<compile_context>
chip_gen: v5e
topology: v5e:2x2
jax: 0.10.0
libtpu: 0.0.40
codegen_flags: <defaults>
</compile_context>

<pallas_src>
import jax
import jax.numpy as jnp
import numpy as np
from jax import lax
from jax.experimental import pallas as pl
from jax.experimental.pallas import tpu as pltpu

EPS = 1e-5  # nn.BatchNorm2d default eps


# ----------------------------- Pallas kernels -----------------------------

def conv1_kernel(xt_ref, xm_ref, xb_ref, s1_ref, t1_ref, w1_ref,
                 y1_ref, st2_ref):
    """BN1-apply + ReLU + nearest-2x upsample + 3x3 conv_1 + BN2 partials.

    xt/xm/xb: top-halo / main / bottom-halo row blocks of the RAW low-res
    NHWC input (1 | thl | 1, W, Ci).  The H upsample is a leading-axis
    repeat; the W upsample and the conv's even/odd output columns are folded
    into the weights, so the stored block (th2, W, 2*Co) is bit-identical
    (row-major) to the hi-res NHWC block (th2, 2*W, Co).
    conv_1's bias is intentionally dropped: training-mode BN2 subtracts the
    batch mean right afterwards, which cancels it exactly.
    """
    i = pl.program_id(1)
    last = pl.num_programs(1) - 1
    thl, w_lo, ci = xm_ref.shape[1], xm_ref.shape[2], xm_ref.shape[3]
    th2 = 2 * thl
    co = w1_ref.shape[2]
    npix = th2 * w_lo

    # BN1-apply + ReLU in f32 (matches the f32 batch statistics exactly)
    low = jnp.concatenate([xt_ref[0], xm_ref[0], xb_ref[0]], axis=0)
    a = jnp.maximum(low * s1_ref[...] + t1_ref[...], 0.0)
    # halo rows that are really the conv's zero padding -> zero them
    ridx = lax.broadcasted_iota(jnp.int32, (thl + 2, 1, 1), 0)
    keep = ((ridx != 0) | (i != 0)) & ((ridx != thl + 1) | (i != last))
    a = jnp.where(keep, a, 0.0).astype(jnp.bfloat16)

    # nearest-2x along H (main rows only; each halo contributes one row)
    u = jnp.concatenate(
        [a[:1], jnp.repeat(a[1:thl + 1], 2, axis=0), a[thl + 1:]], axis=0)
    # zero-pad the low-res W axis by one column on each side
    zc = jnp.zeros((th2 + 2, 1, ci), jnp.bfloat16)
    u = jnp.concatenate([zc, u, zc], axis=1)            # (th2+2, w_lo+2, ci)

    # per-tap bf16 MXU matmuls, f32 accumulation; acc0 / acc1 hold the even /
    # odd hi-res output columns (the W upsample is folded into the weights)
    acc0 = jnp.zeros((npix, co), jnp.float32)
    acc1 = jnp.zeros((npix, co), jnp.float32)
    for dy in range(3):
        centre = u[dy:dy + th2, 1:1 + w_lo, :].reshape(npix, ci)
        left = u[dy:dy + th2, 0:w_lo, :].reshape(npix, ci)
        right = u[dy:dy + th2, 2:2 + w_lo, :].reshape(npix, ci)
        acc0 = acc0 + jnp.dot(centre, w1_ref[4 * dy + 0],
                              preferred_element_type=jnp.float32)
        acc1 = acc1 + jnp.dot(centre, w1_ref[4 * dy + 1],
                              preferred_element_type=jnp.float32)
        acc0 = acc0 + jnp.dot(left, w1_ref[4 * dy + 2],
                              preferred_element_type=jnp.float32)
        acc1 = acc1 + jnp.dot(right, w1_ref[4 * dy + 3],
                              preferred_element_type=jnp.float32)

    y = jnp.concatenate([acc0, acc1], axis=-1)          # (npix, 2*co)
    y1_ref[0] = y.reshape(th2, w_lo, 2 * co).astype(y1_ref.dtype)

    # mean-centred partial BN2 statistics (safer than raw sum of squares)
    s = (jnp.sum(acc0, axis=0, keepdims=True)
         + jnp.sum(acc1, axis=0, keepdims=True))        # (1, co)
    mu = s * (1.0 / (2 * npix))
    d0 = acc0 - mu
    d1 = acc1 - mu
    m2 = jnp.sum(d0 * d0 + d1 * d1, axis=0, keepdims=True)
    st2_ref[0, 0] = jnp.concatenate([s, m2], axis=0)    # (2, co)


def conv2_skip_kernel(yt_ref, ym_ref, yb_ref, x_ref, s2_ref, t2_ref,
                      wc_ref, wlr_ref, b2_ref, w0_ref, b0_ref, o_ref):
    """BN2-apply + ReLU + 3x3 conv_2 (+bias) + 1x1 skip conv + residual add.

    y1 blocks arrive in the folded (W, parity*Co) layout produced by
    conv1_kernel; the conv over the hi-res W axis is expressed with
    (2Co -> 2Co) centre-column taps plus parity-sliced left/right taps, so no
    in-kernel W interleave is ever needed and the MXU MAC count stays at the
    un-folded optimum.
    """
    j = pl.program_id(1)
    last = pl.num_programs(1) - 1
    th2, w_lo, c2 = ym_ref.shape[1], ym_ref.shape[2], ym_ref.shape[3]
    co = c2 // 2
    thl, ci = x_ref.shape[1], x_ref.shape[3]
    npix = th2 * w_lo

    y1 = jnp.concatenate([yt_ref[0], ym_ref[0], yb_ref[0]],
                         axis=0).astype(jnp.float32)    # (th2+2, w_lo, 2co)
    a = jnp.maximum(y1 * s2_ref[...] + t2_ref[...], 0.0)
    ridx = lax.broadcasted_iota(jnp.int32, (th2 + 2, 1, 1), 0)
    keep = ((ridx != 0) | (j != 0)) & ((ridx != th2 + 1) | (j != last))
    a = jnp.where(keep, a, 0.0).astype(jnp.bfloat16)
    zc = jnp.zeros((th2 + 2, 1, c2), jnp.bfloat16)
    a = jnp.concatenate([zc, a, zc], axis=1)            # (th2+2, w_lo+2, 2co)

    accc = jnp.zeros((npix, c2), jnp.float32)           # centre-column taps
    acc0 = jnp.zeros((npix, co), jnp.float32)           # even outputs, left tap
    acc1 = jnp.zeros((npix, co), jnp.float32)           # odd outputs, right tap
    for dy in range(3):
        centre = a[dy:dy + th2, 1:1 + w_lo, :].reshape(npix, c2)
        accc = accc + jnp.dot(centre, wc_ref[dy],
                              preferred_element_type=jnp.float32)
        left = a[dy:dy + th2, 0:w_lo, co:].reshape(npix, co)
        acc0 = acc0 + jnp.dot(left, wlr_ref[2 * dy],
                              preferred_element_type=jnp.float32)
        right = a[dy:dy + th2, 2:2 + w_lo, :co].reshape(npix, co)
        acc1 = acc1 + jnp.dot(right, wlr_ref[2 * dy + 1],
                              preferred_element_type=jnp.float32)
    y = accc + jnp.concatenate([acc0, acc1], axis=-1) + b2_ref[...]

    # skip branch: 1x1 conv on the raw low-res input; the W duplication is
    # folded into w0 (output width 2*co), the H duplication is a leading-axis
    # repeat of the small result.
    xs = x_ref[0].reshape(thl * w_lo, ci).astype(jnp.bfloat16)
    s = jnp.dot(xs, w0_ref[...], preferred_element_type=jnp.float32) + b0_ref[...]
    s = jnp.repeat(s.reshape(thl, w_lo, c2), 2, axis=0)  # (th2, w_lo, 2co)

    o_ref[0] = (y.reshape(th2, w_lo, c2) + s).astype(o_ref.dtype)


# ------------------------------- glue (JAX) -------------------------------

def spectral_normalize(w, u):
    # Mirrors torch.nn.utils.spectral_norm: one power iteration on W reshaped
    # to (C_out, -1), then W / sigma. (Parameter preprocessing, not hot path.)
    w2d = w.reshape(w.shape[0], -1)
    v = w2d.T @ u
    v = v / (jnp.linalg.norm(v) + 1e-12)
    u2 = w2d @ v
    u2 = u2 / (jnp.linalg.norm(u2) + 1e-12)
    sigma = jnp.dot(u2, w2d @ v)
    return w / sigma


def _fold_conv1_weights(w):
    """(Co, Ci, 3, 3) -> (12, Ci, Co): per dy, [centre->even, centre->odd,
    left->even, right->odd] taps over low-res columns, with the nearest-2x W
    upsample folded in."""
    w3 = jnp.transpose(w, (2, 3, 1, 0))                 # (3, 3, Ci, Co)
    slabs = []
    for dy in range(3):
        slabs += [w3[dy, 1] + w3[dy, 2],                # centre -> even col
                  w3[dy, 0] + w3[dy, 1],                # centre -> odd  col
                  w3[dy, 0],                            # left   -> even col
                  w3[dy, 2]]                            # right  -> odd  col
    return jnp.stack(slabs, axis=0)


def _fold_conv2_weights(w):
    """(Co, Co, 3, 3) -> centre taps (3, 2Co, 2Co) and left/right taps
    (6, Co, Co) for the folded (column, parity) layout."""
    w3 = jnp.transpose(w, (2, 3, 1, 0))                 # (3, 3, Cin, Cout)
    wc, wlr = [], []
    for dy in range(3):
        top = jnp.concatenate([w3[dy, 1], w3[dy, 0]], axis=1)   # in parity 0
        bot = jnp.concatenate([w3[dy, 2], w3[dy, 1]], axis=1)   # in parity 1
        wc.append(jnp.concatenate([top, bot], axis=0))          # (2Co, 2Co)
        wlr += [w3[dy, 0], w3[dy, 2]]                           # left, right
    return jnp.stack(wc, axis=0), jnp.stack(wlr, axis=0)


def _pass_vmem_bytes(thl, W, Ci, Co):
    """Rough per-grid-step VMEM estimate (max of the two conv passes)."""
    th2, c2 = 2 * thl, 2 * Co
    p1 = (2 * (thl + 2) * W * Ci * 4        # f32 input tiles (double buffered)
          + 2 * th2 * W * c2 * 2            # bf16 y1 tile (double buffered)
          + (th2 + 2) * (W + 2) * Ci * 2    # padded upsampled bf16 tile
          + th2 * W * Ci * 2                # one shifted tap slice
          + 2 * th2 * W * Co * 4            # f32 accumulators
          + 12 * Ci * Co * 2)               # resident folded weights
    p2 = (2 * (th2 + 2) * W * c2 * 2        # bf16 y1 input (double buffered)
          + 2 * thl * W * Ci * 4            # f32 skip input (double buffered)
          + 2 * th2 * W * c2 * 2            # bf16 output tile (double buffered)
          + (th2 + 2) * (W + 2) * c2 * 2    # padded bf16 tile
          + th2 * W * c2 * 2                # one tap slice
          + 3 * th2 * W * c2 * 4            # f32 accumulators + skip
          + (3 * c2 * c2 + 6 * Co * Co + Ci * c2) * 2)
    return max(p1, p2)


def _pick_thl(H, W, Ci, Co, budget_bytes=12 * 1024 * 1024):
    """Largest power-of-two row block (low-res rows per grid step) that
    divides H, keeps at least two row blocks (megacore balance / halo path)
    and fits under the default scoped VMEM of every TPU generation."""
    best, thl = 1, 1
    cap = max(H // 2, 1)
    while thl <= cap:
        if H % thl == 0 and _pass_vmem_bytes(thl, W, Ci, Co) <= budget_bytes:
            best = thl
        thl *= 2
    return best


def gen_block_forward(x_nchw, params, nchw_output=False):
    N, Ci, H, W = x_nchw.shape
    Co = params["w1"].shape[0]
    H2, W2 = 2 * H, 2 * W
    C2 = 2 * Co

    x = jnp.transpose(x_nchw, (0, 2, 3, 1)).astype(jnp.float32)   # NHWC

    # spectral-normalised conv weights, folded + bf16 for the MXU
    w1 = spectral_normalize(params["w1"], params["u1"])
    w2 = spectral_normalize(params["w2"], params["u2"])
    w0 = spectral_normalize(params["w0"], params["u0"])
    w1f = _fold_conv1_weights(w1).astype(jnp.bfloat16)             # (12, Ci, Co)
    w2c, w2lr = _fold_conv2_weights(w2)
    w2c = w2c.astype(jnp.bfloat16)                                 # (3, 2Co, 2Co)
    w2lr = w2lr.astype(jnp.bfloat16)                               # (6, Co, Co)
    w0m = jnp.transpose(w0[:, :, 0, 0], (1, 0))                    # (Ci, Co)
    w0f = jnp.concatenate([w0m, w0m], axis=1).astype(jnp.bfloat16)  # (Ci, 2Co)

    # ---- BN1 batch statistics: plain (stable two-pass) XLA reduction ----
    mean1 = jnp.mean(x, axis=(0, 1, 2))
    var1 = jnp.mean(jnp.square(x - mean1), axis=(0, 1, 2))
    inv1 = lax.rsqrt(var1 + EPS)
    scale1 = (params["g1"] * inv1).reshape(1, Ci)
    shift1 = (params["b1"] - mean1 * params["g1"] * inv1).reshape(1, Ci)

    thl = _pick_thl(H, W, Ci, Co)
    th2 = 2 * thl
    n_i = H // thl
    parallel2 = pltpu.CompilerParams(
        dimension_semantics=("parallel", "parallel"))

    # ---- pass 1: BN1-apply + ReLU + up + conv_1 + BN2 partial stats ----
    top_map = lambda n, i: (n, jnp.maximum(i * thl - 1, 0), 0, 0)
    mid_map = lambda n, i: (n, i, 0, 0)
    bot_map = lambda n, i: (n, jnp.minimum((i + 1) * thl, H - 1), 0, 0)
    y1, stats2 = pl.pallas_call(
        conv1_kernel,
        out_shape=(jax.ShapeDtypeStruct((N, H2, W, C2), jnp.bfloat16),
                   jax.ShapeDtypeStruct((N, n_i, 2, Co), jnp.float32)),
        grid=(N, n_i),
        in_specs=[
            pl.BlockSpec((1, 1, W, Ci), top_map),
            pl.BlockSpec((1, thl, W, Ci), mid_map),
            pl.BlockSpec((1, 1, W, Ci), bot_map),
            pl.BlockSpec((1, Ci), lambda n, i: (0, 0)),
            pl.BlockSpec((1, Ci), lambda n, i: (0, 0)),
            pl.BlockSpec((12, Ci, Co), lambda n, i: (0, 0, 0)),    # resident
        ],
        out_specs=(
            pl.BlockSpec((1, th2, W, C2), lambda n, i: (n, i, 0, 0)),
            pl.BlockSpec((1, 1, 2, Co), lambda n, i: (n, i, 0, 0)),
        ),
        compiler_params=parallel2,
    )(x, x, x, scale1, shift1, w1f)

    # ---- BN2 batch statistics: parallel-variance merge of tile partials ----
    cnt = float(th2 * W2)                 # hi-res pixels per tile
    P2 = float(N * H2 * W2)
    s_t = stats2[:, :, 0, :].reshape(-1, Co)
    m2_t = stats2[:, :, 1, :].reshape(-1, Co)
    mean2 = jnp.sum(s_t, axis=0) / P2
    var2 = (jnp.sum(m2_t, axis=0)
            + cnt * jnp.sum(jnp.square(s_t / cnt - mean2), axis=0)) / P2
    inv2 = lax.rsqrt(var2 + EPS)
    scale2 = params["g2"] * inv2
    shift2 = params["b2"] - mean2 * params["g2"] * inv2
    scale2f = jnp.concatenate([scale2, scale2]).reshape(1, C2)
    shift2f = jnp.concatenate([shift2, shift2]).reshape(1, C2)
    bias2f = jnp.concatenate([params["bias2"], params["bias2"]]
                             ).reshape(1, C2).astype(jnp.float32)
    bias0f = jnp.concatenate([params["bias0"], params["bias0"]]
                             ).reshape(1, C2).astype(jnp.float32)

    # ---- pass 2: BN2-apply + ReLU + conv_2 + 1x1 skip + residual add ----
    ytop_map = lambda n, j: (n, jnp.maximum(j * th2 - 1, 0), 0, 0)
    ymid_map = lambda n, j: (n, j, 0, 0)
    ybot_map = lambda n, j: (n, jnp.minimum((j + 1) * th2, H2 - 1), 0, 0)
    out = pl.pallas_call(
        conv2_skip_kernel,
        out_shape=jax.ShapeDtypeStruct((N, H2, W, C2), jnp.bfloat16),
        grid=(N, n_i),
        in_specs=[
            pl.BlockSpec((1, 1, W, C2), ytop_map),
            pl.BlockSpec((1, th2, W, C2), ymid_map),
            pl.BlockSpec((1, 1, W, C2), ybot_map),
            pl.BlockSpec((1, thl, W, Ci), lambda n, j: (n, j, 0, 0)),  # skip in
            pl.BlockSpec((1, C2), lambda n, j: (0, 0)),
            pl.BlockSpec((1, C2), lambda n, j: (0, 0)),
            pl.BlockSpec((3, C2, C2), lambda n, j: (0, 0, 0)),
            pl.BlockSpec((6, Co, Co), lambda n, j: (0, 0, 0)),
            pl.BlockSpec((1, C2), lambda n, j: (0, 0)),
            pl.BlockSpec((Ci, C2), lambda n, j: (0, 0)),
            pl.BlockSpec((1, C2), lambda n, j: (0, 0)),
        ],
        out_specs=pl.BlockSpec((1, th2, W, C2), lambda n, j: (n, j, 0, 0)),
        compiler_params=parallel2,
    )(y1, y1, y1, x, scale2f, shift2f, w2c, w2lr, bias2f, w0f, bias0f)

    # un-fold the (W, parity*Co) layout -> hi-res NHWC.  Row-major the two are
    # bit-identical, so this reshape is free (metadata only).
    out = out.reshape(N, H2, W2, Co)
    if nchw_output:
        return jnp.transpose(out, (0, 3, 1, 2))
    return out   # NHWC bf16 (channels-last for the next block)


# ------------------------- pure-JAX reference check ------------------------

def reference_forward(x, params):
    def bn_relu(x, g, b):  # NCHW, training-mode (batch) statistics
        mean = jnp.mean(x, axis=(0, 2, 3), keepdims=True)
        var = jnp.mean((x - mean) ** 2, axis=(0, 2, 3), keepdims=True)
        y = (x - mean) / jnp.sqrt(var + EPS) * g.reshape(1, -1, 1, 1) \
            + b.reshape(1, -1, 1, 1)
        return jnp.maximum(y, 0.0)

    def up(x):
        return jnp.repeat(jnp.repeat(x, 2, axis=2), 2, axis=3)

    def conv(x, w, b, pad):
        y = lax.conv_general_dilated(
            x, w, (1, 1), [(pad, pad), (pad, pad)],
            dimension_numbers=("NCHW", "OIHW", "NCHW"),
            precision=lax.Precision.HIGHEST)
        return y + b.reshape(1, -1, 1, 1)

    w1 = spectral_normalize(params["w1"], params["u1"])
    w2 = spectral_normalize(params["w2"], params["u2"])
    w0 = spectral_normalize(params["w0"], params["u0"])

    x0 = x
    h = bn_relu(x, params["g1"], params["b1"])
    h = up(h)
    h = conv(h, w1, params["bias1"], 1)
    h = bn_relu(h, params["g2"], params["b2"])
    h = conv(h, w2, params["bias2"], 1)
    x0 = up(x0)
    x0 = conv(x0, w0, params["bias0"], 0)
    return h + x0


# --------------------------------- params ----------------------------------

def init_params(key, Ci, Co):
    ks = jax.random.split(key, 13)

    def nrm(k, shape, scale=0.1):
        return scale * jax.random.normal(k, shape, dtype=jnp.float32)

    def unit(k, n):
        u = jax.random.normal(k, (n,), dtype=jnp.float32)
        return u / (jnp.linalg.norm(u) + 1e-12)

    return {
        "w1": nrm(ks[0], (Co, Ci, 3, 3)), "bias1": nrm(ks[1], (Co,)), "u1": unit(ks[2], Co),
        "w2": nrm(ks[3], (Co, Co, 3, 3)), "bias2": nrm(ks[4], (Co,)), "u2": unit(ks[5], Co),
        "w0": nrm(ks[6], (Co, Ci, 1, 1)), "bias0": nrm(ks[7], (Co,)), "u0": unit(ks[8], Co),
        "g1": 1.0 + nrm(ks[9], (Ci,)),   "b1": nrm(ks[10], (Ci,)),
        "g2": 1.0 + nrm(ks[11], (Co,)),  "b2": nrm(ks[12], (Co,)),
    }


if __name__ == "__main__":
    key = jax.random.PRNGKey(0)
    k_x, k_p = jax.random.split(key)

    N, Ci, H, W = 2, 4, 16, 16
    Co = 8

    x = jax.random.normal(k_x, (N, Ci, H, W), dtype=jnp.float32)
    params = init_params(k_p, Ci, Co)

    fwd = jax.jit(gen_block_forward)
    out = jax.block_until_ready(fwd(x, params))                    # NHWC bf16
    ref = jax.block_until_ready(reference_forward(x, params))      # NCHW f32
    ref_nhwc = jnp.transpose(ref, (0, 2, 3, 1))

    assert out.shape == (N, 2 * H, 2 * W, Co), out.shape
    # Kernels use bf16 activations / bf16 MXU matmuls (f32 accumulate) and a
    # bf16 output; the reference is pure f32 HIGHEST -> relaxed tolerance.
    np.testing.assert_allclose(np.asarray(out, dtype=np.float32),
                               np.asarray(ref_nhwc),
                               atol=6e-2, rtol=6e-2)
    print("KERNEL_OK")
</pallas_src>

<mosaic_0001>
module attributes {stable_mosaic.version = 11 : i64} {
  func.func @conv1_kernel(%arg0: i32, %arg1: i32, %arg2: memref<1x1x16x4xf32, #tpu.memory_space<vmem>>, %arg3: memref<1x8x16x4xf32, #tpu.memory_space<vmem>>, %arg4: memref<1x1x16x4xf32, #tpu.memory_space<vmem>>, %arg5: memref<1x4xf32, #tpu.memory_space<vmem>>, %arg6: memref<1x4xf32, #tpu.memory_space<vmem>>, %arg7: memref<12x4x8xbf16, #tpu.memory_space<vmem>>, %arg8: memref<1x16x16x16xbf16, #tpu.memory_space<vmem>>, %arg9: memref<1x1x2x8xf32, #tpu.memory_space<vmem>>) attributes {dimension_semantics = [#tpu.dimension_semantics<parallel>, #tpu.dimension_semantics<parallel>], iteration_bounds = array<i64: 2, 2>, scalar_prefetch = 0 : i64, scratch_operands = 0 : i64, tpu.core_type = #tpu.core_type<tc>, window_params = [{transform_indices = @transform_0, window_bounds = array<i64: 1, 1, 16, 4>}, {transform_indices = @transform_1, window_bounds = array<i64: 1, 8, 16, 4>}, {transform_indices = @transform_2, window_bounds = array<i64: 1, 1, 16, 4>}, {pipeline_mode = #tpu.pipeline_mode<synchronous>, transform_indices = @transform_3, window_bounds = array<i64: 1, 4>}, {pipeline_mode = #tpu.pipeline_mode<synchronous>, transform_indices = @transform_4, window_bounds = array<i64: 1, 4>}, {pipeline_mode = #tpu.pipeline_mode<synchronous>, transform_indices = @transform_5, window_bounds = array<i64: 12, 4, 8>}, {transform_indices = @transform_6, window_bounds = array<i64: 1, 16, 16, 16>}, {transform_indices = @transform_7, window_bounds = array<i64: 1, 1, 2, 8>}]} {
    %c0 = arith.constant 0 : index
    %c0_0 = arith.constant 0 : index
    %c0_1 = arith.constant 0 : index
    %c0_2 = arith.constant 0 : index
    %0 = vector.load %arg2[%c0, %c0_0, %c0_1, %c0_2] : memref<1x1x16x4xf32, #tpu.memory_space<vmem>>, vector<1x1x16x4xf32>
    %1 = vector.shape_cast %0 : vector<1x1x16x4xf32> to vector<1x16x4xf32>
    %c0_3 = arith.constant 0 : index
    %c0_4 = arith.constant 0 : index
    %c0_5 = arith.constant 0 : index
    %c0_6 = arith.constant 0 : index
    %2 = vector.load %arg3[%c0_3, %c0_4, %c0_5, %c0_6] : memref<1x8x16x4xf32, #tpu.memory_space<vmem>>, vector<1x8x16x4xf32>
    %3 = vector.shape_cast %2 : vector<1x8x16x4xf32> to vector<8x16x4xf32>
    %c0_7 = arith.constant 0 : index
    %c0_8 = arith.constant 0 : index
    %c0_9 = arith.constant 0 : index
    %c0_10 = arith.constant 0 : index
    %4 = vector.load %arg4[%c0_7, %c0_8, %c0_9, %c0_10] : memref<1x1x16x4xf32, #tpu.memory_space<vmem>>, vector<1x1x16x4xf32>
    %5 = vector.shape_cast %4 : vector<1x1x16x4xf32> to vector<1x16x4xf32>
    %6 = tpu.concatenate %1, %3, %5 in 0 : vector<1x16x4xf32>, vector<8x16x4xf32>, vector<1x16x4xf32> -> vector<10x16x4xf32>
    %c0_11 = arith.constant 0 : index
    %c0_12 = arith.constant 0 : index
    %7 = vector.load %arg5[%c0_11, %c0_12] : memref<1x4xf32, #tpu.memory_space<vmem>>, vector<1x4xf32>
    %8 = vector.shape_cast %7 : vector<1x4xf32> to vector<1x1x4xf32>
    %9 = vector.broadcast %8 : vector<1x1x4xf32> to vector<10x16x4xf32>
    %10 = arith.mulf %6, %9 : vector<10x16x4xf32>
    %c0_13 = arith.constant 0 : index
    %c0_14 = arith.constant 0 : index
    %11 = vector.load %arg6[%c0_13, %c0_14] : memref<1x4xf32, #tpu.memory_space<vmem>>, vector<1x4xf32>
    %12 = vector.shape_cast %11 : vector<1x4xf32> to vector<1x1x4xf32>
    %13 = vector.broadcast %12 : vector<1x1x4xf32> to vector<10x16x4xf32>
    %14 = arith.addf %10, %13 : vector<10x16x4xf32>
    %cst = arith.constant 0.000000e+00 : f32
    %15 = vector.broadcast %cst : f32 to vector<10x16x4xf32>
    %16 = arith.maximumf %14, %15 : vector<10x16x4xf32>
    %17 = tpu.iota {dimensions = array<i32: 0>} : vector<10x1x1xi32>
    %c0_i32 = arith.constant 0 : i32
    %18 = vector.broadcast %c0_i32 : i32 to vector<10x1x1xi32>
    %19 = arith.cmpi ne, %17, %18 : vector<10x1x1xi32>
    %c0_i32_15 = arith.constant 0 : i32
    %20 = arith.cmpi ne, %arg1, %c0_i32_15 : i32
    %21 = vector.broadcast %20 : i1 to vector<10x1x1xi1>
    %22 = arith.ori %19, %21 : vector<10x1x1xi1>
    %c9_i32 = arith.constant 9 : i32
    %23 = vector.broadcast %c9_i32 : i32 to vector<10x1x1xi32>
    %24 = arith.cmpi ne, %17, %23 : vector<10x1x1xi32>
    %c1_i32 = arith.constant 1 : i32
    %25 = arith.cmpi ne, %arg1, %c1_i32 : i32
    %26 = vector.broadcast %25 : i1 to vector<10x1x1xi1>
    %27 = arith.ori %24, %26 : vector<10x1x1xi1>
    %28 = arith.andi %22, %27 : vector<10x1x1xi1>
    %cst_16 = arith.constant 0.000000e+00 : f32
    %29 = vector.shape_cast %28 : vector<10x1x1xi1> to vector<10x1x1xi1>
    %30 = vector.broadcast %29 : vector<10x1x1xi1> to vector<10x16x4xi1>
    %31 = vector.broadcast %cst_16 : f32 to vector<10x16x4xf32>
    %32 = arith.select %30, %16, %31 : vector<10x16x4xi1>, vector<10x16x4xf32>
    %33 = arith.truncf %32 : vector<10x16x4xf32> to vector<10x16x4xbf16>
    %34 = vector.extract_strided_slice %33 {offsets = [0, 0, 0], sizes = [1, 16, 4], strides = [1, 1, 1]} : vector<10x16x4xbf16> to vector<1x16x4xbf16>
    %35 = vector.extract_strided_slice %33 {offsets = [1, 0, 0], sizes = [8, 16, 4], strides = [1, 1, 1]} : vector<10x16x4xbf16> to vector<8x16x4xbf16>
    %36 = vector.shape_cast %35 : vector<8x16x4xbf16> to vector<8x1x16x4xbf16>
    %37 = vector.broadcast %36 : vector<8x1x16x4xbf16> to vector<8x2x16x4xbf16>
    %38 = vector.shape_cast %37 : vector<8x2x16x4xbf16> to vector<16x16x4xbf16>
    %39 = vector.extract_strided_slice %33 {offsets = [9, 0, 0], sizes = [1, 16, 4], strides = [1, 1, 1]} : vector<10x16x4xbf16> to vector<1x16x4xbf16>
    %40 = tpu.concatenate %34, %38, %39 in 0 : vector<1x16x4xbf16>, vector<16x16x4xbf16>, vector<1x16x4xbf16> -> vector<18x16x4xbf16>
    %cst_17 = arith.constant 0.000000e+00 : bf16
    %41 = vector.broadcast %cst_17 : bf16 to vector<18x1x4xbf16>
    %42 = tpu.concatenate %41, %40, %41 in 1 : vector<18x1x4xbf16>, vector<18x16x4xbf16>, vector<18x1x4xbf16> -> vector<18x18x4xbf16>
    %cst_18 = arith.constant 0.000000e+00 : f32
    %43 = vector.broadcast %cst_18 : f32 to vector<256x8xf32>
    %cst_19 = arith.constant 0.000000e+00 : f32
    %44 = vector.broadcast %cst_19 : f32 to vector<256x8xf32>
    %45 = vector.extract_strided_slice %42 {offsets = [0, 1, 0], sizes = [16, 16, 4], strides = [1, 1, 1]} : vector<18x18x4xbf16> to vector<16x16x4xbf16>
    %46 = vector.shape_cast %45 : vector<16x16x4xbf16> to vector<256x4xbf16>
    %47 = vector.extract_strided_slice %42 {offsets = [0, 0, 0], sizes = [16, 16, 4], strides = [1, 1, 1]} : vector<18x18x4xbf16> to vector<16x16x4xbf16>
    %48 = vector.shape_cast %47 : vector<16x16x4xbf16> to vector<256x4xbf16>
    %49 = vector.extract_strided_slice %42 {offsets = [0, 2, 0], sizes = [16, 16, 4], strides = [1, 1, 1]} : vector<18x18x4xbf16> to vector<16x16x4xbf16>
    %50 = vector.shape_cast %49 : vector<16x16x4xbf16> to vector<256x4xbf16>
    %c0_20 = arith.constant 0 : index
    %c0_21 = arith.constant 0 : index
    %c0_22 = arith.constant 0 : index
    %51 = vector.load %arg7[%c0_20, %c0_21, %c0_22] : memref<12x4x8xbf16, #tpu.memory_space<vmem>>, vector<1x4x8xbf16>
    %52 = vector.shape_cast %51 : vector<1x4x8xbf16> to vector<4x8xbf16>
    %cst_23 = arith.constant dense<0.000000e+00> : vector<256x8xf32>
    %53 = tpu.matmul %46, %52, %cst_23 {dimension_numbers = #tpu.dot_dimension_numbers<[1], [0], [0], [1], [0, 0, 1, 1], [], []>} : vector<256x4xbf16>, vector<4x8xbf16>, vector<256x8xf32> -> vector<256x8xf32>
    %54 = arith.addf %43, %53 : vector<256x8xf32>
    %c1 = arith.constant 1 : index
    %c0_24 = arith.constant 0 : index
    %c0_25 = arith.constant 0 : index
    %55 = vector.load %arg7[%c1, %c0_24, %c0_25] : memref<12x4x8xbf16, #tpu.memory_space<vmem>>, vector<1x4x8xbf16>
    %56 = vector.shape_cast %55 : vector<1x4x8xbf16> to vector<4x8xbf16>
    %cst_26 = arith.constant dense<0.000000e+00> : vector<256x8xf32>
    %57 = tpu.matmul %46, %56, %cst_26 {dimension_numbers = #tpu.dot_dimension_numbers<[1], [0], [0], [1], [0, 0, 1, 1], [], []>} : vector<256x4xbf16>, vector<4x8xbf16>, vector<256x8xf32> -> vector<256x8xf32>
    %58 = arith.addf %44, %57 : vector<256x8xf32>
    %c2 = arith.constant 2 : index
    %c0_27 = arith.constant 0 : index
    %c0_28 = arith.constant 0 : index
    %59 = vector.load %arg7[%c2, %c0_27, %c0_28] : memref<12x4x8xbf16, #tpu.memory_space<vmem>>, vector<1x4x8xbf16>
    %60 = vector.shape_cast %59 : vector<1x4x8xbf16> to vector<4x8xbf16>
    %cst_29 = arith.constant dense<0.000000e+00> : vector<256x8xf32>
    %61 = tpu.matmul %48, %60, %cst_29 {dimension_numbers = #tpu.dot_dimension_numbers<[1], [0], [0], [1], [0, 0, 1, 1], [], []>} : vector<256x4xbf16>, vector<4x8xbf16>, vector<256x8xf32> -> vector<256x8xf32>
    %62 = arith.addf %54, %61 : vector<256x8xf32>
    %c3 = arith.constant 3 : index
    %c0_30 = arith.constant 0 : index
    %c0_31 = arith.constant 0 : index
    %63 = vector.load %arg7[%c3, %c0_30, %c0_31] : memref<12x4x8xbf16, #tpu.memory_space<vmem>>, vector<1x4x8xbf16>
    %64 = vector.shape_cast %63 : vector<1x4x8xbf16> to vector<4x8xbf16>
    %cst_32 = arith.constant dense<0.000000e+00> : vector<256x8xf32>
    %65 = tpu.matmul %50, %64, %cst_32 {dimension_numbers = #tpu.dot_dimension_numbers<[1], [0], [0], [1], [0, 0, 1, 1], [], []>} : vector<256x4xbf16>, vector<4x8xbf16>, vector<256x8xf32> -> vector<256x8xf32>
    %66 = arith.addf %58, %65 : vector<256x8xf32>
    %67 = vector.extract_strided_slice %42 {offsets = [1, 1, 0], sizes = [16, 16, 4], strides = [1, 1, 1]} : vector<18x18x4xbf16> to vector<16x16x4xbf16>
    %68 = vector.shape_cast %67 : vector<16x16x4xbf16> to vector<256x4xbf16>
    %69 = vector.extract_strided_slice %42 {offsets = [1, 0, 0], sizes = [16, 16, 4], strides = [1, 1, 1]} : vector<18x18x4xbf16> to vector<16x16x4xbf16>
    %70 = vector.shape_cast %69 : vector<16x16x4xbf16> to vector<256x4xbf16>
    %71 = vector.extract_strided_slice %42 {offsets = [1, 2, 0], sizes = [16, 16, 4], strides = [1, 1, 1]} : vector<18x18x4xbf16> to vector<16x16x4xbf16>
    %72 = vector.shape_cast %71 : vector<16x16x4xbf16> to vector<256x4xbf16>
    %c4 = arith.constant 4 : index
    %c0_33 = arith.constant 0 : index
    %c0_34 = arith.constant 0 : index
    %73 = vector.load %arg7[%c4, %c0_33, %c0_34] : memref<12x4x8xbf16, #tpu.memory_space<vmem>>, vector<1x4x8xbf16>
    %74 = vector.shape_cast %73 : vector<1x4x8xbf16> to vector<4x8xbf16>
    %cst_35 = arith.constant dense<0.000000e+00> : vector<256x8xf32>
    %75 = tpu.matmul %68, %74, %cst_35 {dimension_numbers = #tpu.dot_dimension_numbers<[1], [0], [0], [1], [0, 0, 1, 1], [], []>} : vector<256x4xbf16>, vector<4x8xbf16>, vector<256x8xf32> -> vector<256x8xf32>
    %76 = arith.addf %62, %75 : vector<256x8xf32>
    %c5 = arith.constant 5 : index
    %c0_36 = arith.constant 0 : index
    %c0_37 = arith.constant 0 : index
    %77 = vector.load %arg7[%c5, %c0_36, %c0_37] : memref<12x4x8xbf16, #tpu.memory_space<vmem>>, vector<1x4x8xbf16>
    %78 = vector.shape_cast %77 : vector<1x4x8xbf16> to vector<4x8xbf16>
    %cst_38 = arith.constant dense<0.000000e+00> : vector<256x8xf32>
    %79 = tpu.matmul %68, %78, %cst_38 {dimension_numbers = #tpu.dot_dimension_numbers<[1], [0], [0], [1], [0, 0, 1, 1], [], []>} : vector<256x4xbf16>, vector<4x8xbf16>, vector<256x8xf32> -> vector<256x8xf32>
    %80 = arith.addf %66, %79 : vector<256x8xf32>
    %c6 = arith.constant 6 : index
    %c0_39 = arith.constant 0 : index
    %c0_40 = arith.constant 0 : index
    %81 = vector.load %arg7[%c6, %c0_39, %c0_40] : memref<12x4x8xbf16, #tpu.memory_space<vmem>>, vector<1x4x8xbf16>
    %82 = vector.shape_cast %81 : vector<1x4x8xbf16> to vector<4x8xbf16>
    %cst_41 = arith.constant dense<0.000000e+00> : vector<256x8xf32>
    %83 = tpu.matmul %70, %82, %cst_41 {dimension_numbers = #tpu.dot_dimension_numbers<[1], [0], [0], [1], [0, 0, 1, 1], [], []>} : vector<256x4xbf16>, vector<4x8xbf16>, vector<256x8xf32> -> vector<256x8xf32>
    %84 = arith.addf %76, %83 : vector<256x8xf32>
    %c7 = arith.constant 7 : index
    %c0_42 = arith.constant 0 : index
    %c0_43 = arith.constant 0 : index
    %85 = vector.load %arg7[%c7, %c0_42, %c0_43] : memref<12x4x8xbf16, #tpu.memory_space<vmem>>, vector<1x4x8xbf16>
    %86 = vector.shape_cast %85 : vector<1x4x8xbf16> to vector<4x8xbf16>
    %cst_44 = arith.constant dense<0.000000e+00> : vector<256x8xf32>
    %87 = tpu.matmul %72, %86, %cst_44 {dimension_numbers = #tpu.dot_dimension_numbers<[1], [0], [0], [1], [0, 0, 1, 1], [], []>} : vector<256x4xbf16>, vector<4x8xbf16>, vector<256x8xf32> -> vector<256x8xf32>
    %88 = arith.addf %80, %87 : vector<256x8xf32>
    %89 = vector.extract_strided_slice %42 {offsets = [2, 1, 0], sizes = [16, 16, 4], strides = [1, 1, 1]} : vector<18x18x4xbf16> to vector<16x16x4xbf16>
    %90 = vector.shape_cast %89 : vector<16x16x4xbf16> to vector<256x4xbf16>
    %91 = vector.extract_strided_slice %42 {offsets = [2, 0, 0], sizes = [16, 16, 4], strides = [1, 1, 1]} : vector<18x18x4xbf16> to vector<16x16x4xbf16>
    %92 = vector.shape_cast %91 : vector<16x16x4xbf16> to vector<256x4xbf16>
    %93 = vector.extract_strided_slice %42 {offsets = [2, 2, 0], sizes = [16, 16, 4], strides = [1, 1, 1]} : vector<18x18x4xbf16> to vector<16x16x4xbf16>
    %94 = vector.shape_cast %93 : vector<16x16x4xbf16> to vector<256x4xbf16>
    %c8 = arith.constant 8 : index
    %c0_45 = arith.constant 0 : index
    %c0_46 = arith.constant 0 : index
    %95 = vector.load %arg7[%c8, %c0_45, %c0_46] : memref<12x4x8xbf16, #tpu.memory_space<vmem>>, vector<1x4x8xbf16>
    %96 = vector.shape_cast %95 : vector<1x4x8xbf16> to vector<4x8xbf16>
    %cst_47 = arith.constant dense<0.000000e+00> : vector<256x8xf32>
    %97 = tpu.matmul %90, %96, %cst_47 {dimension_numbers = #tpu.dot_dimension_numbers<[1], [0], [0], [1], [0, 0, 1, 1], [], []>} : vector<256x4xbf16>, vector<4x8xbf16>, vector<256x8xf32> -> vector<256x8xf32>
    %98 = arith.addf %84, %97 : vector<256x8xf32>
    %c9 = arith.constant 9 : index
    %c0_48 = arith.constant 0 : index
    %c0_49 = arith.constant 0 : index
    %99 = vector.load %arg7[%c9, %c0_48, %c0_49] : memref<12x4x8xbf16, #tpu.memory_space<vmem>>, vector<1x4x8xbf16>
    %100 = vector.shape_cast %99 : vector<1x4x8xbf16> to vector<4x8xbf16>
    %cst_50 = arith.constant dense<0.000000e+00> : vector<256x8xf32>
    %101 = tpu.matmul %90, %100, %cst_50 {dimension_numbers = #tpu.dot_dimension_numbers<[1], [0], [0], [1], [0, 0, 1, 1], [], []>} : vector<256x4xbf16>, vector<4x8xbf16>, vector<256x8xf32> -> vector<256x8xf32>
    %102 = arith.addf %88, %101 : vector<256x8xf32>
    %c10 = arith.constant 10 : index
    %c0_51 = arith.constant 0 : index
    %c0_52 = arith.constant 0 : index
    %103 = vector.load %arg7[%c10, %c0_51, %c0_52] : memref<12x4x8xbf16, #tpu.memory_space<vmem>>, vector<1x4x8xbf16>
    %104 = vector.shape_cast %103 : vector<1x4x8xbf16> to vector<4x8xbf16>
    %cst_53 = arith.constant dense<0.000000e+00> : vector<256x8xf32>
    %105 = tpu.matmul %92, %104, %cst_53 {dimension_numbers = #tpu.dot_dimension_numbers<[1], [0], [0], [1], [0, 0, 1, 1], [], []>} : vector<256x4xbf16>, vector<4x8xbf16>, vector<256x8xf32> -> vector<256x8xf32>
    %106 = arith.addf %98, %105 : vector<256x8xf32>
    %c11 = arith.constant 11 : index
    %c0_54 = arith.constant 0 : index
    %c0_55 = arith.constant 0 : index
    %107 = vector.load %arg7[%c11, %c0_54, %c0_55] : memref<12x4x8xbf16, #tpu.memory_space<vmem>>, vector<1x4x8xbf16>
    %108 = vector.shape_cast %107 : vector<1x4x8xbf16> to vector<4x8xbf16>
    %cst_56 = arith.constant dense<0.000000e+00> : vector<256x8xf32>
    %109 = tpu.matmul %94, %108, %cst_56 {dimension_numbers = #tpu.dot_dimension_numbers<[1], [0], [0], [1], [0, 0, 1, 1], [], []>} : vector<256x4xbf16>, vector<4x8xbf16>, vector<256x8xf32> -> vector<256x8xf32>
    %110 = arith.addf %102, %109 : vector<256x8xf32>
    %111 = tpu.concatenate %106, %110 in 1 : vector<256x8xf32>, vector<256x8xf32> -> vector<256x16xf32>
    %112 = vector.shape_cast %111 : vector<256x16xf32> to vector<16x16x16xf32>
    %113 = arith.truncf %112 : vector<16x16x16xf32> to vector<16x16x16xbf16>
    %c0_57 = arith.constant 0 : index
    %c0_58 = arith.constant 0 : index
    %c0_59 = arith.constant 0 : index
    %c0_60 = arith.constant 0 : index
    %114 = vector.load %arg8[%c0_57, %c0_58, %c0_59, %c0_60] : memref<1x16x16x16xbf16, #tpu.memory_space<vmem>>, vector<1x16x16x16xbf16>
    %115 = vector.shape_cast %114 : vector<1x16x16x16xbf16> to vector<16x16x16xbf16>
    %116 = vector.shape_cast %113 : vector<16x16x16xbf16> to vector<1x16x16x16xbf16>
    tpu.vector_store %arg8[%c0_57, %c0_58, %c0_59, %c0_60], %116 {strides = array<i32>} : memref<1x16x16x16xbf16, #tpu.memory_space<vmem>>, vector<1x16x16x16xbf16>,
    %cst_61 = arith.constant dense<0.000000e+00> : vector<8xf32>
    %117 = vector.multi_reduction <add>, %106, %cst_61 [0] : vector<256x8xf32> to vector<8xf32>
    %118 = vector.shape_cast %117 : vector<8xf32> to vector<1x8xf32>
    %cst_62 = arith.constant dense<0.000000e+00> : vector<8xf32>
    %119 = vector.multi_reduction <add>, %110, %cst_62 [0] : vector<256x8xf32> to vector<8xf32>
    %120 = vector.shape_cast %119 : vector<8xf32> to vector<1x8xf32>
    %121 = arith.addf %118, %120 : vector<1x8xf32>
    %cst_63 = arith.constant 0.001953125 : f32
    %122 = vector.broadcast %cst_63 : f32 to vector<1x8xf32>
    %123 = arith.mulf %121, %122 : vector<1x8xf32>
    %124 = vector.broadcast %123 : vector<1x8xf32> to vector<256x8xf32>
    %125 = arith.subf %106, %124 : vector<256x8xf32>
    %126 = vector.broadcast %123 : vector<1x8xf32> to vector<256x8xf32>
    %127 = arith.subf %110, %126 : vector<256x8xf32>
    %128 = arith.mulf %125, %125 : vector<256x8xf32>
    %129 = arith.mulf %127, %127 : vector<256x8xf32>
    %130 = arith.addf %128, %129 : vector<256x8xf32>
    %cst_64 = arith.constant dense<0.000000e+00> : vector<8xf32>
    %131 = vector.multi_reduction <add>, %130, %cst_64 [0] : vector<256x8xf32> to vector<8xf32>
    %132 = vector.shape_cast %131 : vector<8xf32> to vector<1x8xf32>
    %133 = tpu.concatenate %121, %132 in 0 : vector<1x8xf32>, vector<1x8xf32> -> vector<2x8xf32>
    %c0_65 = arith.constant 0 : index
    %c0_66 = arith.constant 0 : index
    %c0_67 = arith.constant 0 : index
    %c0_68 = arith.constant 0 : index
    %134 = vector.load %arg9[%c0_65, %c0_66, %c0_67, %c0_68] : memref<1x1x2x8xf32, #tpu.memory_space<vmem>>, vector<1x1x2x8xf32>
    %135 = vector.shape_cast %134 : vector<1x1x2x8xf32> to vector<2x8xf32>
    %136 = vector.shape_cast %133 : vector<2x8xf32> to vector<1x1x2x8xf32>
    tpu.vector_store %arg9[%c0_65, %c0_66, %c0_67, %c0_68], %136 {strides = array<i32>} : memref<1x1x2x8xf32, #tpu.memory_space<vmem>>, vector<1x1x2x8xf32>,
    return
  }
  func.func @transform_0(%arg0: i32, %arg1: i32) -> (i32, i32, i32, i32) {
    %c8_i32 = arith.constant 8 : i32
    %0 = arith.muli %arg1, %c8_i32 : i32
    %c1_i32 = arith.constant 1 : i32
    %1 = arith.subi %0, %c1_i32 : i32
    %c0_i32 = arith.constant 0 : i32
    %2 = arith.maxsi %1, %c0_i32 : i32
    %c0_i32_0 = arith.constant 0 : i32
    %c0_i32_1 = arith.constant 0 : i32
    %c0_i32_2 = arith.constant 0 : i32
    return %arg0, %2, %c0_i32_0, %c0_i32_1 : i32, i32, i32, i32
  }
  func.func @transform_1(%arg0: i32, %arg1: i32) -> (i32, i32, i32, i32) {
    %c0_i32 = arith.constant 0 : i32
    %c0_i32_0 = arith.constant 0 : i32
    %c0_i32_1 = arith.constant 0 : i32
    return %arg0, %arg1, %c0_i32, %c0_i32_0 : i32, i32, i32, i32
  }
  func.func @transform_2(%arg0: i32, %arg1: i32) -> (i32, i32, i32, i32) {
    %c1_i32 = arith.constant 1 : i32
    %0 = arith.addi %arg1, %c1_i32 : i32
    %c8_i32 = arith.constant 8 : i32
    %1 = arith.muli %0, %c8_i32 : i32
    %c15_i32 = arith.constant 15 : i32
    %2 = arith.minsi %1, %c15_i32 : i32
    %c0_i32 = arith.constant 0 : i32
    %c0_i32_0 = arith.constant 0 : i32
    %c0_i32_1 = arith.constant 0 : i32
    return %arg0, %2, %c0_i32, %c0_i32_0 : i32, i32, i32, i32
  }
  func.func @transform_3(%arg0: i32, %arg1: i32) -> (i32, i32) {
    %c0_i32 = arith.constant 0 : i32
    %c0_i32_0 = arith.constant 0 : i32
    %c0_i32_1 = arith.constant 0 : i32
    return %c0_i32, %c0_i32_0 : i32, i32
  }
  func.func @transform_4(%arg0: i32, %arg1: i32) -> (i32, i32) {
    %c0_i32 = arith.constant 0 : i32
    %c0_i32_0 = arith.constant 0 : i32
    %c0_i32_1 = arith.constant 0 : i32
    return %c0_i32, %c0_i32_0 : i32, i32
  }
  func.func @transform_5(%arg0: i32, %arg1: i32) -> (i32, i32, i32) {
    %c0_i32 = arith.constant 0 : i32
    %c0_i32_0 = arith.constant 0 : i32
    %c0_i32_1 = arith.constant 0 : i32
    %c0_i32_2 = arith.constant 0 : i32
    return %c0_i32, %c0_i32_0, %c0_i32_1 : i32, i32, i32
  }
  func.func @transform_6(%arg0: i32, %arg1: i32) -> (i32, i32, i32, i32) {
    %c0_i32 = arith.constant 0 : i32
    %c0_i32_0 = arith.constant 0 : i32
    %c0_i32_1 = arith.constant 0 : i32
    return %arg0, %arg1, %c0_i32, %c0_i32_0 : i32, i32, i32, i32
  }
  func.func @transform_7(%arg0: i32, %arg1: i32) -> (i32, i32, i32, i32) {
    %c0_i32 = arith.constant 0 : i32
    %c0_i32_0 = arith.constant 0 : i32
    %c0_i32_1 = arith.constant 0 : i32
    return %arg0, %arg1, %c0_i32, %c0_i32_0 : i32, i32, i32, i32
  }
}

module attributes {stable_mosaic.version = 11 : i64} {
  func.func @conv2_skip_kernel(%arg0: i32, %arg1: i32, %arg2: memref<1x1x16x16xbf16, #tpu.memory_space<vmem>>, %arg3: memref<1x16x16x16xbf16, #tpu.memory_space<vmem>>, %arg4: memref<1x1x16x16xbf16, #tpu.memory_space<vmem>>, %arg5: memref<1x8x16x4xf32, #tpu.memory_space<vmem>>, %arg6: memref<1x16xf32, #tpu.memory_space<vmem>>, %arg7: memref<1x16xf32, #tpu.memory_space<vmem>>, %arg8: memref<3x16x16xbf16, #tpu.memory_space<vmem>>, %arg9: memref<6x8x8xbf16, #tpu.memory_space<vmem>>, %arg10: memref<1x16xf32, #tpu.memory_space<vmem>>, %arg11: memref<4x16xbf16, #tpu.memory_space<vmem>>, %arg12: memref<1x16xf32, #tpu.memory_space<vmem>>, %arg13: memref<1x16x16x16xbf16, #tpu.memory_space<vmem>>) attributes {dimension_semantics = [#tpu.dimension_semantics<parallel>, #tpu.dimension_semantics<parallel>], iteration_bounds = array<i64: 2, 2>, scalar_prefetch = 0 : i64, scratch_operands = 0 : i64, tpu.core_type = #tpu.core_type<tc>, window_params = [{transform_indices = @transform_0, window_bounds = array<i64: 1, 1, 16, 16>}, {transform_indices = @transform_1, window_bounds = array<i64: 1, 16, 16, 16>}, {transform_indices = @transform_2, window_bounds = array<i64: 1, 1, 16, 16>}, {transform_indices = @transform_3, window_bounds = array<i64: 1, 8, 16, 4>}, {pipeline_mode = #tpu.pipeline_mode<synchronous>, transform_indices = @transform_4, window_bounds = array<i64: 1, 16>}, {pipeline_mode = #tpu.pipeline_mode<synchronous>, transform_indices = @transform_5, window_bounds = array<i64: 1, 16>}, {pipeline_mode = #tpu.pipeline_mode<synchronous>, transform_indices = @transform_6, window_bounds = array<i64: 3, 16, 16>}, {pipeline_mode = #tpu.pipeline_mode<synchronous>, transform_indices = @transform_7, window_bounds = array<i64: 6, 8, 8>}, {pipeline_mode = #tpu.pipeline_mode<synchronous>, transform_indices = @transform_8, window_bounds = array<i64: 1, 16>}, {pipeline_mode = #tpu.pipeline_mode<synchronous>, transform_indices = @transform_9, window_bounds = array<i64: 4, 16>}, {pipeline_mode = #tpu.pipeline_mode<synchronous>, transform_indices = @transform_10, window_bounds = array<i64: 1, 16>}, {transform_indices = @transform_11, window_bounds = array<i64: 1, 16, 16, 16>}]} {
    %c0 = arith.constant 0 : index
    %c0_0 = arith.constant 0 : index
    %c0_1 = arith.constant 0 : index
    %c0_2 = arith.constant 0 : index
    %0 = vector.load %arg2[%c0, %c0_0, %c0_1, %c0_2] : memref<1x1x16x16xbf16, #tpu.memory_space<vmem>>, vector<1x1x16x16xbf16>
    %1 = vector.shape_cast %0 : vector<1x1x16x16xbf16> to vector<1x16x16xbf16>
    %c0_3 = arith.constant 0 : index
    %c0_4 = arith.constant 0 : index
    %c0_5 = arith.constant 0 : index
    %c0_6 = arith.constant 0 : index
    %2 = vector.load %arg3[%c0_3, %c0_4, %c0_5, %c0_6] : memref<1x16x16x16xbf16, #tpu.memory_space<vmem>>, vector<1x16x16x16xbf16>
    %3 = vector.shape_cast %2 : vector<1x16x16x16xbf16> to vector<16x16x16xbf16>
    %c0_7 = arith.constant 0 : index
    %c0_8 = arith.constant 0 : index
    %c0_9 = arith.constant 0 : index
    %c0_10 = arith.constant 0 : index
    %4 = vector.load %arg4[%c0_7, %c0_8, %c0_9, %c0_10] : memref<1x1x16x16xbf16, #tpu.memory_space<vmem>>, vector<1x1x16x16xbf16>
    %5 = vector.shape_cast %4 : vector<1x1x16x16xbf16> to vector<1x16x16xbf16>
    %6 = tpu.concatenate %1, %3, %5 in 0 : vector<1x16x16xbf16>, vector<16x16x16xbf16>, vector<1x16x16xbf16> -> vector<18x16x16xbf16>
    %7 = arith.extf %6 : vector<18x16x16xbf16> to vector<18x16x16xf32>
    %c0_11 = arith.constant 0 : index
    %c0_12 = arith.constant 0 : index
    %8 = vector.load %arg6[%c0_11, %c0_12] : memref<1x16xf32, #tpu.memory_space<vmem>>, vector<1x16xf32>
    %9 = vector.shape_cast %8 : vector<1x16xf32> to vector<1x1x16xf32>
    %10 = vector.broadcast %9 : vector<1x1x16xf32> to vector<18x16x16xf32>
    %11 = arith.mulf %7, %10 : vector<18x16x16xf32>
    %c0_13 = arith.constant 0 : index
    %c0_14 = arith.constant 0 : index
    %12 = vector.load %arg7[%c0_13, %c0_14] : memref<1x16xf32, #tpu.memory_space<vmem>>, vector<1x16xf32>
    %13 = vector.shape_cast %12 : vector<1x16xf32> to vector<1x1x16xf32>
    %14 = vector.broadcast %13 : vector<1x1x16xf32> to vector<18x16x16xf32>
    %15 = arith.addf %11, %14 : vector<18x16x16xf32>
    %cst = arith.constant 0.000000e+00 : f32
    %16 = vector.broadcast %cst : f32 to vector<18x16x16xf32>
    %17 = arith.maximumf %15, %16 : vector<18x16x16xf32>
    %18 = tpu.iota {dimensions = array<i32: 0>} : vector<18x1x1xi32>
    %c0_i32 = arith.constant 0 : i32
    %19 = vector.broadcast %c0_i32 : i32 to vector<18x1x1xi32>
    %20 = arith.cmpi ne, %18, %19 : vector<18x1x1xi32>
    %c0_i32_15 = arith.constant 0 : i32
    %21 = arith.cmpi ne, %arg1, %c0_i32_15 : i32
    %22 = vector.broadcast %21 : i1 to vector<18x1x1xi1>
    %23 = arith.ori %20, %22 : vector<18x1x1xi1>
    %c17_i32 = arith.constant 17 : i32
    %24 = vector.broadcast %c17_i32 : i32 to vector<18x1x1xi32>
    %25 = arith.cmpi ne, %18, %24 : vector<18x1x1xi32>
    %c1_i32 = arith.constant 1 : i32
    %26 = arith.cmpi ne, %arg1, %c1_i32 : i32
    %27 = vector.broadcast %26 : i1 to vector<18x1x1xi1>
    %28 = arith.ori %25, %27 : vector<18x1x1xi1>
    %29 = arith.andi %23, %28 : vector<18x1x1xi1>
    %cst_16 = arith.constant 0.000000e+00 : f32
    %30 = vector.shape_cast %29 : vector<18x1x1xi1> to vector<18x1x1xi1>
    %31 = vector.broadcast %30 : vector<18x1x1xi1> to vector<18x16x16xi1>
    %32 = vector.broadcast %cst_16 : f32 to vector<18x16x16xf32>
    %33 = arith.select %31, %17, %32 : vector<18x16x16xi1>, vector<18x16x16xf32>
    %34 = arith.truncf %33 : vector<18x16x16xf32> to vector<18x16x16xbf16>
    %cst_17 = arith.constant 0.000000e+00 : bf16
    %35 = vector.broadcast %cst_17 : bf16 to vector<18x1x16xbf16>
    %36 = tpu.concatenate %35, %34, %35 in 1 : vector<18x1x16xbf16>, vector<18x16x16xbf16>, vector<18x1x16xbf16> -> vector<18x18x16xbf16>
    %cst_18 = arith.constant 0.000000e+00 : f32
    %37 = vector.broadcast %cst_18 : f32 to vector<256x16xf32>
    %cst_19 = arith.constant 0.000000e+00 : f32
    %38 = vector.broadcast %cst_19 : f32 to vector<256x8xf32>
    %cst_20 = arith.constant 0.000000e+00 : f32
    %39 = vector.broadcast %cst_20 : f32 to vector<256x8xf32>
    %40 = vector.extract_strided_slice %36 {offsets = [0, 1, 0], sizes = [16, 16, 16], strides = [1, 1, 1]} : vector<18x18x16xbf16> to vector<16x16x16xbf16>
    %41 = vector.shape_cast %40 : vector<16x16x16xbf16> to vector<256x16xbf16>
    %c0_21 = arith.constant 0 : index
    %c0_22 = arith.constant 0 : index
    %c0_23 = arith.constant 0 : index
    %42 = vector.load %arg8[%c0_21, %c0_22, %c0_23] : memref<3x16x16xbf16, #tpu.memory_space<vmem>>, vector<1x16x16xbf16>
    %43 = vector.shape_cast %42 : vector<1x16x16xbf16> to vector<16x16xbf16>
    %cst_24 = arith.constant dense<0.000000e+00> : vector<256x16xf32>
    %44 = tpu.matmul %41, %43, %cst_24 {dimension_numbers = #tpu.dot_dimension_numbers<[1], [0], [0], [1], [0, 0, 1, 1], [], []>} : vector<256x16xbf16>, vector<16x16xbf16>, vector<256x16xf32> -> vector<256x16xf32>
    %45 = arith.addf %37, %44 : vector<256x16xf32>
    %46 = vector.extract_strided_slice %36 {offsets = [0, 0, 8], sizes = [16, 16, 8], strides = [1, 1, 1]} : vector<18x18x16xbf16> to vector<16x16x8xbf16>
    %47 = vector.shape_cast %46 : vector<16x16x8xbf16> to vector<256x8xbf16>
    %c0_25 = arith.constant 0 : index
    %c0_26 = arith.constant 0 : index
    %c0_27 = arith.constant 0 : index
    %48 = vector.load %arg9[%c0_25, %c0_26, %c0_27] : memref<6x8x8xbf16, #tpu.memory_space<vmem>>, vector<1x8x8xbf16>
    %49 = vector.shape_cast %48 : vector<1x8x8xbf16> to vector<8x8xbf16>
    %cst_28 = arith.constant dense<0.000000e+00> : vector<256x8xf32>
    %50 = tpu.matmul %47, %49, %cst_28 {dimension_numbers = #tpu.dot_dimension_numbers<[1], [0], [0], [1], [0, 0, 1, 1], [], []>} : vector<256x8xbf16>, vector<8x8xbf16>, vector<256x8xf32> -> vector<256x8xf32>
    %51 = arith.addf %38, %50 : vector<256x8xf32>
    %52 = vector.extract_strided_slice %36 {offsets = [0, 2, 0], sizes = [16, 16, 8], strides = [1, 1, 1]} : vector<18x18x16xbf16> to vector<16x16x8xbf16>
    %53 = vector.shape_cast %52 : vector<16x16x8xbf16> to vector<256x8xbf16>
    %c1 = arith.constant 1 : index
    %c0_29 = arith.constant 0 : index
    %c0_30 = arith.constant 0 : index
    %54 = vector.load %arg9[%c1, %c0_29, %c0_30] : memref<6x8x8xbf16, #tpu.memory_space<vmem>>, vector<1x8x8xbf16>
    %55 = vector.shape_cast %54 : vector<1x8x8xbf16> to vector<8x8xbf16>
    %cst_31 = arith.constant dense<0.000000e+00> : vector<256x8xf32>
    %56 = tpu.matmul %53, %55, %cst_31 {dimension_numbers = #tpu.dot_dimension_numbers<[1], [0], [0], [1], [0, 0, 1, 1], [], []>} : vector<256x8xbf16>, vector<8x8xbf16>, vector<256x8xf32> -> vector<256x8xf32>
    %57 = arith.addf %39, %56 : vector<256x8xf32>
    %58 = vector.extract_strided_slice %36 {offsets = [1, 1, 0], sizes = [16, 16, 16], strides = [1, 1, 1]} : vector<18x18x16xbf16> to vector<16x16x16xbf16>
    %59 = vector.shape_cast %58 : vector<16x16x16xbf16> to vector<256x16xbf16>
    %c1_32 = arith.constant 1 : index
    %c0_33 = arith.constant 0 : index
    %c0_34 = arith.constant 0 : index
    %60 = vector.load %arg8[%c1_32, %c0_33, %c0_34] : memref<3x16x16xbf16, #tpu.memory_space<vmem>>, vector<1x16x16xbf16>
    %61 = vector.shape_cast %60 : vector<1x16x16xbf16> to vector<16x16xbf16>
    %cst_35 = arith.constant dense<0.000000e+00> : vector<256x16xf32>
    %62 = tpu.matmul %59, %61, %cst_35 {dimension_numbers = #tpu.dot_dimension_numbers<[1], [0], [0], [1], [0, 0, 1, 1], [], []>} : vector<256x16xbf16>, vector<16x16xbf16>, vector<256x16xf32> -> vector<256x16xf32>
    %63 = arith.addf %45, %62 : vector<256x16xf32>
    %64 = vector.extract_strided_slice %36 {offsets = [1, 0, 8], sizes = [16, 16, 8], strides = [1, 1, 1]} : vector<18x18x16xbf16> to vector<16x16x8xbf16>
    %65 = vector.shape_cast %64 : vector<16x16x8xbf16> to vector<256x8xbf16>
    %c2 = arith.constant 2 : index
    %c0_36 = arith.constant 0 : index
    %c0_37 = arith.constant 0 : index
    %66 = vector.load %arg9[%c2, %c0_36, %c0_37] : memref<6x8x8xbf16, #tpu.memory_space<vmem>>, vector<1x8x8xbf16>
    %67 = vector.shape_cast %66 : vector<1x8x8xbf16> to vector<8x8xbf16>
    %cst_38 = arith.constant dense<0.000000e+00> : vector<256x8xf32>
    %68 = tpu.matmul %65, %67, %cst_38 {dimension_numbers = #tpu.dot_dimension_numbers<[1], [0], [0], [1], [0, 0, 1, 1], [], []>} : vector<256x8xbf16>, vector<8x8xbf16>, vector<256x8xf32> -> vector<256x8xf32>
    %69 = arith.addf %51, %68 : vector<256x8xf32>
    %70 = vector.extract_strided_slice %36 {offsets = [1, 2, 0], sizes = [16, 16, 8], strides = [1, 1, 1]} : vector<18x18x16xbf16> to vector<16x16x8xbf16>
    %71 = vector.shape_cast %70 : vector<16x16x8xbf16> to vector<256x8xbf16>
    %c3 = arith.constant 3 : index
    %c0_39 = arith.constant 0 : index
    %c0_40 = arith.constant 0 : index
    %72 = vector.load %arg9[%c3, %c0_39, %c0_40] : memref<6x8x8xbf16, #tpu.memory_space<vmem>>, vector<1x8x8xbf16>
    %73 = vector.shape_cast %72 : vector<1x8x8xbf16> to vector<8x8xbf16>
    %cst_41 = arith.constant dense<0.000000e+00> : vector<256x8xf32>
    %74 = tpu.matmul %71, %73, %cst_41 {dimension_numbers = #tpu.dot_dimension_numbers<[1], [0], [0], [1], [0, 0, 1, 1], [], []>} : vector<256x8xbf16>, vector<8x8xbf16>, vector<256x8xf32> -> vector<256x8xf32>
    %75 = arith.addf %57, %74 : vector<256x8xf32>
    %76 = vector.extract_strided_slice %36 {offsets = [2, 1, 0], sizes = [16, 16, 16], strides = [1, 1, 1]} : vector<18x18x16xbf16> to vector<16x16x16xbf16>
    %77 = vector.shape_cast %76 : vector<16x16x16xbf16> to vector<256x16xbf16>
    %c2_42 = arith.constant 2 : index
    %c0_43 = arith.constant 0 : index
    %c0_44 = arith.constant 0 : index
    %78 = vector.load %arg8[%c2_42, %c0_43, %c0_44] : memref<3x16x16xbf16, #tpu.memory_space<vmem>>, vector<1x16x16xbf16>
    %79 = vector.shape_cast %78 : vector<1x16x16xbf16> to vector<16x16xbf16>
    %cst_45 = arith.constant dense<0.000000e+00> : vector<256x16xf32>
    %80 = tpu.matmul %77, %79, %cst_45 {dimension_numbers = #tpu.dot_dimension_numbers<[1], [0], [0], [1], [0, 0, 1, 1], [], []>} : vector<256x16xbf16>, vector<16x16xbf16>, vector<256x16xf32> -> vector<256x16xf32>
    %81 = arith.addf %63, %80 : vector<256x16xf32>
    %82 = vector.extract_strided_slice %36 {offsets = [2, 0, 8], sizes = [16, 16, 8], strides = [1, 1, 1]} : vector<18x18x16xbf16> to vector<16x16x8xbf16>
    %83 = vector.shape_cast %82 : vector<16x16x8xbf16> to vector<256x8xbf16>
    %c4 = arith.constant 4 : index
    %c0_46 = arith.constant 0 : index
    %c0_47 = arith.constant 0 : index
    %84 = vector.load %arg9[%c4, %c0_46, %c0_47] : memref<6x8x8xbf16, #tpu.memory_space<vmem>>, vector<1x8x8xbf16>
    %85 = vector.shape_cast %84 : vector<1x8x8xbf16> to vector<8x8xbf16>
    %cst_48 = arith.constant dense<0.000000e+00> : vector<256x8xf32>
    %86 = tpu.matmul %83, %85, %cst_48 {dimension_numbers = #tpu.dot_dimension_numbers<[1], [0], [0], [1], [0, 0, 1, 1], [], []>} : vector<256x8xbf16>, vector<8x8xbf16>, vector<256x8xf32> -> vector<256x8xf32>
    %87 = arith.addf %69, %86 : vector<256x8xf32>
    %88 = vector.extract_strided_slice %36 {offsets = [2, 2, 0], sizes = [16, 16, 8], strides = [1, 1, 1]} : vector<18x18x16xbf16> to vector<16x16x8xbf16>
    %89 = vector.shape_cast %88 : vector<16x16x8xbf16> to vector<256x8xbf16>
    %c5 = arith.constant 5 : index
    %c0_49 = arith.constant 0 : index
    %c0_50 = arith.constant 0 : index
    %90 = vector.load %arg9[%c5, %c0_49, %c0_50] : memref<6x8x8xbf16, #tpu.memory_space<vmem>>, vector<1x8x8xbf16>
    %91 = vector.shape_cast %90 : vector<1x8x8xbf16> to vector<8x8xbf16>
    %cst_51 = arith.constant dense<0.000000e+00> : vector<256x8xf32>
    %92 = tpu.matmul %89, %91, %cst_51 {dimension_numbers = #tpu.dot_dimension_numbers<[1], [0], [0], [1], [0, 0, 1, 1], [], []>} : vector<256x8xbf16>, vector<8x8xbf16>, vector<256x8xf32> -> vector<256x8xf32>
    %93 = arith.addf %75, %92 : vector<256x8xf32>
    %94 = tpu.concatenate %87, %93 in 1 : vector<256x8xf32>, vector<256x8xf32> -> vector<256x16xf32>
    %95 = arith.addf %81, %94 : vector<256x16xf32>
    %c0_52 = arith.constant 0 : index
    %c0_53 = arith.constant 0 : index
    %96 = vector.load %arg10[%c0_52, %c0_53] : memref<1x16xf32, #tpu.memory_space<vmem>>, vector<1x16xf32>
    %97 = vector.broadcast %96 : vector<1x16xf32> to vector<256x16xf32>
    %98 = arith.addf %95, %97 : vector<256x16xf32>
    %c0_54 = arith.constant 0 : index
    %c0_55 = arith.constant 0 : index
    %c0_56 = arith.constant 0 : index
    %c0_57 = arith.constant 0 : index
    %99 = vector.load %arg5[%c0_54, %c0_55, %c0_56, %c0_57] : memref<1x8x16x4xf32, #tpu.memory_space<vmem>>, vector<1x8x16x4xf32>
    %100 = vector.shape_cast %99 : vector<1x8x16x4xf32> to vector<8x16x4xf32>
    %101 = vector.shape_cast %100 : vector<8x16x4xf32> to vector<128x4xf32>
    %102 = arith.truncf %101 : vector<128x4xf32> to vector<128x4xbf16>
    %c0_58 = arith.constant 0 : index
    %c0_59 = arith.constant 0 : index
    %103 = vector.load %arg11[%c0_58, %c0_59] : memref<4x16xbf16, #tpu.memory_space<vmem>>, vector<4x16xbf16>
    %cst_60 = arith.constant dense<0.000000e+00> : vector<128x16xf32>
    %104 = tpu.matmul %102, %103, %cst_60 {dimension_numbers = #tpu.dot_dimension_numbers<[1], [0], [0], [1], [0, 0, 1, 1], [], []>} : vector<128x4xbf16>, vector<4x16xbf16>, vector<128x16xf32> -> vector<128x16xf32>
    %c0_61 = arith.constant 0 : index
    %c0_62 = arith.constant 0 : index
    %105 = vector.load %arg12[%c0_61, %c0_62] : memref<1x16xf32, #tpu.memory_space<vmem>>, vector<1x16xf32>
    %106 = vector.broadcast %105 : vector<1x16xf32> to vector<128x16xf32>
    %107 = arith.addf %104, %106 : vector<128x16xf32>
    %108 = vector.shape_cast %107 : vector<128x16xf32> to vector<8x16x16xf32>
    %109 = vector.shape_cast %108 : vector<8x16x16xf32> to vector<8x1x16x16xf32>
    %110 = vector.broadcast %109 : vector<8x1x16x16xf32> to vector<8x2x16x16xf32>
    %111 = vector.shape_cast %110 : vector<8x2x16x16xf32> to vector<16x16x16xf32>
    %112 = vector.shape_cast %98 : vector<256x16xf32> to vector<16x16x16xf32>
    %113 = arith.addf %112, %111 : vector<16x16x16xf32>
    %114 = arith.truncf %113 : vector<16x16x16xf32> to vector<16x16x16xbf16>
    %c0_63 = arith.constant 0 : index
    %c0_64 = arith.constant 0 : index
    %c0_65 = arith.constant 0 : index
    %c0_66 = arith.constant 0 : index
    %115 = vector.load %arg13[%c0_63, %c0_64, %c0_65, %c0_66] : memref<1x16x16x16xbf16, #tpu.memory_space<vmem>>, vector<1x16x16x16xbf16>
    %116 = vector.shape_cast %115 : vector<1x16x16x16xbf16> to vector<16x16x16xbf16>
    %117 = vector.shape_cast %114 : vector<16x16x16xbf16> to vector<1x16x16x16xbf16>
    tpu.vector_store %arg13[%c0_63, %c0_64, %c0_65, %c0_66], %117 {strides = array<i32>} : memref<1x16x16x16xbf16, #tpu.memory_space<vmem>>, vector<1x16x16x16xbf16>,
    return
  }
  func.func @transform_0(%arg0: i32, %arg1: i32) -> (i32, i32, i32, i32) {
    %c16_i32 = arith.constant 16 : i32
    %0 = arith.muli %arg1, %c16_i32 : i32
    %c1_i32 = arith.constant 1 : i32
    %1 = arith.subi %0, %c1_i32 : i32
    %c0_i32 = arith.constant 0 : i32
    %2 = arith.maxsi %1, %c0_i32 : i32
    %c0_i32_0 = arith.constant 0 : i32
    %c0_i32_1 = arith.constant 0 : i32
    %c0_i32_2 = arith.constant 0 : i32
    return %arg0, %2, %c0_i32_0, %c0_i32_1 : i32, i32, i32, i32
  }
  func.func @transform_1(%arg0: i32, %arg1: i32) -> (i32, i32, i32, i32) {
    %c0_i32 = arith.constant 0 : i32
    %c0_i32_0 = arith.constant 0 : i32
    %c0_i32_1 = arith.constant 0 : i32
    return %arg0, %arg1, %c0_i32, %c0_i32_0 : i32, i32, i32, i32
  }
  func.func @transform_2(%arg0: i32, %arg1: i32) -> (i32, i32, i32, i32) {
    %c1_i32 = arith.constant 1 : i32
    %0 = arith.addi %arg1, %c1_i32 : i32
    %c16_i32 = arith.constant 16 : i32
    %1 = arith.muli %0, %c16_i32 : i32
    %c31_i32 = arith.constant 31 : i32
    %2 = arith.minsi %1, %c31_i32 : i32
    %c0_i32 = arith.constant 0 : i32
    %c0_i32_0 = arith.constant 0 : i32
    %c0_i32_1 = arith.constant 0 : i32
    return %arg0, %2, %c0_i32, %c0_i32_0 : i32, i32, i32, i32
  }
  func.func @transform_3(%arg0: i32, %arg1: i32) -> (i32, i32, i32, i32) {
    %c0_i32 = arith.constant 0 : i32
    %c0_i32_0 = arith.constant 0 : i32
    %c0_i32_1 = arith.constant 0 : i32
    return %arg0, %arg1, %c0_i32, %c0_i32_0 : i32, i32, i32, i32
  }
  func.func @transform_4(%arg0: i32, %arg1: i32) -> (i32, i32) {
    %c0_i32 = arith.constant 0 : i32
    %c0_i32_0 = arith.constant 0 : i32
    %c0_i32_1 = arith.constant 0 : i32
    return %c0_i32, %c0_i32_0 : i32, i32
  }
  func.func @transform_5(%arg0: i32, %arg1: i32) -> (i32, i32) {
    %c0_i32 = arith.constant 0 : i32
    %c0_i32_0 = arith.constant 0 : i32
    %c0_i32_1 = arith.constant 0 : i32
    return %c0_i32, %c0_i32_0 : i32, i32
  }
  func.func @transform_6(%arg0: i32, %arg1: i32) -> (i32, i32, i32) {
    %c0_i32 = arith.constant 0 : i32
    %c0_i32_0 = arith.constant 0 : i32
    %c0_i32_1 = arith.constant 0 : i32
    %c0_i32_2 = arith.constant 0 : i32
    return %c0_i32, %c0_i32_0, %c0_i32_1 : i32, i32, i32
  }
  func.func @transform_7(%arg0: i32, %arg1: i32) -> (i32, i32, i32) {
    %c0_i32 = arith.constant 0 : i32
    %c0_i32_0 = arith.constant 0 : i32
    %c0_i32_1 = arith.constant 0 : i32
    %c0_i32_2 = arith.constant 0 : i32
    return %c0_i32, %c0_i32_0, %c0_i32_1 : i32, i32, i32
  }
  func.func @transform_8(%arg0: i32, %arg1: i32) -> (i32, i32) {
    %c0_i32 = arith.constant 0 : i32
    %c0_i32_0 = arith.constant 0 : i32
    %c0_i32_1 = arith.constant 0 : i32
    return %c0_i32, %c0_i32_0 : i32, i32
  }
  func.func @transform_9(%arg0: i32, %arg1: i32) -> (i32, i32) {
    %c0_i32 = arith.constant 0 : i32
    %c0_i32_0 = arith.constant 0 : i32
    %c0_i32_1 = arith.constant 0 : i32
    return %c0_i32, %c0_i32_0 : i32, i32
  }
  func.func @transform_10(%arg0: i32, %arg1: i32) -> (i32, i32) {
    %c0_i32 = arith.constant 0 : i32
    %c0_i32_0 = arith.constant 0 : i32
    %c0_i32_1 = arith.constant 0 : i32
    return %c0_i32, %c0_i32_0 : i32, i32
  }
  func.func @transform_11(%arg0: i32, %arg1: i32) -> (i32, i32, i32, i32) {
    %c0_i32 = arith.constant 0 : i32
    %c0_i32_0 = arith.constant 0 : i32
    %c0_i32_1 = arith.constant 0 : i32
    return %arg0, %arg1, %c0_i32, %c0_i32_0 : i32, i32, i32, i32
  }
}

</mosaic_0001>

<bundles_post_ra>
// kernel: gen_block_forward.2
= control target key start
LH: loop header
LB: loop body
LE: loop exit
PB: predicated region body
PF: predicated region fallthrough
CT: control target
= control target key end

     0   :  { %s3653_s24 = smov 0   ;;  %s3655_s25 = smov 0   ;;  %s5469_s0 = inlined_call_operand.vmem [shape: f32[2,16,16,4], index: 0, kind: input, shape index: {}, may-alias: {0,1,2}]   ;;  %s5470_s1 = inlined_call_operand.vmem [shape: f32[2,16,16,4], index: 1, kind: input, shape index: {}, may-alias: {0,1,2}]   ;;  %s5471_s2 = inlined_call_operand.vmem [shape: f32[2,16,16,4], index: 2, kind: input, shape index: {}, may-alias: {0,1,2}]   ;;  %s5472_s3 = inlined_call_operand.vmem [shape: f32[1,4], index: 3, kind: input, shape index: {}]   ;;  %s5473_s4 = inlined_call_operand.vmem [shape: f32[1,4], index: 4, kind: input, shape index: {}]   ;;  %s5474_s5 = inlined_call_operand.vmem [shape: bf16[12,4,8], index: 5, kind: input, shape index: {}]   ;;  %s5475_s6 = inlined_call_operand.vmem [shape: bf16[2,32,16,16], index: 6, kind: output, shape index: {0}]   ;;  %s5476_s7 = inlined_call_operand.vmem [shape: f32[2,2,2,8], index: 7, kind: output, shape index: {1}]  }
   0x1   :  { %s3657_s26 = smov 0   ;;  %s3659_s27 = smov 0  }
   0x2   :  { %s3661_s28 = smov 0  }
   0x3 LB: > { %s27_s29 = sadd.s32 1, %s3602_s26  ;;  %s30_s30 = sadd.s32 1, %s3606_s27  ;;  %s3610_s28 = sphi %s3661_s28, %s18_s28   ;;  %s3606_s27 = sphi %s3659_s27, %s5706_s27   ;;  %s3602_s26 = sphi %s3657_s26, %s5705_s26   ;;  %s3598_s25 = sphi %s3655_s25, %s5704_s25   ;;  %s3594_s24 = sphi %s3653_s24, %s5703_s24  }
   0x4   : > { %p28_p0 = scmp.ge.s32.totalorder %s27_s29, 2  ;;  %p3206_p1 = scmp.ge.s32.totalorder %s3610_s28, 1 }
   0x5   : > { %p328_p2 = scmp.lt.s32.totalorder %s3610_s28, 5 }
   0x6   : > { %s5708_s29 = smov (%p28_p0, %s27_s29), 0  ;;  %s5710_s30 = smov (!%p28_p0, %s30_s30), %s3606_s27 }
   0x7   : > { %p329_p3 = pnand %p3206_p1, %p328_p2  ;;  %p32_p4 = scmp.ge.s32.totalorder %s5710_s30, 2 }
   0x9   : > { %s5712_s30 = smov (%p32_p4, %s5710_s30), 0  ;;  %332 = sbr.rel (%p329_p3) target bundleno = 1071 (0x42f), region = 44 }
   0xe   : > { %v3235_v0 = vld [vmem:[%s5474_s5 + $0x4] sm:$0x3]  ;;  %vm951_vm0 = vcmask 1041408   ;;  %s3689_s10 = sshll.u32 %s3594_s24, 3  ;;  %p408_p5 = scmp.lt.s32.totalorder %s3598_s25, 1  ;;  %vm749_vm2 = vcmask 1040384  }
   0xf   : > { %v953_v1 = vsel %vm951_vm0, %v3235_v0, 0  ;;  %s3208_s11 = sadd.s32 4294967295, %s3689_s10  ;;  %p424_p6 = scmp.lt.s32.totalorder %s3689_s10, 15  ;;  %v3268_v2 = vld [vmem:[%s5474_s5 + $0x6] sm:$0x3]  ;;  %v5506_v48 = vmov 0 }
  0x10   : > { %962 = vmatpush.bf16.msra.mxu0 %v953_v1  ;;  %p406_p7 = scmp.gt.s32.totalorder %s3208_s11, 0  ;;  %p3209_p8 = scmp.lt.s32.totalorder %s3208_s11, 15  ;;  %v1193_v3 = vsel %vm951_vm0, %v3268_v2, 0  ;;  %v927_v4 = vld [vmem:[%s5474_s5] sm:$0x3]  ;;  %vm932_vm5 = vcmask 31744  }
  0x11   : > { %s5714_s25 = smov (!%p408_p5, %s3598_s25), 1  ;;  %1202 = vmatpush.bf16.msra.mxu2 %v1193_v3  ;;  %v3234_v5 = vld [vmem:[%s5474_s5 + $0x2] sm:$0x3]  ;;  %v1072_v6 = vsel %vm951_vm0, %v927_v4, 0  ;;  %v3716_v8 = vld [vmem:[%s5472_s3] ss:$0 sm:$0xff] }
  0x12   : > { %s5716_s11 = smov (!%p406_p7, %s3208_s11), 0  ;;  %s3700_s14 = sshll.u32 %s5714_s25, 5  ;;  %v1285_v7 = vsel %vm951_vm0, %v3234_v5, 0  ;;  %1081 = vmatpush.bf16.msra.mxu1 %v1072_v6  ;;  %v3725_v9 = vld [vmem:[%s5473_s4] ss:$0 sm:$0xff]  ;;  %vm899_vm6 = vcmask 1046528  }
  0x13   : > { %s5718_s11 = smov (!%p3209_p8, %s5716_s11), 15  ;;  %1294 = vmatpush.bf16.msra.mxu3 %v1285_v7  ;;  %v3352_v12 = vld [vmem:[%s5474_s5 + $0xe] sm:$0x3]  ;;  %v3318_v16 = vld [vmem:[%s5474_s5 + $0xa] sm:$0x3]  ;;  %p557_p9 = scmp.ne.s32.totalorder %s3594_s24, 0 }
  0x14   : > { %s425_s15 = scalar_select %p424_p6, %s3689_s10, 15  ;;  %v1757_v15 = vsel %vm951_vm0, %v3352_v12, 0  ;;  %v1505_v19 = vsel %vm951_vm0, %v3318_v16, 0  ;;  %vm750_vm3 = vsmask.f32 256  ;;  %vm2537_vm9 = vcmask 64512  }
  0x15   : > { %s3214_s20 = sshll.u32 %s5718_s11, 1  ;;  %v3335_v43 = vld [vmem:[%s5474_s5 + $0xc] sm:$0x3]  ;;  %vm3756_vm4 = vmand %vm749_vm2, %vm750_vm3  ;;  %v3301_v62 = vld [vmem:[%s5474_s5 + $0x8] sm:$0x3]  ;;  %p561_p11 = scmp.ne.s32.totalorder %s3594_s24, 1 }
  0x16   : > { %s414_s21 = sadd.s32 %s3700_s14, %s3214_s20  ;;  %s3218_s22 = sshll.u32 %s425_s15, 1  ;;  %1514 = vmatpush.bf16.msrb.mxu1 %v1505_v19  ;;  %v1631_v44 = vsel %vm951_vm0, %v3335_v43, 0  ;;  %v5507_v48 = vsel %vm3756_vm4, 4294967295, %v5506_v48  ;;  %v1379_v0 = vsel %vm951_vm0, %v3301_v62, 0  ;;  %vm772_vm7 = vsmask.f32 7424 }
  0x17   : > { %s3216_s9 = sshll.u32 %s414_s21, 3  ;;  %s428_s12 = sadd.s32 %s3218_s22, %s3700_s14  ;;  %1766 = vmatpush.bf16.msrb.mxu3 %v1757_v15  ;;  %1640 = vmatpush.bf16.msrb.mxu2 %v1631_v44  ;;  %5508 = vst [vmem:[#allocation2_spill] sm:$0xff] %v5507_v48  ;;  %vm2602_vm10 = vcmask 125952   ;;  %vm3006_vm11 = vcmask 58368  }
  0x18   : > { %s416_s17 = scalar_lea.vmem %s5469_s0, %s3216_s9  ;;  %s3220_s11 = sshll.u32 %s428_s12, 3  ;;  %1388 = vmatpush.bf16.msrb.mxu0 %v1379_v0 }
  0x19   : > { %s3730_s23 = scalar_lea.vmem %s5470_s1, %s3220_s11  ;;  %v469_v10 = vld [vmem:[%s416_s17] sm:$0xff]  ;;  %v470_v11 = vld [vmem:[%s416_s17 + $0x8] sm:$0xff]  ;;  %s3612_s9 = smov 8  }
  0x1a   : > { %v493_v13 = vmul.f32 %v3716_v8, %v469_v10  ;;  %v494_v14 = vmul.f32 %v3716_v8, %v470_v11  ;;  %v471_v17 = vld [vmem:[%s3730_s23] sm:$0xff]  ;;  %v472_v18 = vld [vmem:[%s3730_s23 + $0x8] sm:$0xff]  ;;  %s558_s12 = scalar_select %p557_p9, 1, 0  ;;  %v473_v56 = vld [vmem:[%s3730_s23 + $0x10] sm:$0xff] }
  0x1b   : > { %v495_v20 = vmul.f32 %v3716_v8, %v471_v17  ;;  %v496_v21 = vmul.f32 %v3716_v8, %v472_v18  ;;  %v474_v57 = vld [vmem:[%s3730_s23 + $0x18] sm:$0xff]  ;;  %v497_v1 = vmul.f32 %v3716_v8, %v473_v56  ;;  %v477_v0 = vld [vmem:[%s3730_s23 + $0x30] sm:$0xff]  ;;  %s562_s20 = scalar_select %p561_p11, 1, 0 }
  0x1c   : > { %v517_v22 = vadd.f32 %v3725_v9, %v493_v13  ;;  %v518_v23 = vadd.f32 %v3725_v9, %v494_v14  ;;  %v559_v32 = vstv %s558_s12  ;;  %v498_v2 = vmul.f32 %v3716_v8, %v474_v57  ;;  %s3446_s12 = sadd.s32 8, %s3689_s10  ;;  %s3228_s22 = sshll.u32 %s3594_s24, 4 }
  0x1d   : > { %v519_v24 = vadd.f32 %v3725_v9, %v495_v20  ;;  %v520_v25 = vadd.f32 %v3725_v9, %v496_v21  ;;  %vm560_vm1 = vcmp.eq.s32.totalorder %v559_v32, 1  ;;  %v521_v10 = vadd.f32 %v3725_v9, %v497_v1  ;;  %v478_v1 = vld [vmem:[%s3730_s23 + $0x38] sm:$0xff]  ;;  %p4620_p10 = scmp.lt.s32.totalorder %s3446_s12, 15  ;;  %p452_p12 = scmp.lt.s32.totalorder %s3228_s22, 31 }
  0x1e   : > { %v537_v28 = vmax.f32 %v517_v22, 0.0  ;;  %v538_v29 = vmax.f32 %v518_v23, 0.0  ;;  %v522_v11 = vadd.f32 %v3725_v9, %v498_v2  ;;  %p462_p13 = scmp.lt.s32.totalorder %s3594_s24, 1 }
  0x1f   : > { %v539_v26 = vmax.f32 %v519_v24, 0.0  ;;  %v540_v27 = vmax.f32 %v520_v25, 0.0  ;;  %v541_v15 = vmax.f32 %v521_v10, 0.0  ;;  %s5720_s12 = smov (!%p4620_p10, %s3446_s12), 15  ;;  %s5724_s22 = smov (!%p452_p12, %s3228_s22), 31 }
  0x20   : > { %v569_v35 = vsel %vm560_vm1, %v537_v28, 0.0  ;;  %v570_v36 = vsel %vm560_vm1, %v538_v29, 0.0  ;;  %v542_v16 = vmax.f32 %v522_v11, 0.0  ;;  %s5722_s12 = smov (!%p4620_p10, %s5720_s12), 15  ;;  %s3229_s8 = sshll.u32 %s5724_s22, 1 }
  0x21   : > { %v591_v30 = vpack.c.bf16 %v539_v26, %v539_v26  ;;  %v592_v31 = vpack.c.bf16 %v540_v27, %v540_v27  ;;  %v589_v37 = vpack.c.bf16 %v569_v35, %v569_v35  ;;  %v590_v38 = vpack.c.bf16 %v570_v36, %v570_v36  ;;  %v476_v35 = vld [vmem:[%s3730_s23 + $0x28] sm:$0xff]  ;;  %s3225_s10 = sshll.u32 %s5722_s12, 1  ;;  %s3230_s12 = sshll.u32 %s5714_s25, 6 }
  0x22   : > { %v593_v22 = vpack.c.bf16 %v541_v15, %v541_v15  ;;  %v594_v23 = vpack.c.bf16 %v542_v16, %v542_v16  ;;  %s442_s16 = sadd.s32 %s3225_s10, %s3700_s14  ;;  %s456_s13 = sadd.s32 %s3230_s12, %s3229_s8 }
  0x23   : > { %v631_v33 = vunpack.c.l.b16 %v591_v30  ;;  %v632_v34 = vunpack.c.l.b16 %v592_v31  ;;  %v629_v39 = vunpack.c.l.b16 %v589_v37  ;;  %v630_v40 = vunpack.c.l.b16 %v590_v38  ;;  %s3227_s17 = sshll.u32 %s442_s16, 3  ;;  %s3231_s10 = sshll.u32 %s456_s13, 2 }
  0x24   : > { %v633_v27 = vunpack.c.l.b16 %v593_v22  ;;  %v634_v28 = vunpack.c.l.b16 %v594_v23  ;;  %v500_v38 = vmul.f32 %v3716_v8, %v476_v35  ;;  %v480_v35 = vld [vmem:[%s3730_s23 + $0x48] sm:$0xff]  ;;  %s444_s14 = scalar_lea.vmem %s5471_s2, %s3227_s17  ;;  %s4802_s11 = scalar_lea.vmem %s5475_s6, %s3231_s10 }
  0x25   : > { %v650_v41 = vpack.c.b16 %v632_v34, %v631_v33  ;;  %v649_v42 = vpack.c.b16 %v630_v40, %v629_v39  ;;  %v475_v34 = vld [vmem:[%s3730_s23 + $0x20] sm:$0xff]  ;;  %s5726_s24 = smov (!%p462_p13, %s3594_s24), 1 }
  0x26   : > { %v651_v30 = vpack.c.b16 %v634_v28, %v633_v27  ;;  %v499_v37 = vmul.f32 %v3716_v8, %v475_v34  ;;  %v479_v34 = vld [vmem:[%s3730_s23 + $0x40] sm:$0xff] }
  0x27   : > { %v660_v45 = vshrl.u32 %v649_v42, 16  ;;  %v663_v46 = vshll.u32 %v649_v42, 16  ;;  %v667_v47 = vshrl.u32 %v650_v41, 16  ;;  %v670_v53 = vshll.u32 %v650_v41, 16 }
  0x28   : > { %v674_v31 = vshrl.u32 %v651_v30, 16  ;;  %v677_v33 = vshll.u32 %v651_v30, 16  ;;  %v523_v40 = vadd.f32 %v3725_v9, %v499_v37  ;;  %v524_v41 = vadd.f32 %v3725_v9, %v500_v38 }
  0x29   : > { %v662_v49 = vrot.slane %v660_v45, 7  ;;  %v669_v52 = vrot.slane %v667_v47, 7  ;;  %v503_v37 = vmul.f32 %v3716_v8, %v479_v34  ;;  %v504_v38 = vmul.f32 %v3716_v8, %v480_v35 }
  0x2a   : > { %v676_v32 = vrot.slane %v674_v31, 7  ;;  %v543_v44 = vmax.f32 %v523_v40, 0.0  ;;  %v544_v45 = vmax.f32 %v524_v41, 0.0 }
  0x2b   : > { %v665_v50 = vor.u32 %v663_v46, %v662_v49  ;;  %v762_v51 = vsel %vm3756_vm4, %v662_v49, 0  ;;  %v672_v63 = vor.u32 %v670_v53, %v669_v52  ;;  %v763_v14 = vsel %vm3756_vm4, %v669_v52, 0 }
  0x2c   : > { %v901_v54 = vrot.slane %v762_v51, 1  ;;  %v781_v55 = vshll.u32 %v762_v51, 16  ;;  %v793_v17 = vshll.u32 %v763_v14, 16  ;;  %v904_v21 = vrot.slane %v763_v14, 1 }
  0x2d   : > { %v752_v58 = vsel %vm3756_vm4, 0, %v665_v50  ;;  %v3777_v7 = vsel %vm3756_vm4, 0, %v672_v63  ;;  %v679_v36 = vor.u32 %v677_v33, %v676_v32  ;;  %v764_v43 = vsel %vm3756_vm4, %v676_v32, 0 }
  0x2e   : > { %v774_v59 = vshrl.u32 %v752_v58, 16  ;;  %v776_v60 = vshll.u32 %v752_v58, 16  ;;  %3236 = vmatmul.msk.bf16.vlgmr.msra.gmra.mxu0 %vm932_vm5, %v752_v58  ;;  %v900_v61 = vrot.slane %v752_v58, 1  ;;  %v783_v5 = vrot.slane %v781_v55, 1 }
  0x2f   : > { %v788_v13 = vshll.u32 %v3777_v7, 16  ;;  %v786_v18 = vshrl.u32 %v3777_v7, 16  ;;  %v903_v20 = vrot.slane %v3777_v7, 1  ;;  %v795_v25 = vrot.slane %v793_v17, 1 }
  0x30   : > { %v778_v3 = vrot.slane %v776_v60, 1  ;;  %v902_v4 = vsel %vm899_vm6, %v900_v61, %v901_v54  ;;  %v3813_v39 = vsel %vm3756_vm4, 0, %v679_v36  ;;  %v805_v49 = vshll.u32 %v764_v43, 16 }
  0x31   : > { %3269 = vmatmul.msk.bf16.vlgmr.msra.gmra.mxu2 %vm932_vm5, %v902_v4  ;;  %v790_v19 = vrot.slane %v788_v13, 1  ;;  %v3792_v26 = vsel %vm899_vm6, %v903_v20, %v904_v21  ;;  %v800_v42 = vshll.u32 %v3813_v39, 16  ;;  %v798_v46 = vshrl.u32 %v3813_v39, 16 }
  0x32   : > { %v779_v6 = vor.u32 %v778_v3, %v774_v59  ;;  %5509 = vst [vmem:[#allocation3_spill] sm:$0xff] %v3792_v26  ;;  %v906_v50 = vrot.slane %v3813_v39, 1  ;;  %v907_v51 = vrot.slane %v764_v43, 1  ;;  %v595_v52 = vpack.c.bf16 %v543_v44, %v543_v44 }
  0x33   : > { %v791_v24 = vor.u32 %v790_v19, %v786_v18  ;;  %v802_v47 = vrot.slane %v800_v42, 1  ;;  %v596_v53 = vpack.c.bf16 %v544_v45, %v544_v45  ;;  %v807_v55 = vrot.slane %v805_v49, 1 }
  0x34   : > { %v784_v12 = vsel %vm772_vm7, %v779_v6, %v783_v5  ;;  %v3829_v56 = vsel %vm899_vm6, %v906_v50, %v907_v51  ;;  %v635_v57 = vunpack.c.l.b16 %v595_v52  ;;  %v501_v3 = vmul.f32 %v3716_v8, %v477_v0 }
  0x35   : > { %3252 = vmatmul.msk.bf16.vlgmr.msra.gmra.mxu1 %vm932_vm5, %v784_v12  ;;  %3285 = vmatmul.msk.bf16.vlgmr.msra.gmra.mxu3 %vm932_vm5, %v784_v12  ;;  %v3797_v29 = vsel %vm772_vm7, %v791_v24, %v795_v25  ;;  %v803_v54 = vor.u32 %v802_v47, %v798_v46  ;;  %v636_v58 = vunpack.c.l.b16 %v596_v53  ;;  %v502_v4 = vmul.f32 %v3716_v8, %v478_v1 }
  0x36   : > { %v525_v6 = vadd.f32 %v3725_v9, %v501_v3  ;;  %v527_v41 = vadd.f32 %v3725_v9, %v503_v37  ;;  %v528_v42 = vadd.f32 %v3725_v9, %v504_v38 }
  0x37   : > { %v3834_v59 = vsel %vm772_vm7, %v803_v54, %v807_v55  ;;  %v652_v60 = vpack.c.b16 %v636_v58, %v635_v57  ;;  %v526_v10 = vadd.f32 %v3725_v9, %v502_v4  ;;  %v481_v4 = vld [vmem:[%s3730_s23 + $0x50] sm:$0xff] }
  0x38   : > { %v545_v13 = vmax.f32 %v525_v6, 0.0  ;;  %v547_v45 = vmax.f32 %v527_v41, 0.0  ;;  %v548_v46 = vmax.f32 %v528_v42, 0.0  ;;  %v482_v6 = vld [vmem:[%s3730_s23 + $0x58] sm:$0xff] }
  0x39   : > { %v681_v61 = vshrl.u32 %v652_v60, 16  ;;  %v684_v63 = vshll.u32 %v652_v60, 16  ;;  %v546_v14 = vmax.f32 %v526_v10, 0.0 }
  0x3a   : > { %v597_v20 = vpack.c.bf16 %v545_v13, %v545_v13  ;;  %v599_v53 = vpack.c.bf16 %v547_v45, %v547_v45  ;;  %v600_v54 = vpack.c.bf16 %v548_v46, %v548_v46 }
  0x3b   : > { %v683_v62 = vrot.slane %v681_v61, 7  ;;  %v598_v21 = vpack.c.bf16 %v546_v14, %v546_v14 }
  0x3c   : > { %v637_v25 = vunpack.c.l.b16 %v597_v20  ;;  %v639_v60 = vunpack.c.l.b16 %v599_v53  ;;  %v640_v61 = vunpack.c.l.b16 %v600_v54 }
  0x3d   : > { %v686_v2 = vor.u32 %v684_v63, %v683_v62  ;;  %v765_v12 = vsel %vm3756_vm4, %v683_v62, 0  ;;  %v638_v27 = vunpack.c.l.b16 %v598_v21 }
  0x3e   : > { %3237 = vmatmul.msk.bf16.gmra.mxu0 %vm932_vm5, %v3777_v7  ;;  %v817_v17 = vshll.u32 %v765_v12, 16  ;;  %v910_v19 = vrot.slane %v765_v12, 1  ;;  %v654_v63 = vpack.c.b16 %v640_v61, %v639_v60  ;;  %v506_v12 = vmul.f32 %v3716_v8, %v482_v6 }
  0x3f   : > { %v3850_v5 = vsel %vm3756_vm4, 0, %v686_v2  ;;  %v653_v30 = vpack.c.b16 %v638_v27, %v637_v25 }
  0x40   : > { %v812_v11 = vshll.u32 %v3850_v5, 16  ;;  %v810_v15 = vshrl.u32 %v3850_v5, 16  ;;  %v909_v18 = vrot.slane %v3850_v5, 1  ;;  %v819_v23 = vrot.slane %v817_v17, 1 }
  0x41   : > { %3270 = vmatmul.msk.bf16.gmra.mxu2 %vm932_vm5, %v3792_v26  ;;  %v688_v31 = vshrl.u32 %v653_v30, 16  ;;  %v691_v33 = vshll.u32 %v653_v30, 16  ;;  %v695_v0 = vshrl.u32 %v654_v63, 16  ;;  %v698_v3 = vshll.u32 %v654_v63, 16 }
  0x42   : > { %v814_v16 = vrot.slane %v812_v11, 1  ;;  %v3866_v24 = vsel %vm899_vm6, %v909_v18, %v910_v19  ;;  %v505_v11 = vmul.f32 %v3716_v8, %v481_v4  ;;  %v530_v18 = vadd.f32 %v3725_v9, %v506_v12 }
  0x43   : > { %v690_v32 = vrot.slane %v688_v31, 7  ;;  %v697_v2 = vrot.slane %v695_v0, 7 }
  0x44   : > { %v815_v22 = vor.u32 %v814_v16, %v810_v15  ;;  %v529_v17 = vadd.f32 %v3725_v9, %v505_v11  ;;  %v484_v11 = vld [vmem:[%s3730_s23 + $0x68] sm:$0xff] }
  0x45   : > { %3253 = vmatmul.msk.bf16.gmra.mxu1 %vm932_vm5, %v3797_v29  ;;  %3286 = vmatmul.msk.bf16.gmra.mxu3 %vm932_vm5, %v3797_v29  ;;  %v693_v36 = vor.u32 %v691_v33, %v690_v32  ;;  %v766_v44 = vsel %vm3756_vm4, %v690_v32, 0  ;;  %v700_v10 = vor.u32 %v698_v3, %v697_v2  ;;  %v767_v21 = vsel %vm3756_vm4, %v697_v2, 0 }
  0x46   : > { %v3871_v28 = vsel %vm772_vm7, %v815_v22, %v819_v23  ;;  %v829_v50 = vshll.u32 %v766_v44, 16  ;;  %v913_v52 = vrot.slane %v766_v44, 1  ;;  %v549_v22 = vmax.f32 %v529_v17, 0.0 }
  0x47   : > { %v3887_v40 = vsel %vm3756_vm4, 0, %v693_v36  ;;  %v3926_v16 = vsel %vm3756_vm4, 0, %v700_v10  ;;  %v550_v23 = vmax.f32 %v530_v18, 0.0  ;;  %v841_v34 = vshll.u32 %v767_v21, 16  ;;  %v483_v10 = vld [vmem:[%s3730_s23 + $0x60] sm:$0xff] }
  0x48   : > { %v824_v43 = vshll.u32 %v3887_v40, 16  ;;  %v822_v47 = vshrl.u32 %v3887_v40, 16  ;;  %v912_v51 = vrot.slane %v3887_v40, 1  ;;  %v831_v57 = vrot.slane %v829_v50, 1 }
  0x49   : > { %v836_v20 = vshll.u32 %v3926_v16, 16  ;;  %v915_v30 = vrot.slane %v3926_v16, 1  ;;  %v834_v32 = vshrl.u32 %v3926_v16, 16  ;;  %v916_v35 = vrot.slane %v767_v21, 1 }
  0x4a   : > { %v826_v49 = vrot.slane %v824_v43, 1  ;;  %v3903_v58 = vsel %vm899_vm6, %v912_v51, %v913_v52  ;;  %v601_v38 = vpack.c.bf16 %v549_v22, %v549_v22  ;;  %v602_v41 = vpack.c.bf16 %v550_v23, %v550_v23 }
  0x4b   : > { %v838_v33 = vrot.slane %v836_v20, 1  ;;  %v843_v44 = vrot.slane %v841_v34, 1  ;;  %v3946_v45 = vsel %vm899_vm6, %v915_v30, %v916_v35 }
  0x4c   : > { %v827_v55 = vor.u32 %v826_v49, %v822_v47  ;;  %v641_v46 = vunpack.c.l.b16 %v601_v38  ;;  %v642_v47 = vunpack.c.l.b16 %v602_v41 }
  0x4d   : > { %v839_v43 = vor.u32 %v838_v33, %v834_v32 }
  0x4e   : > { %3238 = vmatmul.msk.bf16.gmra.mxu0 %vm932_vm5, %v3777_v7  ;;  %v3908_v62 = vsel %vm772_vm7, %v827_v55, %v831_v57  ;;  %v655_v55 = vpack.c.b16 %v642_v47, %v641_v46 }
  0x4f   : > { %v3953_v51 = vsel %vm772_vm7, %v839_v43, %v843_v44 }
  0x50   : > { %v702_v60 = vshrl.u32 %v655_v55, 16  ;;  %v705_v4 = vshll.u32 %v655_v55, 16 }
  0x51   : > { %3271 = vmatmul.msk.bf16.gmra.mxu2 %vm932_vm5, %v3792_v26 }
  0x52   : > { %v704_v3 = vrot.slane %v702_v60, 7 }
  0x54   : > { %v707_v12 = vor.u32 %v705_v4, %v704_v3  ;;  %v768_v32 = vsel %vm3756_vm4, %v704_v3, 0 }
  0x55   : > { %3254 = vmatmul.msk.bf16.gmra.mxu1 %vm932_vm5, %v3797_v29  ;;  %3287 = vmatmul.msk.bf16.gmra.mxu3 %vm932_vm5, %v3797_v29  ;;  %v853_v44 = vshll.u32 %v768_v32, 16  ;;  %v919_v46 = vrot.slane %v768_v32, 1 }
  0x56   : > { %v3979_v22 = vsel %vm3756_vm4, 0, %v707_v12 }
  0x57   : > { %v918_v38 = vrot.slane %v3979_v22, 1  ;;  %v855_v60 = vrot.slane %v853_v44, 1 }
  0x5e   : > { %3239 = vmatmul.msk.bf16.gmra.mxu0 %vm932_vm5, %v3813_v39 }
  0x61   : > { %3272 = vmatmul.msk.bf16.gmra.mxu2 %vm932_vm5, %v3829_v56 }
  0x65   : > { %3255 = vmatmul.msk.bf16.gmra.mxu1 %vm932_vm5, %v3834_v59  ;;  %3288 = vmatmul.msk.bf16.gmra.mxu3 %vm932_vm5, %v3834_v59 }
  0x6e   : > { %3240 = vmatmul.msk.bf16.gmra.mxu0 %vm932_vm5, %v3813_v39 }
  0x71   : > { %3273 = vmatmul.msk.bf16.gmra.mxu2 %vm932_vm5, %v3829_v56 }
  0x75   : > { %3256 = vmatmul.msk.bf16.gmra.mxu1 %vm932_vm5, %v3834_v59  ;;  %3289 = vmatmul.msk.bf16.gmra.mxu3 %vm932_vm5, %v3834_v59 }
  0x7e   : > { %3241 = vmatmul.msk.bf16.gmra.mxu0 %vm932_vm5, %v3850_v5 }
  0x81   : > { %3274 = vmatmul.msk.bf16.gmra.mxu2 %vm932_vm5, %v3866_v24 }
  0x85   : > { %3257 = vmatmul.msk.bf16.gmra.mxu1 %vm932_vm5, %v3871_v28  ;;  %3290 = vmatmul.msk.bf16.gmra.mxu3 %vm932_vm5, %v3871_v28 }
  0x8e   : > { %3242 = vmatmul.msk.bf16.gmra.mxu0 %vm932_vm5, %v3850_v5 }
  0x91   : > { %3275 = vmatmul.msk.bf16.gmra.mxu2 %vm932_vm5, %v3866_v24 }
  0x95   : > { %3258 = vmatmul.msk.bf16.gmra.mxu1 %vm932_vm5, %v3871_v28  ;;  %3291 = vmatmul.msk.bf16.gmra.mxu3 %vm932_vm5, %v3871_v28 }
  0x9e   : > { %3243 = vmatmul.msk.bf16.gmra.mxu0 %vm932_vm5, %v3887_v40 }
  0xa1   : > { %3276 = vmatmul.msk.bf16.gmra.mxu2 %vm932_vm5, %v3903_v58 }
  0xa5   : > { %3259 = vmatmul.msk.bf16.gmra.mxu1 %vm932_vm5, %v3908_v62  ;;  %3292 = vmatmul.msk.bf16.gmra.mxu3 %vm932_vm5, %v3908_v62 }
  0xab   : > { %v964_v1 = vpop.f32.mrf.mxu0 }
  0xae   : > { %3244 = vmatmul.msk.bf16.gmra.mxu0 %vm932_vm5, %v3887_v40 }
  0xb1   : > { %3277 = vmatmul.msk.bf16.gmra.mxu2 %vm932_vm5, %v3903_v58 }
  0xb2   : > { %v1083_v13 = vpop.f32.mrf.mxu1 }
  0xb3   : > { %v3922_v14 = vadd.f32 %v1083_v13, %v964_v1  ;;  %v966_v15 = vpop.f32.mrf.mxu0  ;;  %v507_v13 = vmul.f32 %v3716_v8, %v483_v10 }
  0xb4   : > { %v1204_v19 = vpop.f32.mrf.mxu2 }
  0xb5   : > { %3260 = vmatmul.msk.bf16.gmra.mxu1 %vm932_vm5, %v3908_v62  ;;  %3293 = vmatmul.msk.bf16.gmra.mxu3 %vm932_vm5, %v3908_v62  ;;  %v531_v23 = vadd.f32 %v3725_v9, %v507_v13 }
  0xb7   : > { %v551_v33 = vmax.f32 %v531_v23, 0.0 }
  0xb8   : > { %v1296_v25 = vpop.f32.mrf.mxu3 }
  0xb9   : > { %v3937_v27 = vadd.f32 %v1296_v25, %v1204_v19 }
  0xba   : > { %v1085_v31 = vpop.f32.mrf.mxu1 }
  0xbb   : > { %v3941_v36 = vadd.f32 %v1085_v31, %v966_v15  ;;  %v969_v37 = vpop.f32.mrf.mxu0  ;;  %v508_v15 = vmul.f32 %v3716_v8, %v484_v11  ;;  %v848_v31 = vshll.u32 %v3979_v22, 16 }
  0xbc   : > { %v1206_v42 = vpop.f32.mrf.mxu2 }
  0xbd   : > { %v532_v25 = vadd.f32 %v3725_v9, %v508_v15  ;;  %v850_v43 = vrot.slane %v848_v31, 1 }
  0xbe   : > { %3245 = vmatmul.msk.bf16.gmra.mxu0 %vm932_vm5, %v3926_v16 }
  0xbf   : > { %v552_v34 = vmax.f32 %v532_v25, 0.0 }
  0xc0   : > { %v1298_v49 = vpop.f32.mrf.mxu3 }
  0xc1   : > { %v3948_v50 = vadd.f32 %v1298_v49, %v1206_v42  ;;  %3278 = vmatmul.msk.bf16.gmra.mxu2 %vm932_vm5, %v3946_v45  ;;  %v846_v42 = vshrl.u32 %v3979_v22, 16 }
  0xc2   : > { %v1088_v52 = vpop.f32.mrf.mxu1 }
  0xc3   : > { %v3955_v53 = vadd.f32 %v1088_v52, %v969_v37  ;;  %v971_v54 = vpop.f32.mrf.mxu0  ;;  %v603_v52 = vpack.c.bf16 %v551_v33, %v551_v33 }
  0xc4   : > { %v1209_v57 = vpop.f32.mrf.mxu2 }
  0xc5   : > { %3261 = vmatmul.msk.bf16.gmra.mxu1 %vm932_vm5, %v3953_v51  ;;  %3294 = vmatmul.msk.bf16.gmra.mxu3 %vm932_vm5, %v3953_v51 }
  0xc8   : > { %v1301_v61 = vpop.f32.mrf.mxu3 }
  0xc9   : > { %v3961_v63 = vadd.f32 %v1301_v61, %v1209_v57  ;;  %v851_v57 = vor.u32 %v850_v43, %v846_v42  ;;  %v3999_v61 = vsel %vm899_vm6, %v918_v38, %v919_v46 }
  0xca   : > { %v1090_v0 = vpop.f32.mrf.mxu1 }
  0xcb   : > { %v3963_v1 = vadd.f32 %v1090_v0, %v971_v54  ;;  %v974_v2 = vpop.f32.mrf.mxu0  ;;  %v604_v54 = vpack.c.bf16 %v552_v34, %v552_v34  ;;  %v643_v0 = vunpack.c.l.b16 %v603_v52  ;;  %v485_v34 = vld [vmem:[%s3730_s23 + $0x70] sm:$0xff] }
  0xcc   : > { %v1211_v6 = vpop.f32.mrf.mxu2 }
  0xce   : > { %3246 = vmatmul.msk.bf16.gmra.mxu0 %vm932_vm5, %v3926_v16 }
  0xd0   : > { %v1303_v17 = vpop.f32.mrf.mxu3 }
  0xd1   : > { %v3971_v18 = vadd.f32 %v1303_v17, %v1211_v6  ;;  %3279 = vmatmul.msk.bf16.gmra.mxu2 %vm932_vm5, %v3946_v45  ;;  %v4006_v6 = vsel %vm772_vm7, %v851_v57, %v855_v60 }
  0xd2   : > { %v1093_v19 = vpop.f32.mrf.mxu1 }
  0xd3   : > { %v3975_v20 = vadd.f32 %v1093_v19, %v974_v2  ;;  %v976_v21 = vpop.f32.mrf.mxu0  ;;  %v644_v2 = vunpack.c.l.b16 %v604_v54 }
  0xd4   : > { %v1214_v30 = vpop.f32.mrf.mxu2 }
  0xd5   : > { %3262 = vmatmul.msk.bf16.gmra.mxu1 %vm932_vm5, %v3953_v51  ;;  %3295 = vmatmul.msk.bf16.gmra.mxu3 %vm932_vm5, %v3953_v51  ;;  %v656_v13 = vpack.c.b16 %v644_v2, %v643_v0 }
  0xd7   : > { %v709_v17 = vshrl.u32 %v656_v13, 16  ;;  %v712_v32 = vshll.u32 %v656_v13, 16 }
  0xd8   : > { %v1306_v35 = vpop.f32.mrf.mxu3 }
  0xd9   : > { %v3990_v37 = vadd.f32 %v1306_v35, %v1214_v30  ;;  %v711_v31 = vrot.slane %v709_v17, 7  ;;  %v486_v35 = vld [vmem:[%s3730_s23 + $0x78] sm:$0xff] }
  0xda   : > { %v1095_v41 = vpop.f32.mrf.mxu1  ;;  %v510_v42 = vmul.f32 %v3716_v8, %v486_v35 }
  0xdb   : > { %v3994_v47 = vadd.f32 %v1095_v41, %v976_v21  ;;  %v979_v49 = vpop.f32.mrf.mxu0  ;;  %v714_v38 = vor.u32 %v712_v32, %v711_v31  ;;  %v509_v41 = vmul.f32 %v3716_v8, %v485_v34  ;;  %v769_v0 = vsel %vm3756_vm4, %v711_v31, 0 }
  0xdc   : > { %v1216_v55 = vpop.f32.mrf.mxu2  ;;  %v534_v57 = vadd.f32 %v3725_v9, %v510_v42 }
  0xdd   : > { %v4032_v54 = vsel %vm3756_vm4, 0, %v714_v38 }
  0xde   : > { %3247 = vmatmul.msk.bf16.gmra.mxu0 %vm932_vm5, %v3979_v22  ;;  %v860_v8 = vshll.u32 %v4032_v54, 16  ;;  %v921_v13 = vrot.slane %v4032_v54, 1 }
  0xe0   : > { %v1308_v3 = vpop.f32.mrf.mxu3  ;;  %v862_v17 = vrot.slane %v860_v8, 1 }
  0xe1   : > { %v4001_v4 = vadd.f32 %v1308_v3, %v1216_v55  ;;  %3280 = vmatmul.msk.bf16.gmra.mxu2 %vm932_vm5, %v3999_v61  ;;  %v533_v55 = vadd.f32 %v3725_v9, %v509_v41  ;;  %v554_v3 = vmax.f32 %v534_v57, 0.0 }
  0xe2   : > { %v1098_v10 = vpop.f32.mrf.mxu1 }
  0xe3   : > { %v4008_v11 = vadd.f32 %v1098_v10, %v979_v49  ;;  %v981_v12 = vpop.f32.mrf.mxu0  ;;  %v553_v2 = vmax.f32 %v533_v55, 0.0  ;;  %v606_v34 = vpack.c.bf16 %v554_v3, %v554_v3 }
  0xe4   : > { %v1219_v15 = vpop.f32.mrf.mxu2 }
  0xe5   : > { %3263 = vmatmul.msk.bf16.gmra.mxu1 %vm932_vm5, %v4006_v6  ;;  %3296 = vmatmul.msk.bf16.gmra.mxu3 %vm932_vm5, %v4006_v6 }
  0xe8   : > { %v1311_v19 = vpop.f32.mrf.mxu3 }
  0xe9   : > { %v4014_v21 = vadd.f32 %v1311_v19, %v1219_v15  ;;  %v858_v15 = vshrl.u32 %v4032_v54, 16  ;;  %v865_v19 = vshll.u32 %v769_v0, 16 }
  0xea   : > { %v1100_v23 = vpop.f32.mrf.mxu1 }
  0xeb   : > { %v4016_v25 = vadd.f32 %v1100_v23, %v981_v12  ;;  %v984_v30 = vpop.f32.mrf.mxu0  ;;  %v922_v23 = vrot.slane %v769_v0, 1  ;;  %v863_v31 = vor.u32 %v862_v17, %v858_v15  ;;  %v867_v38 = vrot.slane %v865_v19, 1 }
  0xec   : > { %v1221_v33 = vpop.f32.mrf.mxu2 }
  0xed   : > { %v4052_v41 = vsel %vm899_vm6, %v921_v13, %v922_v23 }
  0xee   : > { %3248 = vmatmul.msk.bf16.gmra.mxu0 %vm932_vm5, %v3979_v22 }
  0xf0   : > { %v1313_v43 = vpop.f32.mrf.mxu3 }
  0xf1   : > { %v4024_v44 = vadd.f32 %v1313_v43, %v1221_v33  ;;  %3281 = vmatmul.msk.bf16.gmra.mxu2 %vm932_vm5, %v3999_v61  ;;  %v605_v33 = vpack.c.bf16 %v553_v2, %v553_v2  ;;  %v646_v43 = vunpack.c.l.b16 %v606_v34 }
  0xf2   : > { %v1103_v46 = vpop.f32.mrf.mxu1 }
  0xf3   : > { %v4028_v49 = vadd.f32 %v1103_v46, %v984_v30  ;;  %v986_v52 = vpop.f32.mrf.mxu0  ;;  %v645_v42 = vunpack.c.l.b16 %v605_v33 }
  0xf4   : > { %v1224_v60 = vpop.f32.mrf.mxu2 }
  0xf5   : > { %3264 = vmatmul.msk.bf16.gmra.mxu1 %vm932_vm5, %v4006_v6  ;;  %3297 = vmatmul.msk.bf16.gmra.mxu3 %vm932_vm5, %v4006_v6  ;;  %v657_v0 = vpack.c.b16 %v646_v43, %v645_v42 }
  0xf7   : > { %v716_v3 = vshrl.u32 %v657_v0, 16  ;;  %v719_v23 = vshll.u32 %v657_v0, 16 }
  0xf8   : > { %v1316_v10 = vpop.f32.mrf.mxu3 }
  0xf9   : > { %v4043_v12 = vadd.f32 %v1316_v10, %v1224_v60  ;;  %v718_v19 = vrot.slane %v716_v3, 7 }
  0xfa   : > { %v1105_v9 = vpop.f32.mrf.mxu1 }
  0xfb   : > { %v4047_v30 = vadd.f32 %v1105_v9, %v986_v52  ;;  %v989_v32 = vpop.f32.mrf.mxu0  ;;  %v4059_v52 = vsel %vm772_vm7, %v863_v31, %v867_v38  ;;  %v721_v33 = vor.u32 %v719_v23, %v718_v19  ;;  %v3386_v23 = vld [vmem:[%s5474_s5 + $0x12] sm:$0x3] }
  0xfc   : > { %v1226_v35 = vpop.f32.mrf.mxu2 }
  0xfd   : > { %v4081_v43 = vsel %vm3756_vm4, 0, %v721_v33 }
  0xfe   : > { %3249 = vmatmul.msk.bf16.gmra.mxu0 %vm932_vm5, %v4032_v54  ;;  %v872_v0 = vshll.u32 %v4081_v43, 16  ;;  %v870_v33 = vshrl.u32 %v4081_v43, 16 }
 0x100   : > { %v1318_v46 = vpop.f32.mrf.mxu3 }
 0x101   : > { %v4054_v55 = vadd.f32 %v1318_v46, %v1226_v35  ;;  %3282 = vmatmul.msk.bf16.gmra.mxu2 %vm932_vm5, %v4052_v41 }
 0x102   : > { %v1108_v57 = vpop.f32.mrf.mxu1 }
 0x103   : > { %v4061_v60 = vadd.f32 %v1108_v57, %v989_v32  ;;  %v991_v8 = vpop.f32.mrf.mxu0  ;;  %v3420_v57 = vld [vmem:[%s5474_s5 + $0x16] sm:$0x3] }
 0x104   : > { %v1229_v2 = vpop.f32.mrf.mxu2 }
 0x105   : > { %3265 = vmatmul.msk.bf16.gmra.mxu1 %vm932_vm5, %v4059_v52  ;;  %3298 = vmatmul.msk.bf16.gmra.mxu3 %vm932_vm5, %v4059_v52 }
 0x108   : > { %v1321_v10 = vpop.f32.mrf.mxu3 }
 0x109   : > { %v4067_v13 = vadd.f32 %v1321_v10, %v1229_v2  ;;  %v2286_v2 = vsel %vm951_vm0, %v3420_v57, 0 }
 0x10a   : > { %v1110_v9 = vpop.f32.mrf.mxu1  ;;  %2295 = vmatpush.bf16.msra.mxu3 %v2286_v2 }
 0x10b   : > { %v4069_v15 = vadd.f32 %v1110_v9, %v991_v8  ;;  %v994_v17 = vpop.f32.mrf.mxu0  ;;  %v770_v8 = vsel %vm3756_vm4, %v718_v19, 0  ;;  %v924_v9 = vrot.slane %v4081_v43, 1 }
 0x10c   : > { %v1231_v32 = vpop.f32.mrf.mxu2  ;;  %v877_v19 = vshll.u32 %v770_v8, 16 }
 0x10e   : > { %3250 = vmatmul.msk.bf16.gmra.mxu0 %vm932_vm5, %v4032_v54 }
 0x110   : > { %v1323_v34 = vpop.f32.mrf.mxu3 }
 0x111   : > { %v4073_v35 = vadd.f32 %v1323_v34, %v1231_v32  ;;  %3283 = vmatmul.msk.bf16.gmra.mxu2 %vm932_vm5, %v4052_v41  ;;  %v874_v34 = vrot.slane %v872_v0, 1 }
 0x112   : > { %v1113_v31 = vpop.f32.mrf.mxu1 }
 0x113   : > { %5510 = vst [vmem:[#allocation4_spill] sm:$0xff] %v4073_v35  ;;  %v4077_v38 = vadd.f32 %v1113_v31, %v994_v17  ;;  %v996_v42 = vpop.f32.mrf.mxu0  ;;  %v925_v17 = vrot.slane %v770_v8, 1  ;;  %v2029_v31 = vsel %vm951_vm0, %v3386_v23, 0  ;;  %v875_v2 = vor.u32 %v874_v34, %v870_v33 }
 0x114   : > { %v1234_v46 = vpop.f32.mrf.mxu2  ;;  %2038 = vmatpush.bf16.msra.mxu1 %v2029_v31 }
 0x115   : > { %5511 = vst [vmem:[#allocation5_spill] sm:$0xff] %v4077_v38  ;;  %3266 = vmatmul.msk.bf16.gmra.mxu1 %vm932_vm5, %v4059_v52  ;;  %3299 = vmatmul.msk.bf16.gmra.mxu3 %vm932_vm5, %v4059_v52 }
 0x118   : > { %v1326_v3 = vpop.f32.mrf.mxu3 }
 0x119   : > { %v4094_v10 = vadd.f32 %v1326_v3, %v1234_v46  ;;  %v879_v3 = vrot.slane %v877_v19, 1  ;;  %v3403_v19 = vld [vmem:[%s5474_s5 + $0x14] sm:$0x3] }
 0x11a   : > { %v1115_v32 = vpop.f32.mrf.mxu1 }
 0x11b   : > { %5512 = vst [vmem:[#allocation6_spill] sm:$0xff] %v4094_v10  ;;  %v4102_v48 = vadd.f32 %v1115_v32, %v996_v42  ;;  %v999_v57 = vpop.f32.mrf.mxu0  ;;  %v4107_v10 = vsel %vm899_vm6, %v924_v9, %v925_v17  ;;  %v4114_v42 = vsel %vm772_vm7, %v875_v2, %v879_v3 }
 0x11c   : > { %v1236_v46 = vpop.f32.mrf.mxu2 }
 0x11e   : > { %3251 = vmatmul.msk.bf16.gmra.mxu0 %vm932_vm5, %v4081_v43 }
 0x120   : > { %v1328_v38 = vpop.f32.mrf.mxu3 }
 0x121   : > { %v4109_v35 = vadd.f32 %v1328_v38, %v1236_v46  ;;  %3284 = vmatmul.msk.bf16.gmra.mxu2 %vm932_vm5, %v4107_v10  ;;  %v3369_v46 = vld [vmem:[%s5474_s5 + $0x10] sm:$0x3] }
 0x122   : > { %v1118_v8 = vpop.f32.mrf.mxu1  ;;  %v1903_v2 = vsel %vm951_vm0, %v3369_v46, 0 }
 0x123   : > { %v4116_v0 = vadd.f32 %v1118_v8, %v999_v57  ;;  %v1001_v23 = vpop.f32.mrf.mxu0  ;;  %v2157_v57 = vsel %vm951_vm0, %v3403_v19, 0  ;;  %1912 = vmatpush.bf16.msra.mxu0 %v1903_v2 }
 0x124   : > { %v1239_v32 = vpop.f32.mrf.mxu2  ;;  %2166 = vmatpush.bf16.msra.mxu2 %v2157_v57 }
 0x125   : > { %3267 = vmatmul.msk.bf16.gmra.mxu1 %vm932_vm5, %v4114_v42  ;;  %3300 = vmatmul.msk.bf16.gmra.mxu3 %vm932_vm5, %v4114_v42 }
 0x128   : > { %v1331_v9 = vpop.f32.mrf.mxu3 }
 0x129   : > { %v4122_v38 = vadd.f32 %v1331_v9, %v1239_v32 }
 0x12a   : > { %v1120_v17 = vpop.f32.mrf.mxu1 }
 0x12b   : > { %v4124_v33 = vadd.f32 %v1120_v17, %v1001_v23  ;;  %v1004_v34 = vpop.f32.mrf.mxu0 }
 0x12c   : > { %v1241_v31 = vpop.f32.mrf.mxu2 }
 0x12d   : > { %5513 = vst [vmem:[#allocation7_spill] sm:$0xff] %v4124_v33 }
 0x12e   : > { %3302 = vmatmul.msk.bf16.vlgmr.msrb.gmra.mxu0 %vm932_vm5, %v3797_v29 }
 0x130   : > { %v1333_v3 = vpop.f32.mrf.mxu3 }
 0x131   : > { %v4136_v8 = vadd.f32 %v1333_v3, %v1241_v31  ;;  %3336 = vmatmul.msk.bf16.vlgmr.msrb.gmra.mxu2 %vm932_vm5, %v3777_v7 }
 0x132   : > { %v1123_v23 = vpop.f32.mrf.mxu1 }
 0x133   : > { %5514 = vst [vmem:[#allocation8_spill] sm:$0xff] %v4136_v8  ;;  %v4140_v32 = vadd.f32 %v1123_v23, %v1004_v34  ;;  %v1006_v9 = vpop.f32.mrf.mxu0 }
 0x134   : > { %v1244_v17 = vpop.f32.mrf.mxu2 }
 0x135   : > { %5515 = vst [vmem:[#allocation9_spill] sm:$0xff] %v4140_v32  ;;  %3319 = vmatmul.msk.bf16.vlgmr.msrb.gmra.mxu1 %vm932_vm5, %v3797_v29  ;;  %3353 = vmatmul.msk.bf16.vlgmr.msrb.gmra.mxu3 %vm932_vm5, %v3792_v26 }
 0x138   : > { %v1336_v19 = vpop.f32.mrf.mxu3 }
 0x139   : > { %v4146_v57 = vadd.f32 %v1336_v19, %v1244_v17 }
 0x13a   : > { %v1125_v46 = vpop.f32.mrf.mxu1 }
 0x13b   : > { %v4148_v31 = vadd.f32 %v1125_v46, %v1006_v9  ;;  %v1009_v2 = vpop.f32.mrf.mxu0 }
 0x13c   : > { %v1246_v3 = vpop.f32.mrf.mxu2 }
 0x13d   : > { %5516 = vst [vmem:[#allocation10_spill] sm:$0xff] %v4148_v31 }
 0x13e   : > { %3303 = vmatmul.msk.bf16.gmra.mxu0 %vm932_vm5, %v3797_v29 }
 0x140   : > { %v1338_v34 = vpop.f32.mrf.mxu3 }
 0x141   : > { %v4152_v23 = vadd.f32 %v1338_v34, %v1246_v3  ;;  %3337 = vmatmul.msk.bf16.gmra.mxu2 %vm932_vm5, %v3777_v7 }
 0x142   : > { %v1128_v32 = vpop.f32.mrf.mxu1 }
 0x143   : > { %5517 = vst [vmem:[#allocation11_spill] sm:$0xff] %v4152_v23  ;;  %v4156_v8 = vadd.f32 %v1128_v32, %v1009_v2  ;;  %v1011_v33 = vpop.f32.mrf.mxu0 }
 0x144   : > { %v1249_v17 = vpop.f32.mrf.mxu2 }
 0x145   : > { %5518 = vst [vmem:[#allocation12_spill] sm:$0xff] %v4156_v8  ;;  %3320 = vmatmul.msk.bf16.gmra.mxu1 %vm932_vm5, %v3797_v29  ;;  %3354 = vmatmul.msk.bf16.gmra.mxu3 %vm932_vm5, %v3792_v26 }
 0x148   : > { %v1341_v9 = vpop.f32.mrf.mxu3 }
 0x149   : > { %v4162_v19 = vadd.f32 %v1341_v9, %v1249_v17 }
 0x14a   : > { %v1130_v46 = vpop.f32.mrf.mxu1 }
 0x14b   : > { %5519 = vst [vmem:[#allocation13_spill] sm:$0xff] %v4162_v19  ;;  %v4164_v3 = vadd.f32 %v1130_v46, %v1011_v33  ;;  %v1014_v34 = vpop.f32.mrf.mxu0 }
 0x14c   : > { %v1251_v23 = vpop.f32.mrf.mxu2 }
 0x14d   : > { %5520 = vst [vmem:[#allocation14_spill] sm:$0xff] %v4164_v3 }
 0x14e   : > { %3304 = vmatmul.msk.bf16.gmra.mxu0 %vm932_vm5, %v3834_v59 }
 0x150   : > { %v1343_v32 = vpop.f32.mrf.mxu3 }
 0x151   : > { %v4168_v2 = vadd.f32 %v1343_v32, %v1251_v23  ;;  %3338 = vmatmul.msk.bf16.gmra.mxu2 %vm932_vm5, %v3813_v39 }
 0x152   : > { %v1133_v8 = vpop.f32.mrf.mxu1 }
 0x153   : > { %5521 = vst [vmem:[#allocation15_spill] sm:$0xff] %v4168_v2  ;;  %v4172_v31 = vadd.f32 %v1133_v8, %v1014_v34  ;;  %v1016_v26 = vpop.f32.mrf.mxu0 }
 0x154   : > { %v1254_v17 = vpop.f32.mrf.mxu2 }
 0x155   : > { %5522 = vst [vmem:[#allocation16_spill] sm:$0xff] %v4172_v31  ;;  %3321 = vmatmul.msk.bf16.gmra.mxu1 %vm932_vm5, %v3834_v59  ;;  %3355 = vmatmul.msk.bf16.gmra.mxu3 %vm932_vm5, %v3829_v56 }
 0x158   : > { %v1346_v33 = vpop.f32.mrf.mxu3 }
 0x159   : > { %v4178_v9 = vadd.f32 %v1346_v33, %v1254_v17 }
 0x15a   : > { %v1135_v46 = vpop.f32.mrf.mxu1 }
 0x15b   : > { %5523 = vst [vmem:[#allocation17_spill] sm:$0xff] %v4178_v9  ;;  %v4180_v23 = vadd.f32 %v1135_v46, %v1016_v26  ;;  %v1019_v32 = vpop.f32.mrf.mxu0 }
 0x15c   : > { %v1256_v2 = vpop.f32.mrf.mxu2 }
 0x15d   : > { %5524 = vst [vmem:[#allocation18_spill] sm:$0xff] %v4180_v23 }
 0x15e   : > { %3305 = vmatmul.msk.bf16.gmra.mxu0 %vm932_vm5, %v3834_v59 }
 0x160   : > { %v1348_v8 = vpop.f32.mrf.mxu3 }
 0x161   : > { %v4184_v34 = vadd.f32 %v1348_v8, %v1256_v2  ;;  %3339 = vmatmul.msk.bf16.gmra.mxu2 %vm932_vm5, %v3813_v39 }
 0x162   : > { %v1138_v31 = vpop.f32.mrf.mxu1 }
 0x163   : > { %5525 = vst [vmem:[#allocation19_spill] sm:$0xff] %v4184_v34  ;;  %v4188_v3 = vadd.f32 %v1138_v31, %v1019_v32  ;;  %v1021_v19 = vpop.f32.mrf.mxu0 }
 0x164   : > { %v1259_v17 = vpop.f32.mrf.mxu2 }
 0x165   : > { %5526 = vst [vmem:[#allocation20_spill] sm:$0xff] %v4188_v3  ;;  %3322 = vmatmul.msk.bf16.gmra.mxu1 %vm932_vm5, %v3834_v59  ;;  %3356 = vmatmul.msk.bf16.gmra.mxu3 %vm932_vm5, %v3829_v56 }
 0x168   : > { %v1351_v26 = vpop.f32.mrf.mxu3 }
 0x169   : > { %v4194_v33 = vadd.f32 %v1351_v26, %v1259_v17 }
 0x16a   : > { %v1140_v46 = vpop.f32.mrf.mxu1 }
 0x16b   : > { %5527 = vst [vmem:[#allocation21_spill] sm:$0xff] %v4194_v33  ;;  %v4196_v2 = vadd.f32 %v1140_v46, %v1021_v19  ;;  %v1024_v8 = vpop.f32.mrf.mxu0 }
 0x16c   : > { %v1261_v34 = vpop.f32.mrf.mxu2 }
 0x16d   : > { %5528 = vst [vmem:[#allocation22_spill] sm:$0xff] %v4196_v2 }
 0x16e   : > { %3306 = vmatmul.msk.bf16.gmra.mxu0 %vm932_vm5, %v3871_v28 }
 0x170   : > { %v1353_v31 = vpop.f32.mrf.mxu3 }
 0x171   : > { %v4200_v32 = vadd.f32 %v1353_v31, %v1261_v34  ;;  %3340 = vmatmul.msk.bf16.gmra.mxu2 %vm932_vm5, %v3850_v5 }
 0x172   : > { %v1143_v3 = vpop.f32.mrf.mxu1 }
 0x173   : > { %5529 = vst [vmem:[#allocation23_spill] sm:$0xff] %v4200_v32  ;;  %v4204_v23 = vadd.f32 %v1143_v3, %v1024_v8  ;;  %v1026_v9 = vpop.f32.mrf.mxu0 }
 0x174   : > { %v1264_v17 = vpop.f32.mrf.mxu2 }
 0x175   : > { %5530 = vst [vmem:[#allocation24_spill] sm:$0xff] %v4204_v23  ;;  %3323 = vmatmul.msk.bf16.gmra.mxu1 %vm932_vm5, %v3871_v28  ;;  %3357 = vmatmul.msk.bf16.gmra.mxu3 %vm932_vm5, %v3866_v24 }
 0x178   : > { %v1356_v19 = vpop.f32.mrf.mxu3 }
 0x179   : > { %v4210_v26 = vadd.f32 %v1356_v19, %v1264_v17 }
 0x17a   : > { %v1145_v46 = vpop.f32.mrf.mxu1 }
 0x17b   : > { %5531 = vst [vmem:[#allocation25_spill] sm:$0xff] %v4210_v26  ;;  %v4212_v34 = vadd.f32 %v1145_v46, %v1026_v9  ;;  %v1029_v31 = vpop.f32.mrf.mxu0 }
 0x17c   : > { %v1266_v32 = vpop.f32.mrf.mxu2 }
 0x17d   : > { %5532 = vst [vmem:[#allocation26_spill] sm:$0xff] %v4212_v34 }
 0x17e   : > { %3307 = vmatmul.msk.bf16.gmra.mxu0 %vm932_vm5, %v3871_v28 }
 0x180   : > { %v1358_v3 = vpop.f32.mrf.mxu3 }
 0x181   : > { %v4216_v8 = vadd.f32 %v1358_v3, %v1266_v32  ;;  %3341 = vmatmul.msk.bf16.gmra.mxu2 %vm932_vm5, %v3850_v5 }
 0x182   : > { %v1148_v23 = vpop.f32.mrf.mxu1 }
 0x183   : > { %5533 = vst [vmem:[#allocation27_spill] sm:$0xff] %v4216_v8  ;;  %v4220_v2 = vadd.f32 %v1148_v23, %v1029_v31  ;;  %v1031_v33 = vpop.f32.mrf.mxu0 }
 0x184   : > { %v1269_v17 = vpop.f32.mrf.mxu2 }
 0x185   : > { %5534 = vst [vmem:[#allocation28_spill] sm:$0xff] %v4220_v2  ;;  %3324 = vmatmul.msk.bf16.gmra.mxu1 %vm932_vm5, %v3871_v28  ;;  %3358 = vmatmul.msk.bf16.gmra.mxu3 %vm932_vm5, %v3866_v24 }
 0x188   : > { %v1361_v9 = vpop.f32.mrf.mxu3 }
 0x189   : > { %v4226_v19 = vadd.f32 %v1361_v9, %v1269_v17 }
 0x18a   : > { %v1150_v46 = vpop.f32.mrf.mxu1 }
 0x18b   : > { %5535 = vst [vmem:[#allocation29_spill] sm:$0xff] %v4226_v19  ;;  %v4228_v32 = vadd.f32 %v1150_v46, %v1031_v33  ;;  %v1034_v3 = vpop.f32.mrf.mxu0 }
 0x18c   : > { %v1271_v8 = vpop.f32.mrf.mxu2 }
 0x18d   : > { %5536 = vst [vmem:[#allocation30_spill] sm:$0xff] %v4228_v32 }
 0x18e   : > { %3308 = vmatmul.msk.bf16.gmra.mxu0 %vm932_vm5, %v3908_v62 }
 0x190   : > { %v1363_v23 = vpop.f32.mrf.mxu3 }
 0x191   : > { %v4232_v31 = vadd.f32 %v1363_v23, %v1271_v8  ;;  %3342 = vmatmul.msk.bf16.gmra.mxu2 %vm932_vm5, %v3887_v40 }
 0x192   : > { %v1153_v2 = vpop.f32.mrf.mxu1 }
 0x193   : > { %5537 = vst [vmem:[#allocation31_spill] sm:$0xff] %v4232_v31  ;;  %v4236_v34 = vadd.f32 %v1153_v2, %v1034_v3  ;;  %v1036_v26 = vpop.f32.mrf.mxu0 }
 0x194   : > { %v1274_v17 = vpop.f32.mrf.mxu2 }
 0x195   : > { %5538 = vst [vmem:[#allocation32_spill] sm:$0xff] %v4236_v34  ;;  %3325 = vmatmul.msk.bf16.gmra.mxu1 %vm932_vm5, %v3908_v62  ;;  %3359 = vmatmul.msk.bf16.gmra.mxu3 %vm932_vm5, %v3903_v58 }
 0x198   : > { %v1366_v33 = vpop.f32.mrf.mxu3 }
 0x199   : > { %v4242_v9 = vadd.f32 %v1366_v33, %v1274_v17 }
 0x19a   : > { %v1155_v46 = vpop.f32.mrf.mxu1 }
 0x19b   : > { %v4244_v8 = vadd.f32 %v1155_v46, %v1036_v26  ;;  %v1039_v23 = vpop.f32.mrf.mxu0 }
 0x19c   : > { %v1276_v31 = vpop.f32.mrf.mxu2 }
 0x19d   : > { %5539 = vst [vmem:[#allocation33_spill] sm:$0xff] %v4244_v8 }
 0x19e   : > { %3309 = vmatmul.msk.bf16.gmra.mxu0 %vm932_vm5, %v3908_v62 }
 0x1a0   : > { %v1368_v2 = vpop.f32.mrf.mxu3 }
 0x1a1   : > { %v4248_v3 = vadd.f32 %v1368_v2, %v1276_v31  ;;  %3343 = vmatmul.msk.bf16.gmra.mxu2 %vm932_vm5, %v3887_v40 }
 0x1a2   : > { %v1158_v34 = vpop.f32.mrf.mxu1 }
 0x1a3   : > { %5540 = vst [vmem:[#allocation34_spill] sm:$0xff] %v4248_v3  ;;  %v4252_v32 = vadd.f32 %v1158_v34, %v1039_v23  ;;  %v1041_v19 = vpop.f32.mrf.mxu0 }
 0x1a4   : > { %v1279_v17 = vpop.f32.mrf.mxu2 }
 0x1a5   : > { %5541 = vst [vmem:[#allocation35_spill] sm:$0xff] %v4252_v32  ;;  %3326 = vmatmul.msk.bf16.gmra.mxu1 %vm932_vm5, %v3908_v62  ;;  %3360 = vmatmul.msk.bf16.gmra.mxu3 %vm932_vm5, %v3903_v58 }
 0x1a8   : > { %v1371_v26 = vpop.f32.mrf.mxu3 }
 0x1a9   : > { %v4258_v33 = vadd.f32 %v1371_v26, %v1279_v17 }
 0x1aa   : > { %v1160_v46 = vpop.f32.mrf.mxu1 }
 0x1ab   : > { %v4260_v31 = vadd.f32 %v1160_v46, %v1041_v19  ;;  %v1390_v2 = vpop.f32.mrf.mxu0 }
 0x1ac   : > { %v1470_v3 = vadd.f32 %v1390_v2, %v3922_v14  ;;  %v1281_v8 = vpop.f32.mrf.mxu2 }
 0x1ad   : > { %5542 = vst [vmem:[#allocation36_spill] sm:$0xff] %v4260_v31 }
 0x1ae   : > { %3310 = vmatmul.msk.bf16.gmra.mxu0 %vm932_vm5, %v3953_v51 }
 0x1b0   : > { %v1373_v34 = vpop.f32.mrf.mxu3 }
 0x1b1   : > { %v4265_v23 = vadd.f32 %v1373_v34, %v1281_v8  ;;  %3344 = vmatmul.msk.bf16.gmra.mxu2 %vm932_vm5, %v3926_v16 }
 0x1b2   : > { %v1516_v32 = vpop.f32.mrf.mxu1 }
 0x1b3   : > { %5543 = vst [vmem:[#allocation37_spill] sm:$0xff] %v4265_v23  ;;  %v1596_v17 = vadd.f32 %v1516_v32, %v3937_v27  ;;  %v1392_v26 = vpop.f32.mrf.mxu0 }
 0x1b4   : > { %v1471_v19 = vadd.f32 %v1392_v26, %v3941_v36  ;;  %v1642_v46 = vpop.f32.mrf.mxu2 }
 0x1b5   : > { %v4271_v31 = vadd.f32 %v1642_v46, %v1470_v3  ;;  %3327 = vmatmul.msk.bf16.gmra.mxu1 %vm932_vm5, %v3953_v51  ;;  %3361 = vmatmul.msk.bf16.gmra.mxu3 %vm932_vm5, %v3946_v45 }
 0x1b8   : > { %v1768_v14 = vpop.f32.mrf.mxu3 }
 0x1b9   : > { %v4277_v8 = vadd.f32 %v1768_v14, %v1596_v17 }
 0x1ba   : > { %v1518_v2 = vpop.f32.mrf.mxu1 }
 0x1bb   : > { %v1597_v34 = vadd.f32 %v1518_v2, %v3948_v50  ;;  %v1395_v23 = vpop.f32.mrf.mxu0 }
 0x1bc   : > { %v1472_v27 = vadd.f32 %v1395_v23, %v3955_v53  ;;  %v1644_v32 = vpop.f32.mrf.mxu2 }
 0x1bd   : > { %v4281_v36 = vadd.f32 %v1644_v32, %v1471_v19 }
 0x1be   : > { %3311 = vmatmul.msk.bf16.gmra.mxu0 %vm932_vm5, %v3953_v51 }
 0x1c0   : > { %v1770_v3 = vpop.f32.mrf.mxu3 }
 0x1c1   : > { %v4285_v26 = vadd.f32 %v1770_v3, %v1597_v34  ;;  %3345 = vmatmul.msk.bf16.gmra.mxu2 %vm932_vm5, %v3926_v16 }
 0x1c2   : > { %v1521_v17 = vpop.f32.mrf.mxu1 }
 0x1c3   : > { %v1598_v46 = vadd.f32 %v1521_v17, %v3961_v63  ;;  %v1397_v14 = vpop.f32.mrf.mxu0 }
 0x1c4   : > { %v1473_v50 = vadd.f32 %v1397_v14, %v3963_v1  ;;  %v1647_v2 = vpop.f32.mrf.mxu2 }
 0x1c5   : > { %v4291_v53 = vadd.f32 %v1647_v2, %v1472_v27  ;;  %3328 = vmatmul.msk.bf16.gmra.mxu1 %vm932_vm5, %v3953_v51  ;;  %3362 = vmatmul.msk.bf16.gmra.mxu3 %vm932_vm5, %v3946_v45 }
 0x1c8   : > { %v1773_v23 = vpop.f32.mrf.mxu3 }
 0x1c9   : > { %v4297_v19 = vadd.f32 %v1773_v23, %v1598_v46 }
 0x1ca   : > { %v1523_v34 = vpop.f32.mrf.mxu1 }
 0x1cb   : > { %v1599_v32 = vadd.f32 %v1523_v34, %v3971_v18  ;;  %v1400_v3 = vpop.f32.mrf.mxu0 }
 0x1cc   : > { %v1474_v63 = vadd.f32 %v1400_v3, %v3975_v20  ;;  %v1649_v17 = vpop.f32.mrf.mxu2 }
 0x1cd   : > { %v4301_v1 = vadd.f32 %v1649_v17, %v1473_v50 }
 0x1ce   : > { %3312 = vmatmul.msk.bf16.gmra.mxu0 %vm932_vm5, %v4006_v6 }
 0x1d0   : > { %v1775_v27 = vpop.f32.mrf.mxu3 }
 0x1d1   : > { %v4305_v14 = vadd.f32 %v1775_v27, %v1599_v32  ;;  %3346 = vmatmul.msk.bf16.gmra.mxu2 %vm932_vm5, %v3979_v22 }
 0x1d2   : > { %v1526_v46 = vpop.f32.mrf.mxu1 }
 0x1d3   : > { %v1600_v2 = vadd.f32 %v1526_v46, %v3990_v37  ;;  %v1402_v23 = vpop.f32.mrf.mxu0 }
 0x1d4   : > { %v1475_v18 = vadd.f32 %v1402_v23, %v3994_v47  ;;  %v1652_v34 = vpop.f32.mrf.mxu2 }
 0x1d5   : > { %v4311_v20 = vadd.f32 %v1652_v34, %v1474_v63  ;;  %3329 = vmatmul.msk.bf16.gmra.mxu1 %vm932_vm5, %v4006_v6  ;;  %3363 = vmatmul.msk.bf16.gmra.mxu3 %vm932_vm5, %v3999_v61 }
 0x1d8   : > { %v1778_v50 = vpop.f32.mrf.mxu3 }
 0x1d9   : > { %v4317_v32 = vadd.f32 %v1778_v50, %v1600_v2 }
 0x1da   : > { %v1528_v3 = vpop.f32.mrf.mxu1 }
 0x1db   : > { %v1601_v17 = vadd.f32 %v1528_v3, %v4001_v4  ;;  %v1405_v27 = vpop.f32.mrf.mxu0 }
 0x1dc   : > { %v1476_v37 = vadd.f32 %v1405_v27, %v4008_v11  ;;  %v1654_v46 = vpop.f32.mrf.mxu2 }
 0x1dd   : > { %v4321_v47 = vadd.f32 %v1654_v46, %v1475_v18 }
 0x1de   : > { %3313 = vmatmul.msk.bf16.gmra.mxu0 %vm932_vm5, %v4006_v6 }
 0x1e0   : > { %v1780_v63 = vpop.f32.mrf.mxu3 }
 0x1e1   : > { %v4325_v23 = vadd.f32 %v1780_v63, %v1601_v17  ;;  %3347 = vmatmul.msk.bf16.gmra.mxu2 %vm932_vm5, %v3979_v22 }
 0x1e2   : > { %v1531_v2 = vpop.f32.mrf.mxu1 }
 0x1e3   : > { %v1602_v34 = vadd.f32 %v1531_v2, %v4014_v21  ;;  %v1407_v50 = vpop.f32.mrf.mxu0 }
 0x1e4   : > { %v1477_v4 = vadd.f32 %v1407_v50, %v4016_v25  ;;  %v1657_v3 = vpop.f32.mrf.mxu2 }
 0x1e5   : > { %v4331_v11 = vadd.f32 %v1657_v3, %v1476_v37  ;;  %3330 = vmatmul.msk.bf16.gmra.mxu1 %vm932_vm5, %v4006_v6  ;;  %3364 = vmatmul.msk.bf16.gmra.mxu3 %vm932_vm5, %v3999_v61 }
 0x1e8   : > { %v1783_v18 = vpop.f32.mrf.mxu3 }
 0x1e9   : > { %v4337_v17 = vadd.f32 %v1783_v18, %v1602_v34 }
 0x1ea   : > { %v1533_v27 = vpop.f32.mrf.mxu1 }
 0x1eb   : > { %v1603_v46 = vadd.f32 %v1533_v27, %v4024_v44  ;;  %v1410_v63 = vpop.f32.mrf.mxu0 }
 0x1ec   : > { %v1478_v21 = vadd.f32 %v1410_v63, %v4028_v49  ;;  %v1659_v2 = vpop.f32.mrf.mxu2 }
 0x1ed   : > { %v4341_v25 = vadd.f32 %v1659_v2, %v1477_v4 }
 0x1ee   : > { %3314 = vmatmul.msk.bf16.gmra.mxu0 %vm932_vm5, %v4059_v52 }
 0x1f0   : > { %v1785_v37 = vpop.f32.mrf.mxu3 }
 0x1f1   : > { %v4345_v50 = vadd.f32 %v1785_v37, %v1603_v46  ;;  %3348 = vmatmul.msk.bf16.gmra.mxu2 %vm932_vm5, %v4032_v54 }
 0x1f2   : > { %v1536_v34 = vpop.f32.mrf.mxu1 }
 0x1f3   : > { %v1604_v3 = vadd.f32 %v1536_v34, %v4043_v12  ;;  %v1412_v18 = vpop.f32.mrf.mxu0 }
 0x1f4   : > { %v1479_v44 = vadd.f32 %v1412_v18, %v4047_v30  ;;  %v1662_v27 = vpop.f32.mrf.mxu2 }
 0x1f5   : > { %v4351_v49 = vadd.f32 %v1662_v27, %v1478_v21  ;;  %3331 = vmatmul.msk.bf16.gmra.mxu1 %vm932_vm5, %v4059_v52  ;;  %3365 = vmatmul.msk.bf16.gmra.mxu3 %vm932_vm5, %v4052_v41 }
 0x1f8   : > { %v1788_v4 = vpop.f32.mrf.mxu3 }
 0x1f9   : > { %v4357_v46 = vadd.f32 %v1788_v4, %v1604_v3 }
 0x1fa   : > { %v1538_v63 = vpop.f32.mrf.mxu1 }
 0x1fb   : > { %v1605_v2 = vadd.f32 %v1538_v63, %v4054_v55  ;;  %v1415_v37 = vpop.f32.mrf.mxu0 }
 0x1fc   : > { %v1480_v12 = vadd.f32 %v1415_v37, %v4061_v60  ;;  %v1664_v34 = vpop.f32.mrf.mxu2 }
 0x1fd   : > { %v4361_v30 = vadd.f32 %v1664_v34, %v1479_v44  ;;  %v5547_v34 = vld [vmem:[#allocation4_spill] sm:$0xff] }
 0x1fe   : > { %3315 = vmatmul.msk.bf16.gmra.mxu0 %vm932_vm5, %v4059_v52 }
 0x1ff   : > { %5544 = vst [vmem:[#allocation38_spill] sm:$0xff] %v4361_v30 }
 0x200   : > { %v1790_v21 = vpop.f32.mrf.mxu3 }
 0x201   : > { %v4365_v18 = vadd.f32 %v1790_v21, %v1605_v2  ;;  %3349 = vmatmul.msk.bf16.gmra.mxu2 %vm932_vm5, %v4032_v54 }
 0x202   : > { %v1541_v3 = vpop.f32.mrf.mxu1 }
 0x203   : > { %5545 = vst [vmem:[#allocation39_spill] sm:$0xff] %v4365_v18  ;;  %v1606_v27 = vadd.f32 %v1541_v3, %v4067_v13  ;;  %v1417_v4 = vpop.f32.mrf.mxu0  ;;  %v5548_v13 = vld [vmem:[#allocation5_spill] sm:$0xff] }
 0x204   : > { %v1481_v55 = vadd.f32 %v1417_v4, %v4069_v15  ;;  %v1667_v63 = vpop.f32.mrf.mxu2 }
 0x205   : > { %v4371_v60 = vadd.f32 %v1667_v63, %v1480_v12  ;;  %3332 = vmatmul.msk.bf16.gmra.mxu1 %vm932_vm5, %v4059_v52  ;;  %3366 = vmatmul.msk.bf16.gmra.mxu3 %vm932_vm5, %v4052_v41  ;;  %v5550_v63 = vld [vmem:[#allocation6_spill] sm:$0xff] }
 0x208   : > { %v1793_v44 = vpop.f32.mrf.mxu3 }
 0x209   : > { %v4377_v2 = vadd.f32 %v1793_v44, %v1606_v27 }
 0x20a   : > { %v1543_v37 = vpop.f32.mrf.mxu1 }
 0x20b   : > { %5546 = vst [vmem:[#allocation40_spill] sm:$0xff] %v4377_v2  ;;  %v1607_v21 = vadd.f32 %v1543_v37, %v5547_v34  ;;  %v1420_v30 = vpop.f32.mrf.mxu0 }
 0x20c   : > { %v1482_v3 = vadd.f32 %v1420_v30, %v5548_v13  ;;  %v1669_v18 = vpop.f32.mrf.mxu2 }
 0x20d   : > { %v4381_v15 = vadd.f32 %v1669_v18, %v1481_v55 }
 0x20e   : > { %3316 = vmatmul.msk.bf16.gmra.mxu0 %vm932_vm5, %v4114_v42 }
 0x20f   : > { %5549 = vst [vmem:[#allocation4_spill] sm:$0xff] %v4381_v15 }
 0x210   : > { %v1795_v12 = vpop.f32.mrf.mxu3 }
 0x211   : > { %v4385_v4 = vadd.f32 %v1795_v12, %v1607_v21  ;;  %3350 = vmatmul.msk.bf16.gmra.mxu2 %vm932_vm5, %v4081_v43 }
 0x212   : > { %v1546_v27 = vpop.f32.mrf.mxu1 }
 0x213   : > { %v1608_v44 = vadd.f32 %v1546_v27, %v5550_v63  ;;  %v1422_v2 = vpop.f32.mrf.mxu0 }
 0x214   : > { %v1483_v37 = vadd.f32 %v1422_v2, %v4102_v48  ;;  %v1672_v34 = vpop.f32.mrf.mxu2 }
 0x215   : > { %v4391_v30 = vadd.f32 %v1672_v34, %v1482_v3  ;;  %3333 = vmatmul.msk.bf16.gmra.mxu1 %vm932_vm5, %v4114_v42  ;;  %3367 = vmatmul.msk.bf16.gmra.mxu3 %vm932_vm5, %v4107_v10 }
 0x218   : > { %v1798_v18 = vpop.f32.mrf.mxu3 }
 0x219   : > { %v4397_v55 = vadd.f32 %v1798_v18, %v1608_v44 }
 0x21a   : > { %v1548_v21 = vpop.f32.mrf.mxu1 }
 0x21b   : > { %5551 = vst [vmem:[#allocation5_spill] sm:$0xff] %v4397_v55  ;;  %v1609_v13 = vadd.f32 %v1548_v21, %v4109_v35  ;;  %v1425_v12 = vpop.f32.mrf.mxu0  ;;  %v5553_v35 = vld [vmem:[#allocation7_spill] sm:$0xff] }
 0x21c   : > { %v1484_v27 = vadd.f32 %v1425_v12, %v4116_v0  ;;  %v1674_v63 = vpop.f32.mrf.mxu2 }
 0x21d   : > { %v4401_v48 = vadd.f32 %v1674_v63, %v1483_v37  ;;  %v5555_v63 = vld [vmem:[#allocation8_spill] sm:$0xff] }
 0x21e   : > { %3317 = vmatmul.msk.bf16.gmra.mxu0 %vm932_vm5, %v4114_v42 }
 0x220   : > { %v1800_v2 = vpop.f32.mrf.mxu3 }
 0x221   : > { %v4405_v3 = vadd.f32 %v1800_v2, %v1609_v13  ;;  %3351 = vmatmul.msk.bf16.gmra.mxu2 %vm932_vm5, %v4081_v43 }
 0x222   : > { %v1551_v44 = vpop.f32.mrf.mxu1 }
 0x223   : > { %5552 = vst [vmem:[#allocation6_spill] sm:$0xff] %v4405_v3  ;;  %v1610_v34 = vadd.f32 %v1551_v44, %v4122_v38  ;;  %v1427_v18 = vpop.f32.mrf.mxu0  ;;  %v5556_v38 = vld [vmem:[#allocation9_spill] sm:$0xff] }
 0x224   : > { %v1485_v21 = vadd.f32 %v1427_v18, %v5553_v35  ;;  %v1677_v15 = vpop.f32.mrf.mxu2 }
 0x225   : > { %v4411_v0 = vadd.f32 %v1677_v15, %v1484_v27  ;;  %3334 = vmatmul.msk.bf16.gmra.mxu1 %vm932_vm5, %v4114_v42  ;;  %3368 = vmatmul.msk.bf16.gmra.mxu3 %vm932_vm5, %v4107_v10 }
 0x228   : > { %v1803_v37 = vpop.f32.mrf.mxu3 }
 0x229   : > { %v4417_v13 = vadd.f32 %v1803_v37, %v1610_v34 }
 0x22a   : > { %v1553_v12 = vpop.f32.mrf.mxu1 }
 0x22b   : > { %5554 = vst [vmem:[#allocation7_spill] sm:$0xff] %v4417_v13  ;;  %v1611_v2 = vadd.f32 %v1553_v12, %v5555_v63  ;;  %v1430_v3 = vpop.f32.mrf.mxu0  ;;  %v5559_v12 = vld [vmem:[#allocation10_spill] sm:$0xff] }
 0x22c   : > { %v1486_v44 = vadd.f32 %v1430_v3, %v5556_v38  ;;  %v1679_v55 = vpop.f32.mrf.mxu2 }
 0x22d   : > { %v4421_v18 = vadd.f32 %v1679_v55, %v1485_v21  ;;  %v5560_v55 = vld [vmem:[#allocation3_spill] sm:$0xff] }
 0x22e   : > { %3370 = vmatmul.msk.bf16.vlgmr.msra.gmra.mxu0 %vm932_vm5, %v3797_v29 }
 0x22f   : > { %5557 = vst [vmem:[#allocation8_spill] sm:$0xff] %v4421_v18 }
 0x230   : > { %v1805_v15 = vpop.f32.mrf.mxu3 }
 0x231   : > { %v4425_v27 = vadd.f32 %v1805_v15, %v1611_v2  ;;  %3404 = vmatmul.msk.bf16.vlgmr.msra.gmra.mxu2 %vm932_vm5, %v3777_v7  ;;  %v5562_v7 = vld [vmem:[#allocation11_spill] sm:$0xff] }
 0x232   : > { %v1556_v34 = vpop.f32.mrf.mxu1 }
 0x233   : > { %5558 = vst [vmem:[#allocation9_spill] sm:$0xff] %v4425_v27  ;;  %v1612_v35 = vadd.f32 %v1556_v34, %v4146_v57  ;;  %v1432_v37 = vpop.f32.mrf.mxu0  ;;  %v5563_v57 = vld [vmem:[#allocation12_spill] sm:$0xff] }
 0x234   : > { %v1487_v63 = vadd.f32 %v1432_v37, %v5559_v12  ;;  %v1682_v13 = vpop.f32.mrf.mxu2 }
 0x235   : > { %v4431_v3 = vadd.f32 %v1682_v13, %v1486_v44  ;;  %3387 = vmatmul.msk.bf16.vlgmr.msra.gmra.mxu1 %vm932_vm5, %v3797_v29  ;;  %3421 = vmatmul.msk.bf16.vlgmr.msra.gmra.mxu3 %vm932_vm5, %v5560_v55 }
 0x238   : > { %v1808_v21 = vpop.f32.mrf.mxu3 }
 0x239   : > { %v4437_v2 = vadd.f32 %v1808_v21, %v1612_v35  ;;  %v5566_v35 = vld [vmem:[#allocation13_spill] sm:$0xff]  ;;  %v5567_v21 = vld [vmem:[#allocation14_spill] sm:$0xff] }
 0x23a   : > { %v1558_v38 = vpop.f32.mrf.mxu1 }
 0x23b   : > { %5561 = vst [vmem:[#allocation10_spill] sm:$0xff] %v4437_v2  ;;  %v1613_v15 = vadd.f32 %v1558_v38, %v5562_v7  ;;  %v1435_v27 = vpop.f32.mrf.mxu0 }
 0x23c   : > { %v1488_v34 = vadd.f32 %v1435_v27, %v5563_v57  ;;  %v1684_v18 = vpop.f32.mrf.mxu2  ;;  %v5569_v57 = vld [vmem:[#allocation15_spill] sm:$0xff] }
 0x23d   : > { %v4441_v37 = vadd.f32 %v1684_v18, %v1487_v63 }
 0x23e   : > { %3371 = vmatmul.msk.bf16.gmra.mxu0 %vm932_vm5, %v3834_v59 }
 0x23f   : > { %5564 = vst [vmem:[#allocation3_spill] sm:$0xff] %v4441_v37 }
 0x240   : > { %v1810_v13 = vpop.f32.mrf.mxu3 }
 0x241   : > { %v4445_v29 = vadd.f32 %v1810_v13, %v1613_v15  ;;  %3405 = vmatmul.msk.bf16.gmra.mxu2 %vm932_vm5, %v3813_v39 }
 0x242   : > { %v1561_v44 = vpop.f32.mrf.mxu1 }
 0x243   : > { %5565 = vst [vmem:[#allocation11_spill] sm:$0xff] %v4445_v29  ;;  %v1614_v12 = vadd.f32 %v1561_v44, %v5566_v35  ;;  %v1437_v55 = vpop.f32.mrf.mxu0  ;;  %v5570_v44 = vld [vmem:[#allocation16_spill] sm:$0xff] }
 0x244   : > { %v1489_v38 = vadd.f32 %v1437_v55, %v5567_v21  ;;  %v1687_v7 = vpop.f32.mrf.mxu2 }
 0x245   : > { %v4451_v27 = vadd.f32 %v1687_v7, %v1488_v34  ;;  %3388 = vmatmul.msk.bf16.gmra.mxu1 %vm932_vm5, %v3834_v59  ;;  %3422 = vmatmul.msk.bf16.gmra.mxu3 %vm932_vm5, %v3829_v56  ;;  %v5572_v7 = vld [vmem:[#allocation17_spill] sm:$0xff] }
 0x248   : > { %v1813_v18 = vpop.f32.mrf.mxu3 }
 0x249   : > { %v4457_v63 = vadd.f32 %v1813_v18, %v1614_v12 }
 0x24a   : > { %v1563_v15 = vpop.f32.mrf.mxu1 }
 0x24b   : > { %5568 = vst [vmem:[#allocation12_spill] sm:$0xff] %v4457_v63  ;;  %v1615_v13 = vadd.f32 %v1563_v15, %v5569_v57  ;;  %v1440_v37 = vpop.f32.mrf.mxu0  ;;  %v5573_v15 = vld [vmem:[#allocation18_spill] sm:$0xff] }
 0x24c   : > { %v1490_v35 = vadd.f32 %v1440_v37, %v5570_v44  ;;  %v1689_v29 = vpop.f32.mrf.mxu2 }
 0x24d   : > { %v4461_v55 = vadd.f32 %v1689_v29, %v1489_v38 }
 0x24e   : > { %3372 = vmatmul.msk.bf16.gmra.mxu0 %vm932_vm5, %v3834_v59 }
 0x250   : > { %v1815_v34 = vpop.f32.mrf.mxu3 }
 0x251   : > { %v4465_v21 = vadd.f32 %v1815_v34, %v1615_v13  ;;  %3406 = vmatmul.msk.bf16.gmra.mxu2 %vm932_vm5, %v3813_v39  ;;  %v5575_v39 = vld [vmem:[#allocation19_spill] sm:$0xff] }
 0x252   : > { %v1566_v12 = vpop.f32.mrf.mxu1 }
 0x253   : > { %5571 = vst [vmem:[#allocation13_spill] sm:$0xff] %v4465_v21  ;;  %v1616_v18 = vadd.f32 %v1566_v12, %v5572_v7  ;;  %v1442_v63 = vpop.f32.mrf.mxu0  ;;  %v5576_v12 = vld [vmem:[#allocation20_spill] sm:$0xff] }
 0x254   : > { %v1491_v57 = vadd.f32 %v1442_v63, %v5573_v15  ;;  %v1692_v2 = vpop.f32.mrf.mxu2 }
 0x255   : > { %v4471_v37 = vadd.f32 %v1692_v2, %v1490_v35  ;;  %3389 = vmatmul.msk.bf16.gmra.mxu1 %vm932_vm5, %v3834_v59  ;;  %3423 = vmatmul.msk.bf16.gmra.mxu3 %vm932_vm5, %v3829_v56  ;;  %v5578_v35 = vld [vmem:[#allocation21_spill] sm:$0xff] }
 0x258   : > { %v1818_v29 = vpop.f32.mrf.mxu3 }
 0x259   : > { %v4477_v38 = vadd.f32 %v1818_v29, %v1616_v18  ;;  %v5579_v29 = vld [vmem:[#allocation22_spill] sm:$0xff] }
 0x25a   : > { %v1568_v13 = vpop.f32.mrf.mxu1 }
 0x25b   : > { %5574 = vst [vmem:[#allocation14_spill] sm:$0xff] %v4477_v38  ;;  %v1617_v44 = vadd.f32 %v1568_v13, %v5575_v39  ;;  %v1445_v34 = vpop.f32.mrf.mxu0 }
 0x25c   : > { %v1492_v7 = vadd.f32 %v1445_v34, %v5576_v12  ;;  %v1694_v21 = vpop.f32.mrf.mxu2  ;;  %v5582_v12 = vld [vmem:[#allocation23_spill] sm:$0xff] }
 0x25d   : > { %v4481_v63 = vadd.f32 %v1694_v21, %v1491_v57 }
 0x25e   : > { %3373 = vmatmul.msk.bf16.gmra.mxu0 %vm932_vm5, %v3871_v28 }
 0x25f   : > { %5577 = vst [vmem:[#allocation15_spill] sm:$0xff] %v4481_v63 }
 0x260   : > { %v1820_v2 = vpop.f32.mrf.mxu3 }
 0x261   : > { %v4485_v59 = vadd.f32 %v1820_v2, %v1617_v44  ;;  %3407 = vmatmul.msk.bf16.gmra.mxu2 %vm932_vm5, %v3850_v5 }
 0x262   : > { %v1571_v56 = vpop.f32.mrf.mxu1 }
 0x263   : > { %v1618_v18 = vadd.f32 %v1571_v56, %v5578_v35  ;;  %v1447_v15 = vpop.f32.mrf.mxu0  ;;  %v5583_v56 = vld [vmem:[#allocation24_spill] sm:$0xff] }
 0x264   : > { %v1493_v13 = vadd.f32 %v1447_v15, %v5579_v29  ;;  %v1697_v39 = vpop.f32.mrf.mxu2 }
 0x265   : > { %v4491_v34 = vadd.f32 %v1697_v39, %v1492_v7  ;;  %3390 = vmatmul.msk.bf16.gmra.mxu1 %vm932_vm5, %v3871_v28  ;;  %3424 = vmatmul.msk.bf16.gmra.mxu3 %vm932_vm5, %v3866_v24  ;;  %v5585_v39 = vld [vmem:[#allocation25_spill] sm:$0xff] }
 0x267   : > { %5580 = vst [vmem:[#allocation16_spill] sm:$0xff] %v4491_v34 }
 0x268   : > { %v1823_v21 = vpop.f32.mrf.mxu3 }
 0x269   : > { %v4497_v57 = vadd.f32 %v1823_v21, %v1618_v18 }
 0x26a   : > { %v1573_v44 = vpop.f32.mrf.mxu1 }
 0x26b   : > { %5581 = vst [vmem:[#allocation17_spill] sm:$0xff] %v4497_v57  ;;  %v1619_v2 = vadd.f32 %v1573_v44, %v5582_v12  ;;  %v1450_v63 = vpop.f32.mrf.mxu0  ;;  %v5586_v44 = vld [vmem:[#allocation26_spill] sm:$0xff] }
 0x26c   : > { %v1494_v35 = vadd.f32 %v1450_v63, %v5583_v56  ;;  %v1699_v38 = vpop.f32.mrf.mxu2 }
 0x26d   : > { %v4501_v15 = vadd.f32 %v1699_v38, %v1493_v13 }
 0x26e   : > { %3374 = vmatmul.msk.bf16.gmra.mxu0 %vm932_vm5, %v3871_v28 }
 0x26f   : > { %5584 = vst [vmem:[#allocation18_spill] sm:$0xff] %v4501_v15 }
 0x270   : > { %v1825_v7 = vpop.f32.mrf.mxu3 }
 0x271   : > { %v4505_v29 = vadd.f32 %v1825_v7, %v1619_v2  ;;  %3408 = vmatmul.msk.bf16.gmra.mxu2 %vm932_vm5, %v3850_v5  ;;  %v5588_v5 = vld [vmem:[#allocation27_spill] sm:$0xff] }
 0x272   : > { %v1576_v18 = vpop.f32.mrf.mxu1 }
 0x273   : > { %v1620_v21 = vadd.f32 %v1576_v18, %v5585_v39  ;;  %v1452_v34 = vpop.f32.mrf.mxu0  ;;  %v5589_v18 = vld [vmem:[#allocation28_spill] sm:$0xff] }
 0x274   : > { %v1495_v12 = vadd.f32 %v1452_v34, %v5586_v44  ;;  %v1702_v57 = vpop.f32.mrf.mxu2 }
 0x275   : > { %v4511_v63 = vadd.f32 %v1702_v57, %v1494_v35  ;;  %3391 = vmatmul.msk.bf16.gmra.mxu1 %vm932_vm5, %v3871_v28  ;;  %3425 = vmatmul.msk.bf16.gmra.mxu3 %vm932_vm5, %v3866_v24  ;;  %v5591_v35 = vld [vmem:[#allocation29_spill] sm:$0xff] }
 0x277   : > { %5587 = vst [vmem:[#allocation19_spill] sm:$0xff] %v4511_v63 }
 0x278   : > { %v1828_v38 = vpop.f32.mrf.mxu3 }
 0x279   : > { %v4517_v13 = vadd.f32 %v1828_v38, %v1620_v21  ;;  %v5592_v38 = vld [vmem:[#allocation30_spill] sm:$0xff] }
 0x27a   : > { %v1578_v2 = vpop.f32.mrf.mxu1 }
 0x27b   : > { %v1621_v56 = vadd.f32 %v1578_v2, %v5588_v5  ;;  %v1455_v7 = vpop.f32.mrf.mxu0 }
 0x27c   : > { %v1496_v39 = vadd.f32 %v1455_v7, %v5589_v18  ;;  %v1704_v15 = vpop.f32.mrf.mxu2  ;;  %v5594_v18 = vld [vmem:[#allocation31_spill] sm:$0xff] }
 0x27d   : > { %v4521_v34 = vadd.f32 %v1704_v15, %v1495_v12 }
 0x27e   : > { %3375 = vmatmul.msk.bf16.gmra.mxu0 %vm932_vm5, %v3908_v62 }
 0x27f   : > { %5590 = vst [vmem:[#allocation20_spill] sm:$0xff] %v4521_v34 }
 0x280   : > { %v1830_v57 = vpop.f32.mrf.mxu3 }
 0x281   : > { %v4525_v28 = vadd.f32 %v1830_v57, %v1621_v56  ;;  %3409 = vmatmul.msk.bf16.gmra.mxu2 %vm932_vm5, %v3887_v40 }
 0x282   : > { %v1581_v24 = vpop.f32.mrf.mxu1 }
 0x283   : > { %v1622_v21 = vadd.f32 %v1581_v24, %v5591_v35  ;;  %v1457_v44 = vpop.f32.mrf.mxu0  ;;  %v5595_v24 = vld [vmem:[#allocation32_spill] sm:$0xff] }
 0x284   : > { %v1497_v2 = vadd.f32 %v1457_v44, %v5592_v38  ;;  %v1707_v5 = vpop.f32.mrf.mxu2 }
 0x285   : > { %v4531_v7 = vadd.f32 %v1707_v5, %v1496_v39  ;;  %3392 = vmatmul.msk.bf16.gmra.mxu1 %vm932_vm5, %v3908_v62  ;;  %3426 = vmatmul.msk.bf16.gmra.mxu3 %vm932_vm5, %v3903_v58 }
 0x287   : > { %5593 = vst [vmem:[#allocation21_spill] sm:$0xff] %v4531_v7 }
 0x288   : > { %v1833_v15 = vpop.f32.mrf.mxu3 }
 0x289   : > { %v4537_v12 = vadd.f32 %v1833_v15, %v1622_v21 }
 0x28a   : > { %v1583_v56 = vpop.f32.mrf.mxu1 }
 0x28b   : > { %v1623_v57 = vadd.f32 %v1583_v56, %v5594_v18  ;;  %v1460_v34 = vpop.f32.mrf.mxu0  ;;  %v5597_v56 = vld [vmem:[#allocation33_spill] sm:$0xff] }
 0x28c   : > { %v1498_v35 = vadd.f32 %v1460_v34, %v5595_v24  ;;  %v1709_v63 = vpop.f32.mrf.mxu2 }
 0x28d   : > { %v4541_v44 = vadd.f32 %v1709_v63, %v1497_v2 }
 0x28e   : > { %3376 = vmatmul.msk.bf16.gmra.mxu0 %vm932_vm5, %v3908_v62 }
 0x28f   : > { %5596 = vst [vmem:[#allocation22_spill] sm:$0xff] %v4541_v44 }
 0x290   : > { %v1835_v39 = vpop.f32.mrf.mxu3 }
 0x291   : > { %v4545_v38 = vadd.f32 %v1835_v39, %v1623_v57  ;;  %3410 = vmatmul.msk.bf16.gmra.mxu2 %vm932_vm5, %v3887_v40  ;;  %v5599_v40 = vld [vmem:[#allocation34_spill] sm:$0xff] }
 0x292   : > { %v1586_v21 = vpop.f32.mrf.mxu1 }
 0x293   : > { %v1624_v5 = vadd.f32 %v1586_v21, %v4242_v9  ;;  %v1462_v15 = vpop.f32.mrf.mxu0  ;;  %v5600_v9 = vld [vmem:[#allocation35_spill] sm:$0xff] }
 0x294   : > { %v1499_v18 = vadd.f32 %v1462_v15, %v5597_v56  ;;  %v1712_v7 = vpop.f32.mrf.mxu2  ;;  %v5603_v56 = vld [vmem:[#allocation36_spill] sm:$0xff] }
 0x295   : > { %v4551_v34 = vadd.f32 %v1712_v7, %v1498_v35  ;;  %3393 = vmatmul.msk.bf16.gmra.mxu1 %vm932_vm5, %v3908_v62  ;;  %3427 = vmatmul.msk.bf16.gmra.mxu3 %vm932_vm5, %v3903_v58 }
 0x297   : > { %5598 = vst [vmem:[#allocation23_spill] sm:$0xff] %v4551_v34  ;;  %v5623_v34 = vld [vmem:[#allocation6_spill] sm:$0xff] }
 0x298   : > { %v1838_v63 = vpop.f32.mrf.mxu3 }
 0x299   : > { %v4557_v2 = vadd.f32 %v1838_v63, %v1624_v5 }
 0x29a   : > { %v1588_v57 = vpop.f32.mrf.mxu1 }
 0x29b   : > { %v1625_v24 = vadd.f32 %v1588_v57, %v5599_v40  ;;  %v1465_v39 = vpop.f32.mrf.mxu0 }
 0x29c   : > { %v1500_v21 = vadd.f32 %v1465_v39, %v5600_v9  ;;  %v1714_v44 = vpop.f32.mrf.mxu2  ;;  %v5606_v39 = vld [vmem:[#allocation37_spill] sm:$0xff] }
 0x29d   : > { %v4561_v15 = vadd.f32 %v1714_v44, %v1499_v18 }
 0x29e   : > { %3377 = vmatmul.msk.bf16.gmra.mxu0 %vm932_vm5, %v3953_v51 }
 0x29f   : > { %5601 = vst [vmem:[#allocation24_spill] sm:$0xff] %v4561_v15 }
 0x2a0   : > { %v1840_v7 = vpop.f32.mrf.mxu3 }
 0x2a1   : > { %v4565_v62 = vadd.f32 %v1840_v7, %v1625_v24  ;;  %3411 = vmatmul.msk.bf16.gmra.mxu2 %vm932_vm5, %v3926_v16 }
 0x2a2   : > { %v1591_v58 = vpop.f32.mrf.mxu1 }
 0x2a3   : > { %5602 = vst [vmem:[#allocation25_spill] sm:$0xff] %v4565_v62  ;;  %v1626_v35 = vadd.f32 %v1591_v58, %v4258_v33  ;;  %v1467_v5 = vpop.f32.mrf.mxu0 }
 0x2a4   : > { %v1501_v63 = vadd.f32 %v1467_v5, %v5603_v56  ;;  %v1717_v57 = vpop.f32.mrf.mxu2 }
 0x2a5   : > { %v4571_v40 = vadd.f32 %v1717_v57, %v1500_v21  ;;  %3394 = vmatmul.msk.bf16.gmra.mxu1 %vm932_vm5, %v3953_v51  ;;  %3428 = vmatmul.msk.bf16.gmra.mxu3 %vm932_vm5, %v3946_v45 }
 0x2a7   : > { %5604 = vst [vmem:[#allocation26_spill] sm:$0xff] %v4571_v40 }
 0x2a8   : > { %v1843_v44 = vpop.f32.mrf.mxu3 }
 0x2a9   : > { %v4577_v18 = vadd.f32 %v1843_v44, %v1626_v35 }
 0x2aa   : > { %v1593_v24 = vpop.f32.mrf.mxu1 }
 0x2ab   : > { %5605 = vst [vmem:[#allocation27_spill] sm:$0xff] %v4577_v18  ;;  %v1627_v9 = vadd.f32 %v1593_v24, %v5606_v39  ;;  %v1914_v7 = vpop.f32.mrf.mxu0 }
 0x2ac   : > { %v1994_v33 = vadd.f32 %v1914_v7, %v4271_v31  ;;  %v1719_v58 = vpop.f32.mrf.mxu2 }
 0x2ad   : > { %v4581_v5 = vadd.f32 %v1719_v58, %v1501_v63 }
 0x2ae   : > { %3378 = vmatmul.msk.bf16.gmra.mxu0 %vm932_vm5, %v3953_v51 }
 0x2af   : > { %5607 = vst [vmem:[#allocation28_spill] sm:$0xff] %v4581_v5 }
 0x2b0   : > { %v1845_v21 = vpop.f32.mrf.mxu3 }
 0x2b1   : > { %v4585_v56 = vadd.f32 %v1845_v21, %v1627_v9  ;;  %3412 = vmatmul.msk.bf16.gmra.mxu2 %vm932_vm5, %v3926_v16 }
 0x2b2   : > { %v2040_v35 = vpop.f32.mrf.mxu1 }
 0x2b3   : > { %5608 = vst [vmem:[#allocation29_spill] sm:$0xff] %v4585_v56  ;;  %v1916_v57 = vpop.f32.mrf.mxu0 }
 0x2b4   : > { %v1995_v44 = vadd.f32 %v1916_v57, %v4281_v36  ;;  %v2168_v24 = vpop.f32.mrf.mxu2  ;;  %v2120_v36 = vadd.f32 %v2040_v35, %v4277_v8 }
 0x2b5   : > { %v4590_v39 = vadd.f32 %v2168_v24, %v1994_v33  ;;  %3395 = vmatmul.msk.bf16.gmra.mxu1 %vm932_vm5, %v3953_v51  ;;  %3429 = vmatmul.msk.bf16.gmra.mxu3 %vm932_vm5, %v3946_v45 }
 0x2b8   : > { %v2297_v31 = vpop.f32.mrf.mxu3 }
 0x2b9   : > { %v4603_v21 = vadd.f32 %v2297_v31, %v2120_v36 }
 0x2ba   : > { %v2042_v63 = vpop.f32.mrf.mxu1 }
 0x2bb   : > { %v1919_v9 = vpop.f32.mrf.mxu0  ;;  %v2121_v33 = vadd.f32 %v2042_v63, %v4285_v26  ;;  %5609 = vst [vmem:[#allocation30_spill] sm:$0xff] %v4603_v21 }
 0x2bc   : > { %v1996_v7 = vadd.f32 %v1919_v9, %v4291_v53  ;;  %v2170_v58 = vpop.f32.mrf.mxu2 }
 0x2bd   : > { %v4597_v16 = vadd.f32 %v2170_v58, %v1995_v44 }
 0x2be   : > { %3379 = vmatmul.msk.bf16.gmra.mxu0 %vm932_vm5, %v4006_v6 }
 0x2c0   : > { %v2299_v51 = vpop.f32.mrf.mxu3 }
 0x2c1   : > { %v4605_v45 = vadd.f32 %v2299_v51, %v2121_v33  ;;  %3413 = vmatmul.msk.bf16.gmra.mxu2 %vm932_vm5, %v3979_v22 }
 0x2c2   : > { %v2045_v53 = vpop.f32.mrf.mxu1 }
 0x2c3   : > { %5610 = vst [vmem:[#allocation31_spill] sm:$0xff] %v4605_v45  ;;  %v1921_v57 = vpop.f32.mrf.mxu0  ;;  %v3488_v44 = vpack.i.bf16 %v4605_v45, %v4603_v21  ;;  %v2122_v58 = vadd.f32 %v2045_v53, %v4297_v19 }
 0x2c4   : > { %v1997_v24 = vadd.f32 %v1921_v57, %v4301_v1  ;;  %v2173_v9 = vpop.f32.mrf.mxu2 }
 0x2c5   : > { %v4612_v8 = vadd.f32 %v2173_v9, %v1996_v7  ;;  %3396 = vmatmul.msk.bf16.gmra.mxu1 %vm932_vm5, %v4006_v6  ;;  %3430 = vmatmul.msk.bf16.gmra.mxu3 %vm932_vm5, %v3999_v61 }
 0x2c6   : > { %3489 = vrot.lane.b32.xlu0 %v3488_v44, %s3612_s9 }
 0x2c8   : > { %v2302_v26 = vpop.f32.mrf.mxu3 }
 0x2c9   : > { %v4633_v51 = vadd.f32 %v2302_v26, %v2122_v58 }
 0x2ca   : > { %v2047_v35 = vpop.f32.mrf.mxu1 }
 0x2cb   : > { %v1924_v31 = vpop.f32.mrf.mxu0  ;;  %v2123_v36 = vadd.f32 %v2047_v35, %v4305_v14  ;;  %5612 = vst [vmem:[#allocation32_spill] sm:$0xff] %v4633_v51 }
 0x2cc   : > { %v1998_v1 = vadd.f32 %v1924_v31, %v4311_v20  ;;  %v2175_v63 = vpop.f32.mrf.mxu2 }
 0x2cd   : > { %v4625_v7 = vadd.f32 %v2175_v63, %v1997_v24 }
 0x2ce   : > { %3380 = vmatmul.msk.bf16.gmra.mxu0 %vm932_vm5, %v4006_v6 }
 0x2d0   : > { %v2304_v33 = vpop.f32.mrf.mxu3 }
 0x2d1   : > { %v4635_v57 = vadd.f32 %v2304_v33, %v2123_v36  ;;  %3414 = vmatmul.msk.bf16.gmra.mxu2 %vm932_vm5, %v3979_v22 }
 0x2d2   : > { %v2050_v20 = vpop.f32.mrf.mxu1 }
 0x2d3   : > { %5613 = vst [vmem:[#allocation33_spill] sm:$0xff] %v4635_v57  ;;  %v1926_v44 = vpop.f32.mrf.mxu0  ;;  %v3493_v24 = vpack.i.bf16 %v4635_v57, %v4633_v51 }
 0x2d4   : > { %v1999_v19 = vadd.f32 %v1926_v44, %v4321_v47  ;;  %v2178_v14 = vpop.f32.mrf.mxu2 }
 0x2d5   : > { %v4644_v53 = vadd.f32 %v2178_v14, %v1998_v1  ;;  %3397 = vmatmul.msk.bf16.gmra.mxu1 %vm932_vm5, %v4006_v6  ;;  %3431 = vmatmul.msk.bf16.gmra.mxu3 %vm932_vm5, %v3999_v61  ;;  %v2124_v6 = vadd.f32 %v2050_v20, %v4317_v32  ;;  %v487_v32 = vld [vmem:[%s444_s14] sm:$0xff]  ;;  %v488_v20 = vld [vmem:[%s444_s14 + $0x8] sm:$0xff] }
 0x2d6   : > { %3494 = vrot.lane.b32.xlu0 %v3493_v24, %s3612_s9 }
 0x2d8   : > { %v2307_v22 = vpop.f32.mrf.mxu3 }
 0x2d9   : > { %v4662_v63 = vadd.f32 %v2307_v22, %v2124_v6 }
 0x2da   : > { %v2052_v9 = vpop.f32.mrf.mxu1 }
 0x2db   : > { %v1929_v26 = vpop.f32.mrf.mxu0  ;;  %v2125_v61 = vadd.f32 %v2052_v9, %v4325_v23  ;;  %5614 = vst [vmem:[#allocation34_spill] sm:$0xff] %v4662_v63 }
 0x2dc   : > { %v2000_v35 = vadd.f32 %v1929_v26, %v4331_v11  ;;  %v2180_v31 = vpop.f32.mrf.mxu2 }
 0x2dd   : > { %v4653_v47 = vadd.f32 %v2180_v31, %v1999_v19  ;;  %v3570_v19 = vld [vmem:[%s5472_s3] ss:$0 sm:$0xff] }
 0x2de   : > { %3381 = vmatmul.msk.bf16.gmra.mxu0 %vm932_vm5, %v4059_v52  ;;  %v511_v14 = vmul.f32 %v3570_v19, %v487_v32  ;;  %v512_v22 = vmul.f32 %v3570_v19, %v488_v20 }
 0x2e0   : > { %v2309_v1 = vpop.f32.mrf.mxu3 }
 0x2e1   : > { %v4664_v11 = vadd.f32 %v2309_v1, %v2125_v61  ;;  %3415 = vmatmul.msk.bf16.gmra.mxu2 %vm932_vm5, %v4032_v54  ;;  %v563_v61 = vstv %s562_s20 }
 0x2e2   : > { %v2055_v58 = vpop.f32.mrf.mxu1  ;;  %vm564_vm8 = vcmp.eq.s32.totalorder %v563_v61, 1 }
 0x2e3   : > { %v1931_v36 = vpop.f32.mrf.mxu0  ;;  %v3498_v33 = vpack.i.bf16 %v4664_v11, %v4662_v63 }
 0x2e4   : > { %v2001_v23 = vadd.f32 %v1931_v36, %v4341_v25  ;;  %v2183_v44 = vpop.f32.mrf.mxu2  ;;  %v3571_v25 = vld [vmem:[%s5473_s4] ss:$0 sm:$0xff] }
 0x2e5   : > { %v4672_v24 = vadd.f32 %v2183_v44, %v2000_v35  ;;  %3398 = vmatmul.msk.bf16.gmra.mxu1 %vm932_vm5, %v4059_v52  ;;  %3432 = vmatmul.msk.bf16.gmra.mxu3 %vm932_vm5, %v4052_v41  ;;  %v535_v26 = vadd.f32 %v3571_v25, %v511_v14  ;;  %v536_v35 = vadd.f32 %v3571_v25, %v512_v22 }
 0x2e6   : > { %3499 = vrot.lane.b32.xlu1 %v3498_v33, %s3612_s9  ;;  %v2126_v33 = vadd.f32 %v2055_v58, %v4337_v17 }
 0x2e7   : > { %v555_v32 = vmax.f32 %v535_v26, 0.0  ;;  %v556_v20 = vmax.f32 %v536_v35, 0.0 }
 0x2e8   : > { %v2312_v9 = vpop.f32.mrf.mxu3 }
 0x2e9   : > { %v4692_v22 = vadd.f32 %v2312_v9, %v2126_v33 }
 0x2ea   : > { %v2057_v31 = vpop.f32.mrf.mxu1 }
 0x2eb   : > { %v1934_v6 = vpop.f32.mrf.mxu0  ;;  %v2127_v19 = vadd.f32 %v2057_v31, %v4345_v50 }
 0x2ec   : > { %v2002_v1 = vadd.f32 %v1934_v6, %v4351_v49  ;;  %v2185_v36 = vpop.f32.mrf.mxu2  ;;  %v587_v49 = vsel %vm564_vm8, %v555_v32, 0.0 }
 0x2ed   : > { %v4686_v44 = vadd.f32 %v2185_v36, %v2001_v23  ;;  %v588_v23 = vsel %vm564_vm8, %v556_v20, 0.0  ;;  %v607_v17 = vpack.c.bf16 %v587_v49, %v587_v49 }
 0x2ee   : > { %3382 = vmatmul.msk.bf16.gmra.mxu0 %vm932_vm5, %v4059_v52  ;;  %v608_v58 = vpack.c.bf16 %v588_v23, %v588_v23 }
 0x2ef   : > { %v647_v9 = vunpack.c.l.b16 %v607_v17 }
 0x2f0   : > { %v2314_v14 = vpop.f32.mrf.mxu3  ;;  %v648_v31 = vunpack.c.l.b16 %v608_v58 }
 0x2f1   : > { %v4694_v25 = vadd.f32 %v2314_v14, %v2127_v19  ;;  %3416 = vmatmul.msk.bf16.gmra.mxu2 %vm932_vm5, %v4032_v54 }
 0x2f2   : > { %v2060_v26 = vpop.f32.mrf.mxu1  ;;  %v658_v19 = vpack.c.b16 %v648_v31, %v647_v9 }
 0x2f3   : > { %v4698_v35 = vpop.f32.mrf.mxu0  ;;  %v3503_v6 = vpack.i.bf16 %v4694_v25, %v4692_v22 }
 0x2f4   : > { %v2188_v61 = vpop.f32.mrf.mxu2  ;;  %v723_v49 = vshrl.u32 %v658_v19, 16 }
 0x2f5   : > { %v4702_v50 = vadd.f32 %v2188_v61, %v2002_v1  ;;  %3399 = vmatmul.msk.bf16.gmra.mxu1 %vm932_vm5, %v4059_v52  ;;  %3433 = vmatmul.msk.bf16.gmra.mxu3 %vm932_vm5, %v4052_v41  ;;  %v2128_v52 = vadd.f32 %v2060_v26, %v4357_v46  ;;  %v5615_v1 = vld [vmem:[#allocation39_spill] sm:$0xff]  ;;  %v726_v46 = vshll.u32 %v658_v19, 16  ;;  %v5619_v19 = vld [vmem:[#allocation40_spill] sm:$0xff] }
 0x2f6   : > { %3504 = vrot.lane.b32.xlu1 %v3503_v6, %s3612_s9  ;;  %v725_v9 = vrot.slane %v723_v49, 7 }
 0x2f8   : > { %v2317_v54 = vpop.f32.mrf.mxu3  ;;  %v728_v31 = vor.u32 %v726_v46, %v725_v9  ;;  %v771_v46 = vsel %vm3756_vm4, %v725_v9, 0 }
 0x2f9   : > { %v4716_v23 = vadd.f32 %v2317_v54, %v2128_v52 }
 0x2fa   : > { %v2062_v36 = vpop.f32.mrf.mxu1 }
 0x2fb   : > { %v1939_v32 = vpop.f32.mrf.mxu0  ;;  %v2129_v14 = vadd.f32 %v2062_v36, %v5615_v1  ;;  %5616 = vst [vmem:[#allocation35_spill] sm:$0xff] %v4716_v23 }
 0x2fc   : > { %v2004_v20 = vadd.f32 %v1939_v32, %v4371_v60  ;;  %v4710_v33 = vpop.f32.mrf.mxu2 }
 0x2fe   : > { %3383 = vmatmul.msk.bf16.gmra.mxu0 %vm932_vm5, %v4114_v42 }
 0x300   : > { %v2319_v41 = vpop.f32.mrf.mxu3 }
 0x301   : > { %v4718_v6 = vadd.f32 %v2319_v41, %v2129_v14  ;;  %3417 = vmatmul.msk.bf16.gmra.mxu2 %vm932_vm5, %v4081_v43 }
 0x302   : > { %v2065_v60 = vpop.f32.mrf.mxu1 }
 0x303   : > { %5617 = vst [vmem:[#allocation36_spill] sm:$0xff] %v4718_v6  ;;  %v4722_v61 = vpop.f32.mrf.mxu0  ;;  %v3508_v17 = vpack.i.bf16 %v4718_v6, %v4716_v23  ;;  %v2130_v41 = vadd.f32 %v2065_v60, %v5619_v19 }
 0x304   : > { %v2193_v58 = vpop.f32.mrf.mxu2 }
 0x305   : > { %v4726_v26 = vadd.f32 %v2193_v58, %v2004_v20  ;;  %3400 = vmatmul.msk.bf16.gmra.mxu1 %vm932_vm5, %v4114_v42  ;;  %3434 = vmatmul.msk.bf16.gmra.mxu3 %vm932_vm5, %v4107_v10  ;;  %v761_v20 = vsel %vm3756_vm4, 0, %v728_v31 }
 0x306   : > { %3509 = vrot.lane.b32.xlu2 %v3508_v17, %s3612_s9  ;;  %v1883_v58 = vshll.u32 %v761_v20, 16  ;;  %v1881_v60 = vshrl.u32 %v761_v20, 16 }
 0x308   : > { %v2322_v54 = vpop.f32.mrf.mxu3  ;;  %v1885_v19 = vrot.slane %v1883_v58, 1 }
 0x309   : > { %v4744_v5 = vadd.f32 %v2322_v54, %v2130_v41 }
 0x30a   : > { %v2067_v36 = vpop.f32.mrf.mxu1 }
 0x30b   : > { %v1944_v32 = vpop.f32.mrf.mxu0  ;;  %v2131_v49 = vadd.f32 %v2067_v36, %v4385_v4  ;;  %5620 = vst [vmem:[#allocation37_spill] sm:$0xff] %v4744_v5  ;;  %v1888_v4 = vshll.u32 %v771_v46, 16 }
 0x30c   : > { %v2006_v52 = vadd.f32 %v1944_v32, %v4391_v30  ;;  %v4734_v1 = vpop.f32.mrf.mxu2 }
 0x30d   : > { %v1890_v9 = vrot.slane %v1888_v4, 1 }
 0x30e   : > { %3384 = vmatmul.msk.bf16.gmra.mxu0 %vm932_vm5, %v4114_v42 }
 0x310   : > { %v2324_v17 = vpop.f32.mrf.mxu3 }
 0x311   : > { %v4746_v30 = vadd.f32 %v2324_v17, %v2131_v49  ;;  %3418 = vmatmul.msk.bf16.gmra.mxu2 %vm932_vm5, %v4081_v43  ;;  %v1886_v43 = vor.u32 %v1885_v19, %v1881_v60 }
 0x312   : > { %v2070_v31 = vpop.f32.mrf.mxu1 }
 0x313   : > { %5621 = vst [vmem:[#allocation39_spill] sm:$0xff] %v4746_v30  ;;  %v1946_v32 = vpop.f32.mrf.mxu0  ;;  %v3513_v40 = vpack.i.bf16 %v4746_v30, %v4744_v5  ;;  %v1891_v58 = vsel %vm772_vm7, %v1886_v43, %v1890_v9 }
 0x314   : > { %v2007_v36 = vadd.f32 %v1946_v32, %v4401_v48  ;;  %v2198_v15 = vpop.f32.mrf.mxu2  ;;  %v5622_v32 = vld [vmem:[#allocation5_spill] sm:$0xff] }
 0x315   : > { %v4753_v14 = vadd.f32 %v2198_v15, %v2006_v52  ;;  %3401 = vmatmul.msk.bf16.gmra.mxu1 %vm932_vm5, %v4114_v42  ;;  %3435 = vmatmul.msk.bf16.gmra.mxu3 %vm932_vm5, %v4107_v10  ;;  %v1894_v42 = vrot.slane %v761_v20, 1  ;;  %v1895_v52 = vrot.slane %v771_v46, 1  ;;  %v2132_v10 = vadd.f32 %v2070_v31, %v5622_v32  ;;  %v5625_v46 = vld [vmem:[#allocation8_spill] sm:$0xff] }
 0x316   : > { %3514 = vrot.lane.b32.xlu2 %v3513_v40, %s3612_s9 }
 0x318   : > { %v2327_v54 = vpop.f32.mrf.mxu3 }
 0x319   : > { %v4767_v19 = vadd.f32 %v2327_v54, %v2132_v10  ;;  %v5627_v10 = vld [vmem:[#allocation9_spill] sm:$0xff] }
 0x31a   : > { %v2072_v41 = vpop.f32.mrf.mxu1 }
 0x31b   : > { %v1949_v49 = vpop.f32.mrf.mxu0  ;;  %v2133_v40 = vadd.f32 %v2072_v41, %v5623_v34  ;;  %5624 = vst [vmem:[#allocation2_spill] sm:$0xff] %v4767_v19 }
 0x31c   : > { %v2008_v48 = vadd.f32 %v1949_v49, %v4411_v0  ;;  %v2200_v17 = vpop.f32.mrf.mxu2 }
 0x31d   : > { %v4762_v15 = vadd.f32 %v2200_v17, %v2007_v36  ;;  %v1896_v36 = vsel %vm899_vm6, %v1894_v42, %v1895_v52 }
 0x31e   : > { %3385 = vmatmul.msk.bf16.gmra.mxu0 %vm932_vm5, %v1891_v58 }
 0x320   : > { %v2329_v60 = vpop.f32.mrf.mxu3 }
 0x321   : > { %v4769_v4 = vadd.f32 %v2329_v60, %v2133_v40  ;;  %3419 = vmatmul.msk.bf16.gmra.mxu2 %vm932_vm5, %v761_v20 }
 0x322   : > { %v2075_v0 = vpop.f32.mrf.mxu1 }
 0x323   : > { %v1951_v43 = vpop.f32.mrf.mxu0  ;;  %v3518_v9 = vpack.i.bf16 %v4769_v4, %v4767_v19 }
 0x324   : > { %v2009_v49 = vadd.f32 %v1951_v43, %v5625_v46  ;;  %v2203_v31 = vpop.f32.mrf.mxu2 }
 0x325   : > { %v4776_v17 = vadd.f32 %v2203_v31, %v2008_v48  ;;  %3402 = vmatmul.msk.bf16.gmra.mxu1 %vm932_vm5, %v1891_v58  ;;  %3436 = vmatmul.msk.bf16.gmra.mxu3 %vm932_vm5, %v1896_v36  ;;  %v5626_v48 = vld [vmem:[#allocation7_spill] sm:$0xff] }
 0x326   : > { %3519 = vrot.lane.b32.xlu0 %v3518_v9, %s3612_s9  ;;  %v2134_v32 = vadd.f32 %v2075_v0, %v5626_v48 }
 0x328   : > { %v2332_v34 = vpop.f32.mrf.mxu3 }
 0x329   : > { %v4787_v60 = vadd.f32 %v2332_v34, %v2134_v32 }
 0x32a   : > { %v2077_v20 = vpop.f32.mrf.mxu1 }
 0x32b   : > { %v1954_v54 = vpop.f32.mrf.mxu0  ;;  %v2135_v58 = vadd.f32 %v2077_v20, %v5627_v10 }
 0x32c   : > { %v2010_v41 = vadd.f32 %v1954_v54, %v4431_v3  ;;  %v2205_v42 = vpop.f32.mrf.mxu2 }
 0x32d   : > { %v4783_v52 = vadd.f32 %v2205_v42, %v2009_v49 }
 0x330   : > { %v2334_v40 = vpop.f32.mrf.mxu3 }
 0x331   : > { %v4789_v36 = vadd.f32 %v2334_v40, %v2135_v58 }
 0x332   : > { %v2080_v43 = vpop.f32.mrf.mxu1 }
 0x333   : > { %v4792_v9 = vpop.f32.mrf.mxu0  ;;  %v3523_v3 = vpack.i.bf16 %v4789_v36, %v4787_v60 }
 0x334   : > { %v2208_v46 = vpop.f32.mrf.mxu2 }
 0x335   : > { %v4796_v49 = vadd.f32 %v2208_v46, %v2010_v41  ;;  %3524 = vrot.lane.b32.xlu1 %v3523_v3, %s3612_s9  ;;  %v5630_v3 = vld [vmem:[#allocation10_spill] sm:$0xff] }
 0x336   : > { %v2136_v46 = vadd.f32 %v2080_v43, %v5630_v3 }
 0x337   : > { %5628 = vst [vmem:[#allocation40_spill] sm:$0xff] %v4796_v49 }
 0x338   : > { %v3490_v0 = vpop.permute.xlu0 %3489  ;;  %v2337_v31 = vpop.f32.mrf.mxu3 }
 0x339   : > { %v3492_v34 = vunpack.i.h.bf16 %v3490_v0  ;;  %v3491_v20 = vunpack.i.l.bf16 %v3490_v0  ;;  %v5631_v0 = vld [vmem:[#allocation11_spill] sm:$0xff] }
 0x33a   : > { %v2082_v54 = vpop.f32.mrf.mxu1 }
 0x33b   : > { %v2538_v41 = vsel %vm2537_vm9, %v4590_v39, %v3491_v20  ;;  %v2539_v42 = vsel %vm2537_vm9, %v4597_v16, %v3492_v34  ;;  %v1959_v48 = vpop.f32.mrf.mxu0  ;;  %v2137_v56 = vadd.f32 %v2082_v54, %v5631_v0  ;;  %v4817_v20 = vadd.f32 %v2337_v31, %v2136_v46 }
 0x33c   : > { %v2570_v32 = vpack.c.bf16 %v2538_v41, %v2538_v41  ;;  %v2571_v10 = vpack.c.bf16 %v2539_v42, %v2539_v42  ;;  %v2012_v58 = vadd.f32 %v1959_v48, %v4451_v27  ;;  %v4809_v40 = vpop.f32.mrf.mxu2 }
 0x33d   : > { %5629 = vst [vmem:[#allocation5_spill] sm:$0xff] %v4809_v40 }
 0x33e   : > { %2603 = vst.msk [vmem:[%s4802_s11] sm:$0xf] %vm2602_vm10, %v2570_v32 }
 0x33f   : > { %2604 = vst.msk [vmem:[%s4802_s11 + $0x4] sm:$0xf] %vm2602_vm10, %v2571_v10 }
 0x340   : > { %v2339_v18 = vpop.f32.mrf.mxu3  ;;  %5632 = vst [vmem:[#allocation6_spill] sm:$0xff] %v4817_v20 }
 0x341   : > { %v4819_v62 = vadd.f32 %v2339_v18, %v2137_v56 }
 0x342   : > { %v2085_v34 = vpop.f32.mrf.mxu1 }
 0x343   : > { %5633 = vst [vmem:[#allocation8_spill] sm:$0xff] %v4819_v62  ;;  %v1961_v41 = vpop.f32.mrf.mxu0  ;;  %v3528_v27 = vpack.i.bf16 %v4819_v62, %v4817_v20 }
 0x344   : > { %v2013_v42 = vadd.f32 %v1961_v41, %v4461_v55  ;;  %v2213_v48 = vpop.f32.mrf.mxu2 }
 0x345   : > { %v4824_v32 = vadd.f32 %v2213_v48, %v2012_v58  ;;  %3529 = vrot.lane.b32.xlu2 %v3528_v27, %s3612_s9  ;;  %v5635_v27 = vld [vmem:[#allocation12_spill] sm:$0xff] }
 0x347   : > { %5634 = vst [vmem:[#allocation7_spill] sm:$0xff] %v4824_v32  ;;  %v2138_v32 = vadd.f32 %v2085_v34, %v5635_v27 }
 0x348   : > { %v3495_v43 = vpop.permute.xlu0 %3494  ;;  %v2342_v54 = vpop.f32.mrf.mxu3 }
 0x349   : > { %v3497_v31 = vunpack.i.h.bf16 %v3495_v43  ;;  %v3496_v10 = vunpack.i.l.bf16 %v3495_v43  ;;  %v5636_v43 = vld [vmem:[#allocation13_spill] sm:$0xff]  ;;  %v4840_v40 = vadd.f32 %v2342_v54, %v2138_v32 }
 0x34a   : > { %v2087_v18 = vpop.f32.mrf.mxu1 }
 0x34b   : > { %v2540_v56 = vsel %vm2537_vm9, %v4612_v8, %v3496_v10  ;;  %v2541_v3 = vsel %vm2537_vm9, %v4625_v7, %v3497_v31  ;;  %v1964_v46 = vpop.f32.mrf.mxu0  ;;  %v2139_v49 = vadd.f32 %v2087_v18, %v5636_v43  ;;  %5637 = vst [vmem:[#allocation9_spill] sm:$0xff] %v4840_v40 }
 0x34c   : > { %v2572_v55 = vpack.c.bf16 %v2540_v56, %v2540_v56  ;;  %v2573_v0 = vpack.c.bf16 %v2541_v3, %v2541_v3  ;;  %v2014_v58 = vadd.f32 %v1964_v46, %v4471_v37  ;;  %v2215_v41 = vpop.f32.mrf.mxu2 }
 0x34d   : > { %v4832_v48 = vadd.f32 %v2215_v41, %v2013_v42 }
 0x34e   : > { %2605 = vst.msk [vmem:[%s4802_s11 + $0x8] sm:$0xf] %vm2602_vm10, %v2572_v55 }
 0x34f   : > { %2606 = vst.msk [vmem:[%s4802_s11 + $0xc] sm:$0xf] %vm2602_vm10, %v2573_v0 }
 0x350   : > { %v2344_v10 = vpop.f32.mrf.mxu3 }
 0x351   : > { %v4842_v31 = vadd.f32 %v2344_v10, %v2139_v49 }
 0x352   : > { %v2090_v56 = vpop.f32.mrf.mxu1 }
 0x353   : > { %5638 = vst [vmem:[#allocation10_spill] sm:$0xff] %v4842_v31  ;;  %v4844_v3 = vpop.f32.mrf.mxu0  ;;  %v3533_v37 = vpack.i.bf16 %v4842_v31, %v4840_v40 }
 0x354   : > { %v2218_v42 = vpop.f32.mrf.mxu2 }
 0x355   : > { %v4848_v46 = vadd.f32 %v2218_v42, %v2014_v58  ;;  %3534 = vrot.lane.b32.xlu0 %v3533_v37, %s3612_s9  ;;  %v5642_v58 = vld [vmem:[#allocation38_spill] sm:$0xff] }
 0x356   : > { %v2003_v37 = vadd.f32 %v4698_v35, %v5642_v58 }
 0x357   : > { %5639 = vst [vmem:[#allocation11_spill] sm:$0xff] %v4848_v46 }
 0x358   : > { %v3500_v34 = vpop.permute.xlu1 %3499  ;;  %v2347_v18 = vpop.f32.mrf.mxu3 }
 0x359   : > { %v3502_v55 = vunpack.i.h.bf16 %v3500_v34  ;;  %v3501_v32 = vunpack.i.l.bf16 %v3500_v34  ;;  %v4867_v34 = vadd.f32 %v4710_v33, %v2003_v37 }
 0x35a   : > { %v2092_v54 = vpop.f32.mrf.mxu1 }
 0x35b   : > { %v2542_v49 = vsel %vm2537_vm9, %v4644_v53, %v3501_v32  ;;  %v2543_v0 = vsel %vm2537_vm9, %v4653_v47, %v3502_v55  ;;  %v4855_v41 = vpop.f32.mrf.mxu0  ;;  %v2141_v42 = vadd.f32 %v2092_v54, %v4485_v59 }
 0x35c   : > { %5640 = vst [vmem:[#allocation12_spill] sm:$0xff] %v4855_v41  ;;  %v2574_v27 = vpack.c.bf16 %v2542_v49, %v2542_v49  ;;  %v2575_v43 = vpack.c.bf16 %v2543_v0, %v2543_v0  ;;  %v4857_v10 = vpop.f32.mrf.mxu2  ;;  %v5643_v49 = vld [vmem:[#allocation14_spill] sm:$0xff] }
 0x35d   : > { %5641 = vst [vmem:[#allocation13_spill] sm:$0xff] %v4857_v10  ;;  %v2140_v0 = vadd.f32 %v2090_v56, %v5643_v49  ;;  %v2704_v49 = vsel %vm2537_vm9, %v4603_v21, 0.0 }
 0x35e   : > { %2607 = vst.msk [vmem:[%s4802_s11 + $0x10] sm:$0xf] %vm2602_vm10, %v2574_v27 }
 0x35f   : > { %2608 = vst.msk [vmem:[%s4802_s11 + $0x14] sm:$0xf] %vm2602_vm10, %v2575_v43  ;;  %v4872_v58 = vadd.f32 %v2347_v18, %v2140_v0  ;;  %v2707_v0 = vsel %vm2537_vm9, %v4633_v51, 0.0 }
 0x360   : > { %v3510_v55 = vpop.permute.xlu2 %3509  ;;  %v2349_v32 = vpop.f32.mrf.mxu3 }
 0x361   : > { %v3512_v46 = vunpack.i.h.bf16 %v3510_v55  ;;  %v3511_v10 = vunpack.i.l.bf16 %v3510_v55  ;;  %v4870_v41 = vadd.f32 %v2349_v32, %v2141_v42  ;;  %5645 = vst [vmem:[#allocation14_spill] sm:$0xff] %v4872_v58 }
 0x362   : > { %v2095_v35 = vpop.f32.mrf.mxu1 }
 0x363   : > { %5644 = vst [vmem:[#allocation38_spill] sm:$0xff] %v4870_v41  ;;  %v2546_v27 = vsel %vm2537_vm9, %v4702_v50, %v3511_v10  ;;  %v2547_v59 = vsel %vm2537_vm9, %v4867_v34, %v3512_v46  ;;  %v4878_v43 = vpop.f32.mrf.mxu0  ;;  %v3538_v56 = vpack.i.bf16 %v4870_v41, %v4872_v58  ;;  %v2705_v46 = vsel %vm2537_vm9, %v4605_v45, 0.0 }
 0x364   : > { %v2578_v33 = vpack.c.bf16 %v2546_v27, %v2546_v27  ;;  %v2579_v54 = vpack.c.bf16 %v2547_v59, %v2547_v59  ;;  %5646 = vst [vmem:[#allocation41_spill] sm:$0xff] %v4878_v43  ;;  %v4880_v37 = vpop.f32.mrf.mxu2 }
 0x365   : > { %5647 = vst [vmem:[#allocation42_spill] sm:$0xff] %v4880_v37  ;;  %3539 = vrot.lane.b32.xlu1 %v3538_v56, %s3612_s9  ;;  %v5648_v37 = vld [vmem:[#allocation4_spill] sm:$0xff] }
 0x366   : > { %2611 = vst.msk [vmem:[%s4802_s11 + $0x20] sm:$0xf] %vm2602_vm10, %v2578_v33  ;;  %v2706_v33 = vadd.f32 %v2705_v46, %v2704_v49  ;;  %v2005_v21 = vadd.f32 %v4722_v61, %v5648_v37  ;;  %v2713_v49 = vsel %vm2537_vm9, %v4664_v11, 0.0  ;;  %v5649_v37 = vld [vmem:[#allocation17_spill] sm:$0xff] }
 0x367   : > { %2612 = vst.msk [vmem:[%s4802_s11 + $0x24] sm:$0xf] %vm2602_vm10, %v2579_v54 }
 0x368   : > { %v3505_v18 = vpop.permute.xlu1 %3504  ;;  %v2352_v10 = vpop.f32.mrf.mxu3  ;;  %v2708_v43 = vadd.f32 %v2707_v0, %v2706_v33  ;;  %v4917_v0 = vadd.f32 %v4734_v1, %v2005_v21 }
 0x369   : > { %v3507_v42 = vunpack.i.h.bf16 %v3505_v18  ;;  %v3506_v55 = vunpack.i.l.bf16 %v3505_v18  ;;  %v2709_v18 = vsel %vm2537_vm9, %v4635_v57, 0.0 }
 0x36a   : > { %v2097_v32 = vpop.f32.mrf.mxu1 }
 0x36b   : > { %v2544_v27 = vsel %vm2537_vm9, %v4672_v24, %v3506_v55  ;;  %v2545_v59 = vsel %vm2537_vm9, %v4686_v44, %v3507_v42  ;;  %v4907_v51 = vpop.f32.mrf.mxu0  ;;  %v2711_v55 = vsel %vm2537_vm9, %v4662_v63, 0.0  ;;  %v2143_v46 = vadd.f32 %v2097_v32, %v4505_v29 }
 0x36c   : > { %v2576_v54 = vpack.c.bf16 %v2544_v27, %v2544_v27  ;;  %v2577_v56 = vpack.c.bf16 %v2545_v59, %v2545_v59  ;;  %v4899_v45 = vpop.f32.mrf.mxu2  ;;  %v2710_v42 = vadd.f32 %v2709_v18, %v2708_v43  ;;  %v2142_v59 = vadd.f32 %v2095_v35, %v5649_v37 }
 0x36d   : > { %v2715_v29 = vsel %vm2537_vm9, %v4692_v22, 0.0 }
 0x36e   : > { %2609 = vst.msk [vmem:[%s4802_s11 + $0x18] sm:$0xf] %vm2602_vm10, %v2576_v54  ;;  %v4924_v43 = vadd.f32 %v2352_v10, %v2142_v59  ;;  %v2719_v10 = vsel %vm2537_vm9, %v4716_v23, 0.0  ;;  %v2721_v59 = vsel %vm2537_vm9, %v4718_v6, 0.0 }
 0x36f   : > { %2610 = vst.msk [vmem:[%s4802_s11 + $0x1c] sm:$0xf] %vm2602_vm10, %v2577_v56  ;;  %v2712_v56 = vadd.f32 %v2711_v55, %v2710_v42  ;;  %v2717_v55 = vsel %vm2537_vm9, %v4694_v25, 0.0 }
 0x370   : > { %v3515_v27 = vpop.permute.xlu2 %3514  ;;  %v2354_v61 = vpop.f32.mrf.mxu3  ;;  %5651 = vst [vmem:[#allocation17_spill] sm:$0xff] %v4924_v43 }
 0x371   : > { %v3517_v33 = vunpack.i.h.bf16 %v3515_v27  ;;  %v3516_v54 = vunpack.i.l.bf16 %v3515_v27  ;;  %v4920_v57 = vadd.f32 %v2354_v61, %v2143_v46  ;;  %v2714_v35 = vadd.f32 %v2713_v49, %v2712_v56 }
 0x372   : > { %v2100_v63 = vpop.f32.mrf.mxu1  ;;  %v2723_v56 = vsel %vm2537_vm9, %v4744_v5, 0.0  ;;  %v2729_v5 = vsel %vm2537_vm9, %v4769_v4, 0.0 }
 0x373   : > { %5650 = vst [vmem:[#allocation4_spill] sm:$0xff] %v4920_v57  ;;  %v2548_v21 = vsel %vm2537_vm9, %v4726_v26, %v3516_v54  ;;  %v2549_v1 = vsel %vm2537_vm9, %v4917_v0, %v3517_v33  ;;  %v3543_v46 = vpack.i.bf16 %v4920_v57, %v4924_v43  ;;  %v2716_v42 = vadd.f32 %v2715_v29, %v2714_v35  ;;  %v4943_v61 = vpop.f32.mrf.mxu0 }
 0x374   : > { %v2580_v32 = vpack.c.bf16 %v2548_v21, %v2548_v21  ;;  %v2581_v18 = vpack.c.bf16 %v2549_v1, %v2549_v1  ;;  %v4930_v27 = vpop.f32.mrf.mxu2  ;;  %v2636_v1 = vsel %vm2537_vm9, %v4597_v16, 0.0  ;;  %v2725_v35 = vsel %vm2537_vm9, %v4746_v30, 0.0 }
 0x375   : > { %3544 = vrot.lane.b32.xlu2 %v3543_v46, %s3612_s9  ;;  %v2718_v49 = vadd.f32 %v2717_v55, %v2716_v42  ;;  %v2638_v55 = vsel %vm2537_vm9, %v4612_v8, 0.0  ;;  %v2727_v46 = vsel %vm2537_vm9, %v4767_v19, 0.0  ;;  %v2144_v42 = vadd.f32 %v2100_v63, %v4517_v13 }
 0x376   : > { %2613 = vst.msk [vmem:[%s4802_s11 + $0x28] sm:$0xf] %vm2602_vm10, %v2580_v32  ;;  %v2635_v32 = vsel %vm2537_vm9, %v4590_v39, 0.0  ;;  %v2640_v30 = vsel %vm2537_vm9, %v4625_v7, 0.0  ;;  %v2731_v63 = vsel %vm2537_vm9, %v4787_v60, 0.0 }
 0x377   : > { %2614 = vst.msk [vmem:[%s4802_s11 + $0x2c] sm:$0xf] %vm2602_vm10, %v2581_v18  ;;  %v2720_v33 = vadd.f32 %v2719_v10, %v2718_v49  ;;  %v2637_v49 = vadd.f32 %v2636_v1, %v2635_v32  ;;  %v2644_v32 = vsel %vm2537_vm9, %v4653_v47, 0.0 }
 0x378   : > { %v2357_v37 = vpop.f32.mrf.mxu3 }
 0x379   : > { %v2722_v29 = vadd.f32 %v2721_v59, %v2720_v33  ;;  %v2639_v6 = vadd.f32 %v2638_v55, %v2637_v49  ;;  %v2737_v49 = vsel %vm2537_vm9, %v4819_v62, 0.0 }
 0x37a   : > { %v2102_v54 = vpop.f32.mrf.mxu1 }
 0x37b   : > { %v2724_v18 = vadd.f32 %v2723_v56, %v2722_v29  ;;  %v2145_v10 = vadd.f32 %v2102_v54, %v4525_v28  ;;  %v4967_v56 = vadd.f32 %v2357_v37, %v2144_v42  ;;  %v4971_v19 = vpop.f32.mrf.mxu0  ;;  %v2642_v28 = vsel %vm2537_vm9, %v4644_v53, 0.0 }
 0x37c   : > { %v4949_v21 = vpop.f32.mrf.mxu2  ;;  %v2641_v1 = vadd.f32 %v2640_v30, %v2639_v6  ;;  %v2646_v42 = vsel %vm2537_vm9, %v4672_v24, 0.0  ;;  %v2648_v30 = vsel %vm2537_vm9, %v4686_v44, 0.0 }
 0x37d   : > { %v2726_v59 = vadd.f32 %v2725_v35, %v2724_v18  ;;  %5652 = vst [vmem:[#allocation43_spill] sm:$0xff] %v4967_v56  ;;  %v2733_v18 = vsel %vm2537_vm9, %v4789_v36, 0.0 }
 0x37e   : > { %v2643_v55 = vadd.f32 %v2642_v28, %v2641_v1  ;;  %v2650_v28 = vsel %vm2537_vm9, %v4702_v50, 0.0 }
 0x37f   : > { %v2728_v23 = vadd.f32 %v2727_v46, %v2726_v59 }
 0x380   : > { %v2359_v33 = vpop.f32.mrf.mxu3  ;;  %v2645_v6 = vadd.f32 %v2644_v32, %v2643_v55  ;;  %v2741_v55 = vsel %vm2537_vm9, %v4842_v31, 0.0  ;;  %v2656_v31 = vsel %vm2537_vm9, %v4917_v0, 0.0 }
 0x381   : > { %v4969_v29 = vadd.f32 %v2359_v33, %v2145_v10  ;;  %v2730_v35 = vadd.f32 %v2729_v5, %v2728_v23  ;;  %v2735_v10 = vsel %vm2537_vm9, %v4817_v20, 0.0 }
 0x382   : > { %v2105_v13 = vpop.f32.mrf.mxu1  ;;  %v2647_v59 = vadd.f32 %v2646_v42, %v2645_v6  ;;  %v2654_v6 = vsel %vm2537_vm9, %v4726_v26, 0.0 }
 0x383   : > { %5653 = vst [vmem:[#allocation44_spill] sm:$0xff] %v4969_v29  ;;  %v3548_v54 = vpack.i.bf16 %v4969_v29, %v4967_v56  ;;  %v2732_v46 = vadd.f32 %v2731_v63, %v2730_v35  ;;  %v2739_v63 = vsel %vm2537_vm9, %v4840_v40, 0.0  ;;  %v4998_v32 = vpop.f32.mrf.mxu0 }
 0x384   : > { %v4979_v37 = vpop.f32.mrf.mxu2  ;;  %v2649_v1 = vadd.f32 %v2648_v30, %v2647_v59  ;;  %v2146_v30 = vadd.f32 %v2105_v13, %v4537_v12  ;;  %v2658_v12 = vsel %vm2537_vm9, %v4753_v14, 0.0 }
 0x385   : > { %3549 = vrot.lane.b32.xlu0 %v3548_v54, %s3612_s9  ;;  %v2734_v5 = vadd.f32 %v2733_v18, %v2732_v46  ;;  %v2652_v18 = vsel %vm2537_vm9, %v4867_v34, 0.0 }
 0x386   : > { %v2651_v42 = vadd.f32 %v2650_v28, %v2649_v1  ;;  %v2745_v28 = vsel %vm2537_vm9, %v4870_v41, 0.0  ;;  %v5666_v41 = vld [vmem:[#allocation13_spill] sm:$0xff] }
 0x387   : > { %v2736_v33 = vadd.f32 %v2735_v10, %v2734_v5  ;;  %v2743_v5 = vsel %vm2537_vm9, %v4872_v58, 0.0 }
 0x388   : > { %v2362_v23 = vpop.f32.mrf.mxu3  ;;  %v2653_v59 = vadd.f32 %v2652_v18, %v2651_v42 }
 0x389   : > { %v2738_v35 = vadd.f32 %v2737_v49, %v2736_v33 }
 0x38a   : > { %v2107_v54 = vpop.f32.mrf.mxu1 }
 0x38b   : > { %v2740_v10 = vadd.f32 %v2739_v63, %v2738_v35  ;;  %v2147_v49 = vadd.f32 %v2107_v54, %v4545_v38  ;;  %v5016_v63 = vadd.f32 %v2362_v23, %v2146_v30  ;;  %v2655_v35 = vadd.f32 %v2654_v6, %v2653_v59  ;;  %v5656_v30 = vld [vmem:[#allocation3_spill] sm:$0xff] }
 0x38c   : > { %v5004_v46 = vpop.f32.mrf.mxu2  ;;  %v2747_v38 = vsel %vm2537_vm9, %v4924_v43, 0.0  ;;  %v2660_v23 = vsel %vm2537_vm9, %v4762_v15, 0.0  ;;  %v2662_v6 = vsel %vm2537_vm9, %v4776_v17, 0.0  ;;  %v5665_v43 = vld [vmem:[#allocation11_spill] sm:$0xff] }
 0x38d   : > { %v2742_v33 = vadd.f32 %v2741_v55, %v2740_v10  ;;  %5654 = vst [vmem:[#allocation45_spill] sm:$0xff] %v5016_v63  ;;  %v2657_v54 = vadd.f32 %v2656_v31, %v2655_v35  ;;  %v5031_v10 = vpop.f32.mrf.mxu0  ;;  %v2753_v35 = vsel %vm2537_vm9, %v4969_v29, 0.0  ;;  %v5660_v29 = vld [vmem:[#allocation7_spill] sm:$0xff] }
 0x38f   : > { %v2744_v62 = vadd.f32 %v2743_v5, %v2742_v33  ;;  %v2659_v55 = vadd.f32 %v2658_v12, %v2657_v54  ;;  %v2751_v5 = vsel %vm2537_vm9, %v4967_v56, 0.0  ;;  %v5657_v56 = vld [vmem:[#allocation5_spill] sm:$0xff] }
 0x390   : > { %v2364_v40 = vpop.f32.mrf.mxu3 }
 0x391   : > { %v5018_v1 = vadd.f32 %v2364_v40, %v2147_v49  ;;  %v2746_v18 = vadd.f32 %v2745_v28, %v2744_v62  ;;  %v2749_v40 = vsel %vm2537_vm9, %v4920_v57, 0.0  ;;  %v2661_v62 = vadd.f32 %v2660_v23, %v2659_v55 }
 0x392   : > { %v2110_v58 = vpop.f32.mrf.mxu1  ;;  %v2011_v49 = vadd.f32 %v4792_v9, %v5656_v30 }
 0x393   : > { %5655 = vst [vmem:[#allocation46_spill] sm:$0xff] %v5018_v1  ;;  %v3553_v13 = vpack.i.bf16 %v5018_v1, %v5016_v63  ;;  %v2748_v42 = vadd.f32 %v2747_v38, %v2746_v18  ;;  %v2148_v12 = vadd.f32 %v2110_v58, %v4557_v2  ;;  %v2663_v54 = vadd.f32 %v2662_v6, %v2661_v62  ;;  %v5658_v6 = vld [vmem:[#allocation40_spill] sm:$0xff] }
 0x394   : > { %v5037_v31 = vpop.f32.mrf.mxu2  ;;  %v2664_v18 = vsel %vm2537_vm9, %v4783_v52, 0.0  ;;  %v5047_v23 = vadd.f32 %v5657_v56, %v2011_v49  ;;  %v2666_v62 = vsel %vm2537_vm9, %v5658_v6, 0.0 }
 0x395   : > { %3554 = vrot.lane.b32.xlu1 %v3553_v13, %s3612_s9  ;;  %v2750_v59 = vadd.f32 %v2749_v40, %v2748_v42  ;;  %v2755_v40 = vsel %vm2537_vm9, %v5016_v63, 0.0 }
 0x397   : > { %v2752_v55 = vadd.f32 %v2751_v5, %v2750_v59  ;;  %v2665_v5 = vadd.f32 %v2664_v18, %v2663_v54  ;;  %v2757_v59 = vsel %vm2537_vm9, %v5018_v1, 0.0  ;;  %v5070_v54 = vpop.f32.mrf.mxu0 }
 0x398   : > { %v3520_v33 = vpop.permute.xlu0 %3519  ;;  %v2367_v28 = vpop.f32.mrf.mxu3 }
 0x399   : > { %v3522_v38 = vunpack.i.h.bf16 %v3520_v33  ;;  %v3521_v13 = vunpack.i.l.bf16 %v3520_v33  ;;  %v5055_v58 = vadd.f32 %v2367_v28, %v2148_v12  ;;  %v2754_v30 = vadd.f32 %v2753_v35, %v2752_v55  ;;  %v5659_v12 = vld [vmem:[#allocation25_spill] sm:$0xff] }
 0x39a   : > { %v2112_v9 = vpop.f32.mrf.mxu1  ;;  %v2668_v33 = vsel %vm2537_vm9, %v5047_v23, 0.0 }
 0x39b   : > { %v2550_v42 = vsel %vm2537_vm9, %v4753_v14, %v3521_v13  ;;  %v2551_v2 = vsel %vm2537_vm9, %v4762_v15, %v3522_v38  ;;  %v2756_v63 = vadd.f32 %v2755_v40, %v2754_v30  ;;  %v2667_v13 = vadd.f32 %v2666_v62, %v2665_v5 }
 0x39c   : > { %v2582_v56 = vpack.c.bf16 %v2550_v42, %v2550_v42  ;;  %v2583_v49 = vpack.c.bf16 %v2551_v2, %v2551_v2  ;;  %v2759_v28 = vsel %vm2537_vm9, %v5055_v58, 0.0  ;;  %v2149_v35 = vadd.f32 %v2112_v9, %v5659_v12 }
 0x39d   : > { %v2758_v55 = vadd.f32 %v2757_v59, %v2756_v63  ;;  %v2669_v1 = vadd.f32 %v2668_v33, %v2667_v13  ;;  %v2670_v40 = vsel %vm2537_vm9, %v5660_v29, 0.0  ;;  %v2672_v62 = vsel %vm2537_vm9, %v4832_v48, 0.0  ;;  %v5662_v59 = vld [vmem:[#allocation15_spill] sm:$0xff] }
 0x39e   : > { %2615 = vst.msk [vmem:[%s4802_s11 + $0x30] sm:$0xf] %vm2602_vm10, %v2582_v56  ;;  %v2015_v33 = vadd.f32 %v4844_v3, %v5662_v59  ;;  %v5670_v59 = vld [vmem:[#allocation27_spill] sm:$0xff] }
 0x39f   : > { %2616 = vst.msk [vmem:[%s4802_s11 + $0x34] sm:$0xf] %vm2602_vm10, %v2583_v49  ;;  %v3530_v38 = vpop.permute.xlu2 %3529  ;;  %v2760_v56 = vadd.f32 %v2759_v28, %v2758_v55  ;;  %v5078_v49 = vpop.f32.mrf.mxu2  ;;  %v5663_v28 = vld [vmem:[#allocation16_spill] sm:$0xff] }
 0x3a0   : > { %v3532_v18 = vunpack.i.h.bf16 %v3530_v38  ;;  %v3531_v42 = vunpack.i.l.bf16 %v3530_v38  ;;  %v2369_v2 = vpop.f32.mrf.mxu3  ;;  %v2671_v38 = vadd.f32 %v2670_v40, %v2669_v1  ;;  %v5664_v55 = vld [vmem:[#allocation12_spill] sm:$0xff]  ;;  %v5095_v20 = vadd.f32 %v5666_v41, %v2015_v33  ;;  %v5668_v1 = vld [vmem:[#allocation18_spill] sm:$0xff]  ;;  %v5669_v40 = vld [vmem:[#allocation41_spill] sm:$0xff] }
 0x3a1   : > { %v5074_v30 = vadd.f32 %v2369_v2, %v2149_v35  ;;  %v2016_v2 = vadd.f32 %v5664_v55, %v5663_v28 }
 0x3a2   : > { %v2554_v63 = vsel %vm2537_vm9, %v5658_v6, %v3531_v42  ;;  %v2555_v9 = vsel %vm2537_vm9, %v5047_v23, %v3532_v18  ;;  %v2115_v5 = vpop.f32.mrf.mxu1  ;;  %v2674_v18 = vsel %vm2537_vm9, %v5665_v43, 0.0  ;;  %v2673_v3 = vadd.f32 %v2672_v62, %v2671_v38 }
 0x3a3   : > { %5661 = vst [vmem:[#allocation3_spill] sm:$0xff] %v5074_v30  ;;  %v2586_v13 = vpack.c.bf16 %v2554_v63, %v2554_v63  ;;  %v2587_v12 = vpack.c.bf16 %v2555_v9, %v2555_v9  ;;  %v2761_v35 = vsel %vm2537_vm9, %v5074_v30, 0.0  ;;  %v3558_v42 = vpack.i.bf16 %v5074_v30, %v5055_v58  ;;  %v5667_v63 = vld [vmem:[#allocation42_spill] sm:$0xff] }
 0x3a4   : > { %v2762_v57 = vadd.f32 %v2761_v35, %v2760_v56  ;;  %v5100_v9 = vadd.f32 %v5667_v63, %v2016_v2  ;;  %v2017_v56 = vadd.f32 %v5669_v40, %v5668_v1  ;;  %v2150_v35 = vadd.f32 %v2115_v5, %v5670_v59  ;;  %v5672_v5 = vld [vmem:[#allocation20_spill] sm:$0xff] }
 0x3a5   : > { %2619 = vst.msk [vmem:[%s4802_s11 + $0x40] sm:$0xf] %vm2602_vm10, %v2586_v13  ;;  %3559 = vrot.lane.b32.xlu2 %v3558_v42, %s3612_s9  ;;  %v2675_v55 = vadd.f32 %v2674_v18, %v2673_v3  ;;  %v2676_v62 = vsel %vm2537_vm9, %v5095_v20, 0.0  ;;  %v5671_v13 = vld [vmem:[#allocation19_spill] sm:$0xff]  ;;  %v2019_v18 = vadd.f32 %v4943_v61, %v5672_v5  ;;  %v1989_v3 = vpop.f32.mrf.mxu0  ;;  %v5675_v5 = vld [vmem:[#allocation29_spill] sm:$0xff] }
 0x3a6   : > { %2620 = vst.msk [vmem:[%s4802_s11 + $0x44] sm:$0xf] %vm2602_vm10, %v2587_v12  ;;  %v2018_v38 = vadd.f32 %v4907_v51, %v5671_v13  ;;  %v5113_v12 = vadd.f32 %v4899_v45, %v2017_v56  ;;  %v2678_v42 = vsel %vm2537_vm9, %v5100_v9, 0.0  ;;  %v5673_v13 = vld [vmem:[#allocation21_spill] sm:$0xff] }
 0x3a7   : > { %v3525_v28 = vpop.permute.xlu1 %3524  ;;  %v2677_v59 = vadd.f32 %v2676_v62, %v2675_v55  ;;  %v5674_v62 = vld [vmem:[#allocation22_spill] sm:$0xff] }
 0x3a8   : > { %v3527_v30 = vunpack.i.h.bf16 %v3525_v28  ;;  %v3526_v41 = vunpack.i.l.bf16 %v3525_v28  ;;  %v2372_v33 = vpop.f32.mrf.mxu3  ;;  %v5126_v45 = vadd.f32 %v4930_v27, %v2018_v38 }
 0x3a9   : > { %v5115_v2 = vadd.f32 %v2372_v33, %v2150_v35  ;;  %v2243_v35 = vpop.f32.mrf.mxu2  ;;  %v2680_v33 = vsel %vm2537_vm9, %v5113_v12, 0.0  ;;  %v2679_v27 = vadd.f32 %v2678_v42, %v2677_v59 }
 0x3aa   : > { %v2552_v63 = vsel %vm2537_vm9, %v4776_v17, %v3526_v41  ;;  %v2553_v51 = vsel %vm2537_vm9, %v4783_v52, %v3527_v30  ;;  %v2117_v61 = vpop.f32.mrf.mxu1  ;;  %v2020_v41 = vadd.f32 %v4971_v19, %v5673_v13  ;;  %v5135_v30 = vadd.f32 %v4949_v21, %v2019_v18  ;;  %v5676_v18 = vld [vmem:[#allocation23_spill] sm:$0xff] }
 0x3ab   : > { %v2584_v1 = vpack.c.bf16 %v2552_v63, %v2552_v63  ;;  %v2585_v40 = vpack.c.bf16 %v2553_v51, %v2553_v51  ;;  %v2763_v56 = vsel %vm2537_vm9, %v5115_v2, 0.0  ;;  %v2682_v55 = vsel %vm2537_vm9, %v5126_v45, 0.0 }
 0x3ac   : > { %v2764_v28 = vadd.f32 %v2763_v56, %v2762_v57  ;;  %v2021_v57 = vadd.f32 %v4998_v32, %v5674_v62  ;;  %v5146_v38 = vadd.f32 %v4979_v37, %v2020_v41  ;;  %v2151_v63 = vadd.f32 %v2117_v61, %v5675_v5  ;;  %v5677_v32 = vld [vmem:[#allocation24_spill] sm:$0xff] }
 0x3ad   : > { %2617 = vst.msk [vmem:[%s4802_s11 + $0x38] sm:$0xf] %vm2602_vm10, %v2584_v1  ;;  %v2681_v19 = vadd.f32 %v2680_v33, %v2679_v27  ;;  %v2684_v21 = vsel %vm2537_vm9, %v5135_v30, 0.0  ;;  %v2022_v42 = vadd.f32 %v5031_v10, %v5676_v18  ;;  %v2023_v59 = vadd.f32 %v5070_v54, %v5677_v32  ;;  %v1991_v10 = vpop.f32.mrf.mxu0  ;;  %v5678_v27 = vld [vmem:[#allocation26_spill] sm:$0xff]  ;;  %v5679_v54 = vld [vmem:[#allocation28_spill] sm:$0xff] }
 0x3ae   : > { %2618 = vst.msk [vmem:[%s4802_s11 + $0x3c] sm:$0xf] %vm2602_vm10, %v2585_v40  ;;  %v5154_v1 = vadd.f32 %v5004_v46, %v2021_v57  ;;  %v2686_v37 = vsel %vm2537_vm9, %v5146_v38, 0.0 }
 0x3af   : > { %v2683_v56 = vadd.f32 %v2682_v55, %v2681_v19  ;;  %v5163_v61 = vadd.f32 %v5037_v31, %v2022_v42  ;;  %v2024_v55 = vadd.f32 %v1989_v3, %v5678_v27  ;;  %v5171_v62 = vadd.f32 %v5078_v49, %v2023_v59 }
 0x3b0   : > { %v2374_v51 = vpop.f32.mrf.mxu3  ;;  %v2688_v46 = vsel %vm2537_vm9, %v5154_v1, 0.0 }
 0x3b1   : > { %v5156_v40 = vadd.f32 %v2374_v51, %v2151_v63  ;;  %v2685_v13 = vadd.f32 %v2684_v21, %v2683_v56  ;;  %v2245_v5 = vpop.f32.mrf.mxu2  ;;  %v2690_v31 = vsel %vm2537_vm9, %v5163_v61, 0.0  ;;  %v2025_v63 = vadd.f32 %v1991_v10, %v5679_v54 }
 0x3b2   : > { %v5176_v19 = vadd.f32 %v2243_v35, %v2024_v55 }
 0x3b3   : > { %v2765_v33 = vsel %vm2537_vm9, %v5156_v40, 0.0  ;;  %v2687_v57 = vadd.f32 %v2686_v37, %v2685_v13  ;;  %v5180_v21 = vadd.f32 %v2245_v5, %v2025_v63  ;;  %v3563_v56 = vpack.i.bf16 %v5156_v40, %v5115_v2 }
 0x3b4   : > { %v2766_v41 = vadd.f32 %v2765_v33, %v2764_v28  ;;  %v2692_v28 = vsel %vm2537_vm9, %v5171_v62, 0.0  ;;  %v2694_v49 = vsel %vm2537_vm9, %v5176_v19, 0.0 }
 0x3b5   : > { %v2689_v51 = vadd.f32 %v2688_v46, %v2687_v57  ;;  %v2696_v42 = vsel %vm2537_vm9, %v5180_v21, 0.0  ;;  %3564 = vrot.lane.b32.xlu0 %v3563_v56, %s3612_s9  ;;  %s3232_s9 = sshll.u32 %s5714_s25, 1 }
 0x3b6   : > { %v2767_v32 = vrot.slane %v2766_v41, 4  ;;  %s465_s18 = sadd.s32 %s3232_s9, %s5726_s24 }
 0x3b7   : > { %v2691_v18 = vadd.f32 %v2690_v31, %v2689_v51  ;;  %s3233_s14 = sshll.u32 %s465_s18, 1 }
 0x3b8   : > { %v2768_v33 = vadd.f32 %v2767_v32, %v2766_v41  ;;  %s467_s24 = scalar_lea.vmem %s5476_s7, %s3233_s14 }
 0x3b9   : > { %v2693_v3 = vadd.f32 %v2692_v28, %v2691_v18  ;;  %v5680_v18 = vld [vmem:[#allocation30_spill] sm:$0xff] }
 0x3ba   : > { %v2769_v10 = vrot.slane %v2768_v33, 2 }
 0x3bb   : > { %v2695_v37 = vadd.f32 %v2694_v49, %v2693_v3  ;;  %v5681_v3 = vld [vmem:[#allocation31_spill] sm:$0xff] }
 0x3bc   : > { %v2770_v27 = vadd.f32 %v2769_v10, %v2768_v33  ;;  %v5683_v33 = vld [vmem:[#allocation33_spill] sm:$0xff] }
 0x3bd   : > { %v2697_v35 = vadd.f32 %v2696_v42, %v2695_v37 }
 0x3be   : > { %v2771_v57 = vrot.slane %v2770_v27, 1 }
 0x3bf   : > { %v2698_v59 = vrot.slane %v2697_v35, 4 }
 0x3c0   : > { %v2772_v31 = vadd.f32 %v2771_v57, %v2770_v27  ;;  %v5684_v57 = vld [vmem:[#allocation34_spill] sm:$0xff] }
 0x3c1   : > { %v2699_v13 = vadd.f32 %v2698_v59, %v2697_v35  ;;  %v5682_v35 = vld [vmem:[#allocation32_spill] sm:$0xff] }
 0x3c3   : > { %v2700_v46 = vrot.slane %v2699_v13, 2 }
 0x3c5   : > { %v2701_v55 = vadd.f32 %v2700_v46, %v2699_v13 }
 0x3c7   : > { %v2702_v5 = vrot.slane %v2701_v55, 1 }
 0x3c9   : > { %v2703_v54 = vadd.f32 %v2702_v5, %v2701_v55 }
 0x3cb   : > { %v5189_v63 = vadd.f32 %v2772_v31, %v2703_v54 }
 0x3cd   : > { %v5192_v51 = vmul.f32 0.001953125, %v5189_v63 }
 0x3cf   : > { %v2775_v28 = vsub.f32 %v4590_v39, %v5192_v51  ;;  %v2776_v41 = vsub.f32 %v4597_v16, %v5192_v51  ;;  %v2807_v49 = vsub.f32 %v5680_v18, %v5192_v51  ;;  %v2808_v42 = vsub.f32 %v5681_v3, %v5192_v51 }
 0x3d0   : > { %v2777_v56 = vsub.f32 %v4612_v8, %v5192_v51  ;;  %v2778_v37 = vsub.f32 %v4625_v7, %v5192_v51  ;;  %v2809_v32 = vsub.f32 %v5682_v35, %v5192_v51  ;;  %v2779_v39 = vsub.f32 %v4644_v53, %v5192_v51 }
 0x3d1   : > { %v2780_v16 = vsub.f32 %v4653_v47, %v5192_v51  ;;  %v2781_v59 = vsub.f32 %v4672_v24, %v5192_v51  ;;  %v2810_v13 = vsub.f32 %v5683_v33, %v5192_v51  ;;  %v2839_v10 = vmul.f32 %v2775_v28, %v2775_v28 }
 0x3d2   : > { %v2840_v8 = vmul.f32 %v2776_v41, %v2776_v41  ;;  %v2871_v46 = vmul.f32 %v2807_v49, %v2807_v49  ;;  %v2872_v27 = vmul.f32 %v2808_v42, %v2808_v42  ;;  %v2782_v7 = vsub.f32 %v4686_v44, %v5192_v51 }
 0x3d3   : > { %v2783_v55 = vsub.f32 %v4702_v50, %v5192_v51  ;;  %v2784_v53 = vsub.f32 %v4867_v34, %v5192_v51  ;;  %v2785_v47 = vsub.f32 %v4726_v26, %v5192_v51  ;;  %v2786_v24 = vsub.f32 %v4917_v0, %v5192_v51 }
 0x3d4   : > { %v2811_v5 = vsub.f32 %v5684_v57, %v5192_v51  ;;  %v2841_v31 = vmul.f32 %v2777_v56, %v2777_v56  ;;  %v2873_v54 = vmul.f32 %v2809_v32, %v2809_v32  ;;  %v2787_v44 = vsub.f32 %v4753_v14, %v5192_v51 }
 0x3d5   : > { %v5232_v50 = vsub.f32 %v4762_v15, %v5192_v51  ;;  %v2812_v34 = vsub.f32 %v4664_v11, %v5192_v51  ;;  %v2813_v26 = vsub.f32 %v4692_v22, %v5192_v51  ;;  %v2842_v28 = vmul.f32 %v2778_v37, %v2778_v37  ;;  %v5685_v22 = vld [vmem:[#allocation35_spill] sm:$0xff] }
 0x3d6   : > { %v2874_v0 = vmul.f32 %v2810_v13, %v2810_v13  ;;  %v2903_v41 = vadd.f32 %v2871_v46, %v2839_v10  ;;  %v2904_v18 = vadd.f32 %v2872_v27, %v2840_v8  ;;  %v5240_v49 = vsub.f32 %v4776_v17, %v5192_v51  ;;  %v5686_v17 = vld [vmem:[#allocation36_spill] sm:$0xff]  ;;  %v5688_v27 = vld [vmem:[#allocation39_spill] sm:$0xff] }
 0x3d7   : > { %v5244_v14 = vsub.f32 %v4783_v52, %v5192_v51  ;;  %v5248_v15 = vsub.f32 %v5658_v6, %v5192_v51  ;;  %v2814_v11 = vsub.f32 %v4694_v25, %v5192_v51  ;;  %v2815_v3 = vsub.f32 %v5685_v22, %v5192_v51 }
 0x3d8   : > { %v2843_v42 = vmul.f32 %v2779_v39, %v2779_v39  ;;  %v2875_v56 = vmul.f32 %v2811_v5, %v2811_v5  ;;  %v2905_v37 = vadd.f32 %v2873_v54, %v2841_v31  ;;  %v2816_v35 = vsub.f32 %v5686_v17, %v5192_v51  ;;  %v5687_v39 = vld [vmem:[#allocation37_spill] sm:$0xff]  ;;  %v5689_v17 = vld [vmem:[#allocation2_spill] sm:$0xff] }
 0x3d9   : > { %v2844_v32 = vmul.f32 %v2780_v16, %v2780_v16  ;;  %v2845_v33 = vmul.f32 %v2781_v59, %v2781_v59  ;;  %v2876_v52 = vmul.f32 %v2812_v34, %v2812_v34  ;;  %v2877_v13 = vmul.f32 %v2813_v26, %v2813_v26 }
 0x3da   : > { %v2906_v10 = vadd.f32 %v2874_v0, %v2842_v28  ;;  %v2935_v6 = vsel %vm2537_vm9, %v2903_v41, 0.0  ;;  %v2936_v8 = vsel %vm2537_vm9, %v2904_v18, 0.0  ;;  %v5260_v25 = vsub.f32 %v5047_v23, %v5192_v51 }
 0x3db   : > { %v2817_v46 = vsub.f32 %v5687_v39, %v5192_v51  ;;  %v2818_v57 = vsub.f32 %v5688_v27, %v5192_v51  ;;  %v2937_v5 = vadd.f32 %v2936_v8, %v2935_v6  ;;  %v2846_v16 = vmul.f32 %v2782_v7, %v2782_v7 }
 0x3dc   : > { %v2878_v59 = vmul.f32 %v2814_v11, %v2814_v11  ;;  %v2907_v31 = vadd.f32 %v2875_v56, %v2843_v42  ;;  %v2938_v54 = vsel %vm2537_vm9, %v2905_v37, 0.0  ;;  %v2847_v34 = vmul.f32 %v2783_v55, %v2783_v55  ;;  %v3535_v56 = vpop.permute.xlu0 %3534  ;;  %v3545_v37 = vpop.permute.xlu2 %3544 }
 0x3dd   : > { %v2848_v26 = vmul.f32 %v2784_v53, %v2784_v53  ;;  %v2879_v28 = vmul.f32 %v2815_v3, %v2815_v3  ;;  %v2939_v0 = vadd.f32 %v2938_v54, %v2937_v5  ;;  %v2880_v41 = vmul.f32 %v2816_v35, %v2816_v35 }
 0x3de   : > { %v2908_v18 = vadd.f32 %v2876_v52, %v2844_v32  ;;  %v2909_v23 = vadd.f32 %v2877_v13, %v2845_v33  ;;  %v2940_v22 = vsel %vm2537_vm9, %v2906_v10, 0.0  ;;  %v2819_v39 = vsub.f32 %v5689_v17, %v5192_v51  ;;  %v3540_v13 = vpop.permute.xlu1 %3539 }
 0x3df   : > { %v2820_v6 = vsub.f32 %v4769_v4, %v5192_v51  ;;  %v2821_v7 = vsub.f32 %v4787_v60, %v5192_v51  ;;  %v2941_v11 = vadd.f32 %v2940_v22, %v2939_v0  ;;  %v2849_v42 = vmul.f32 %v2785_v47, %v2785_v47 }
 0x3e0   : > { %v2850_v55 = vmul.f32 %v2786_v24, %v2786_v24  ;;  %v2910_v53 = vadd.f32 %v2878_v59, %v2846_v16  ;;  %v2942_v3 = vsel %vm2537_vm9, %v2907_v31, 0.0  ;;  %v2851_v35 = vmul.f32 %v2787_v44, %v2787_v44 }
 0x3e1   : > { %v2881_v32 = vmul.f32 %v2817_v46, %v2817_v46  ;;  %v2882_v33 = vmul.f32 %v2818_v57, %v2818_v57  ;;  %v2943_v52 = vadd.f32 %v2942_v3, %v2941_v11  ;;  %v2911_v10 = vadd.f32 %v2879_v28, %v2847_v34 }
 0x3e2   : > { %v2912_v8 = vadd.f32 %v2880_v41, %v2848_v26  ;;  %v2944_v4 = vsel %vm2537_vm9, %v2908_v18, 0.0  ;;  %v2946_v27 = vsel %vm2537_vm9, %v2909_v23, 0.0  ;;  %v3537_v5 = vunpack.i.h.bf16 %v3535_v56 }
 0x3e3   : > { %v2945_v60 = vadd.f32 %v2944_v4, %v2943_v52  ;;  %v3536_v47 = vunpack.i.l.bf16 %v3535_v56  ;;  %v3547_v24 = vunpack.i.h.bf16 %v3545_v37  ;;  %v2948_v16 = vsel %vm2537_vm9, %v2910_v53, 0.0 }
 0x3e4   : > { %v3546_v59 = vunpack.i.l.bf16 %v3545_v37  ;;  %v3542_v31 = vunpack.i.h.bf16 %v3540_v13  ;;  %v3541_v54 = vunpack.i.l.bf16 %v3540_v13  ;;  %v2557_v57 = vsel %vm2537_vm9, %v4832_v48, %v3537_v5 }
 0x3e5   : > { %v2947_v44 = vadd.f32 %v2946_v27, %v2945_v60  ;;  %v2556_v46 = vsel %vm2537_vm9, %v5660_v29, %v3536_v47  ;;  %v2561_v34 = vsel %vm2537_vm9, %v5113_v12, %v3547_v24  ;;  %v2589_v28 = vpack.c.bf16 %v2557_v57, %v2557_v57  ;;  %v5690_v27 = vld [vmem:[#allocation6_spill] sm:$0xff] }
 0x3e6   : > { %v2588_v26 = vpack.c.bf16 %v2556_v46, %v2556_v46  ;;  %v2560_v0 = vsel %vm2537_vm9, %v5100_v9, %v3546_v59  ;;  %v2593_v41 = vpack.c.bf16 %v2561_v34, %v2561_v34  ;;  %v2558_v22 = vsel %vm2537_vm9, %v5665_v43, %v3541_v54 }
 0x3e7   : > { %v2949_v18 = vadd.f32 %v2948_v16, %v2947_v44  ;;  %v2592_v23 = vpack.c.bf16 %v2560_v0, %v2560_v0  ;;  %v2559_v17 = vsel %vm2537_vm9, %v5095_v20, %v3542_v31  ;;  %v2883_v11 = vmul.f32 %v2819_v39, %v2819_v39  ;;  %2622 = vst.msk [vmem:[%s4802_s11 + $0x4c] sm:$0xf] %vm2602_vm10, %v2589_v28 }
 0x3e8   : > { %v2913_v53 = vadd.f32 %v2881_v32, %v2849_v42  ;;  %v2950_v3 = vsel %vm2537_vm9, %v2911_v10, 0.0  ;;  %2621 = vst.msk [vmem:[%s4802_s11 + $0x48] sm:$0xf] %vm2602_vm10, %v2588_v26  ;;  %v2590_v56 = vpack.c.bf16 %v2558_v22, %v2558_v22  ;;  %v2793_v37 = vsub.f32 %v5660_v29, %v5192_v51  ;;  %v5693_v26 = vld [vmem:[#allocation10_spill] sm:$0xff] }
 0x3e9   : > { %v2822_v52 = vsub.f32 %v4789_v36, %v5192_v51  ;;  %v2951_v13 = vadd.f32 %v2950_v3, %v2949_v18  ;;  %v2591_v4 = vpack.c.bf16 %v2559_v17, %v2559_v17  ;;  %v2852_v39 = vmul.f32 %v5232_v50, %v5232_v50  ;;  %2625 = vst.msk [vmem:[%s4802_s11 + $0x58] sm:$0xf] %vm2602_vm10, %v2592_v23  ;;  %v5694_v22 = vld [vmem:[#allocation14_spill] sm:$0xff] }
 0x3ea   : > { %v2884_v42 = vmul.f32 %v2820_v6, %v2820_v6  ;;  %v2914_v32 = vadd.f32 %v2882_v33, %v2850_v55  ;;  %v2952_v10 = vsel %vm2537_vm9, %v2912_v8, 0.0  ;;  %v2794_v29 = vsub.f32 %v4832_v48, %v5192_v51  ;;  %2626 = vst.msk [vmem:[%s4802_s11 + $0x5c] sm:$0xf] %vm2602_vm10, %v2593_v41  ;;  %v5691_v8 = vld [vmem:[#allocation8_spill] sm:$0xff] }
 0x3eb   : > { %v2795_v36 = vsub.f32 %v5665_v43, %v5192_v51  ;;  %v2823_v60 = vsub.f32 %v5690_v27, %v5192_v51  ;;  %v2953_v5 = vadd.f32 %v2952_v10, %v2951_v13  ;;  %v2853_v50 = vmul.f32 %v5240_v49, %v5240_v49  ;;  %2623 = vst.msk [vmem:[%s4802_s11 + $0x50] sm:$0xf] %vm2602_vm10, %v2590_v56 }
 0x3ec   : > { %v2885_v6 = vmul.f32 %v2821_v7, %v2821_v7  ;;  %v2915_v55 = vadd.f32 %v2883_v11, %v2851_v35  ;;  %v2954_v33 = vsel %vm2537_vm9, %v2913_v53, 0.0  ;;  %v2796_v48 = vsub.f32 %v5095_v20, %v5192_v51  ;;  %2624 = vst.msk [vmem:[%s4802_s11 + $0x54] sm:$0xf] %vm2602_vm10, %v2591_v4 }
 0x3ed   : > { %v2797_v43 = vsub.f32 %v5100_v9, %v5192_v51  ;;  %v2824_v47 = vsub.f32 %v5691_v8, %v5192_v51  ;;  %v2955_v24 = vadd.f32 %v2954_v33, %v2953_v5  ;;  %v2854_v49 = vmul.f32 %v5244_v14, %v5244_v14  ;;  %v5692_v9 = vld [vmem:[#allocation9_spill] sm:$0xff] }
 0x3ee   : > { %v2886_v7 = vmul.f32 %v2822_v52, %v2822_v52  ;;  %v2916_v35 = vadd.f32 %v2884_v42, %v2852_v39  ;;  %v2956_v16 = vsel %vm2537_vm9, %v2914_v32, 0.0  ;;  %v2798_v59 = vsub.f32 %v5113_v12, %v5192_v51  ;;  %v5695_v42 = vld [vmem:[#allocation38_spill] sm:$0xff] }
 0x3ef   : > { %v5332_v20 = vsub.f32 %v5126_v45, %v5192_v51  ;;  %v2825_v31 = vsub.f32 %v5692_v9, %v5192_v51  ;;  %v2957_v54 = vadd.f32 %v2956_v16, %v2955_v24  ;;  %v2855_v44 = vmul.f32 %v5248_v15, %v5248_v15 }
 0x3f0   : > { %v2887_v46 = vmul.f32 %v2823_v60, %v2823_v60  ;;  %v2917_v14 = vadd.f32 %v2885_v6, %v2853_v50  ;;  %v2958_v57 = vsel %vm2537_vm9, %v2915_v55, 0.0  ;;  %v5341_v34 = vsub.f32 %v5135_v30, %v5192_v51  ;;  %v5696_v6 = vld [vmem:[#allocation17_spill] sm:$0xff] }
 0x3f1   : > { %v5345_v12 = vsub.f32 %v5146_v38, %v5192_v51  ;;  %v2826_v28 = vsub.f32 %v5693_v26, %v5192_v51  ;;  %v2959_v0 = vadd.f32 %v2958_v57, %v2957_v54  ;;  %v2856_v41 = vmul.f32 %v5260_v25, %v5260_v25 }
 0x3f2   : > { %v2888_v15 = vmul.f32 %v2824_v47, %v2824_v47  ;;  %v2918_v18 = vadd.f32 %v2886_v7, %v2854_v49  ;;  %v2960_v23 = vsel %vm2537_vm9, %v2916_v35, 0.0  ;;  %v2827_v17 = vsub.f32 %v5694_v22, %v5192_v51 }
 0x3f3   : > { %v2857_v11 = vmul.f32 %v2793_v37, %v2793_v37  ;;  %v2889_v53 = vmul.f32 %v2825_v31, %v2825_v31  ;;  %v2961_v3 = vadd.f32 %v2960_v23, %v2959_v0  ;;  %v2919_v52 = vadd.f32 %v2887_v46, %v2855_v44  ;;  %v5698_v46 = vld [vmem:[#allocation43_spill] sm:$0xff] }
 0x3f4   : > { %v2962_v13 = vsel %vm2537_vm9, %v2917_v14, 0.0  ;;  %v2828_v32 = vsub.f32 %v5695_v42, %v5192_v51  ;;  %v2858_v25 = vmul.f32 %v2794_v29, %v2794_v29  ;;  %v2890_v10 = vmul.f32 %v2826_v28, %v2826_v28 }
 0x3f5   : > { %v2963_v27 = vadd.f32 %v2962_v13, %v2961_v3  ;;  %v2920_v60 = vadd.f32 %v2888_v15, %v2856_v41  ;;  %v2964_v5 = vsel %vm2537_vm9, %v2918_v18, 0.0  ;;  %v2829_v55 = vsub.f32 %v5696_v6, %v5192_v51  ;;  %v5700_v13 = vld [vmem:[#allocation45_spill] sm:$0xff] }
 0x3f6   : > { %v2859_v29 = vmul.f32 %v2795_v36, %v2795_v36  ;;  %v2891_v24 = vmul.f32 %v2827_v17, %v2827_v17  ;;  %v2921_v49 = vadd.f32 %v2889_v53, %v2857_v11  ;;  %v2966_v7 = vsel %vm2537_vm9, %v2919_v52, 0.0 }
 0x3f7   : > { %v3550_v56 = vpop.permute.xlu0 %3549  ;;  %v2965_v33 = vadd.f32 %v2964_v5, %v2963_v27  ;;  %v2802_v35 = vsub.f32 %v5154_v1, %v5192_v51  ;;  %v2860_v31 = vmul.f32 %v2796_v48, %v2796_v48  ;;  %v2892_v54 = vmul.f32 %v2828_v32, %v2828_v32  ;;  %v5699_v48 = vld [vmem:[#allocation44_spill] sm:$0xff]  ;;  %v5701_v5 = vld [vmem:[#allocation46_spill] sm:$0xff] }
 0x3f8   : > { %v3552_v4 = vunpack.i.h.bf16 %v3550_v56  ;;  %v3551_v39 = vunpack.i.l.bf16 %v3550_v56  ;;  %v2922_v36 = vadd.f32 %v2890_v10, %v2858_v25  ;;  %v2968_v44 = vsel %vm2537_vm9, %v2920_v60, 0.0 }
 0x3f9   : > { %v2967_v9 = vadd.f32 %v2966_v7, %v2965_v33  ;;  %v2831_v14 = vsub.f32 %v5698_v46, %v5192_v51  ;;  %v2861_v57 = vmul.f32 %v2797_v43, %v2797_v43  ;;  %v2893_v26 = vmul.f32 %v2829_v55, %v2829_v55 }
 0x3fa   : > { %v2562_v37 = vsel %vm2537_vm9, %v5126_v45, %v3551_v39  ;;  %v2563_v50 = vsel %vm2537_vm9, %v5135_v30, %v3552_v4  ;;  %v5369_v45 = vsub.f32 %v5163_v61, %v5192_v51  ;;  %v5697_v30 = vld [vmem:[#allocation4_spill] sm:$0xff]  ;;  %v2923_v41 = vadd.f32 %v2891_v24, %v2859_v29 }
 0x3fb   : > { %v2594_v8 = vpack.c.bf16 %v2562_v37, %v2562_v37  ;;  %v2595_v47 = vpack.c.bf16 %v2563_v50, %v2563_v50  ;;  %v2830_v16 = vsub.f32 %v5697_v30, %v5192_v51  ;;  %v2969_v28 = vadd.f32 %v2968_v44, %v2967_v9 }
 0x3fc   : > { %v2970_v15 = vsel %vm2537_vm9, %v2921_v49, 0.0  ;;  %v2832_v22 = vsub.f32 %v5699_v48, %v5192_v51  ;;  %v2862_v17 = vmul.f32 %v2798_v59, %v2798_v59  ;;  %v2924_v3 = vadd.f32 %v2892_v54, %v2860_v31 }
 0x3fd   : > { %2627 = vst.msk [vmem:[%s4802_s11 + $0x60] sm:$0xf] %vm2602_vm10, %v2594_v8  ;;  %v2894_v11 = vmul.f32 %v2830_v16, %v2830_v16  ;;  %v2971_v53 = vadd.f32 %v2970_v15, %v2969_v28  ;;  %v2972_v56 = vsel %vm2537_vm9, %v2922_v36, 0.0  ;;  %v2833_v4 = vsub.f32 %v5700_v13, %v5192_v51  ;;  %v5702_v16 = vld [vmem:[#allocation3_spill] sm:$0xff] }
 0x3fe   : > { %2628 = vst.msk [vmem:[%s4802_s11 + $0x64] sm:$0xf] %vm2602_vm10, %v2595_v47  ;;  %v2863_v59 = vmul.f32 %v5332_v20, %v5332_v20  ;;  %v2895_v25 = vmul.f32 %v2831_v14, %v2831_v14  ;;  %v2925_v10 = vadd.f32 %v2893_v26, %v2861_v57  ;;  %v2974_v27 = vsel %vm2537_vm9, %v2923_v41, 0.0 }
 0x3ff   : > { %v3560_v0 = vpop.permute.xlu2 %3559  ;;  %v2973_v39 = vadd.f32 %v2972_v56, %v2971_v53  ;;  %v2805_v60 = vsub.f32 %v5176_v19, %v5192_v51  ;;  %v2834_v37 = vsub.f32 %v5701_v5, %v5192_v51  ;;  %v2864_v6 = vmul.f32 %v5341_v34, %v5341_v34 }
 0x400   : > { %v3562_v18 = vunpack.i.h.bf16 %v3560_v0  ;;  %v3561_v23 = vunpack.i.l.bf16 %v3560_v0  ;;  %v2896_v20 = vmul.f32 %v2832_v22, %v2832_v22  ;;  %v2926_v55 = vadd.f32 %v2894_v11, %v2862_v17 }
 0x401   : > { %v2975_v50 = vadd.f32 %v2974_v27, %v2973_v39  ;;  %v2976_v33 = vsel %vm2537_vm9, %v2924_v3, 0.0  ;;  %v2865_v8 = vmul.f32 %v5345_v12, %v5345_v12  ;;  %v2897_v47 = vmul.f32 %v2833_v4, %v2833_v4 }
 0x402   : > { %v2566_v43 = vsel %vm2537_vm9, %v5163_v61, %v3561_v23  ;;  %v2567_v52 = vsel %vm2537_vm9, %v5171_v62, %v3562_v18  ;;  %v2804_v61 = vsub.f32 %v5171_v62, %v5192_v51  ;;  %v2835_v62 = vsub.f32 %v5055_v58, %v5192_v51 }
 0x403   : > { %v2598_v42 = vpack.c.bf16 %v2566_v43, %v2566_v43  ;;  %v2599_v32 = vpack.c.bf16 %v2567_v52, %v2567_v52  ;;  %v2977_v29 = vadd.f32 %v2976_v33, %v2975_v50  ;;  %v2927_v49 = vadd.f32 %v2895_v25, %v2863_v59 }
 0x404   : > { %v2978_v7 = vsel %vm2537_vm9, %v2925_v10, 0.0  ;;  %v2836_v9 = vsub.f32 %v5702_v16, %v5192_v51  ;;  %v2866_v31 = vmul.f32 %v2802_v35, %v2802_v35  ;;  %v2898_v54 = vmul.f32 %v2834_v37, %v2834_v37 }
 0x405   : > { %2631 = vst.msk [vmem:[%s4802_s11 + $0x70] sm:$0xf] %vm2602_vm10, %v2598_v42  ;;  %v2979_v36 = vadd.f32 %v2978_v7, %v2977_v29  ;;  %v2928_v44 = vadd.f32 %v2896_v20, %v2864_v6  ;;  %v2980_v58 = vsel %vm2537_vm9, %v2926_v55, 0.0  ;;  %v2837_v14 = vsub.f32 %v5115_v2, %v5192_v51 }
 0x406   : > { %2632 = vst.msk [vmem:[%s4802_s11 + $0x74] sm:$0xf] %vm2602_vm10, %v2599_v32  ;;  %v2867_v35 = vmul.f32 %v5369_v45, %v5369_v45  ;;  %v2899_v0 = vmul.f32 %v2835_v62, %v2835_v62  ;;  %v2929_v41 = vadd.f32 %v2897_v47, %v2865_v8  ;;  %v2982_v15 = vsel %vm2537_vm9, %v2927_v49, 0.0 }
 0x407   : > { %v3555_v24 = vpop.permute.xlu1 %3554  ;;  %v2981_v57 = vadd.f32 %v2980_v58, %v2979_v36  ;;  %v2868_v2 = vmul.f32 %v2804_v61, %v2804_v61  ;;  %v2900_v23 = vmul.f32 %v2836_v9, %v2836_v9  ;;  %v2930_v48 = vadd.f32 %v2898_v54, %v2866_v31 }
 0x408   : > { %v3557_v30 = vunpack.i.h.bf16 %v3555_v24  ;;  %v3556_v34 = vunpack.i.l.bf16 %v3555_v24  ;;  %v2984_v22 = vsel %vm2537_vm9, %v2928_v44, 0.0  ;;  %v2869_v17 = vmul.f32 %v2805_v60, %v2805_v60 }
 0x409   : > { %v2983_v18 = vadd.f32 %v2982_v15, %v2981_v57  ;;  %v2901_v11 = vmul.f32 %v2837_v14, %v2837_v14  ;;  %v2931_v53 = vadd.f32 %v2899_v0, %v2867_v35  ;;  %v2986_v3 = vsel %vm2537_vm9, %v2929_v41, 0.0 }
 0x40a   : > { %v2564_v12 = vsel %vm2537_vm9, %v5146_v38, %v3556_v34  ;;  %v2565_v46 = vsel %vm2537_vm9, %v5154_v1, %v3557_v30  ;;  %v2806_v38 = vsub.f32 %v5180_v21, %v5192_v51  ;;  %v2838_v1 = vsub.f32 %v5156_v40, %v5192_v51 }
 0x40b   : > { %v2596_v26 = vpack.c.bf16 %v2564_v12, %v2564_v12  ;;  %v2597_v28 = vpack.c.bf16 %v2565_v46, %v2565_v46  ;;  %v2985_v45 = vadd.f32 %v2984_v22, %v2983_v18  ;;  %v2932_v51 = vadd.f32 %v2900_v23, %v2868_v2 }
 0x40c   : > { %v2870_v43 = vmul.f32 %v2806_v38, %v2806_v38  ;;  %v2902_v40 = vmul.f32 %v2838_v1, %v2838_v1  ;;  %v2988_v52 = vsel %vm2537_vm9, %v2930_v48, 0.0  ;;  %v2933_v4 = vadd.f32 %v2901_v11, %v2869_v17 }
 0x40d   : > { %2629 = vst.msk [vmem:[%s4802_s11 + $0x68] sm:$0xf] %vm2602_vm10, %v2596_v26  ;;  %v2987_v56 = vadd.f32 %v2986_v3, %v2985_v45  ;;  %v2990_v39 = vsel %vm2537_vm9, %v2931_v53, 0.0  ;;  %v2992_v59 = vsel %vm2537_vm9, %v2932_v51, 0.0 }
 0x40e   : > { %2630 = vst.msk [vmem:[%s4802_s11 + $0x6c] sm:$0xf] %vm2602_vm10, %v2597_v28  ;;  %v2934_v32 = vadd.f32 %v2902_v40, %v2870_v43  ;;  %v2994_v10 = vsel %vm2537_vm9, %v2933_v4, 0.0 }
 0x40f   : > { %v2989_v13 = vadd.f32 %v2988_v52, %v2987_v56 }
 0x410   : > { %v2996_v61 = vsel %vm2537_vm9, %v2934_v32, 0.0 }
 0x411   : > { %v2991_v42 = vadd.f32 %v2990_v39, %v2989_v13 }
 0x413   : > { %v2993_v25 = vadd.f32 %v2992_v59, %v2991_v42 }
 0x415   : > { %v2995_v27 = vadd.f32 %v2994_v10, %v2993_v25 }
 0x417   : > { %v2997_v60 = vadd.f32 %v2996_v61, %v2995_v27 }
 0x419   : > { %v2998_v5 = vrot.slane %v2997_v60, 4 }
 0x41b   : > { %v2999_v37 = vadd.f32 %v2998_v5, %v2997_v60 }
 0x41d   : > { %v3000_v50 = vrot.slane %v2999_v37, 2 }
 0x41f   : > { %v3001_v33 = vadd.f32 %v3000_v50, %v2999_v37 }
 0x421   : > { %v3002_v47 = vrot.slane %v3001_v33, 1 }
 0x423   : > { %v3003_v49 = vadd.f32 %v3002_v47, %v3001_v33 }
 0x425   : > { %v3005_v7 = vsel %vm749_vm2, %v5189_v63, %v3003_v49 }
 0x426   : > { %3007 = vst.msk [vmem:[%s467_s24] sm:$0x3] %vm3006_vm11, %v3005_v7 }
 0x427   : > { %v3565_v6 = vpop.permute.xlu0 %3564 }
 0x428   : > { %v3567_v20 = vunpack.i.h.bf16 %v3565_v6  ;;  %v3566_v55 = vunpack.i.l.bf16 %v3565_v6 }
 0x42a   : > { %v2568_v62 = vsel %vm2537_vm9, %v5176_v19, %v3566_v55  ;;  %v2569_v8 = vsel %vm2537_vm9, %v5180_v21, %v3567_v20 }
 0x42b   : > { %v2600_v29 = vpack.c.bf16 %v2568_v62, %v2568_v62  ;;  %v2601_v24 = vpack.c.bf16 %v2569_v8, %v2569_v8 }
 0x42d   : > { %2633 = vst.msk [vmem:[%s4802_s11 + $0x78] sm:$0xf] %vm2602_vm10, %v2600_v29 }
 0x42e   : > { %2634 = vst.msk [vmem:[%s4802_s11 + $0x7c] sm:$0xf] %vm2602_vm10, %v2601_v24 }
 0x42f PF: > { %s18_s28 = sadd.s32 1, %s3610_s28   ;;  %s5703_s24 = smov %s3602_s26 }
 0x430   : > { %p15_p0 = scmp.ge.s32.totalorder %s18_s28, 6   ;;  %s5704_s25 = smov %s3606_s27 }
 0x431   : > { %s5705_s26 = smov %s5708_s29  ;;  %s5706_s27 = smov %s5712_s30 }
 0x432   :  { %17 = sbr.rel (!%p15_p0) target bundleno = 3 (0x3), region = 103 }

// kernel: gen_block_forward.3
= control target key start
LH: loop header
LB: loop body
LE: loop exit
PB: predicated region body
PF: predicated region fallthrough
CT: control target
= control target key end

     0   :  { %s3679_s17 = smov 0   ;;  %s3681_s18 = smov 0   ;;  %s5386_s0 = inlined_call_operand.vmem [shape: bf16[2,32,16,16], index: 0, kind: input, shape index: {}, may-alias: {0,1,2}]   ;;  %s5387_s1 = inlined_call_operand.vmem [shape: bf16[2,32,16,16], index: 1, kind: input, shape index: {}, may-alias: {0,1,2}]   ;;  %s5388_s2 = inlined_call_operand.vmem [shape: bf16[2,32,16,16], index: 2, kind: input, shape index: {}, may-alias: {0,1,2}]   ;;  %s5389_s3 = inlined_call_operand.vmem [shape: f32[2,16,16,4], index: 3, kind: input, shape index: {}]   ;;  %s5390_s4 = inlined_call_operand.vmem [shape: f32[1,16], index: 4, kind: input, shape index: {}]   ;;  %s5391_s5 = inlined_call_operand.vmem [shape: f32[1,16], index: 5, kind: input, shape index: {}]   ;;  %s5392_s6 = inlined_call_operand.vmem [shape: bf16[3,16,16], index: 6, kind: input, shape index: {}]   ;;  %s5393_s7 = inlined_call_operand.vmem [shape: bf16[6,8,8], index: 7, kind: input, shape index: {}]   ;;  %s5394_s8 = inlined_call_operand.vmem [shape: f32[1,16], index: 8, kind: input, shape index: {}]   ;;  %s5395_s9 = inlined_call_operand.vmem [shape: bf16[4,16], index: 9, kind: input, shape index: {}]   ;;  %s5396_s10 = inlined_call_operand.vmem [shape: f32[1,16], index: 10, kind: input, shape index: {}]   ;;  %s5397_s11 = inlined_call_operand.vmem [shape: bf16[2,32,16,16], index: 11, kind: output, shape index: {}]  }
   0x1   :  { %s3683_s19 = smov 0   ;;  %s3685_s20 = smov 0  }
   0x2   :  { %s3687_s21 = smov 0  }
   0x3 LB: > { %5407 = sst [smem:[#allocation2_spill]] %s3611_s20  ;;  %s30_s22 = sadd.s32 1, %s3607_s19  ;;  %s3615_s21 = sphi %s3687_s21, %s21_s21   ;;  %s3611_s20 = sphi %s3685_s20, %s5595_s20   ;;  %s3607_s19 = sphi %s3683_s19, %s5597_s19   ;;  %s3603_s18 = sphi %s3681_s18, %s5593_s18   ;;  %s3599_s17 = sphi %s3679_s17, %s5596_s17  }
   0x4   : > { %s33_s23 = sadd.s32 1, %s3611_s20  ;;  %p31_p0 = scmp.ge.s32.totalorder %s30_s22, 2 }
   0x5   : > { %p3223_p1 = scmp.ge.s32.totalorder %s3615_s21, 1  ;;  %p441_p2 = scmp.lt.s32.totalorder %s3615_s21, 5 }
   0x6   : > { %s5599_s22 = smov (%p31_p0, %s30_s22), 0  ;;  %s5601_s23 = smov (!%p31_p0, %s33_s23), %s3611_s20 }
   0x7   : > { %5408 = sst [smem:[#allocation3_spill]] %s5599_s22  ;;  %p442_p3 = pnand %p3223_p1, %p441_p2 }
   0x8   : > { %p35_p4 = scmp.ge.s32.totalorder %s5601_s23, 2 }
   0x9   : > { %445 = sbr.rel (%p442_p3) target bundleno = 911 (0x38f), region = 64 }
   0xa   : > { %s5603_s23 = smov (%p35_p4, %s5601_s23), 0 }
   0xb   : > { %5409 = sst [smem:[#allocation4_spill]] %s5603_s23 }
   0xe   : > { %v3437_v0 = vld [vmem:[%s5392_s6 + $0x8] sm:$0xff]  ;;  %s3715_s26 = sshll.u32 %s3599_s17, 4  ;;  %p531_p5 = scmp.lt.s32.totalorder %s3603_s18, 1  ;;  %v3436_v1 = vld [vmem:[%s5392_s6] sm:$0xff]  ;;  %vm1778_vm0 = vcmask 1043456   ;;  %vm1119_vm1 = vcmask 1040384  }
   0xf   : > { %s3225_s27 = sadd.s32 4294967295, %s3715_s26  ;;  %p547_p6 = scmp.lt.s32.totalorder %s3715_s26, 31  ;;  %1514 = vmatpush.bf16.msra.mxu0 %v3437_v0  ;;  %3527 = vmatpush.bf16.msra.mxu3 %v3437_v0  ;;  %v3329_v2 = vld [vmem:[%s5393_s7 + $0xc] sm:$0xf]  ;;  %v3750_v5 = vld [vmem:[%s5390_s4] ss:$0 sm:$0xff] }
  0x10   : > { %p529_p7 = scmp.gt.s32.totalorder %s3225_s27, 0  ;;  %p3226_p8 = scmp.lt.s32.totalorder %s3225_s27, 31  ;;  %3526 = vmatpush.bf16.msra.mxu2 %v3437_v0  ;;  %v2023_v3 = vsel %vm1778_vm0, %v3329_v2, 0  ;;  %1612 = vmatpush.bf16.msra.mxu1 %v3436_v1  ;;  %v3758_v11 = vld [vmem:[%s5391_s5] ss:$0 sm:$0xff]  ;;  %vm1458_vm6 = vcmask 130048  }
  0x11   : > { %s5605_s18 = smov (!%p531_p5, %s3603_s18), 1  ;;  %p783_p9 = scmp.ne.s32.totalorder %s3599_s17, 0  ;;  %vm1120_vm3 = vsmask.f32 256  ;;  %vm1158_vm4 = vsmask.f32 7424 }
  0x12   : > { %s5607_s27 = smov (!%p529_p7, %s3225_s27), 0  ;;  %s3722_s28 = sshll.u32 %s5605_s18, 6  ;;  %vm3788_vm5 = vmand %vm1119_vm1, %vm1120_vm3  ;;  %vm1386_vm7 = vcmask 1046528   ;;  %vm1729_vm8 = vcmask 64512   ;;  %vm2901_vm9 = vcmask 1041408   ;;  %vm2876_vm11 = vcmask 31744  }
  0x13   : > { %s5609_s27 = smov (!%p3226_p8, %s5607_s27), 31  ;;  %3528 = vmatpush.bf16.msrb.mxu3 %v3436_v1  ;;  %2032 = vmatpush.bf16.msrb.mxu0 %v2023_v3  ;;  %p787_p11 = scmp.ne.s32.totalorder %s3599_s17, 1  ;;  %vm3018_vm12 = vcmask 125952  }
  0x14   : > { %s548_s29 = scalar_select %p547_p6, %s3715_s26, 31 }
  0x15   : > { %s3231_s30 = sshll.u32 %s5609_s27, 1  ;;  %s3245_s23 = sshll.u32 %s3599_s17, 3 }
  0x16   : > { %s537_s12 = sadd.s32 %s3722_s28, %s3231_s30  ;;  %s3235_s13 = sshll.u32 %s548_s29, 1 }
  0x17   : > { %s3233_s16 = sshll.u32 %s537_s12, 2  ;;  %s3730_s24 = sadd.s32 %s3235_s13, %s3722_s28 }
  0x18   : > { %s539_s27 = scalar_lea.vmem %s5386_s0, %s3233_s16  ;;  %s3237_s30 = sshll.u32 %s3730_s24, 2 }
  0x19   : > { %s3745_s13 = scalar_lea.vmem %s5387_s1, %s3237_s30  ;;  %v3440_v4 = vld [vmem:[%s539_s27] sm:$0xff]   ;;  %s3617_s16 = smov 120  }
  0x1a   : > { %v3441_v6 = vunpack.c.l.bf16 %v3440_v4  ;;  %v3442_v7 = vunpack.c.h.bf16 %v3440_v4  ;;  %v3444_v8 = vld [vmem:[%s3745_s13] sm:$0xff]   ;;  %v3511_v9 = vld [vmem:[%s3745_s13 + $0x8] sm:$0xff]   ;;  %v3516_v32 = vld [vmem:[%s3745_s13 + $0x30] sm:$0xff]   ;;  %s784_s15 = scalar_select %p783_p9, 1, 0 }
  0x1b   : > { %v3522_v10 = vld [vmem:[%s3745_s13 + $0x60] sm:$0xff]   ;;  %v3445_v12 = vunpack.c.l.bf16 %v3444_v8  ;;  %v3446_v13 = vunpack.c.h.bf16 %v3444_v8  ;;  %v3449_v14 = vunpack.c.l.bf16 %v3511_v9  ;;  %v3450_v15 = vunpack.c.h.bf16 %v3511_v9  ;;  %v3782_v3 = vld [vmem:[%s3745_s13 + $0x10] sm:$0xff]   ;;  %s788_s29 = scalar_select %p787_p11, 1, 0 }
  0x1c   : > { %v671_v16 = vmul.f32 %v3750_v5, %v3441_v6  ;;  %v672_v17 = vmul.f32 %v3750_v5, %v3442_v7  ;;  %v3493_v18 = vunpack.c.l.bf16 %v3522_v10  ;;  %v3494_v19 = vunpack.c.h.bf16 %v3522_v10  ;;  %p575_p12 = scmp.lt.s32.totalorder %s3245_s23, 15 }
  0x1d   : > { %v673_v20 = vmul.f32 %v3750_v5, %v3445_v12  ;;  %v674_v21 = vmul.f32 %v3750_v5, %v3446_v13  ;;  %v675_v22 = vmul.f32 %v3750_v5, %v3449_v14  ;;  %v676_v23 = vmul.f32 %v3750_v5, %v3450_v15 }
  0x1e   : > { %v711_v24 = vadd.f32 %v3758_v11, %v671_v16  ;;  %v712_v25 = vadd.f32 %v3758_v11, %v672_v17  ;;  %v697_v26 = vmul.f32 %v3750_v5, %v3493_v18  ;;  %v698_v27 = vmul.f32 %v3750_v5, %v3494_v19  ;;  %s5615_s23 = smov (!%p575_p12, %s3245_s23), 15 }
  0x1f   : > { %v713_v28 = vadd.f32 %v3758_v11, %v673_v20  ;;  %v714_v29 = vadd.f32 %v3758_v11, %v674_v21  ;;  %v715_v30 = vadd.f32 %v3758_v11, %v675_v22  ;;  %v716_v31 = vadd.f32 %v3758_v11, %v676_v23  ;;  %s3246_s17 = sshll.u32 %s5615_s23, 1  ;;  %s5024_s23 = scalar_lea.vmem %s5397_s11, %s3237_s30 }
  0x20   : > { %v747_v33 = vmax.f32 %v711_v24, 0.0  ;;  %v748_v34 = vmax.f32 %v712_v25, 0.0  ;;  %v737_v35 = vadd.f32 %v3758_v11, %v697_v26  ;;  %v738_v36 = vadd.f32 %v3758_v11, %v698_v27 }
  0x21   : > { %v749_v37 = vmax.f32 %v713_v28, 0.0  ;;  %v750_v38 = vmax.f32 %v714_v29, 0.0  ;;  %v751_v39 = vmax.f32 %v715_v30, 0.0  ;;  %v752_v40 = vmax.f32 %v716_v31, 0.0 }
  0x22   : > { %v785_v41 = vstv %s784_s15  ;;  %v773_v42 = vmax.f32 %v737_v35, 0.0  ;;  %v774_v43 = vmax.f32 %v738_v36, 0.0  ;;  %v3469_v44 = vunpack.c.l.bf16 %v3516_v32  ;;  %s3618_s15 = smov 8  }
  0x23   : > { %vm786_vm2 = vcmp.eq.s32.totalorder %v785_v41, 1  ;;  %v833_v45 = vpack.c.bf16 %v749_v37, %v749_v37  ;;  %v834_v46 = vpack.c.bf16 %v750_v38, %v750_v38  ;;  %v835_v47 = vpack.c.bf16 %v751_v39, %v751_v39 }
  0x24   : > { %v795_v48 = vsel %vm786_vm2, %v747_v33, 0.0  ;;  %v796_v49 = vsel %vm786_vm2, %v748_v34, 0.0  ;;  %v836_v50 = vpack.c.bf16 %v752_v40, %v752_v40  ;;  %v857_v51 = vpack.c.bf16 %v773_v42, %v773_v42 }
  0x25   : > { %v831_v52 = vpack.c.bf16 %v795_v48, %v795_v48  ;;  %v832_v53 = vpack.c.bf16 %v796_v49, %v796_v49  ;;  %v905_v54 = vunpack.c.l.b16 %v833_v45  ;;  %v906_v55 = vunpack.c.l.b16 %v834_v46 }
  0x26   : > { %v907_v56 = vunpack.c.l.b16 %v835_v47  ;;  %v908_v57 = vunpack.c.l.b16 %v836_v50  ;;  %v858_v58 = vpack.c.bf16 %v774_v43, %v774_v43  ;;  %v929_v59 = vunpack.c.l.b16 %v857_v51 }
  0x27   : > { %v903_v60 = vunpack.c.l.b16 %v831_v52  ;;  %v904_v61 = vunpack.c.l.b16 %v832_v53  ;;  %v940_v62 = vpack.c.b16 %v906_v55, %v905_v54  ;;  %v3470_v63 = vunpack.c.h.bf16 %v3516_v32 }
  0x28   : > { %v941_v0 = vpack.c.b16 %v908_v57, %v907_v56  ;;  %v930_v1 = vunpack.c.l.b16 %v858_v58  ;;  %v685_v2 = vmul.f32 %v3750_v5, %v3469_v44  ;;  %v3453_v16 = vunpack.c.l.bf16 %v3782_v3 }
  0x29   : > { %v939_v4 = vpack.c.b16 %v904_v61, %v903_v60  ;;  %v965_v6 = vshrl.u32 %v940_v62, 16  ;;  %v968_v7 = vshll.u32 %v940_v62, 16  ;;  %v686_v8 = vmul.f32 %v3750_v5, %v3470_v63  ;;  %v3523_v62 = vld [vmem:[%s3745_s13 + $0x68] sm:$0xff]  }
  0x2a   : > { %v972_v9 = vshrl.u32 %v941_v0, 16  ;;  %v975_v10 = vshll.u32 %v941_v0, 16  ;;  %v952_v12 = vpack.c.b16 %v930_v1, %v929_v59  ;;  %v725_v20 = vadd.f32 %v3758_v11, %v685_v2 }
  0x2b   : > { %v958_v13 = vshrl.u32 %v939_v4, 16  ;;  %v961_v14 = vshll.u32 %v939_v4, 16  ;;  %v967_v15 = vrot.slane %v965_v6, 7  ;;  %v726_v21 = vadd.f32 %v3758_v11, %v686_v8  ;;  %v3517_v4 = vld [vmem:[%s3745_s13 + $0x38] sm:$0xff]  }
  0x2c   : > { %v974_v18 = vrot.slane %v972_v9, 7  ;;  %v1049_v19 = vshrl.u32 %v952_v12, 16  ;;  %v1052_v25 = vshll.u32 %v952_v12, 16  ;;  %v761_v37 = vmax.f32 %v725_v20, 0.0 }
  0x2d   : > { %v960_v22 = vrot.slane %v958_v13, 7  ;;  %v970_v23 = vor.u32 %v968_v7, %v967_v15  ;;  %v3796_v24 = vsel %vm3788_vm5, %v967_v15, 0  ;;  %v762_v41 = vmax.f32 %v726_v21, 0.0 }
  0x2e   : > { %v1179_v26 = vshll.u32 %v3796_v24, 16  ;;  %v977_v27 = vor.u32 %v975_v10, %v974_v18  ;;  %v3801_v28 = vsel %vm3788_vm5, %v974_v18, 0  ;;  %v1051_v29 = vrot.slane %v1049_v19, 7 }
  0x2f   : > { %v963_v30 = vor.u32 %v961_v14, %v960_v22  ;;  %v3805_v31 = vsel %vm3788_vm5, 0, %v970_v23  ;;  %v3809_v32 = vsel %vm3788_vm5, %v960_v22, 0  ;;  %v1191_v33 = vshll.u32 %v3801_v28, 16  ;;  %v3513_v23 = vld [vmem:[%s3745_s13 + $0x18] sm:$0xff]  }
  0x30   : > { %v1172_v34 = vshrl.u32 %v3805_v31, 16  ;;  %v1174_v35 = vshll.u32 %v3805_v31, 16  ;;  %v1167_v36 = vshll.u32 %v3809_v32, 16  ;;  %v1181_v39 = vrot.slane %v1179_v26, 1 }
  0x31   : > { %v3817_v38 = vsel %vm3788_vm5, 0, %v963_v30  ;;  %v3821_v40 = vsel %vm3788_vm5, 0, %v977_v27  ;;  %v1193_v45 = vrot.slane %v1191_v33, 1  ;;  %v1054_v49 = vor.u32 %v1052_v25, %v1051_v29 }
  0x32   : > { %1871 = vrot.lane.b32.xlu0 %v3817_v38, %s3617_s16  ;;  %v1160_v42 = vshrl.u32 %v3817_v38, 16  ;;  %v1162_v43 = vshll.u32 %v3817_v38, 16  ;;  %v1176_v44 = vrot.slane %v1174_v35, 1  ;;  %1699 = vrot.lane.b32.xlu1 %v3821_v40, %s3617_s16  ;;  %v1169_v46 = vrot.slane %v1167_v36, 1 }
  0x33   : > { %v1184_v47 = vshrl.u32 %v3821_v40, 16  ;;  %v1186_v48 = vshll.u32 %v3821_v40, 16  ;;  %v3833_v52 = vsel %vm3788_vm5, %v1051_v29, 0  ;;  %v845_v53 = vpack.c.bf16 %v761_v37, %v761_v37 }
  0x34   : > { %v1164_v50 = vrot.slane %v1162_v43, 1  ;;  %v1177_v51 = vor.u32 %v1176_v44, %v1172_v34  ;;  %v3837_v55 = vsel %vm3788_vm5, 0, %v1054_v49  ;;  %v1323_v56 = vshll.u32 %v3833_v52, 16 }
  0x35   : > { %v1188_v54 = vrot.slane %v1186_v48, 1  ;;  %v846_v57 = vpack.c.bf16 %v762_v41, %v762_v41  ;;  %v1316_v60 = vshrl.u32 %v3837_v55, 16  ;;  %v1318_v61 = vshll.u32 %v3837_v55, 16 }
  0x36   : > { %v3841_v58 = vsel %vm1158_vm4, %v1177_v51, %v1181_v39  ;;  %v1165_v59 = vor.u32 %v1164_v50, %v1160_v42  ;;  %v1325_v0 = vrot.slane %v1323_v56, 1  ;;  %v917_v1 = vunpack.c.l.b16 %v845_v53 }
  0x37   : > { %3260 = vmatmul.msk.bf16.vlgmr.msra.gmra.mxu0 %vm1458_vm6, %v3841_v58  ;;  %v1189_v63 = vor.u32 %v1188_v54, %v1184_v47  ;;  %v918_v2 = vunpack.c.l.b16 %v846_v57  ;;  %v1320_v7 = vrot.slane %v1318_v61, 1  ;;  %v3454_v8 = vunpack.c.h.bf16 %v3782_v3  ;;  %v3524_v61 = vld [vmem:[%s3745_s13 + $0x70] sm:$0xff]  }
  0x38   : > { %v1170_v6 = vsel %vm1158_vm4, %v1165_v59, %v1169_v46  ;;  %v677_v9 = vmul.f32 %v3750_v5, %v3453_v16  ;;  %v3497_v13 = vunpack.c.l.bf16 %v3523_v62  ;;  %v3498_v14 = vunpack.c.h.bf16 %v3523_v62 }
  0x39   : > { %3280 = vmatmul.msk.bf16.vlgmr.msra.gmra.mxu1 %vm1458_vm6, %v1170_v6  ;;  %v3854_v10 = vsel %vm1158_vm4, %v1189_v63, %v1193_v45  ;;  %v946_v12 = vpack.c.b16 %v918_v2, %v917_v1  ;;  %v1321_v15 = vor.u32 %v1320_v7, %v1316_v60  ;;  %v678_v18 = vmul.f32 %v3750_v5, %v3454_v8 }
  0x3a   : > { %1697 = vrot.lane.b32.xlu0 %v3805_v31, %s3617_s16  ;;  %v717_v19 = vadd.f32 %v3758_v11, %v677_v9  ;;  %v3473_v3 = vunpack.c.l.bf16 %v3517_v4  ;;  %v699_v16 = vmul.f32 %v3750_v5, %v3497_v13  ;;  %v700_v22 = vmul.f32 %v3750_v5, %v3498_v14 }
  0x3b   : > { %v1007_v20 = vshrl.u32 %v946_v12, 16  ;;  %v1010_v21 = vshll.u32 %v946_v12, 16  ;;  %v3864_v25 = vsel %vm1158_vm4, %v1321_v15, %v1325_v0  ;;  %v718_v26 = vadd.f32 %v3758_v11, %v678_v18 }
  0x3c   : > { %5412 = vst [vmem:[#allocation5_spill] sm:$0xff] %v3864_v25  ;;  %v753_v27 = vmax.f32 %v717_v19, 0.0  ;;  %v3474_v29 = vunpack.c.h.bf16 %v3517_v4  ;;  %3272 = vmatmul.msk.bf16.vlgmr.msra.gmra.mxu3 %vm1458_vm6, %v3864_v25  ;;  %v739_v33 = vadd.f32 %v3758_v11, %v699_v16  ;;  %v740_v34 = vadd.f32 %v3758_v11, %v700_v22 }
  0x3d   : > { %v1009_v30 = vrot.slane %v1007_v20, 7  ;;  %v687_v35 = vmul.f32 %v3750_v5, %v3473_v3  ;;  %v754_v36 = vmax.f32 %v718_v26, 0.0  ;;  %v3457_v41 = vunpack.c.l.bf16 %v3513_v23 }
  0x3e   : > { %v837_v37 = vpack.c.bf16 %v753_v27, %v753_v27  ;;  %v688_v39 = vmul.f32 %v3750_v5, %v3474_v29  ;;  %v775_v44 = vmax.f32 %v739_v33, 0.0  ;;  %v776_v45 = vmax.f32 %v740_v34, 0.0 }
  0x3f   : > { %v1012_v42 = vor.u32 %v1010_v21, %v1009_v30  ;;  %v3875_v43 = vsel %vm3788_vm5, %v1009_v30, 0  ;;  %v838_v47 = vpack.c.bf16 %v754_v36, %v754_v36  ;;  %v727_v49 = vadd.f32 %v3758_v11, %v687_v35 }
  0x40   : > { %v1251_v46 = vshll.u32 %v3875_v43, 16  ;;  %v909_v48 = vunpack.c.l.b16 %v837_v37  ;;  %v859_v51 = vpack.c.bf16 %v775_v44, %v775_v44  ;;  %v860_v53 = vpack.c.bf16 %v776_v45, %v776_v45 }
  0x41   : > { %v3881_v50 = vsel %vm3788_vm5, 0, %v1012_v42  ;;  %v728_v54 = vadd.f32 %v3758_v11, %v688_v39  ;;  %v910_v60 = vunpack.c.l.b16 %v838_v47  ;;  %v763_v0 = vmax.f32 %v727_v49, 0.0 }
  0x42   : > { %v1244_v56 = vshrl.u32 %v3881_v50, 16  ;;  %v1246_v57 = vshll.u32 %v3881_v50, 16  ;;  %v1253_v59 = vrot.slane %v1251_v46, 1  ;;  %v931_v62 = vunpack.c.l.b16 %v859_v51 }
  0x43   : > { %v932_v63 = vunpack.c.l.b16 %v860_v53  ;;  %v764_v1 = vmax.f32 %v728_v54, 0.0  ;;  %v942_v4 = vpack.c.b16 %v910_v60, %v909_v48  ;;  %v3458_v6 = vunpack.c.h.bf16 %v3513_v23 }
  0x44   : > { %v1248_v2 = vrot.slane %v1246_v57, 1  ;;  %v679_v7 = vmul.f32 %v3750_v5, %v3457_v41  ;;  %v847_v9 = vpack.c.bf16 %v763_v0, %v763_v0  ;;  %v3501_v13 = vunpack.c.l.bf16 %v3524_v61 }
  0x45   : > { %v953_v8 = vpack.c.b16 %v932_v63, %v931_v62  ;;  %v848_v12 = vpack.c.bf16 %v764_v1, %v764_v1  ;;  %v979_v15 = vshrl.u32 %v942_v4, 16  ;;  %v982_v18 = vshll.u32 %v942_v4, 16  ;;  %v3518_v1 = vld [vmem:[%s3745_s13 + $0x40] sm:$0xff]  }
  0x46   : > { %v1249_v14 = vor.u32 %v1248_v2, %v1244_v56  ;;  %v680_v19 = vmul.f32 %v3750_v5, %v3458_v6  ;;  %v919_v21 = vunpack.c.l.b16 %v847_v9  ;;  %v719_v26 = vadd.f32 %v3758_v11, %v679_v7 }
  0x47   : > { %3261 = vmatmul.msk.bf16.gmra.mxu0 %vm1458_vm6, %v3854_v10  ;;  %v1056_v3 = vshrl.u32 %v953_v8, 16  ;;  %v1059_v20 = vshll.u32 %v953_v8, 16  ;;  %v920_v16 = vunpack.c.l.b16 %v848_v12  ;;  %v981_v23 = vrot.slane %v979_v15, 7 }
  0x48   : > { %v3892_v22 = vsel %vm1158_vm4, %v1249_v14, %v1253_v59  ;;  %v720_v27 = vadd.f32 %v3758_v11, %v680_v19  ;;  %v3502_v33 = vunpack.c.h.bf16 %v3524_v61  ;;  %v701_v34 = vmul.f32 %v3750_v5, %v3501_v13 }
  0x49   : > { %3281 = vmatmul.msk.bf16.gmra.mxu1 %vm1458_vm6, %v3841_v58  ;;  %3266 = vmatmul.msk.bf16.vlgmr.msra.gmra.mxu2 %vm1458_vm6, %v3892_v22  ;;  %v1058_v29 = vrot.slane %v1056_v3, 7  ;;  %v947_v30 = vpack.c.b16 %v920_v16, %v919_v21  ;;  %v984_v35 = vor.u32 %v982_v18, %v981_v23  ;;  %v3903_v36 = vsel %vm3788_vm5, %v981_v23, 0  ;;  %v3514_v3 = vld [vmem:[%s3745_s13 + $0x20] sm:$0xff]  }
  0x4a   : > { %v755_v37 = vmax.f32 %v719_v26, 0.0  ;;  %v756_v39 = vmax.f32 %v720_v27, 0.0  ;;  %v1203_v41 = vshll.u32 %v3903_v36, 16  ;;  %v702_v0 = vmul.f32 %v3750_v5, %v3502_v33 }
  0x4b   : > { %v1061_v42 = vor.u32 %v1059_v20, %v1058_v29  ;;  %v3908_v58 = vsel %vm3788_vm5, %v1058_v29, 0  ;;  %v1014_v44 = vshrl.u32 %v947_v30, 16  ;;  %v3912_v45 = vsel %vm3788_vm5, 0, %v984_v35 }
  0x4c   : > { %v1335_v46 = vshll.u32 %v3908_v58, 16  ;;  %v1017_v47 = vshll.u32 %v947_v30, 16  ;;  %v839_v48 = vpack.c.bf16 %v755_v37, %v755_v37  ;;  %v1196_v49 = vshrl.u32 %v3912_v45, 16  ;;  %1701 = vrot.lane.b32.xlu1 %v3912_v45, %s3617_s16 }
  0x4d   : > { %v1198_v51 = vshll.u32 %v3912_v45, 16  ;;  %v1205_v53 = vrot.slane %v1203_v41, 1  ;;  %v3919_v54 = vsel %vm3788_vm5, 0, %v1061_v42  ;;  %v1016_v60 = vrot.slane %v1014_v44, 7 }
  0x4e   : > { %v1328_v56 = vshrl.u32 %v3919_v54, 16  ;;  %v1330_v57 = vshll.u32 %v3919_v54, 16  ;;  %v1337_v59 = vrot.slane %v1335_v46, 1  ;;  %v840_v62 = vpack.c.bf16 %v756_v39, %v756_v39  ;;  %v3525_v39 = vld [vmem:[%s3745_s13 + $0x78] sm:$0xff]  }
  0x4f   : > { %v1200_v61 = vrot.slane %v1198_v51, 1  ;;  %v911_v63 = vunpack.c.l.b16 %v839_v48  ;;  %v1019_v4 = vor.u32 %v1017_v47, %v1016_v60  ;;  %v3929_v6 = vsel %vm3788_vm5, %v1016_v60, 0 }
  0x50   : > { %v1332_v2 = vrot.slane %v1330_v57, 1  ;;  %v741_v7 = vadd.f32 %v3758_v11, %v701_v34  ;;  %v1263_v9 = vshll.u32 %v3929_v6, 16  ;;  %v912_v12 = vunpack.c.l.b16 %v840_v62 }
  0x51   : > { %v1201_v8 = vor.u32 %v1200_v61, %v1196_v49  ;;  %v742_v13 = vadd.f32 %v3758_v11, %v702_v0  ;;  %v3936_v15 = vsel %vm3788_vm5, 0, %v1019_v4  ;;  %v3477_v19 = vunpack.c.l.bf16 %v3518_v1 }
  0x52   : > { %v1333_v14 = vor.u32 %v1332_v2, %v1328_v56  ;;  %v777_v18 = vmax.f32 %v741_v7, 0.0  ;;  %v1256_v21 = vshrl.u32 %v3936_v15, 16  ;;  %v1258_v16 = vshll.u32 %v3936_v15, 16 }
  0x53   : > { %v3940_v20 = vsel %vm1158_vm4, %v1201_v8, %v1205_v53  ;;  %v1265_v23 = vrot.slane %v1263_v9, 1  ;;  %v943_v27 = vpack.c.b16 %v912_v12, %v911_v63  ;;  %v778_v29 = vmax.f32 %v742_v13, 0.0 }
  0x54   : > { %v3945_v26 = vsel %vm1158_vm4, %v1333_v14, %v1337_v59  ;;  %v861_v30 = vpack.c.bf16 %v777_v18, %v777_v18  ;;  %v1260_v33 = vrot.slane %v1258_v16, 1  ;;  %v3478_v34 = vunpack.c.h.bf16 %v3518_v1  ;;  %1709 = vrot.lane.b32.xlu1 %v3881_v50, %s3617_s16 }
  0x55   : > { %5413 = vst [vmem:[#allocation6_spill] sm:$0xff] %v3945_v26  ;;  %3273 = vmatmul.msk.bf16.gmra.mxu3 %vm1458_vm6, %v3945_v26  ;;  %v689_v35 = vmul.f32 %v3750_v5, %v3477_v19  ;;  %v3461_v37 = vunpack.c.l.bf16 %v3514_v3  ;;  %v986_v41 = vshrl.u32 %v943_v27, 16  ;;  %v989_v42 = vshll.u32 %v943_v27, 16 }
  0x56   : > { %v862_v44 = vpack.c.bf16 %v778_v29, %v778_v29  ;;  %v933_v46 = vunpack.c.l.b16 %v861_v30  ;;  %v1261_v47 = vor.u32 %v1260_v33, %v1256_v21  ;;  %v690_v48 = vmul.f32 %v3750_v5, %v3478_v34 }
  0x57   : > { %3262 = vmatmul.msk.bf16.gmra.mxu0 %vm1458_vm6, %v3940_v20  ;;  %v729_v49 = vadd.f32 %v3758_v11, %v689_v35  ;;  %v3462_v51 = vunpack.c.h.bf16 %v3514_v3  ;;  %v988_v53 = vrot.slane %v986_v41, 7  ;;  %v681_v57 = vmul.f32 %v3750_v5, %v3461_v37 }
  0x58   : > { %v934_v56 = vunpack.c.l.b16 %v862_v44  ;;  %v3505_v59 = vunpack.c.l.bf16 %v3525_v39  ;;  %v3961_v60 = vsel %vm1158_vm4, %v1261_v47, %v1265_v23  ;;  %v730_v61 = vadd.f32 %v3758_v11, %v690_v48 }
  0x59   : > { %3282 = vmatmul.msk.bf16.gmra.mxu1 %vm1458_vm6, %v3854_v10  ;;  %v765_v62 = vmax.f32 %v729_v49, 0.0  ;;  %v682_v63 = vmul.f32 %v3750_v5, %v3462_v51  ;;  %3267 = vmatmul.msk.bf16.gmra.mxu2 %vm1458_vm6, %v3961_v60  ;;  %v991_v0 = vor.u32 %v989_v42, %v988_v53  ;;  %v3969_v1 = vsel %vm3788_vm5, %v988_v53, 0  ;;  %v3519_v42 = vld [vmem:[%s3745_s13 + $0x48] sm:$0xff]  }
  0x5a   : > { %v954_v2 = vpack.c.b16 %v934_v56, %v933_v46  ;;  %v721_v4 = vadd.f32 %v3758_v11, %v681_v57  ;;  %v1215_v7 = vshll.u32 %v3969_v1, 16  ;;  %v766_v8 = vmax.f32 %v730_v61, 0.0 }
  0x5b   : > { %v849_v9 = vpack.c.bf16 %v765_v62, %v765_v62  ;;  %v722_v12 = vadd.f32 %v3758_v11, %v682_v63  ;;  %v3976_v13 = vsel %vm3788_vm5, 0, %v991_v0  ;;  %v3506_v37 = vunpack.c.h.bf16 %v3525_v39 }
  0x5c   : > { %v1063_v14 = vshrl.u32 %v954_v2, 16  ;;  %v1066_v18 = vshll.u32 %v954_v2, 16  ;;  %v757_v19 = vmax.f32 %v721_v4, 0.0  ;;  %v1208_v3 = vshrl.u32 %v3976_v13, 16  ;;  %1703 = vrot.lane.b32.xlu2 %v3976_v13, %s3617_s16 }
  0x5d   : > { %v1210_v21 = vshll.u32 %v3976_v13, 16  ;;  %v1217_v16 = vrot.slane %v1215_v7, 1  ;;  %v850_v23 = vpack.c.bf16 %v766_v8, %v766_v8  ;;  %v921_v29 = vunpack.c.l.b16 %v849_v9 }
  0x5e   : > { %v1065_v27 = vrot.slane %v1063_v14, 7  ;;  %v758_v30 = vmax.f32 %v722_v12, 0.0  ;;  %v841_v33 = vpack.c.bf16 %v757_v19, %v757_v19  ;;  %v703_v41 = vmul.f32 %v3750_v5, %v3505_v59 }
  0x5f   : > { %v1212_v34 = vrot.slane %v1210_v21, 1  ;;  %v922_v35 = vunpack.c.l.b16 %v850_v23  ;;  %v704_v56 = vmul.f32 %v3750_v5, %v3506_v37  ;;  %v3481_v61 = vunpack.c.l.bf16 %v3519_v42 }
  0x60   : > { %v1068_v44 = vor.u32 %v1066_v18, %v1065_v27  ;;  %v3986_v46 = vsel %vm3788_vm5, %v1065_v27, 0  ;;  %v842_v47 = vpack.c.bf16 %v758_v30, %v758_v30  ;;  %v913_v48 = vunpack.c.l.b16 %v841_v33 }
  0x61   : > { %v1213_v49 = vor.u32 %v1212_v34, %v1208_v3  ;;  %v1347_v51 = vshll.u32 %v3986_v46, 16  ;;  %v948_v53 = vpack.c.b16 %v922_v35, %v921_v29  ;;  %v743_v59 = vadd.f32 %v3758_v11, %v703_v41 }
  0x62   : > { %v3992_v57 = vsel %vm3788_vm5, 0, %v1068_v44  ;;  %v914_v39 = vunpack.c.l.b16 %v842_v47  ;;  %v744_v9 = vadd.f32 %v3758_v11, %v704_v56  ;;  %v3482_v18 = vunpack.c.h.bf16 %v3519_v42 }
  0x63   : > { %v3996_v62 = vsel %vm1158_vm4, %v1213_v49, %v1217_v16  ;;  %v1340_v63 = vshrl.u32 %v3992_v57, 16  ;;  %v1342_v0 = vshll.u32 %v3992_v57, 16  ;;  %v1349_v2 = vrot.slane %v1347_v51, 1 }
  0x64   : > { %v1021_v4 = vshrl.u32 %v948_v53, 16  ;;  %v1024_v7 = vshll.u32 %v948_v53, 16  ;;  %v944_v8 = vpack.c.b16 %v914_v39, %v913_v48  ;;  %v779_v14 = vmax.f32 %v743_v59, 0.0 }
  0x65   : > { %v1344_v12 = vrot.slane %v1342_v0, 1  ;;  %v691_v19 = vmul.f32 %v3750_v5, %v3481_v61  ;;  %v780_v16 = vmax.f32 %v744_v9, 0.0  ;;  %v692_v30 = vmul.f32 %v3750_v5, %v3482_v18 }
  0x66   : > { %v1023_v3 = vrot.slane %v1021_v4, 7  ;;  %v993_v21 = vshrl.u32 %v944_v8, 16  ;;  %v996_v23 = vshll.u32 %v944_v8, 16  ;;  %v863_v29 = vpack.c.bf16 %v779_v14, %v779_v14  ;;  %v3515_v8 = vld [vmem:[%s3745_s13 + $0x28] sm:$0xff]  }
  0x67   : > { %3263 = vmatmul.msk.bf16.gmra.mxu0 %vm1458_vm6, %v3996_v62  ;;  %v1345_v27 = vor.u32 %v1344_v12, %v1340_v63  ;;  %v731_v33 = vadd.f32 %v3758_v11, %v691_v19  ;;  %v864_v41 = vpack.c.bf16 %v780_v16, %v780_v16  ;;  %v732_v48 = vadd.f32 %v3758_v11, %v692_v30  ;;  %v3520_v19 = vld [vmem:[%s3745_s13 + $0x50] sm:$0xff]  }
  0x68   : > { %v1026_v34 = vor.u32 %v1024_v7, %v1023_v3  ;;  %v4008_v35 = vsel %vm3788_vm5, %v1023_v3, 0  ;;  %v995_v37 = vrot.slane %v993_v21, 7  ;;  %v935_v47 = vunpack.c.l.b16 %v863_v29 }
  0x69   : > { %v4011_v42 = vsel %vm1158_vm4, %v1345_v27, %v1349_v2  ;;  %3283 = vmatmul.msk.bf16.gmra.mxu1 %vm1458_vm6, %v3940_v20  ;;  %v1275_v44 = vshll.u32 %v4008_v35, 16  ;;  %v936_v56 = vunpack.c.l.b16 %v864_v41  ;;  %v767_v4 = vmax.f32 %v731_v33, 0.0 }
  0x6a   : > { %5414 = vst [vmem:[#allocation7_spill] sm:$0xff] %v4011_v42  ;;  %3274 = vmatmul.msk.bf16.gmra.mxu3 %vm1458_vm6, %v4011_v42  ;;  %v4021_v49 = vsel %vm3788_vm5, 0, %v1026_v34  ;;  %v998_v51 = vor.u32 %v996_v23, %v995_v37  ;;  %v4025_v53 = vsel %vm3788_vm5, %v995_v37, 0  ;;  %v768_v7 = vmax.f32 %v732_v48, 0.0 }
  0x6b   : > { %v1268_v39 = vshrl.u32 %v4021_v49, 16  ;;  %v1270_v59 = vshll.u32 %v4021_v49, 16  ;;  %v1277_v61 = vrot.slane %v1275_v44, 1  ;;  %v1227_v63 = vshll.u32 %v4025_v53, 16 }
  0x6c   : > { %v4032_v0 = vsel %vm3788_vm5, 0, %v998_v51  ;;  %v955_v2 = vpack.c.b16 %v936_v56, %v935_v47  ;;  %v851_v23 = vpack.c.bf16 %v767_v4, %v767_v4  ;;  %v852_v16 = vpack.c.bf16 %v768_v7, %v768_v7 }
  0x6d   : > { %v1272_v9 = vrot.slane %v1270_v59, 1  ;;  %v1220_v12 = vshrl.u32 %v4032_v0, 16  ;;  %v1222_v14 = vshll.u32 %v4032_v0, 16  ;;  %v1229_v18 = vrot.slane %v1227_v63, 1  ;;  %1705 = vrot.lane.b32.xlu2 %v4032_v0, %s3617_s16 }
  0x6e   : > { %v1070_v3 = vshrl.u32 %v955_v2, 16  ;;  %v1073_v21 = vshll.u32 %v955_v2, 16  ;;  %v3465_v30 = vunpack.c.l.bf16 %v3515_v8  ;;  %v3466_v33 = vunpack.c.h.bf16 %v3515_v8 }
  0x6f   : > { %v1273_v27 = vor.u32 %v1272_v9, %v1268_v39  ;;  %v1224_v29 = vrot.slane %v1222_v14, 1  ;;  %v923_v37 = vunpack.c.l.b16 %v851_v23  ;;  %v924_v41 = vunpack.c.l.b16 %v852_v16 }
  0x70   : > { %v1072_v34 = vrot.slane %v1070_v3, 7  ;;  %v3485_v44 = vunpack.c.l.bf16 %v3520_v19  ;;  %v683_v51 = vmul.f32 %v3750_v5, %v3465_v30  ;;  %v684_v56 = vmul.f32 %v3750_v5, %v3466_v33 }
  0x71   : > { %v4041_v47 = vsel %vm1158_vm4, %v1273_v27, %v1277_v61  ;;  %v1225_v48 = vor.u32 %v1224_v29, %v1220_v12  ;;  %v949_v63 = vpack.c.b16 %v924_v41, %v923_v37  ;;  %v3486_v2 = vunpack.c.h.bf16 %v3520_v19  ;;  %v3521_v37 = vld [vmem:[%s3745_s13 + $0x58] sm:$0xff]   ;;  %s3435_s13 = sadd.s32 16, %s3715_s26 }
  0x72   : > { %3268 = vmatmul.msk.bf16.gmra.mxu2 %vm1458_vm6, %v4041_v47  ;;  %v1075_v59 = vor.u32 %v1073_v21, %v1072_v34  ;;  %v4049_v39 = vsel %vm3788_vm5, %v1072_v34, 0  ;;  %v723_v7 = vadd.f32 %v3758_v11, %v683_v51  ;;  %v724_v8 = vadd.f32 %v3758_v11, %v684_v56  ;;  %p4676_p10 = scmp.lt.s32.totalorder %s3435_s13, 31 }
  0x73   : > { %v4052_v4 = vsel %vm1158_vm4, %v1225_v48, %v1229_v18  ;;  %v1445_v61 = vshll.u32 %v4049_v39, 16  ;;  %v1028_v12 = vshrl.u32 %v949_v63, 16  ;;  %v1031_v14 = vshll.u32 %v949_v63, 16 }
  0x74   : > { %v4059_v9 = vsel %vm3788_vm5, 0, %v1075_v59  ;;  %v693_v3 = vmul.f32 %v3750_v5, %v3485_v44  ;;  %v759_v21 = vmax.f32 %v723_v7, 0.0  ;;  %v760_v16 = vmax.f32 %v724_v8, 0.0  ;;  %s5611_s13 = smov (!%p4676_p10, %s3435_s13), 31 }
  0x75   : > { %v1438_v19 = vshrl.u32 %v4059_v9, 16  ;;  %v1440_v18 = vshll.u32 %v4059_v9, 16  ;;  %1711 = vrot.lane.b32.xlu2 %v3936_v15, %s3617_s16  ;;  %v1030_v23 = vrot.slane %v1028_v12, 7  ;;  %v694_v27 = vmul.f32 %v3750_v5, %v3486_v2  ;;  %s5613_s13 = smov (!%p4676_p10, %s5611_s13), 31 }
  0x76   : > { %v733_v29 = vadd.f32 %v3758_v11, %v693_v3  ;;  %v1447_v33 = vrot.slane %v1445_v61, 1  ;;  %v843_v34 = vpack.c.bf16 %v759_v21, %v759_v21  ;;  %v844_v48 = vpack.c.bf16 %v760_v16, %v760_v16  ;;  %s3242_s26 = sshll.u32 %s5613_s13, 1 }
  0x77   : > { %3264 = vmatmul.msk.bf16.gmra.mxu0 %vm1458_vm6, %v4052_v4  ;;  %v1442_v30 = vrot.slane %v1440_v18, 1  ;;  %v1033_v41 = vor.u32 %v1031_v14, %v1030_v23  ;;  %v4073_v44 = vsel %vm3788_vm5, %v1030_v23, 0  ;;  %v734_v51 = vadd.f32 %v3758_v11, %v694_v27  ;;  %v3401_v27 = vld [vmem:[%s5393_s7 + $0x14] sm:$0xf]  ;;  %s565_s14 = sadd.s32 %s3242_s26, %s3722_s28  ;;  %s3247_s26 = sshll.u32 %s5605_s18, 5 }
  0x78   : > { %v1287_v59 = vshll.u32 %v4073_v44, 16  ;;  %v915_v63 = vunpack.c.l.b16 %v843_v34  ;;  %v769_v2 = vmax.f32 %v733_v29, 0.0  ;;  %v916_v7 = vunpack.c.l.b16 %v844_v48  ;;  %s3244_s20 = sshll.u32 %s565_s14, 2  ;;  %s579_s14 = sadd.s32 %s3247_s26, %s3246_s17 }
  0x79   : > { %v1443_v56 = vor.u32 %v1442_v30, %v1438_v19  ;;  %3284 = vmatmul.msk.bf16.gmra.mxu1 %vm1458_vm6, %v3996_v62  ;;  %v4081_v61 = vsel %vm3788_vm5, 0, %v1033_v41  ;;  %v770_v8 = vmax.f32 %v734_v51, 0.0  ;;  %v3489_v12 = vunpack.c.l.bf16 %v3521_v37  ;;  %s567_s25 = scalar_lea.vmem %s5388_s2, %s3244_s20  ;;  %s3248_s20 = sshll.u32 %s579_s14, 3 }
  0x7a   : > { %v1280_v3 = vshrl.u32 %v4081_v61, 16  ;;  %v1282_v19 = vshll.u32 %v4081_v61, 16  ;;  %v3490_v18 = vunpack.c.h.bf16 %v3521_v37  ;;  %1715 = vrot.lane.b32.xlu1 %v4081_v61, %s3617_s16  ;;  %v945_v21 = vpack.c.b16 %v916_v7, %v915_v63  ;;  %s4781_s22 = scalar_lea.vmem %s5389_s3, %s3248_s20 }
  0x7b   : > { %v4084_v14 = vsel %vm1158_vm4, %v1443_v56, %v1447_v33  ;;  %v853_v23 = vpack.c.bf16 %v769_v2, %v769_v2  ;;  %v854_v16 = vpack.c.bf16 %v770_v8, %v770_v8  ;;  %v1289_v30 = vrot.slane %v1287_v59, 1 }
  0x7c   : > { %5415 = vst [vmem:[#allocation8_spill] sm:$0xff] %v4084_v14  ;;  %3275 = vmatmul.msk.bf16.gmra.mxu3 %vm1458_vm6, %v4084_v14  ;;  %v1284_v29 = vrot.slane %v1282_v19, 1  ;;  %v2496_v33 = vsel %vm1778_vm0, %v3401_v27, 0  ;;  %v1000_v34 = vshrl.u32 %v945_v21, 16  ;;  %v1003_v41 = vshll.u32 %v945_v21, 16 }
  0x7d   : > { %v925_v37 = vunpack.c.l.b16 %v853_v23  ;;  %v926_v48 = vunpack.c.l.b16 %v854_v16  ;;  %2505 = vmatpush.bf16.msra.mxu0 %v2496_v33  ;;  %v695_v56 = vmul.f32 %v3750_v5, %v3489_v12  ;;  %v696_v63 = vmul.f32 %v3750_v5, %v3490_v18  ;;  %v1353_v5 = vld [vmem:[%s5393_s7] sm:$0xf] }
  0x7e   : > { %v1285_v51 = vor.u32 %v1284_v29, %v1280_v3  ;;  %v1002_v2 = vrot.slane %v1000_v34, 7  ;;  %v3296_v29 = vld [vmem:[%s5393_s7 + $0x8] sm:$0xf] }
  0x7f   : > { %v950_v7 = vpack.c.b16 %v926_v48, %v925_v37  ;;  %v735_v19 = vadd.f32 %v3758_v11, %v695_v56  ;;  %v736_v59 = vadd.f32 %v3758_v11, %v696_v63  ;;  %v1877_v11 = vsel %vm1778_vm0, %v1353_v5, 0 }
  0x80   : > { %v4099_v8 = vsel %vm1158_vm4, %v1285_v51, %v1289_v30  ;;  %v1005_v21 = vor.u32 %v1003_v41, %v1002_v2  ;;  %v4107_v3 = vsel %vm3788_vm5, %v1002_v2, 0  ;;  %1886 = vmatpush.bf16.msra.mxu3 %v1877_v11  ;;  %v1780_v34 = vsel %vm1778_vm0, %v3296_v29, 0 }
  0x81   : > { %v1035_v12 = vshrl.u32 %v950_v7, 16  ;;  %v1038_v23 = vshll.u32 %v950_v7, 16  ;;  %v1239_v18 = vshll.u32 %v4107_v3, 16  ;;  %v771_v16 = vmax.f32 %v735_v19, 0.0  ;;  %1789 = vmatpush.bf16.msrb.mxu2 %v1780_v34 }
  0x82   : > { %3269 = vmatmul.msk.bf16.gmra.mxu2 %vm1458_vm6, %v4099_v8  ;;  %v772_v27 = vmax.f32 %v736_v59, 0.0  ;;  %1721 = vrot.lane.b32.xlu1 %v3837_v55, %s3617_s16  ;;  %v4121_v30 = vsel %vm3788_vm5, 0, %v1005_v21 }
  0x83   : > { %v1037_v33 = vrot.slane %v1035_v12, 7  ;;  %v1232_v41 = vshrl.u32 %v4121_v30, 16  ;;  %v1234_v37 = vshll.u32 %v4121_v30, 16  ;;  %1707 = vrot.lane.b32.xlu0 %v4121_v30, %s3617_s16  ;;  %v855_v48 = vpack.c.bf16 %v771_v16, %v771_v16 }
  0x84   : > { %v856_v63 = vpack.c.bf16 %v772_v27, %v772_v27  ;;  %v1241_v7 = vrot.slane %v1239_v18, 1 }
  0x85   : > { %v1040_v51 = vor.u32 %v1038_v23, %v1037_v33  ;;  %v4130_v56 = vsel %vm3788_vm5, %v1037_v33, 0  ;;  %v1236_v2 = vrot.slane %v1234_v37, 1  ;;  %v927_v59 = vunpack.c.l.b16 %v855_v48 }
  0x86   : > { %v1299_v19 = vshll.u32 %v4130_v56, 16  ;;  %v928_v12 = vunpack.c.l.b16 %v856_v63 }
  0x87   : > { %v4135_v21 = vsel %vm3788_vm5, 0, %v1040_v51  ;;  %v1237_v5 = vor.u32 %v1236_v2, %v1232_v41  ;;  %v3253_v2 = vld [vmem:[%s5393_s7 + $0x4] sm:$0xf] }
  0x88   : > { %v1292_v23 = vshrl.u32 %v4135_v21, 16  ;;  %v1294_v16 = vshll.u32 %v4135_v21, 16  ;;  %1717 = vrot.lane.b32.xlu2 %v4135_v21, %s3617_s16  ;;  %v951_v18 = vpack.c.b16 %v928_v12, %v927_v59  ;;  %v1301_v29 = vrot.slane %v1299_v19, 1 }
  0x89   : > { %3285 = vmatmul.msk.bf16.gmra.mxu1 %vm1458_vm6, %v4052_v4  ;;  %v4144_v27 = vsel %vm1158_vm4, %v1237_v5, %v1241_v7  ;;  %v2118_v19 = vsel %vm1778_vm0, %v3253_v2, 0  ;;  %v1390_v12 = vrot.slane %v3805_v31, 1  ;;  %v1391_v5 = vrot.slane %v3796_v24, 1 }
  0x8a   : > { %v1296_v11 = vrot.slane %v1294_v16, 1  ;;  %1727 = vrot.lane.b32.xlu1 %v4059_v9, %s3617_s16  ;;  %3265 = vmatmul.msk.bf16.gmra.mxu0 %vm1458_vm6, %v4144_v27  ;;  %v1042_v33 = vshrl.u32 %v951_v18, 16  ;;  %v1045_v34 = vshll.u32 %v951_v18, 16 }
  0x8b   : > { %1713 = vrot.lane.b32.xlu0 %v4021_v49, %s3617_s16  ;;  %2127 = vmatpush.bf16.msrb.mxu1 %v2118_v19 }
  0x8c   : > { %3294 = vmatmul.msk.bf16.vlgmr.msrb.gmra.mxu3 %vm1458_vm6, %v3945_v26  ;;  %v1297_v41 = vor.u32 %v1296_v11, %v1292_v23  ;;  %v1044_v37 = vrot.slane %v1042_v33, 7  ;;  %v4181_v11 = vsel %vm1386_vm7, %v1390_v12, %v1391_v5 }
  0x8e   : > { %v4155_v48 = vsel %vm1158_vm4, %v1297_v41, %v1301_v29  ;;  %v1047_v51 = vor.u32 %v1045_v34, %v1044_v37  ;;  %v4172_v59 = vsel %vm3788_vm5, %v1044_v37, 0  ;;  %v1393_v34 = vrot.slane %v3821_v40, 1 }
  0x8f   : > { %v1311_v18 = vshll.u32 %v4172_v59, 16  ;;  %v1394_v41 = vrot.slane %v3801_v28, 1  ;;  %v1397_v40 = vrot.slane %v3903_v36, 1 }
  0x90   : > { %1723 = vrot.lane.b32.xlu2 %v3919_v54, %s3617_s16  ;;  %v4163_v63 = vsel %vm3788_vm5, 0, %v1047_v51 }
  0x91   : > { %v1306_v7 = vshll.u32 %v4163_v63, 16  ;;  %v1304_v23 = vshrl.u32 %v4163_v63, 16  ;;  %v1313_v31 = vrot.slane %v1311_v18, 1  ;;  %v4199_v37 = vsel %vm1386_vm7, %v1393_v34, %v1394_v41 }
  0x92   : > { %3270 = vmatmul.msk.bf16.gmra.mxu2 %vm1458_vm6, %v4155_v48  ;;  %v1399_v18 = vrot.slane %v3976_v13, 1 }
  0x93   : > { %1719 = vrot.lane.b32.xlu0 %v4163_v63, %s3617_s16  ;;  %v1308_v16 = vrot.slane %v1306_v7, 1  ;;  %v1396_v7 = vrot.slane %v3912_v45, 1 }
  0x95   : > { %v1309_v29 = vor.u32 %v1308_v16, %v1304_v23  ;;  %v4212_v12 = vsel %vm1386_vm7, %v1396_v7, %v1397_v40 }
  0x97   : > { %v4192_v24 = vsel %vm1158_vm4, %v1309_v29, %v1313_v31  ;;  %v1400_v29 = vrot.slane %v3969_v1, 1 }
  0x98   : > { %5416 = vst [vmem:[#allocation9_spill] sm:$0xff] %v4192_v24 }
  0x99   : > { %3286 = vmatmul.msk.bf16.gmra.mxu1 %vm1458_vm6, %v4144_v27  ;;  %v4232_v41 = vsel %vm1386_vm7, %v1399_v18, %v1400_v29 }
  0x9a   : > { %3330 = vmatmul.msk.bf16.vlgmr.msrb.gmra.mxu0 %vm1729_vm8, %v4181_v11 }
  0x9b   : > { %1725 = vrot.lane.b32.xlu0 %v3992_v57, %s3617_s16 }
  0x9c   : > { %3295 = vmatmul.msk.bf16.gmra.mxu3 %vm1458_vm6, %v4011_v42 }
  0xa2   : > { %3271 = vmatmul.msk.bf16.gmra.mxu2 %vm1458_vm6, %v4192_v24 }
  0xa4   : > { %v1872_v33 = vpop.permute.xlu0 %1871  ;;  %v4219_v16 = vpop.permute.xlu1 %1699 }
  0xa9   : > { %3287 = vmatmul.msk.bf16.gmra.mxu1 %vm1458_vm6, %v3892_v22 }
  0xaa   : > { %3331 = vmatmul.msk.bf16.gmra.mxu0 %vm1729_vm8, %v4199_v37 }
  0xac   : > { %3313 = vmatmul.msk.bf16.vlgmr.msra.gmra.mxu3 %vm1729_vm8, %v1872_v33  ;;  %v1698_v51 = vpop.permute.xlu0 %1697 }
  0xb2   : > { %3297 = vmatmul.msk.bf16.vlgmr.msrb.gmra.mxu2 %vm1729_vm8, %v1698_v51 }
  0xb4   : > { %v1516_v2 = vpop.f32.mrf.mxu0 }
  0xb6   : > { %v1614_v28 = vpop.f32.mrf.mxu1 }
  0xb7   : > { %v4209_v19 = vadd.f32 %v1614_v28, %v1516_v2 }
  0xb9   : > { %5417 = vst [vmem:[#allocation10_spill] sm:$0xff] %v4209_v19  ;;  %3288 = vmatmul.msk.bf16.gmra.mxu1 %vm1458_vm6, %v3961_v60 }
  0xba   : > { %3332 = vmatmul.msk.bf16.gmra.mxu0 %vm1729_vm8, %v4212_v12 }
  0xbc   : > { %3314 = vmatmul.msk.bf16.gmra.mxu3 %vm1729_vm8, %v1698_v51  ;;  %v1518_v5 = vpop.f32.mrf.mxu0 }
  0xbe   : > { %v1616_v23 = vpop.f32.mrf.mxu1  ;;  %v4242_v2 = vpop.permute.xlu1 %1701 }
  0xbf   : > { %v4221_v45 = vadd.f32 %v1616_v23, %v1518_v5  ;;  %v4227_v31 = vpop.f32.mrf.mxu3  ;;  %v1402_v5 = vrot.slane %v4032_v0, 1  ;;  %v1403_v23 = vrot.slane %v4025_v53, 1 }
  0xc0   : > { %5419 = vst [vmem:[#allocation12_spill] sm:$0xff] %v4227_v31  ;;  %v1406_v31 = vrot.slane %v4107_v3, 1 }
  0xc1   : > { %5418 = vst [vmem:[#allocation11_spill] sm:$0xff] %v4221_v45 }
  0xc2   : > { %3298 = vmatmul.msk.bf16.gmra.mxu2 %vm1729_vm8, %v4219_v16 }
  0xc4   : > { %v1521_v36 = vpop.f32.mrf.mxu0 }
  0xc6   : > { %v1619_v33 = vpop.f32.mrf.mxu1 }
  0xc7   : > { %v4229_v34 = vadd.f32 %v1619_v33, %v1521_v36  ;;  %v4246_v40 = vpop.f32.mrf.mxu3  ;;  %v4257_v33 = vsel %vm1386_vm7, %v1402_v5, %v1403_v23 }
  0xc8   : > { %5423 = vst [vmem:[#allocation16_spill] sm:$0xff] %v4246_v40  ;;  %v1405_v40 = vrot.slane %v4121_v30, 1 }
  0xc9   : > { %5420 = vst [vmem:[#allocation13_spill] sm:$0xff] %v4229_v34  ;;  %3289 = vmatmul.msk.bf16.gmra.mxu1 %vm1458_vm6, %v4041_v47 }
  0xca   : > { %3333 = vmatmul.msk.bf16.gmra.mxu0 %vm1729_vm8, %v4232_v41 }
  0xcc   : > { %3315 = vmatmul.msk.bf16.gmra.mxu3 %vm1729_vm8, %v4219_v16  ;;  %v1523_v13 = vpop.f32.mrf.mxu0  ;;  %v4240_v51 = vpop.f32.mrf.mxu2 }
  0xcd   : > { %5421 = vst [vmem:[#allocation14_spill] sm:$0xff] %v4240_v51  ;;  %v4282_v51 = vsel %vm1386_vm7, %v1405_v40, %v1406_v31 }
  0xce   : > { %v1621_v1 = vpop.f32.mrf.mxu1 }
  0xcf   : > { %v4244_v7 = vadd.f32 %v1621_v1, %v1523_v13  ;;  %v4267_v1 = vpop.permute.xlu2 %1703 }
  0xd1   : > { %5422 = vst [vmem:[#allocation15_spill] sm:$0xff] %v4244_v7 }
  0xd2   : > { %3299 = vmatmul.msk.bf16.gmra.mxu2 %vm1729_vm8, %v4242_v2 }
  0xd4   : > { %v1526_v28 = vpop.f32.mrf.mxu0  ;;  %v4254_v29 = vpop.f32.mrf.mxu2 }
  0xd5   : > { %5425 = vst [vmem:[#allocation18_spill] sm:$0xff] %v4254_v29 }
  0xd6   : > { %v1624_v36 = vpop.f32.mrf.mxu1 }
  0xd7   : > { %v4252_v18 = vadd.f32 %v1624_v36, %v1526_v28 }
  0xd8   : > { %v4259_v13 = vpop.f32.mrf.mxu3 }
  0xd9   : > { %5424 = vst [vmem:[#allocation17_spill] sm:$0xff] %v4252_v18  ;;  %3290 = vmatmul.msk.bf16.gmra.mxu1 %vm1458_vm6, %v4099_v8 }
  0xda   : > { %5426 = vst [vmem:[#allocation19_spill] sm:$0xff] %v4259_v13  ;;  %3334 = vmatmul.msk.bf16.gmra.mxu0 %vm1729_vm8, %v4257_v33 }
  0xdc   : > { %3316 = vmatmul.msk.bf16.gmra.mxu3 %vm1729_vm8, %v4242_v2  ;;  %v1528_v53 = vpop.f32.mrf.mxu0  ;;  %v4271_v36 = vpop.f32.mrf.mxu2 }
  0xdd   : > { %5428 = vst [vmem:[#allocation21_spill] sm:$0xff] %v4271_v36 }
  0xde   : > { %v1626_v0 = vpop.f32.mrf.mxu1 }
  0xdf   : > { %v4269_v28 = vadd.f32 %v1626_v0, %v1528_v53  ;;  %v3384_v53 = vld [vmem:[%s5393_s7 + $0x10] sm:$0xf] }
  0xe0   : > { %v4275_v5 = vpop.f32.mrf.mxu3  ;;  %v3438_v0 = vld [vmem:[%s5392_s6 + $0x10] sm:$0xff]  ;;  %v2363_v30 = vsel %vm1778_vm0, %v3384_v53, 0 }
  0xe1   : > { %5427 = vst [vmem:[#allocation20_spill] sm:$0xff] %v4269_v28  ;;  %2372 = vmatpush.bf16.msrb.mxu3 %v2363_v30  ;;  %2240 = vmatpush.bf16.msra.mxu2 %v3438_v0  ;;  %v1408_v30 = vrot.slane %v3881_v50, 1 }
  0xe2   : > { %3300 = vmatmul.msk.bf16.gmra.mxu2 %vm1729_vm8, %v4267_v1  ;;  %5429 = vst [vmem:[#allocation22_spill] sm:$0xff] %v4275_v5 }
  0xe4   : > { %v1531_v23 = vpop.f32.mrf.mxu0  ;;  %v4293_v3 = vpop.f32.mrf.mxu2 }
  0xe6   : > { %v1629_v13 = vpop.f32.mrf.mxu1 }
  0xe7   : > { %v4279_v29 = vadd.f32 %v1629_v13, %v1531_v23  ;;  %v4299_v23 = vpop.permute.xlu2 %1705 }
  0xe9   : > { %5430 = vst [vmem:[#allocation23_spill] sm:$0xff] %v4279_v29  ;;  %3291 = vmatmul.msk.bf16.gmra.mxu1 %vm1458_vm6, %v4155_v48  ;;  %v1409_v29 = vrot.slane %v3875_v43, 1 }
  0xea   : > { %3335 = vmatmul.msk.bf16.gmra.mxu0 %vm1729_vm8, %v4282_v51 }
  0xeb   : > { %v4312_v28 = vsel %vm1386_vm7, %v1408_v30, %v1409_v29 }
  0xec   : > { %3317 = vmatmul.msk.bf16.gmra.mxu3 %vm1729_vm8, %v4267_v1  ;;  %v1533_v31 = vpop.f32.mrf.mxu0 }
  0xed   : > { %v1586_v40 = vpop.f32.mrf.mxu3 }
  0xee   : > { %v1631_v13 = vpop.f32.mrf.mxu1 }
  0xef   : > { %v4301_v5 = vadd.f32 %v1631_v13, %v1533_v31  ;;  %v1387_v31 = vrot.slane %v3817_v38, 1  ;;  %v1388_v13 = vrot.slane %v3809_v32, 1  ;;  %v1411_v38 = vrot.slane %v3936_v15, 1 }
  0xf1   : > { %5431 = vst [vmem:[#allocation24_spill] sm:$0xff] %v4301_v5  ;;  %v1389_v5 = vsel %vm1386_vm7, %v1387_v31, %v1388_v13  ;;  %v4348_v13 = vpop.permute.xlu1 %1709 }
  0xf2   : > { %3301 = vmatmul.msk.bf16.gmra.mxu2 %vm1729_vm8, %v4299_v23 }
  0xf4   : > { %v1536_v53 = vpop.f32.mrf.mxu0 }
  0xf5   : > { %v4305_v36 = vpop.f32.mrf.mxu2  ;;  %v1588_v0 = vpop.f32.mrf.mxu3 }
  0xf6   : > { %v1634_v18 = vpop.f32.mrf.mxu1  ;;  %v4324_v29 = vpop.permute.xlu0 %1707 }
  0xf7   : > { %v4309_v7 = vadd.f32 %v1634_v18, %v1536_v53 }
  0xf9   : > { %5432 = vst [vmem:[#allocation25_spill] sm:$0xff] %v4309_v7  ;;  %3292 = vmatmul.msk.bf16.gmra.mxu1 %vm1458_vm6, %v4192_v24  ;;  %v1412_v7 = vrot.slane %v3929_v6, 1 }
  0xfa   : > { %3336 = vmatmul.msk.bf16.gmra.mxu0 %vm1729_vm8, %v4312_v28 }
  0xfb   : > { %v4336_v34 = vsel %vm1386_vm7, %v1411_v38, %v1412_v7  ;;  %v1414_v38 = vrot.slane %v4021_v49, 1 }
  0xfc   : > { %3318 = vmatmul.msk.bf16.gmra.mxu3 %vm1729_vm8, %v4299_v23  ;;  %v1538_v50 = vpop.f32.mrf.mxu0 }
  0xfd   : > { %v4322_v43 = vpop.f32.mrf.mxu2 }
  0xfe   : > { %v1636_v18 = vpop.f32.mrf.mxu1 }
  0xff   : > { %v1591_v53 = vpop.f32.mrf.mxu3  ;;  %v4326_v30 = vadd.f32 %v1636_v18, %v1538_v50 }
 0x101   : > { %5433 = vst [vmem:[#allocation26_spill] sm:$0xff] %v4326_v30 }
 0x102   : > { %3302 = vmatmul.msk.bf16.gmra.mxu2 %vm1729_vm8, %v4324_v29 }
 0x105   : > { %v4331_v32 = vpop.f32.mrf.mxu2 }
 0x106   : > { %v1639_v45 = vpop.f32.mrf.mxu1 }
 0x107   : > { %v1593_v14 = vpop.f32.mrf.mxu3  ;;  %v1541_v19 = vpop.f32.mrf.mxu0 }
 0x108   : > { %v4340_v50 = vadd.f32 %v1639_v45, %v1541_v19 }
 0x109   : > { %3293 = vmatmul.msk.bf16.gmra.mxu1 %vm1458_vm6, %v3864_v25 }
 0x10a   : > { %5434 = vst [vmem:[#allocation27_spill] sm:$0xff] %v4340_v50  ;;  %3337 = vmatmul.msk.bf16.gmra.mxu0 %vm1729_vm8, %v4336_v34  ;;  %v1415_v50 = vrot.slane %v4008_v35, 1 }
 0x10c   : > { %3319 = vmatmul.msk.bf16.gmra.mxu3 %vm1729_vm8, %v4324_v29 }
 0x10d   : > { %v4346_v15 = vpop.f32.mrf.mxu2 }
 0x10e   : > { %v1641_v6 = vpop.f32.mrf.mxu1 }
 0x10f   : > { %v1684_v31 = vpop.f32.mrf.mxu3  ;;  %v1543_v7 = vpop.f32.mrf.mxu0 }
 0x110   : > { %v4350_v18 = vadd.f32 %v1684_v31, %v1586_v40  ;;  %v4354_v19 = vadd.f32 %v1641_v6, %v1543_v7  ;;  %v4367_v40 = vsel %vm1386_vm7, %v1414_v38, %v1415_v50  ;;  %v1417_v50 = vrot.slane %v4081_v61, 1 }
 0x111   : > { %v1418_v7 = vrot.slane %v4073_v44, 1 }
 0x112   : > { %5435 = vst [vmem:[#allocation28_spill] sm:$0xff] %v4350_v18  ;;  %3303 = vmatmul.msk.bf16.gmra.mxu2 %vm1729_vm8, %v4348_v13 }
 0x113   : > { %5436 = vst [vmem:[#allocation29_spill] sm:$0xff] %v4354_v19 }
 0x115   : > { %v4356_v45 = vpop.f32.mrf.mxu2 }
 0x116   : > { %v4360_v30 = vpop.f32.mrf.mxu1 }
 0x117   : > { %5437 = vst [vmem:[#allocation30_spill] sm:$0xff] %v4360_v30  ;;  %v1686_v42 = vpop.f32.mrf.mxu3  ;;  %v4364_v25 = vpop.f32.mrf.mxu0 }
 0x118   : > { %v4362_v26 = vadd.f32 %v1686_v42, %v1588_v0  ;;  %v4378_v42 = vpop.permute.xlu2 %1711 }
 0x119   : > { %3346 = vmatmul.msk.bf16.vlgmr.msrb.gmra.mxu1 %vm1729_vm8, %v1389_v5 }
 0x11a   : > { %5438 = vst [vmem:[#allocation31_spill] sm:$0xff] %v4362_v26  ;;  %3338 = vmatmul.msk.bf16.gmra.mxu0 %vm1729_vm8, %v4367_v40 }
 0x11c   : > { %3320 = vmatmul.msk.bf16.gmra.mxu3 %vm1729_vm8, %v4348_v13 }
 0x11d   : > { %v4374_v49 = vpop.f32.mrf.mxu2 }
 0x11e   : > { %v4376_v35 = vpop.f32.mrf.mxu1 }
 0x11f   : > { %5439 = vst [vmem:[#allocation32_spill] sm:$0xff] %v4376_v35  ;;  %v1689_v6 = vpop.f32.mrf.mxu3  ;;  %v4382_v31 = vpop.f32.mrf.mxu0 }
 0x120   : > { %v4380_v0 = vadd.f32 %v1689_v6, %v1591_v53  ;;  %v4397_v53 = vsel %vm1386_vm7, %v1417_v50, %v1418_v7  ;;  %v1420_v7 = vrot.slane %v4135_v21, 1 }
 0x122   : > { %5440 = vst [vmem:[#allocation33_spill] sm:$0xff] %v4380_v0  ;;  %3304 = vmatmul.msk.bf16.gmra.mxu2 %vm1729_vm8, %v4378_v42 }
 0x125   : > { %v4386_v5 = vpop.f32.mrf.mxu2 }
 0x126   : > { %v4390_v38 = vpop.f32.mrf.mxu1 }
 0x127   : > { %5441 = vst [vmem:[#allocation34_spill] sm:$0xff] %v4390_v38  ;;  %v1691_v18 = vpop.f32.mrf.mxu3  ;;  %v4394_v35 = vpop.f32.mrf.mxu0 }
 0x128   : > { %v4392_v26 = vadd.f32 %v1691_v18, %v1593_v14  ;;  %v4407_v14 = vpop.permute.xlu0 %1713 }
 0x129   : > { %3347 = vmatmul.msk.bf16.gmra.mxu1 %vm1729_vm8, %v4181_v11 }
 0x12a   : > { %5442 = vst [vmem:[#allocation35_spill] sm:$0xff] %v4392_v26  ;;  %3339 = vmatmul.msk.bf16.gmra.mxu0 %vm1729_vm8, %v4397_v53  ;;  %v1421_v26 = vrot.slane %v4130_v56, 1 }
 0x12c   : > { %3321 = vmatmul.msk.bf16.gmra.mxu3 %vm1729_vm8, %v4378_v42 }
 0x12d   : > { %v4405_v44 = vpop.f32.mrf.mxu2 }
 0x12e   : > { %v1651_v61 = vpop.f32.mrf.mxu1 }
 0x12f   : > { %v1888_v6 = vpop.f32.mrf.mxu3  ;;  %v4410_v18 = vadd.f32 %v1651_v61, %v4293_v3  ;;  %v4412_v50 = vpop.f32.mrf.mxu0  ;;  %v4426_v3 = vsel %vm1386_vm7, %v1420_v7, %v1421_v26  ;;  %v1423_v7 = vrot.slane %v4163_v63, 1 }
 0x131   : > { %5443 = vst [vmem:[#allocation36_spill] sm:$0xff] %v4410_v18 }
 0x132   : > { %3305 = vmatmul.msk.bf16.gmra.mxu2 %vm1729_vm8, %v4407_v14 }
 0x135   : > { %v1791_v11 = vpop.f32.mrf.mxu2 }
 0x136   : > { %v4418_v0 = vadd.f32 %v1888_v6, %v1791_v11  ;;  %v1654_v30 = vpop.f32.mrf.mxu1 }
 0x137   : > { %v1890_v38 = vpop.f32.mrf.mxu3  ;;  %v4421_v19 = vadd.f32 %v1654_v30, %v4305_v36  ;;  %v4423_v24 = vpop.f32.mrf.mxu0 }
 0x138   : > { %5444 = vst [vmem:[#allocation37_spill] sm:$0xff] %v4418_v0  ;;  %v4436_v30 = vpop.permute.xlu1 %1715 }
 0x139   : > { %5445 = vst [vmem:[#allocation38_spill] sm:$0xff] %v4421_v19  ;;  %3348 = vmatmul.msk.bf16.gmra.mxu1 %vm1729_vm8, %v4199_v37  ;;  %v1424_v19 = vrot.slane %v4172_v59, 1 }
 0x13a   : > { %3340 = vmatmul.msk.bf16.gmra.mxu0 %vm1729_vm8, %v4426_v3 }
 0x13c   : > { %3322 = vmatmul.msk.bf16.gmra.mxu3 %vm1729_vm8, %v4407_v14 }
 0x13d   : > { %v1793_v56 = vpop.f32.mrf.mxu2 }
 0x13e   : > { %v4434_v21 = vadd.f32 %v1890_v38, %v1793_v56  ;;  %v1656_v61 = vpop.f32.mrf.mxu1 }
 0x13f   : > { %v1893_v36 = vpop.f32.mrf.mxu3  ;;  %v4439_v6 = vadd.f32 %v1656_v61, %v4322_v43  ;;  %v4441_v26 = vpop.f32.mrf.mxu0  ;;  %v4455_v43 = vsel %vm1386_vm7, %v1423_v7, %v1424_v19 }
 0x140   : > { %5446 = vst [vmem:[#allocation39_spill] sm:$0xff] %v4434_v21 }
 0x141   : > { %5447 = vst [vmem:[#allocation40_spill] sm:$0xff] %v4439_v6 }
 0x142   : > { %3306 = vmatmul.msk.bf16.gmra.mxu2 %vm1729_vm8, %v4436_v30 }
 0x145   : > { %v1796_v11 = vpop.f32.mrf.mxu2 }
 0x146   : > { %v4447_v18 = vadd.f32 %v1893_v36, %v1796_v11  ;;  %v1659_v38 = vpop.f32.mrf.mxu1  ;;  %v4465_v36 = vpop.permute.xlu2 %1717 }
 0x147   : > { %v1895_v56 = vpop.f32.mrf.mxu3  ;;  %v4450_v21 = vadd.f32 %v1659_v38, %v4331_v32  ;;  %v4452_v0 = vpop.f32.mrf.mxu0  ;;  %v1426_v38 = vrot.slane %v3837_v55, 1 }
 0x148   : > { %5448 = vst [vmem:[#allocation41_spill] sm:$0xff] %v4447_v18 }
 0x149   : > { %5449 = vst [vmem:[#allocation42_spill] sm:$0xff] %v4450_v21  ;;  %3349 = vmatmul.msk.bf16.gmra.mxu1 %vm1729_vm8, %v4212_v12  ;;  %v1427_v21 = vrot.slane %v3833_v52, 1 }
 0x14a   : > { %3341 = vmatmul.msk.bf16.gmra.mxu0 %vm1729_vm8, %v4455_v43 }
 0x14c   : > { %3323 = vmatmul.msk.bf16.gmra.mxu3 %vm1729_vm8, %v4436_v30 }
 0x14d   : > { %v1798_v63 = vpop.f32.mrf.mxu2 }
 0x14e   : > { %v4463_v59 = vadd.f32 %v1895_v56, %v1798_v63  ;;  %v1661_v61 = vpop.f32.mrf.mxu1 }
 0x14f   : > { %v1898_v32 = vpop.f32.mrf.mxu3  ;;  %v4468_v11 = vadd.f32 %v1661_v61, %v4346_v15  ;;  %v4470_v19 = vpop.f32.mrf.mxu0  ;;  %v4484_v15 = vsel %vm1386_vm7, %v1426_v38, %v1427_v21 }
 0x150   : > { %5450 = vst [vmem:[#allocation43_spill] sm:$0xff] %v4463_v59 }
 0x151   : > { %5451 = vst [vmem:[#allocation44_spill] sm:$0xff] %v4468_v11  ;;  %v1430_v11 = vrot.slane %v3908_v58, 1 }
 0x152   : > { %3307 = vmatmul.msk.bf16.gmra.mxu2 %vm1729_vm8, %v4465_v36 }
 0x155   : > { %v1801_v7 = vpop.f32.mrf.mxu2 }
 0x156   : > { %v4476_v6 = vadd.f32 %v1898_v32, %v1801_v7  ;;  %v1664_v56 = vpop.f32.mrf.mxu1  ;;  %v4494_v32 = vpop.permute.xlu0 %1719 }
 0x157   : > { %v1900_v63 = vpop.f32.mrf.mxu3  ;;  %v4479_v59 = vadd.f32 %v1664_v56, %v4356_v45  ;;  %v4481_v18 = vpop.f32.mrf.mxu0  ;;  %v1429_v56 = vrot.slane %v3919_v54, 1 }
 0x158   : > { %5452 = vst [vmem:[#allocation45_spill] sm:$0xff] %v4476_v6 }
 0x159   : > { %5453 = vst [vmem:[#allocation46_spill] sm:$0xff] %v4479_v59  ;;  %3350 = vmatmul.msk.bf16.gmra.mxu1 %vm1729_vm8, %v4232_v41 }
 0x15a   : > { %3342 = vmatmul.msk.bf16.gmra.mxu0 %vm1729_vm8, %v4484_v15 }
 0x15c   : > { %3324 = vmatmul.msk.bf16.gmra.mxu3 %vm1729_vm8, %v4465_v36 }
 0x15d   : > { %v1803_v52 = vpop.f32.mrf.mxu2 }
 0x15e   : > { %v4492_v55 = vadd.f32 %v1900_v63, %v1803_v52  ;;  %v1666_v61 = vpop.f32.mrf.mxu1 }
 0x15f   : > { %v1903_v45 = vpop.f32.mrf.mxu3  ;;  %v4497_v7 = vadd.f32 %v1666_v61, %v4374_v49  ;;  %v4499_v21 = vpop.f32.mrf.mxu0  ;;  %v4513_v49 = vsel %vm1386_vm7, %v1429_v56, %v1430_v11  ;;  %v2871_v56 = vld [vmem:[%s5395_s9] sm:$0x3] }
 0x160   : > { %5454 = vst [vmem:[#allocation47_spill] sm:$0xff] %v4492_v55 }
 0x161   : > { %5455 = vst [vmem:[#allocation48_spill] sm:$0xff] %v4497_v7 }
 0x162   : > { %3308 = vmatmul.msk.bf16.gmra.mxu2 %vm1729_vm8, %v4494_v32 }
 0x165   : > { %v1806_v38 = vpop.f32.mrf.mxu2 }
 0x166   : > { %v4505_v59 = vadd.f32 %v1903_v45, %v1806_v38  ;;  %v1669_v63 = vpop.f32.mrf.mxu1  ;;  %v4523_v45 = vpop.permute.xlu1 %1721 }
 0x167   : > { %v1905_v52 = vpop.f32.mrf.mxu3  ;;  %v4508_v6 = vadd.f32 %v1669_v63, %v4386_v5  ;;  %v4510_v55 = vpop.f32.mrf.mxu0  ;;  %v2903_v63 = vsel %vm2901_vm9, %v2871_v56, 0 }
 0x168   : > { %5456 = vst [vmem:[#allocation49_spill] sm:$0xff] %v4505_v59  ;;  %2912 = vmatpush.bf16.msra.mxu1 %v2903_v63  ;;  %v4556_v63 = vpop.permute.xlu2 %1723 }
 0x169   : > { %5457 = vst [vmem:[#allocation50_spill] sm:$0xff] %v4508_v6  ;;  %3351 = vmatmul.msk.bf16.gmra.mxu1 %vm1729_vm8, %v4257_v33  ;;  %v1433_v6 = vrot.slane %v3986_v46, 1 }
 0x16a   : > { %3343 = vmatmul.msk.bf16.gmra.mxu0 %vm1729_vm8, %v4513_v49 }
 0x16c   : > { %3325 = vmatmul.msk.bf16.gmra.mxu3 %vm1729_vm8, %v4494_v32 }
 0x16d   : > { %v1808_v58 = vpop.f32.mrf.mxu2 }
 0x16e   : > { %v4521_v54 = vadd.f32 %v1905_v52, %v1808_v58  ;;  %v1671_v61 = vpop.f32.mrf.mxu1  ;;  %v1432_v58 = vrot.slane %v3992_v57, 1 }
 0x16f   : > { %v1908_v5 = vpop.f32.mrf.mxu3  ;;  %v4526_v38 = vadd.f32 %v1671_v61, %v4405_v44  ;;  %v4528_v11 = vpop.f32.mrf.mxu0 }
 0x170   : > { %5458 = vst [vmem:[#allocation51_spill] sm:$0xff] %v4521_v54  ;;  %v4544_v54 = vsel %vm1386_vm7, %v1432_v58, %v1433_v6  ;;  %v1969_v58 = vrot.slane %v4059_v9, 1 }
 0x171   : > { %5459 = vst [vmem:[#allocation52_spill] sm:$0xff] %v4526_v38 }
 0x172   : > { %3309 = vmatmul.msk.bf16.gmra.mxu2 %vm1729_vm8, %v4523_v45 }
 0x175   : > { %v1811_v52 = vpop.f32.mrf.mxu2 }
 0x176   : > { %v4537_v7 = vadd.f32 %v1908_v5, %v1811_v52  ;;  %v4539_v44 = vpop.f32.mrf.mxu1 }
 0x177   : > { %5461 = vst [vmem:[#allocation54_spill] sm:$0xff] %v4539_v44  ;;  %v1910_v61 = vpop.f32.mrf.mxu3  ;;  %v4541_v38 = vpop.f32.mrf.mxu0  ;;  %v1970_v44 = vrot.slane %v4049_v39, 1 }
 0x178   : > { %5460 = vst [vmem:[#allocation53_spill] sm:$0xff] %v4537_v7 }
 0x179   : > { %5462 = vst [vmem:[#allocation55_spill] sm:$0xff] %v4541_v38  ;;  %3352 = vmatmul.msk.bf16.gmra.mxu1 %vm1729_vm8, %v4282_v51 }
 0x17a   : > { %3344 = vmatmul.msk.bf16.gmra.mxu0 %vm1729_vm8, %v4544_v54 }
 0x17c   : > { %3326 = vmatmul.msk.bf16.gmra.mxu3 %vm1729_vm8, %v4523_v45 }
 0x17d   : > { %v1813_v46 = vpop.f32.mrf.mxu2 }
 0x17e   : > { %v4552_v57 = vadd.f32 %v1910_v61, %v1813_v46  ;;  %v4554_v5 = vpop.f32.mrf.mxu1 }
 0x17f   : > { %5464 = vst [vmem:[#allocation57_spill] sm:$0xff] %v4554_v5  ;;  %v1913_v56 = vpop.f32.mrf.mxu3  ;;  %v4558_v52 = vpop.f32.mrf.mxu0  ;;  %v4571_v5 = vsel %vm1386_vm7, %v1969_v58, %v1970_v44 }
 0x180   : > { %5463 = vst [vmem:[#allocation56_spill] sm:$0xff] %v4552_v57 }
 0x181   : > { %5465 = vst [vmem:[#allocation58_spill] sm:$0xff] %v4558_v52 }
 0x182   : > { %3310 = vmatmul.msk.bf16.gmra.mxu2 %vm1729_vm8, %v4556_v63  ;;  %5469 = vst [vmem:[#allocation62_spill] sm:$0xff] %v4571_v5 }
 0x185   : > { %v1816_v6 = vpop.f32.mrf.mxu2 }
 0x186   : > { %v4564_v59 = vadd.f32 %v1913_v56, %v1816_v6  ;;  %v4566_v7 = vpop.f32.mrf.mxu1 }
 0x187   : > { %5467 = vst [vmem:[#allocation60_spill] sm:$0xff] %v4566_v7  ;;  %v1915_v61 = vpop.f32.mrf.mxu3  ;;  %v4568_v46 = vpop.f32.mrf.mxu0 }
 0x188   : > { %5466 = vst [vmem:[#allocation59_spill] sm:$0xff] %v4564_v59  ;;  %v4583_v7 = vpop.permute.xlu0 %1725 }
 0x189   : > { %5468 = vst [vmem:[#allocation61_spill] sm:$0xff] %v4568_v46  ;;  %3353 = vmatmul.msk.bf16.gmra.mxu1 %vm1729_vm8, %v4312_v28 }
 0x18a   : > { %3345 = vmatmul.msk.bf16.gmra.mxu0 %vm1729_vm8, %v4571_v5  ;;  %5472 = vst [vmem:[#allocation65_spill] sm:$0xff] %v4583_v7 }
 0x18c   : > { %3327 = vmatmul.msk.bf16.gmra.mxu3 %vm1729_vm8, %v4556_v63 }
 0x18d   : > { %v1818_v39 = vpop.f32.mrf.mxu2 }
 0x18e   : > { %v4579_v9 = vadd.f32 %v1915_v61, %v1818_v39  ;;  %v4581_v56 = vpop.f32.mrf.mxu1 }
 0x18f   : > { %5471 = vst [vmem:[#allocation64_spill] sm:$0xff] %v4581_v56  ;;  %v1918_v6 = vpop.f32.mrf.mxu3  ;;  %v4585_v59 = vpop.f32.mrf.mxu0 }
 0x190   : > { %5470 = vst [vmem:[#allocation63_spill] sm:$0xff] %v4579_v9 }
 0x191   : > { %5473 = vst [vmem:[#allocation66_spill] sm:$0xff] %v4585_v59 }
 0x192   : > { %3311 = vmatmul.msk.bf16.gmra.mxu2 %vm1729_vm8, %v4583_v7 }
 0x195   : > { %v1821_v44 = vpop.f32.mrf.mxu2 }
 0x196   : > { %v4589_v58 = vadd.f32 %v1918_v6, %v1821_v44  ;;  %v4591_v57 = vpop.f32.mrf.mxu1  ;;  %v4605_v44 = vpop.permute.xlu1 %1727 }
 0x197   : > { %v1920_v46 = vpop.f32.mrf.mxu3  ;;  %v4593_v52 = vpop.f32.mrf.mxu0  ;;  %5477 = vst [vmem:[#allocation70_spill] sm:$0xff] %v4605_v44 }
 0x198   : > { %5474 = vst [vmem:[#allocation67_spill] sm:$0xff] %v4589_v58 }
 0x199   : > { %5475 = vst [vmem:[#allocation68_spill] sm:$0xff] %v4593_v52  ;;  %3354 = vmatmul.msk.bf16.gmra.mxu1 %vm1729_vm8, %v4336_v34 }
 0x19a   : > { %3402 = vmatmul.msk.bf16.vlgmr.msra.gmra.mxu0 %vm1729_vm8, %v4199_v37 }
 0x19c   : > { %3328 = vmatmul.msk.bf16.gmra.mxu3 %vm1729_vm8, %v4583_v7 }
 0x19d   : > { %v1823_v61 = vpop.f32.mrf.mxu2 }
 0x19e   : > { %v4601_v39 = vadd.f32 %v1920_v46, %v1823_v61  ;;  %v4603_v56 = vpop.f32.mrf.mxu1 }
 0x19f   : > { %v1923_v6 = vpop.f32.mrf.mxu3  ;;  %v4607_v58 = vpop.f32.mrf.mxu0 }
 0x1a0   : > { %5476 = vst [vmem:[#allocation69_spill] sm:$0xff] %v4601_v39 }
 0x1a1   : > { %5478 = vst [vmem:[#allocation71_spill] sm:$0xff] %v4607_v58 }
 0x1a2   : > { %3312 = vmatmul.msk.bf16.gmra.mxu2 %vm1729_vm8, %v4605_v44 }
 0x1a5   : > { %v1826_v9 = vpop.f32.mrf.mxu2 }
 0x1a6   : > { %v4611_v52 = vadd.f32 %v1923_v6, %v1826_v9  ;;  %v4613_v59 = vpop.f32.mrf.mxu1 }
 0x1a7   : > { %v1925_v5 = vpop.f32.mrf.mxu3  ;;  %v4615_v37 = vpop.f32.mrf.mxu0 }
 0x1a8   : > { %5479 = vst [vmem:[#allocation72_spill] sm:$0xff] %v4611_v52 }
 0x1a9   : > { %5480 = vst [vmem:[#allocation73_spill] sm:$0xff] %v4615_v37  ;;  %3355 = vmatmul.msk.bf16.gmra.mxu1 %vm1729_vm8, %v4367_v40 }
 0x1aa   : > { %3403 = vmatmul.msk.bf16.gmra.mxu0 %vm1729_vm8, %v4212_v12 }
 0x1ac   : > { %3385 = vmatmul.msk.bf16.vlgmr.msrb.gmra.mxu3 %vm1729_vm8, %v4219_v16 }
 0x1ad   : > { %v1828_v46 = vpop.f32.mrf.mxu2 }
 0x1ae   : > { %v4623_v61 = vadd.f32 %v1925_v5, %v1828_v46  ;;  %v4625_v39 = vpop.f32.mrf.mxu1 }
 0x1af   : > { %v1928_v9 = vpop.f32.mrf.mxu3  ;;  %v4627_v6 = vpop.f32.mrf.mxu0 }
 0x1b0   : > { %5481 = vst [vmem:[#allocation74_spill] sm:$0xff] %v4623_v61 }
 0x1b1   : > { %5482 = vst [vmem:[#allocation75_spill] sm:$0xff] %v4627_v6 }
 0x1b2   : > { %3368 = vmatmul.msk.bf16.vlgmr.msra.gmra.mxu2 %vm1458_vm6, %v3854_v10 }
 0x1b5   : > { %v1831_v52 = vpop.f32.mrf.mxu2 }
 0x1b6   : > { %v4631_v37 = vadd.f32 %v1928_v9, %v1831_v52  ;;  %v4633_v58 = vpop.f32.mrf.mxu1 }
 0x1b7   : > { %v1930_v16 = vpop.f32.mrf.mxu3  ;;  %v4635_v44 = vpop.f32.mrf.mxu0 }
 0x1b8   : > { %5483 = vst [vmem:[#allocation76_spill] sm:$0xff] %v4631_v37 }
 0x1b9   : > { %5484 = vst [vmem:[#allocation77_spill] sm:$0xff] %v4635_v44  ;;  %3356 = vmatmul.msk.bf16.gmra.mxu1 %vm1729_vm8, %v4397_v53 }
 0x1ba   : > { %3404 = vmatmul.msk.bf16.gmra.mxu0 %vm1729_vm8, %v4232_v41 }
 0x1bc   : > { %3386 = vmatmul.msk.bf16.gmra.mxu3 %vm1729_vm8, %v4242_v2 }
 0x1bd   : > { %v1833_v12 = vpop.f32.mrf.mxu2 }
 0x1be   : > { %v4643_v5 = vadd.f32 %v1930_v16, %v1833_v12  ;;  %v4645_v10 = vpop.f32.mrf.mxu1 }
 0x1bf   : > { %v1933_v52 = vpop.f32.mrf.mxu3  ;;  %v4647_v46 = vpop.f32.mrf.mxu0 }
 0x1c0   : > { %5485 = vst [vmem:[#allocation78_spill] sm:$0xff] %v4643_v5 }
 0x1c1   : > { %5486 = vst [vmem:[#allocation79_spill] sm:$0xff] %v4647_v46 }
 0x1c2   : > { %3369 = vmatmul.msk.bf16.gmra.mxu2 %vm1458_vm6, %v3940_v20 }
 0x1c5   : > { %v1836_v9 = vpop.f32.mrf.mxu2 }
 0x1c6   : > { %v4651_v37 = vadd.f32 %v1933_v52, %v1836_v9  ;;  %v4653_v61 = vpop.f32.mrf.mxu1 }
 0x1c7   : > { %v1935_v2 = vpop.f32.mrf.mxu3  ;;  %v4655_v44 = vpop.f32.mrf.mxu0 }
 0x1c8   : > { %5487 = vst [vmem:[#allocation80_spill] sm:$0xff] %v4651_v37 }
 0x1c9   : > { %5488 = vst [vmem:[#allocation81_spill] sm:$0xff] %v4655_v44  ;;  %3357 = vmatmul.msk.bf16.gmra.mxu1 %vm1729_vm8, %v4426_v3  ;;  %v789_v44 = vstv %s788_s29 }
 0x1ca   : > { %3405 = vmatmul.msk.bf16.gmra.mxu0 %vm1729_vm8, %v4257_v33  ;;  %vm790_vm10 = vcmp.eq.s32.totalorder %v789_v44, 1 }
 0x1cc   : > { %3387 = vmatmul.msk.bf16.gmra.mxu3 %vm1729_vm8, %v4267_v1 }
 0x1cd   : > { %v1838_v41 = vpop.f32.mrf.mxu2 }
 0x1ce   : > { %v4663_v16 = vadd.f32 %v1935_v2, %v1838_v41  ;;  %v4665_v20 = vpop.f32.mrf.mxu1 }
 0x1cf   : > { %v1938_v12 = vpop.f32.mrf.mxu3  ;;  %v4667_v52 = vpop.f32.mrf.mxu0 }
 0x1d0   : > { %5489 = vst [vmem:[#allocation82_spill] sm:$0xff] %v4663_v16 }
 0x1d1   : > { %5490 = vst [vmem:[#allocation83_spill] sm:$0xff] %v4667_v52 }
 0x1d2   : > { %3370 = vmatmul.msk.bf16.gmra.mxu2 %vm1458_vm6, %v3996_v62 }
 0x1d5   : > { %v1841_v9 = vpop.f32.mrf.mxu2 }
 0x1d6   : > { %v4672_v37 = vadd.f32 %v1938_v12, %v1841_v9  ;;  %v4674_v5 = vpop.f32.mrf.mxu1 }
 0x1d7   : > { %v1940_v33 = vpop.f32.mrf.mxu3  ;;  %v4680_v1 = vpop.f32.mrf.mxu0 }
 0x1d8   : > { %5491 = vst [vmem:[#allocation84_spill] sm:$0xff] %v4672_v37 }
 0x1d9   : > { %5493 = vst [vmem:[#allocation85_spill] sm:$0xff] %v4680_v1  ;;  %3358 = vmatmul.msk.bf16.gmra.mxu1 %vm1729_vm8, %v4455_v43  ;;  %v3575_v1 = vld [vmem:[%s5390_s4] ss:$0 sm:$0xff] }
 0x1da   : > { %3406 = vmatmul.msk.bf16.gmra.mxu0 %vm1729_vm8, %v4282_v51 }
 0x1dc   : > { %3388 = vmatmul.msk.bf16.gmra.mxu3 %vm1729_vm8, %v4299_v23 }
 0x1dd   : > { %v1843_v62 = vpop.f32.mrf.mxu2 }
 0x1de   : > { %v4690_v2 = vadd.f32 %v1940_v33, %v1843_v62  ;;  %v4692_v41 = vpop.f32.mrf.mxu1 }
 0x1df   : > { %v1943_v12 = vpop.f32.mrf.mxu3  ;;  %v4696_v9 = vpop.f32.mrf.mxu0 }
 0x1e0   : > { %5494 = vst [vmem:[#allocation86_spill] sm:$0xff] %v4690_v2 }
 0x1e1   : > { %5495 = vst [vmem:[#allocation87_spill] sm:$0xff] %v4696_v9 }
 0x1e2   : > { %3371 = vmatmul.msk.bf16.gmra.mxu2 %vm1458_vm6, %v4052_v4 }
 0x1e5   : > { %v1846_v16 = vpop.f32.mrf.mxu2 }
 0x1e6   : > { %v4701_v23 = vadd.f32 %v1943_v12, %v1846_v16  ;;  %v4703_v51 = vpop.f32.mrf.mxu1 }
 0x1e7   : > { %v1945_v33 = vpop.f32.mrf.mxu3  ;;  %v4705_v62 = vpop.f32.mrf.mxu0 }
 0x1e8   : > { %5496 = vst [vmem:[#allocation88_spill] sm:$0xff] %v4701_v23  ;;  %v3508_v23 = vld [vmem:[%s567_s25] sm:$0xff]  }
 0x1e9   : > { %5497 = vst [vmem:[#allocation89_spill] sm:$0xff] %v4705_v62  ;;  %3359 = vmatmul.msk.bf16.gmra.mxu1 %vm1729_vm8, %v4484_v15  ;;  %v3509_v37 = vunpack.c.l.bf16 %v3508_v23  ;;  %v3510_v62 = vunpack.c.h.bf16 %v3508_v23 }
 0x1ea   : > { %3407 = vmatmul.msk.bf16.gmra.mxu0 %vm1729_vm8, %v4312_v28  ;;  %v3576_v28 = vld [vmem:[%s5391_s5] ss:$0 sm:$0xff] }
 0x1eb   : > { %v706_v52 = vmul.f32 %v3575_v1, %v3510_v62 }
 0x1ec   : > { %3389 = vmatmul.msk.bf16.gmra.mxu3 %vm1729_vm8, %v4324_v29  ;;  %v705_v29 = vmul.f32 %v3575_v1, %v3509_v37 }
 0x1ed   : > { %v1848_v4 = vpop.f32.mrf.mxu2 }
 0x1ee   : > { %v4717_v16 = vadd.f32 %v1945_v33, %v1848_v4  ;;  %v4719_v12 = vpop.f32.mrf.mxu1  ;;  %v745_v33 = vadd.f32 %v3576_v28, %v705_v29  ;;  %v746_v4 = vadd.f32 %v3576_v28, %v706_v52 }
 0x1ef   : > { %v1948_v2 = vpop.f32.mrf.mxu3  ;;  %v4721_v9 = vpop.f32.mrf.mxu0 }
 0x1f0   : > { %5498 = vst [vmem:[#allocation90_spill] sm:$0xff] %v4717_v16  ;;  %v781_v23 = vmax.f32 %v745_v33, 0.0 }
 0x1f1   : > { %5499 = vst [vmem:[#allocation91_spill] sm:$0xff] %v4721_v9  ;;  %v782_v9 = vmax.f32 %v746_v4, 0.0 }
 0x1f2   : > { %3372 = vmatmul.msk.bf16.gmra.mxu2 %vm1458_vm6, %v4144_v27  ;;  %v829_v1 = vsel %vm790_vm10, %v781_v23, 0.0 }
 0x1f3   : > { %v830_v62 = vsel %vm790_vm10, %v782_v9, 0.0  ;;  %v865_v27 = vpack.c.bf16 %v829_v1, %v829_v1 }
 0x1f4   : > { %v866_v7 = vpack.c.bf16 %v830_v62, %v830_v62 }
 0x1f5   : > { %v1851_v16 = vpop.f32.mrf.mxu2  ;;  %v937_v52 = vunpack.c.l.b16 %v865_v27 }
 0x1f6   : > { %v4731_v46 = vadd.f32 %v1948_v2, %v1851_v16  ;;  %v4733_v6 = vpop.f32.mrf.mxu1  ;;  %v938_v29 = vunpack.c.l.b16 %v866_v7 }
 0x1f7   : > { %v1950_v37 = vpop.f32.mrf.mxu3  ;;  %v4735_v38 = vpop.f32.mrf.mxu0 }
 0x1f8   : > { %v956_v44 = vpack.c.b16 %v938_v29, %v937_v52 }
 0x1f9   : > { %3360 = vmatmul.msk.bf16.gmra.mxu1 %vm1729_vm8, %v4513_v49 }
 0x1fa   : > { %3408 = vmatmul.msk.bf16.gmra.mxu0 %vm1729_vm8, %v4336_v34  ;;  %v1077_v28 = vshrl.u32 %v956_v44, 16  ;;  %v1080_v7 = vshll.u32 %v956_v44, 16 }
 0x1fc   : > { %3390 = vmatmul.msk.bf16.gmra.mxu3 %vm1729_vm8, %v4348_v13  ;;  %v4748_v4 = vrot.slane %v1077_v28, 7 }
 0x1fd   : > { %v1853_v2 = vpop.f32.mrf.mxu2 }
 0x1fe   : > { %v4744_v9 = vadd.f32 %v1950_v37, %v1853_v2  ;;  %v4746_v16 = vpop.f32.mrf.mxu1  ;;  %v1082_v34 = vor.u32 %v1080_v7, %v4748_v4 }
 0x1ff   : > { %v1953_v33 = vpop.f32.mrf.mxu3  ;;  %v4750_v23 = vpop.f32.mrf.mxu0 }
 0x200   : > { %5500 = vst [vmem:[#allocation92_spill] sm:$0xff] %v4744_v9  ;;  %v4757_v13 = vsel %vm3788_vm5, 0, %v1082_v34 }
 0x201   : > { %2357 = vrot.lane.b32.xlu2 %v4757_v13, %s3617_s16 }
 0x202   : > { %3373 = vmatmul.msk.bf16.gmra.mxu2 %vm1458_vm6, %v3892_v22 }
 0x205   : > { %v1856_v37 = vpop.f32.mrf.mxu2 }
 0x206   : > { %v4762_v1 = vadd.f32 %v1953_v33, %v1856_v37  ;;  %v4764_v62 = vpop.f32.mrf.mxu1 }
 0x207   : > { %v1955_v27 = vpop.f32.mrf.mxu3  ;;  %v4766_v52 = vpop.f32.mrf.mxu0 }
 0x209   : > { %3361 = vmatmul.msk.bf16.gmra.mxu1 %vm1729_vm8, %v4544_v54 }
 0x20a   : > { %3409 = vmatmul.msk.bf16.gmra.mxu0 %vm1729_vm8, %v4367_v40  ;;  %v2848_v40 = vld [vmem:[%s4781_s22 + $0x8] sm:$0xff] }
 0x20c   : > { %3391 = vmatmul.msk.bf16.gmra.mxu3 %vm1729_vm8, %v4378_v42  ;;  %v2847_v42 = vld [vmem:[%s4781_s22] sm:$0xff] }
 0x20d   : > { %v1858_v22 = vpop.f32.mrf.mxu2  ;;  %v2863_v7 = vpack.c.bf16 %v2848_v40, %v2847_v42 }
 0x20e   : > { %v4774_v29 = vadd.f32 %v1955_v27, %v1858_v22  ;;  %v4776_v44 = vpop.f32.mrf.mxu1  ;;  %v2130_v27 = vadd.f32 %v4591_v57, %v4364_v25  ;;  %v2132_v57 = vadd.f32 %v4603_v56, %v4382_v31  ;;  %v2135_v31 = vadd.f32 %v4613_v59, %v4394_v35 }
 0x20f   : > { %v1958_v2 = vpop.f32.mrf.mxu3  ;;  %v4783_v28 = vpop.f32.mrf.mxu0  ;;  %v2137_v35 = vadd.f32 %v4625_v39, %v4412_v50 }
 0x210   : > { %5501 = vst [vmem:[#allocation93_spill] sm:$0xff] %v4774_v29 }
 0x212   : > { %3374 = vmatmul.msk.bf16.gmra.mxu2 %vm1458_vm6, %v3961_v60 }
 0x215   : > { %v1861_v33 = vpop.f32.mrf.mxu2 }
 0x216   : > { %v4789_v34 = vadd.f32 %v1958_v2, %v1861_v33  ;;  %v4791_v37 = vpop.f32.mrf.mxu1 }
 0x217   : > { %v1960_v22 = vpop.f32.mrf.mxu3  ;;  %v2507_v29 = vpop.f32.mrf.mxu0 }
 0x218   : > { %v2587_v9 = vadd.f32 %v2507_v29, %v2130_v27  ;;  %v2850_v29 = vld [vmem:[%s4781_s22 + $0x18] sm:$0xff] }
 0x219   : > { %3418 = vmatmul.msk.bf16.vlgmr.msra.gmra.mxu1 %vm2876_vm11, %v2863_v7 }
 0x21a   : > { %3410 = vmatmul.msk.bf16.gmra.mxu0 %vm1729_vm8, %v4397_v53  ;;  %2651 = vrot.lane.b32.xlu0 %v2587_v9, %s3618_s15 }
 0x21c   : > { %3392 = vmatmul.msk.bf16.gmra.mxu3 %vm1729_vm8, %v4407_v14  ;;  %v2849_v14 = vld [vmem:[%s4781_s22 + $0x10] sm:$0xff] }
 0x21d   : > { %v1863_v60 = vpop.f32.mrf.mxu2  ;;  %v2864_v9 = vpack.c.bf16 %v2850_v29, %v2849_v14  ;;  %v2852_v14 = vld [vmem:[%s4781_s22 + $0x28] sm:$0xff] }
 0x21e   : > { %v4801_v2 = vadd.f32 %v1960_v22, %v1863_v60  ;;  %v4803_v25 = vpop.f32.mrf.mxu1 }
 0x21f   : > { %v2509_v42 = vpop.f32.mrf.mxu0  ;;  %v1963_v33 = vpop.f32.mrf.mxu3 }
 0x220   : > { %v2588_v40 = vadd.f32 %v2509_v42, %v2132_v57 }
 0x222   : > { %3375 = vmatmul.msk.bf16.gmra.mxu2 %vm1458_vm6, %v4041_v47  ;;  %2653 = vrot.lane.b32.xlu1 %v2588_v40, %s3618_s15 }
 0x225   : > { %v1866_v53 = vpop.f32.mrf.mxu2 }
 0x226   : > { %v4812_v7 = vadd.f32 %v1963_v33, %v1866_v53  ;;  %v4814_v27 = vpop.f32.mrf.mxu1  ;;  %v2140_v53 = vadd.f32 %v4633_v58, %v4423_v24  ;;  %v2142_v24 = vadd.f32 %v4645_v10, %v4441_v26  ;;  %v2854_v26 = vld [vmem:[%s4781_s22 + $0x38] sm:$0xff] }
 0x227   : > { %v2512_v56 = vpop.f32.mrf.mxu0  ;;  %v1965_v22 = vpop.f32.mrf.mxu3 }
 0x228   : > { %v2589_v47 = vadd.f32 %v2512_v56, %v2135_v31 }
 0x229   : > { %3419 = vmatmul.msk.bf16.gmra.mxu1 %vm2876_vm11, %v2864_v9 }
 0x22a   : > { %3411 = vmatmul.msk.bf16.gmra.mxu0 %vm1729_vm8, %v4426_v3  ;;  %2655 = vrot.lane.b32.xlu2 %v2589_v47, %s3618_s15 }
 0x22c   : > { %3393 = vmatmul.msk.bf16.gmra.mxu3 %vm1729_vm8, %v4436_v30  ;;  %v2851_v30 = vld [vmem:[%s4781_s22 + $0x20] sm:$0xff] }
 0x22d   : > { %v1868_v60 = vpop.f32.mrf.mxu2  ;;  %v2865_v3 = vpack.c.bf16 %v2852_v14, %v2851_v30  ;;  %v5503_v14 = vld [vmem:[#allocation9_spill] sm:$0xff] }
 0x22e   : > { %v4824_v57 = vadd.f32 %v1965_v22, %v1868_v60  ;;  %v4826_v42 = vpop.f32.mrf.mxu1 }
 0x22f   : > { %v2514_v59 = vpop.f32.mrf.mxu0  ;;  %v4837_v33 = vpop.f32.mrf.mxu3 }
 0x230   : > { %5502 = vst [vmem:[#allocation94_spill] sm:$0xff] %v4824_v57  ;;  %v2590_v40 = vadd.f32 %v2514_v59, %v2137_v35  ;;  %v2853_v35 = vld [vmem:[%s4781_s22 + $0x30] sm:$0xff] }
 0x231   : > { %v2866_v59 = vpack.c.bf16 %v2854_v26, %v2853_v35 }
 0x232   : > { %3376 = vmatmul.msk.bf16.gmra.mxu2 %vm1458_vm6, %v4099_v8  ;;  %2657 = vrot.lane.b32.xlu0 %v2590_v40, %s3618_s15 }
 0x235   : > { %v4841_v9 = vpop.f32.mrf.mxu2 }
 0x236   : > { %v4835_v29 = vpop.f32.mrf.mxu1 }
 0x237   : > { %v2517_v50 = vpop.f32.mrf.mxu0  ;;  %v4853_v58 = vpop.f32.mrf.mxu3 }
 0x238   : > { %v2591_v39 = vadd.f32 %v2517_v50, %v2140_v53  ;;  %v2150_v53 = vadd.f32 %v4674_v5, %v4481_v18  ;;  %v2152_v18 = vadd.f32 %v4692_v41, %v4499_v21 }
 0x239   : > { %3420 = vmatmul.msk.bf16.gmra.mxu1 %vm2876_vm11, %v2865_v3 }
 0x23a   : > { %3412 = vmatmul.msk.bf16.gmra.mxu0 %vm1729_vm8, %v4455_v43  ;;  %2659 = vrot.lane.b32.xlu1 %v2591_v39, %s3618_s15  ;;  %v2145_v43 = vadd.f32 %v4653_v61, %v4452_v0  ;;  %v2147_v61 = vadd.f32 %v4665_v20, %v4470_v19  ;;  %v2856_v19 = vld [vmem:[%s4781_s22 + $0x48] sm:$0xff] }
 0x23c   : > { %3394 = vmatmul.msk.bf16.gmra.mxu3 %vm1729_vm8, %v4465_v36 }
 0x23d   : > { %v4857_v47 = vpop.f32.mrf.mxu2 }
 0x23e   : > { %v4849_v8 = vpop.f32.mrf.mxu1 }
 0x23f   : > { %v2519_v31 = vpop.f32.mrf.mxu0  ;;  %v4866_v10 = vpop.f32.mrf.mxu3 }
 0x240   : > { %v2592_v56 = vadd.f32 %v2519_v31, %v2142_v24  ;;  %v2855_v24 = vld [vmem:[%s4781_s22 + $0x40] sm:$0xff] }
 0x241   : > { %v2867_v20 = vpack.c.bf16 %v2856_v19, %v2855_v24  ;;  %v2857_v24 = vld [vmem:[%s4781_s22 + $0x50] sm:$0xff]  ;;  %v5507_v19 = vld [vmem:[#allocation65_spill] sm:$0xff] }
 0x242   : > { %3377 = vmatmul.msk.bf16.gmra.mxu2 %vm1458_vm6, %v4155_v48  ;;  %2661 = vrot.lane.b32.xlu2 %v2592_v56, %s3618_s15 }
 0x245   : > { %v4872_v48 = vpop.f32.mrf.mxu2 }
 0x246   : > { %v4860_v36 = vpop.f32.mrf.mxu1 }
 0x247   : > { %v2522_v22 = vpop.f32.mrf.mxu0 }
 0x248   : > { %v2593_v60 = vadd.f32 %v2522_v22, %v2145_v43 }
 0x249   : > { %3421 = vmatmul.msk.bf16.gmra.mxu1 %vm2876_vm11, %v2866_v59 }
 0x24a   : > { %3413 = vmatmul.msk.bf16.gmra.mxu0 %vm1729_vm8, %v4484_v15  ;;  %2663 = vrot.lane.b32.xlu0 %v2593_v60, %s3618_s15  ;;  %v4883_v15 = vpop.f32.mrf.mxu3  ;;  %v5504_v60 = vld [vmem:[#allocation5_spill] sm:$0xff] }
 0x24c   : > { %3395 = vmatmul.msk.bf16.gmra.mxu3 %vm1729_vm8, %v4494_v32 }
 0x24d   : > { %v4887_v3 = vpop.f32.mrf.mxu2 }
 0x24e   : > { %v4876_v0 = vpop.f32.mrf.mxu1 }
 0x24f   : > { %v2524_v40 = vpop.f32.mrf.mxu0 }
 0x250   : > { %v2594_v30 = vadd.f32 %v2524_v40, %v2147_v61  ;;  %v5505_v40 = vld [vmem:[#allocation6_spill] sm:$0xff] }
 0x252   : > { %3378 = vmatmul.msk.bf16.gmra.mxu2 %vm1458_vm6, %v5503_v14  ;;  %2665 = vrot.lane.b32.xlu1 %v2594_v30, %s3618_s15  ;;  %v4901_v56 = vpop.f32.mrf.mxu3 }
 0x255   : > { %v4905_v5 = vpop.f32.mrf.mxu2 }
 0x256   : > { %v4885_v32 = vpop.f32.mrf.mxu1 }
 0x257   : > { %v2527_v50 = vpop.f32.mrf.mxu0 }
 0x258   : > { %v2595_v39 = vadd.f32 %v2527_v50, %v2150_v53 }
 0x259   : > { %3422 = vmatmul.msk.bf16.gmra.mxu1 %vm2876_vm11, %v2867_v20  ;;  %v5508_v20 = vld [vmem:[#allocation62_spill] sm:$0xff] }
 0x25a   : > { %3414 = vmatmul.msk.bf16.gmra.mxu0 %vm1729_vm8, %v4513_v49  ;;  %2667 = vrot.lane.b32.xlu2 %v2595_v39, %s3618_s15  ;;  %v4914_v35 = vpop.f32.mrf.mxu3 }
 0x25c   : > { %3396 = vmatmul.msk.bf16.gmra.mxu3 %vm1729_vm8, %v4523_v45  ;;  %v2155_v45 = vadd.f32 %v4703_v51, %v4510_v55  ;;  %v2157_v55 = vadd.f32 %v4719_v12, %v4528_v11  ;;  %v2858_v11 = vld [vmem:[%s4781_s22 + $0x58] sm:$0xff] }
 0x25d   : > { %v4916_v61 = vpop.f32.mrf.mxu2  ;;  %v2868_v12 = vpack.c.bf16 %v2858_v11, %v2857_v24 }
 0x25e   : > { %v4899_v31 = vpop.f32.mrf.mxu1 }
 0x25f   : > { %v2529_v43 = vpop.f32.mrf.mxu0 }
 0x260   : > { %v2596_v22 = vadd.f32 %v2529_v43, %v2152_v18  ;;  %v4947_v43 = vpop.permute.xlu2 %2357 }
 0x262   : > { %3379 = vmatmul.msk.bf16.gmra.mxu2 %vm1458_vm6, %v5504_v60  ;;  %2669 = vrot.lane.b32.xlu0 %v2596_v22, %s3618_s15  ;;  %v4929_v30 = vpop.f32.mrf.mxu3  ;;  %v5509_v60 = vld [vmem:[#allocation58_spill] sm:$0xff] }
 0x266   : > { %v4910_v49 = vpop.f32.mrf.mxu1 }
 0x267   : > { %v2532_v26 = vpop.f32.mrf.mxu0 }
 0x268   : > { %v2597_v59 = vadd.f32 %v2532_v26, %v2155_v45  ;;  %v2162_v45 = vadd.f32 %v4746_v16, %v5509_v60  ;;  %v5512_v16 = vld [vmem:[#allocation13_spill] sm:$0xff] }
 0x269   : > { %3423 = vmatmul.msk.bf16.gmra.mxu1 %vm2876_vm11, %v2868_v12  ;;  %v5513_v12 = vld [vmem:[#allocation61_spill] sm:$0xff] }
 0x26a   : > { %3415 = vmatmul.msk.bf16.gmra.mxu0 %vm1729_vm8, %v4544_v54  ;;  %2671 = vrot.lane.b32.xlu1 %v2597_v59, %s3618_s15  ;;  %v5506_v54 = vld [vmem:[#allocation55_spill] sm:$0xff]  ;;  %v4944_v18 = vpop.f32.mrf.mxu3  ;;  %v2165_v17 = vadd.f32 %v4764_v62, %v5513_v12 }
 0x26b   : > { %v2160_v53 = vadd.f32 %v4733_v6, %v5506_v54  ;;  %v5511_v54 = vld [vmem:[#allocation41_spill] sm:$0xff] }
 0x26c   : > { %3397 = vmatmul.msk.bf16.gmra.mxu3 %vm1729_vm8, %v4556_v63  ;;  %v4932_v63 = vpop.f32.mrf.mxu2 }
 0x26e   : > { %v4923_v21 = vpop.f32.mrf.mxu1 }
 0x26f   : > { %v2534_v41 = vpop.f32.mrf.mxu0 }
 0x270   : > { %v2598_v51 = vadd.f32 %v2534_v41, %v2157_v55  ;;  %v5510_v55 = vld [vmem:[#allocation7_spill] sm:$0xff]  ;;  %v1157_v41 = vsel %vm3788_vm5, %v4748_v4, 0 }
 0x272   : > { %3380 = vmatmul.msk.bf16.gmra.mxu2 %vm1458_vm6, %v5505_v40  ;;  %2673 = vrot.lane.b32.xlu2 %v2598_v51, %s3618_s15  ;;  %v2487_v51 = vrot.slane %v4757_v13, 1  ;;  %v2488_v40 = vrot.slane %v1157_v41, 1  ;;  %v4969_v24 = vpop.f32.mrf.mxu3 }
 0x274   : > { %v4952_v22 = vpop.f32.mrf.mxu2 }
 0x276   : > { %v4934_v14 = vpop.f32.mrf.mxu1 }
 0x277   : > { %v2537_v50 = vpop.f32.mrf.mxu0 }
 0x278   : > { %v2599_v39 = vadd.f32 %v2537_v50, %v2160_v53  ;;  %v2456_v53 = vadd.f32 %v4866_v10, %v5511_v54 }
 0x27a   : > { %3416 = vmatmul.msk.bf16.gmra.mxu0 %vm1729_vm8, %v5508_v20  ;;  %2675 = vrot.lane.b32.xlu0 %v2599_v39, %s3618_s15  ;;  %v2324_v39 = vadd.f32 %v4872_v48, %v5512_v16  ;;  %v5515_v48 = vld [vmem:[#allocation37_spill] sm:$0xff]  ;;  %v5517_v16 = vld [vmem:[#allocation66_spill] sm:$0xff] }
 0x27c   : > { %3398 = vmatmul.msk.bf16.gmra.mxu3 %vm1729_vm8, %v5507_v19  ;;  %v4974_v19 = vpop.f32.mrf.mxu2 }
 0x27e   : > { %v4950_v6 = vpop.f32.mrf.mxu1 }
 0x27f   : > { %v2539_v26 = vpop.f32.mrf.mxu0 }
 0x280   : > { %v2600_v59 = vadd.f32 %v2539_v26, %v2162_v45  ;;  %v2489_v45 = vsel %vm1386_vm7, %v2487_v51, %v2488_v40  ;;  %v5514_v26 = vld [vmem:[#allocation70_spill] sm:$0xff]  ;;  %v2167_v51 = vadd.f32 %v4776_v44, %v5517_v16  ;;  %v5005_v44 = vld [vmem:[%s5396_s10] ss:$0 sm:$0xff]  ;;  %v2217_v16 = vshll.u32 %v1157_v41, 16 }
 0x282   : > { %3381 = vmatmul.msk.bf16.gmra.mxu2 %vm1458_vm6, %v5510_v55  ;;  %2677 = vrot.lane.b32.xlu1 %v2600_v59, %s3618_s15  ;;  %v2454_v59 = vadd.f32 %v4837_v33, %v5515_v48  ;;  %v5516_v55 = vld [vmem:[#allocation10_spill] sm:$0xff] }
 0x283   : > { %v2322_v54 = vadd.f32 %v4841_v9, %v5516_v55  ;;  %v5000_v9 = vld [vmem:[%s5394_s8] ss:$0 sm:$0xff] }
 0x284   : > { %v2656_v11 = vpop.permute.xlu2 %2655  ;;  %v4995_v33 = vpop.f32.mrf.mxu2 }
 0x285   : > { %v2749_v4 = vsel %vm1729_vm8, %v2456_v53, %v2656_v11 }
 0x286   : > { %v4965_v50 = vpop.f32.mrf.mxu1  ;;  %v2781_v20 = vadd.f32 %v2749_v4, %v2324_v39  ;;  %v4990_v39 = vpop.f32.mrf.mxu3 }
 0x287   : > { %v2542_v60 = vpop.f32.mrf.mxu0 }
 0x288   : > { %v2601_v10 = vadd.f32 %v2542_v60, %v2165_v17  ;;  %v2212_v17 = vshll.u32 %v4757_v13, 16  ;;  %v5518_v60 = vld [vmem:[#allocation8_spill] sm:$0xff] }
 0x28a   : > { %3417 = vmatmul.msk.bf16.gmra.mxu0 %vm1729_vm8, %v2489_v45  ;;  %2679 = vrot.lane.b32.xlu2 %v2601_v10, %s3618_s15  ;;  %v5519_v45 = vld [vmem:[#allocation39_spill] sm:$0xff]  ;;  %v2214_v48 = vrot.slane %v2212_v17, 1 }
 0x28b   : > { %v2455_v10 = vadd.f32 %v4853_v58, %v5519_v45 }
 0x28c   : > { %3399 = vmatmul.msk.bf16.gmra.mxu3 %vm1729_vm8, %v5514_v26  ;;  %v2652_v53 = vpop.permute.xlu0 %2651  ;;  %v2210_v26 = vshrl.u32 %v4757_v13, 16 }
 0x28d   : > { %v2747_v40 = vsel %vm1729_vm8, %v2454_v59, %v2652_v53  ;;  %v5520_v59 = vld [vmem:[#allocation11_spill] sm:$0xff] }
 0x28e   : > { %v4983_v62 = vpop.f32.mrf.mxu1  ;;  %v2779_v11 = vadd.f32 %v2747_v40, %v2322_v54  ;;  %v2323_v55 = vadd.f32 %v4857_v47, %v5520_v59  ;;  %v5026_v41 = vpop.f32.mrf.mxu3  ;;  %v5522_v59 = vld [vmem:[#allocation47_spill] sm:$0xff] }
 0x28f   : > { %v2544_v12 = vpop.f32.mrf.mxu0 }
 0x290   : > { %v2602_v4 = vadd.f32 %v2544_v12, %v2167_v51  ;;  %v2815_v40 = vadd.f32 %v5000_v9, %v2779_v11  ;;  %v2817_v12 = vadd.f32 %v5000_v9, %v2781_v20 }
 0x292   : > { %3382 = vmatmul.msk.bf16.gmra.mxu2 %vm1458_vm6, %v5518_v60  ;;  %2681 = vrot.lane.b32.xlu0 %v2602_v4, %s3618_s15  ;;  %v5521_v60 = vld [vmem:[#allocation68_spill] sm:$0xff] }
 0x293   : > { %v2170_v58 = vadd.f32 %v4791_v37, %v5521_v60  ;;  %v2219_v37 = vrot.slane %v2217_v16, 1 }
 0x294   : > { %v2654_v54 = vpop.permute.xlu1 %2653 }
 0x295   : > { %v2748_v51 = vsel %vm1729_vm8, %v2455_v10, %v2654_v54  ;;  %v2215_v10 = vor.u32 %v2214_v48, %v2210_v26  ;;  %v5033_v54 = vpop.f32.mrf.mxu2 }
 0x296   : > { %v2914_v53 = vpop.f32.mrf.mxu1  ;;  %v2780_v45 = vadd.f32 %v2748_v51, %v2323_v55  ;;  %v2459_v55 = vadd.f32 %v4914_v35, %v5522_v59 }
 0x297   : > { %v2915_v4 = vadd.f32 %v5005_v44, %v2914_v53  ;;  %v2547_v13 = vpop.f32.mrf.mxu0  ;;  %v5523_v53 = vld [vmem:[#allocation20_spill] sm:$0xff] }
 0x298   : > { %v2603_v47 = vadd.f32 %v2547_v13, %v2170_v58  ;;  %v2327_v51 = vadd.f32 %v4916_v61, %v5523_v53  ;;  %v2816_v16 = vadd.f32 %v5000_v9, %v2780_v45  ;;  %v5051_v45 = vpop.f32.mrf.mxu3 }
 0x299   : > { %v2954_v17 = vadd.f32 %v2915_v4, %v2815_v40  ;;  %v2956_v57 = vadd.f32 %v2915_v4, %v2817_v12  ;;  %v5524_v40 = vld [vmem:[#allocation71_spill] sm:$0xff] }
 0x29a   : > { %2683 = vrot.lane.b32.xlu1 %v2603_v47, %s3618_s15  ;;  %v2172_v12 = vadd.f32 %v4803_v25, %v5524_v40 }
 0x29b   : > { %v2986_v20 = vpack.c.bf16 %v2954_v17, %v2954_v17  ;;  %v2988_v11 = vpack.c.bf16 %v2956_v57, %v2956_v57  ;;  %v5525_v17 = vld [vmem:[#allocation43_spill] sm:$0xff] }
 0x29c   : > { %3400 = vmatmul.msk.bf16.gmra.mxu3 %vm1729_vm8, %v4947_v43  ;;  %v2662_v57 = vpop.permute.xlu2 %2661  ;;  %v2220_v43 = vsel %vm1158_vm4, %v2215_v10, %v2219_v37  ;;  %v2457_v47 = vadd.f32 %v4883_v15, %v5525_v17 }
 0x29d   : > { %3019 = vst.msk [vmem:[%s5024_s23] sm:$0xf] %vm3018_vm12, %v2986_v20  ;;  %v2752_v48 = vsel %vm1729_vm8, %v2459_v55, %v2662_v57  ;;  %v5526_v20 = vld [vmem:[#allocation15_spill] sm:$0xff]  ;;  %v5057_v37 = vpop.f32.mrf.mxu2  ;;  %v5527_v55 = vld [vmem:[#allocation73_spill] sm:$0xff] }
 0x29e   : > { %3021 = vst.msk [vmem:[%s5024_s23 + $0x8] sm:$0xf] %vm3018_vm12, %v2988_v11  ;;  %v2916_v26 = vpop.f32.mrf.mxu1  ;;  %v2784_v4 = vadd.f32 %v2752_v48, %v2327_v51  ;;  %v2325_v25 = vadd.f32 %v4887_v3, %v5526_v20  ;;  %v2175_v53 = vadd.f32 %v4814_v27, %v5527_v55  ;;  %v2859_v48 = vld [vmem:[%s4781_s22 + $0x60] sm:$0xff] }
 0x29f   : > { %v2917_v35 = vadd.f32 %v5005_v44, %v2916_v26  ;;  %v2549_v60 = vpop.f32.mrf.mxu0  ;;  %v5528_v3 = vld [vmem:[#allocation45_spill] sm:$0xff] }
 0x2a0   : > { %v2604_v61 = vadd.f32 %v2549_v60, %v2172_v12  ;;  %v2458_v12 = vadd.f32 %v4901_v56, %v5528_v3  ;;  %v5529_v27 = vld [vmem:[#allocation17_spill] sm:$0xff]  ;;  %v2820_v17 = vadd.f32 %v5000_v9, %v2784_v4 }
 0x2a1   : > { %v2955_v58 = vadd.f32 %v2917_v35, %v2816_v16  ;;  %v5533_v3 = vld [vmem:[#allocation77_spill] sm:$0xff] }
 0x2a2   : > { %3383 = vmatmul.msk.bf16.gmra.mxu2 %vm1458_vm6, %v2220_v43  ;;  %2685 = vrot.lane.b32.xlu2 %v2604_v61, %s3618_s15  ;;  %v2860_v43 = vld [vmem:[%s4781_s22 + $0x68] sm:$0xff]  ;;  %v2326_v61 = vadd.f32 %v4905_v5, %v5529_v27 }
 0x2a3   : > { %v2987_v13 = vpack.c.bf16 %v2955_v58, %v2955_v58  ;;  %v2869_v16 = vpack.c.bf16 %v2860_v43, %v2859_v48  ;;  %v5532_v48 = vld [vmem:[#allocation25_spill] sm:$0xff] }
 0x2a4   : > { %v2658_v11 = vpop.permute.xlu0 %2657  ;;  %v2330_v43 = vadd.f32 %v4974_v19, %v5532_v48  ;;  %v2862_v19 = vld [vmem:[%s4781_s22 + $0x78] sm:$0xff] }
 0x2a5   : > { %3020 = vst.msk [vmem:[%s5024_s23 + $0x4] sm:$0xf] %vm3018_vm12, %v2987_v13  ;;  %v2750_v59 = vsel %vm1729_vm8, %v2457_v47, %v2658_v11  ;;  %3424 = vmatmul.msk.bf16.gmra.mxu1 %vm2876_vm11, %v2869_v16  ;;  %v5082_v11 = vpop.f32.mrf.mxu2 }
 0x2a6   : > { %v2919_v10 = vpop.f32.mrf.mxu1  ;;  %v2782_v51 = vadd.f32 %v2750_v59, %v2325_v25  ;;  %v5077_v25 = vpop.f32.mrf.mxu3 }
 0x2a7   : > { %v2552_v57 = vpop.f32.mrf.mxu0  ;;  %v2920_v5 = vadd.f32 %v5005_v44, %v2919_v10 }
 0x2a8   : > { %v2818_v15 = vadd.f32 %v5000_v9, %v2782_v51  ;;  %v2605_v26 = vadd.f32 %v2552_v57, %v2175_v53 }
 0x2aa   : > { %v2957_v40 = vadd.f32 %v2917_v35, %v2818_v15  ;;  %2687 = vrot.lane.b32.xlu0 %v2605_v26, %s3618_s15  ;;  %v5530_v35 = vld [vmem:[#allocation75_spill] sm:$0xff]  ;;  %v5531_v15 = vld [vmem:[#allocation53_spill] sm:$0xff] }
 0x2ab   : > { %v2177_v20 = vadd.f32 %v4826_v42, %v5530_v35  ;;  %v2462_v26 = vadd.f32 %v4969_v24, %v5531_v15 }
 0x2ac   : > { %v2989_v60 = vpack.c.bf16 %v2957_v40, %v2957_v40  ;;  %v2660_v13 = vpop.permute.xlu1 %2659 }
 0x2ad   : > { %v2751_v56 = vsel %vm1729_vm8, %v2458_v12, %v2660_v13  ;;  %v2180_v12 = vadd.f32 %v4835_v29, %v5533_v3  ;;  %v5106_v35 = vpop.f32.mrf.mxu2 }
 0x2ae   : > { %v2921_v58 = vpop.f32.mrf.mxu1  ;;  %3022 = vst.msk [vmem:[%s5024_s23 + $0xc] sm:$0xf] %vm3018_vm12, %v2989_v60  ;;  %v2783_v59 = vadd.f32 %v2751_v56, %v2326_v61  ;;  %v5102_v13 = vpop.f32.mrf.mxu3 }
 0x2af   : > { %v5073_v47 = vadd.f32 %v5005_v44, %v2921_v58  ;;  %v2554_v4 = vpop.f32.mrf.mxu0 }
 0x2b0   : > { %v2606_v53 = vadd.f32 %v2554_v4, %v2177_v20  ;;  %v2819_v51 = vadd.f32 %v5000_v9, %v2783_v59  ;;  %v5534_v59 = vld [vmem:[#allocation49_spill] sm:$0xff] }
 0x2b1   : > { %v2959_v55 = vadd.f32 %v5073_v47, %v2820_v17  ;;  %v2861_v17 = vld [vmem:[%s4781_s22 + $0x70] sm:$0xff]  ;;  %v2460_v4 = vadd.f32 %v4929_v30, %v5534_v59 }
 0x2b2   : > { %2689 = vrot.lane.b32.xlu1 %v2606_v53, %s3618_s15  ;;  %v2958_v42 = vadd.f32 %v2920_v5, %v2819_v51  ;;  %v2870_v29 = vpack.c.bf16 %v2862_v19, %v2861_v17  ;;  %v5537_v30 = vld [vmem:[#allocation51_spill] sm:$0xff]  ;;  %v5539_v17 = vld [vmem:[#allocation81_spill] sm:$0xff] }
 0x2b3   : > { %v2991_v57 = vpack.c.bf16 %v2959_v55, %v2959_v55  ;;  %v5535_v55 = vld [vmem:[#allocation23_spill] sm:$0xff]  ;;  %v2185_v19 = vadd.f32 %v4860_v36, %v5539_v17 }
 0x2b4   : > { %v2990_v16 = vpack.c.bf16 %v2958_v42, %v2958_v42  ;;  %v2668_v40 = vpop.permute.xlu2 %2667  ;;  %v2328_v53 = vadd.f32 %v4932_v63, %v5535_v55  ;;  %v5536_v42 = vld [vmem:[#allocation79_spill] sm:$0xff]  ;;  %v2461_v63 = vadd.f32 %v4944_v18, %v5537_v30  ;;  %v5541_v55 = vld [vmem:[#allocation29_spill] sm:$0xff]  ;;  %v5543_v30 = vld [vmem:[#allocation56_spill] sm:$0xff] }
 0x2b5   : > { %3024 = vst.msk [vmem:[%s5024_s23 + $0x14] sm:$0xf] %vm3018_vm12, %v2991_v57  ;;  %v2755_v60 = vsel %vm1729_vm8, %v2462_v26, %v2668_v40  ;;  %3425 = vmatmul.msk.bf16.gmra.mxu1 %vm2876_vm11, %v2870_v29  ;;  %v2182_v15 = vadd.f32 %v4849_v8, %v5536_v42  ;;  %v5127_v3 = vpop.f32.mrf.mxu2 }
 0x2b6   : > { %v2924_v10 = vpop.f32.mrf.mxu1  ;;  %3023 = vst.msk [vmem:[%s5024_s23 + $0x10] sm:$0xf] %vm3018_vm12, %v2990_v16  ;;  %v2787_v58 = vadd.f32 %v2755_v60, %v2330_v43  ;;  %v5122_v40 = vpop.f32.mrf.mxu3 }
 0x2b7   : > { %v2557_v27 = vpop.f32.mrf.mxu0  ;;  %v5100_v61 = vadd.f32 %v5005_v44, %v2924_v10 }
 0x2b8   : > { %v2607_v24 = vadd.f32 %v2557_v27, %v2180_v12  ;;  %v2823_v20 = vadd.f32 %v5000_v9, %v2787_v58  ;;  %v5538_v12 = vld [vmem:[#allocation24_spill] sm:$0xff] }
 0x2b9   : > { %v2329_v60 = vadd.f32 %v4952_v22, %v5538_v12  ;;  %v5540_v22 = vld [vmem:[#allocation63_spill] sm:$0xff] }
 0x2ba   : > { %2691 = vrot.lane.b32.xlu2 %v2607_v24, %s3618_s15  ;;  %v2962_v56 = vadd.f32 %v5100_v61, %v2823_v20  ;;  %v2465_v59 = vadd.f32 %v5051_v45, %v5540_v22 }
 0x2bc   : > { %v2994_v51 = vpack.c.bf16 %v2962_v56, %v2962_v56  ;;  %v2664_v57 = vpop.permute.xlu0 %2663 }
 0x2bd   : > { %v2753_v26 = vsel %vm1729_vm8, %v2460_v4, %v2664_v57  ;;  %v5145_v42 = vpop.f32.mrf.mxu2 }
 0x2be   : > { %3027 = vst.msk [vmem:[%s5024_s23 + $0x20] sm:$0xf] %vm3018_vm12, %v2994_v51  ;;  %v2785_v10 = vadd.f32 %v2753_v26, %v2328_v53  ;;  %v2926_v4 = vpop.f32.mrf.mxu1  ;;  %v2333_v53 = vadd.f32 %v5057_v37, %v5541_v55  ;;  %v5143_v36 = vpop.f32.mrf.mxu3  ;;  %v5542_v26 = vld [vmem:[#allocation83_spill] sm:$0xff] }
 0x2bf   : > { %v2559_v48 = vpop.f32.mrf.mxu0  ;;  %v2927_v45 = vadd.f32 %v5005_v44, %v2926_v4 }
 0x2c0   : > { %v2608_v43 = vadd.f32 %v2559_v48, %v2182_v15  ;;  %v2821_v16 = vadd.f32 %v5000_v9, %v2785_v10 }
 0x2c2   : > { %2693 = vrot.lane.b32.xlu0 %v2608_v43, %s3618_s15  ;;  %v2960_v8 = vadd.f32 %v2920_v5, %v2821_v16 }
 0x2c4   : > { %v2666_v58 = vpop.permute.xlu1 %2665  ;;  %v2992_v27 = vpack.c.bf16 %v2960_v8, %v2960_v8  ;;  %v5544_v8 = vld [vmem:[#allocation26_spill] sm:$0xff] }
 0x2c5   : > { %v2754_v24 = vsel %vm1729_vm8, %v2461_v63, %v2666_v58  ;;  %v2463_v63 = vadd.f32 %v4990_v39, %v5543_v30  ;;  %v2331_v12 = vadd.f32 %v4995_v33, %v5544_v8 }
 0x2c6   : > { %v2786_v20 = vadd.f32 %v2754_v24, %v2329_v60  ;;  %3025 = vst.msk [vmem:[%s5024_s23 + $0x18] sm:$0xf] %vm3018_vm12, %v2992_v27  ;;  %v5545_v27 = vld [vmem:[#allocation85_spill] sm:$0xff]  ;;  %v5162_v17 = vpop.f32.mrf.mxu3  ;;  %v2929_v55 = vpop.f32.mrf.mxu1 }
 0x2c7   : > { %v2562_v29 = vpop.f32.mrf.mxu0  ;;  %v2190_v24 = vadd.f32 %v4885_v32, %v5545_v27  ;;  %v5547_v32 = vld [vmem:[#allocation27_spill] sm:$0xff] }
 0x2c8   : > { %v2822_v18 = vadd.f32 %v5000_v9, %v2786_v20  ;;  %v2609_v56 = vadd.f32 %v2562_v29, %v2185_v19  ;;  %v5166_v20 = vpop.f32.mrf.mxu2 }
 0x2ca   : > { %v2961_v5 = vadd.f32 %v5073_v47, %v2822_v18  ;;  %2695 = vrot.lane.b32.xlu1 %v2609_v56, %s3618_s15  ;;  %v2187_v47 = vadd.f32 %v4876_v0, %v5542_v26  ;;  %v5546_v56 = vld [vmem:[#allocation59_spill] sm:$0xff] }
 0x2cc   : > { %v2993_v51 = vpack.c.bf16 %v2961_v5, %v2961_v5  ;;  %v2674_v57 = vpop.permute.xlu2 %2673  ;;  %v2464_v5 = vadd.f32 %v5026_v41, %v5546_v56  ;;  %v5555_v56 = vld [vmem:[#allocation67_spill] sm:$0xff] }
 0x2cd   : > { %v2758_v15 = vsel %vm1729_vm8, %v2465_v59, %v2674_v57  ;;  %v2332_v59 = vadd.f32 %v5033_v54, %v5547_v32  ;;  %v5549_v54 = vld [vmem:[#allocation21_spill] sm:$0xff] }
 0x2ce   : > { %3026 = vst.msk [vmem:[%s5024_s23 + $0x1c] sm:$0xf] %vm3018_vm12, %v2993_v51  ;;  %v2790_v10 = vadd.f32 %v2758_v15, %v2333_v53  ;;  %v5548_v53 = vld [vmem:[#allocation87_spill] sm:$0xff] }
 0x2cf   : > { %v2564_v48 = vpop.f32.mrf.mxu0  ;;  %v2192_v51 = vadd.f32 %v4899_v31, %v5548_v53  ;;  %v5551_v31 = vld [vmem:[#allocation72_spill] sm:$0xff] }
 0x2d0   : > { %v2610_v43 = vadd.f32 %v2564_v48, %v2187_v47  ;;  %v2826_v37 = vadd.f32 %v5000_v9, %v2790_v10  ;;  %v2416_v47 = vpop.f32.mrf.mxu3  ;;  %v5550_v48 = vld [vmem:[#allocation34_spill] sm:$0xff] }
 0x2d2   : > { %v2965_v16 = vadd.f32 %v2927_v45, %v2826_v37  ;;  %2697 = vrot.lane.b32.xlu2 %v2610_v43, %s3618_s15  ;;  %v1650_v43 = vadd.f32 %v5550_v48, %v5549_v54 }
 0x2d4   : > { %v2997_v0 = vpack.c.bf16 %v2965_v16, %v2965_v16  ;;  %v2670_v60 = vpop.permute.xlu0 %2669  ;;  %v2468_v16 = vadd.f32 %v5122_v40, %v5551_v31  ;;  %v2336_v30 = vadd.f32 %v5127_v3, %v1650_v43  ;;  %v5553_v3 = vld [vmem:[#allocation14_spill] sm:$0xff] }
 0x2d5   : > { %v2756_v58 = vsel %vm1729_vm8, %v2463_v63, %v2670_v60 }
 0x2d6   : > { %3030 = vst.msk [vmem:[%s5024_s23 + $0x2c] sm:$0xf] %vm3018_vm12, %v2997_v0  ;;  %v2788_v19 = vadd.f32 %v2756_v58, %v2331_v12  ;;  %v5552_v12 = vld [vmem:[#allocation89_spill] sm:$0xff] }
 0x2d7   : > { %v2567_v29 = vpop.f32.mrf.mxu0  ;;  %v2195_v0 = vadd.f32 %v4910_v49, %v5552_v12 }
 0x2d8   : > { %v2824_v39 = vadd.f32 %v5000_v9, %v2788_v19  ;;  %v2611_v18 = vadd.f32 %v2567_v29, %v2190_v24  ;;  %v2930_v24 = vadd.f32 %v5005_v44, %v2929_v55  ;;  %v5194_v29 = vpop.f32.mrf.mxu3 }
 0x2da   : > { %v2963_v33 = vadd.f32 %v2927_v45, %v2824_v39  ;;  %2699 = vrot.lane.b32.xlu0 %v2611_v18, %s3618_s15  ;;  %v2284_v45 = vpop.f32.mrf.mxu2  ;;  %v5554_v39 = vld [vmem:[#allocation30_spill] sm:$0xff] }
 0x2db   : > { %v1645_v49 = vadd.f32 %v5554_v39, %v5553_v3 }
 0x2dc   : > { %v2995_v22 = vpack.c.bf16 %v2963_v33, %v2963_v33  ;;  %v2672_v4 = vpop.permute.xlu1 %2671 }
 0x2dd   : > { %v2757_v57 = vsel %vm1729_vm8, %v2464_v5, %v2672_v4  ;;  %v2466_v5 = vadd.f32 %v5077_v25, %v5555_v56  ;;  %v5556_v4 = vld [vmem:[#allocation91_spill] sm:$0xff]  ;;  %v5558_v25 = vld [vmem:[#allocation32_spill] sm:$0xff] }
 0x2de   : > { %3028 = vst.msk [vmem:[%s5024_s23 + $0x24] sm:$0xf] %vm3018_vm12, %v2995_v22  ;;  %v2789_v15 = vadd.f32 %v2757_v57, %v2332_v59  ;;  %v2334_v22 = vadd.f32 %v5082_v11, %v1645_v49  ;;  %v2197_v55 = vadd.f32 %v4923_v21, %v5556_v4  ;;  %v5559_v11 = vld [vmem:[#allocation69_spill] sm:$0xff] }
 0x2df   : > { %v2569_v26 = vpop.f32.mrf.mxu0  ;;  %v2467_v48 = vadd.f32 %v5102_v13, %v5559_v11  ;;  %v5564_v11 = vld [vmem:[#allocation76_spill] sm:$0xff] }
 0x2e0   : > { %v2612_v10 = vadd.f32 %v2569_v26, %v2192_v51  ;;  %v2825_v41 = vadd.f32 %v5000_v9, %v2789_v15 }
 0x2e2   : > { %2701 = vrot.lane.b32.xlu1 %v2612_v10, %s3618_s15  ;;  %v2964_v37 = vadd.f32 %v5100_v61, %v2825_v41  ;;  %v2931_v61 = vpop.f32.mrf.mxu1  ;;  %v5199_v18 = vpop.f32.mrf.mxu2  ;;  %v5557_v41 = vld [vmem:[#allocation18_spill] sm:$0xff] }
 0x2e3   : > { %v1647_v54 = vadd.f32 %v5558_v25, %v5557_v41  ;;  %v2932_v12 = vadd.f32 %v5005_v44, %v2931_v61  ;;  %v2202_v61 = vadd.f32 %v4950_v6, %v4750_v23  ;;  %v5563_v6 = vld [vmem:[#allocation36_spill] sm:$0xff] }
 0x2e4   : > { %v2996_v63 = vpack.c.bf16 %v2964_v37, %v2964_v37  ;;  %v2680_v8 = vpop.permute.xlu2 %2679  ;;  %v5216_v37 = vpop.f32.mrf.mxu3  ;;  %v2337_v4 = vadd.f32 %v5145_v42, %v5563_v6 }
 0x2e5   : > { %v2761_v60 = vsel %vm1729_vm8, %v2468_v16, %v2680_v8  ;;  %v2335_v43 = vadd.f32 %v5106_v35, %v1647_v54  ;;  %v2200_v8 = vadd.f32 %v4934_v14, %v4735_v38 }
 0x2e6   : > { %3029 = vst.msk [vmem:[%s5024_s23 + $0x28] sm:$0xf] %vm3018_vm12, %v2996_v63  ;;  %v2793_v58 = vadd.f32 %v2761_v60, %v2336_v30 }
 0x2e7   : > { %v2572_v27 = vpop.f32.mrf.mxu0 }
 0x2e8   : > { %v2613_v19 = vadd.f32 %v2572_v27, %v2195_v0  ;;  %v2829_v40 = vadd.f32 %v5000_v9, %v2793_v58  ;;  %v5560_v27 = vld [vmem:[#allocation78_spill] sm:$0xff] }
 0x2ea   : > { %2703 = vrot.lane.b32.xlu2 %v2613_v19, %s3618_s15  ;;  %v2968_v33 = vadd.f32 %v2930_v24, %v2829_v40  ;;  %v2934_v10 = vpop.f32.mrf.mxu1  ;;  %v5218_v16 = vpop.f32.mrf.mxu2  ;;  %v5561_v40 = vld [vmem:[#allocation40_spill] sm:$0xff] }
 0x2eb   : > { %v2339_v3 = vadd.f32 %v2284_v45, %v5561_v40 }
 0x2ec   : > { %v3000_v32 = vpack.c.bf16 %v2968_v33, %v2968_v33  ;;  %v2676_v59 = vpop.permute.xlu0 %2675  ;;  %v2424_v49 = vpop.f32.mrf.mxu3 }
 0x2ed   : > { %v2759_v53 = vsel %vm1729_vm8, %v2466_v5, %v2676_v59  ;;  %v5562_v59 = vld [vmem:[#allocation74_spill] sm:$0xff] }
 0x2ee   : > { %3033 = vst.msk [vmem:[%s5024_s23 + $0x38] sm:$0xf] %vm3018_vm12, %v3000_v32  ;;  %v2791_v51 = vadd.f32 %v2759_v53, %v2334_v22  ;;  %v2469_v23 = vadd.f32 %v5143_v36, %v5562_v59 }
 0x2ef   : > { %v2574_v57 = vpop.f32.mrf.mxu0 }
 0x2f0   : > { %v2614_v15 = vadd.f32 %v2574_v57, %v2197_v55  ;;  %v2827_v26 = vadd.f32 %v5000_v9, %v2791_v51  ;;  %v2205_v57 = vadd.f32 %v4965_v50, %v4766_v52 }
 0x2f2   : > { %2705 = vrot.lane.b32.xlu0 %v2614_v15, %s3618_s15  ;;  %v2966_v21 = vadd.f32 %v2930_v24, %v2827_v26  ;;  %v2471_v24 = vadd.f32 %v2416_v47, %v5560_v27  ;;  %v2936_v19 = vpop.f32.mrf.mxu1  ;;  %v2292_v5 = vpop.f32.mrf.mxu2 }
 0x2f3   : > { %v5236_v56 = vadd.f32 %v5005_v44, %v2936_v19 }
 0x2f4   : > { %v2678_v31 = vpop.permute.xlu1 %2677  ;;  %v2998_v30 = vpack.c.bf16 %v2966_v21, %v2966_v21  ;;  %v5250_v41 = vpop.f32.mrf.mxu3  ;;  %v5565_v21 = vld [vmem:[#allocation38_spill] sm:$0xff] }
 0x2f5   : > { %v2760_v63 = vsel %vm1729_vm8, %v2467_v48, %v2678_v31  ;;  %v2470_v48 = vadd.f32 %v5162_v17, %v5564_v11  ;;  %v2338_v52 = vadd.f32 %v5166_v20, %v5565_v21  ;;  %v5566_v20 = vld [vmem:[#allocation84_spill] sm:$0xff]  ;;  %v5572_v11 = vld [vmem:[#allocation90_spill] sm:$0xff] }
 0x2f6   : > { %v2792_v0 = vadd.f32 %v2760_v63, %v2335_v43  ;;  %3031 = vst.msk [vmem:[%s5024_s23 + $0x30] sm:$0xf] %vm3018_vm12, %v2998_v30  ;;  %v2207_v30 = vadd.f32 %v4983_v62, %v4783_v28  ;;  %v2935_v63 = vadd.f32 %v5005_v44, %v2934_v10  ;;  %v5573_v21 = vld [vmem:[#allocation52_spill] sm:$0xff] }
 0x2f7   : > { %v2577_v13 = vpop.f32.mrf.mxu0 }
 0x2f8   : > { %v2828_v35 = vadd.f32 %v5000_v9, %v2792_v0  ;;  %v2615_v60 = vadd.f32 %v2577_v13, %v2200_v8 }
 0x2fa   : > { %v2967_v58 = vadd.f32 %v2932_v12, %v2828_v35  ;;  %2707 = vrot.lane.b32.xlu1 %v2615_v60, %s3618_s15  ;;  %v5253_v54 = vpop.f32.mrf.mxu2  ;;  %v2474_v60 = vadd.f32 %v2424_v49, %v5566_v20  ;;  %v2939_v27 = vpop.f32.mrf.mxu1  ;;  %v5569_v49 = vld [vmem:[#allocation42_spill] sm:$0xff] }
 0x2fc   : > { %v2999_v39 = vpack.c.bf16 %v2967_v58, %v2967_v58  ;;  %v2686_v38 = vpop.permute.xlu2 %2685  ;;  %v2429_v13 = vpop.f32.mrf.mxu3 }
 0x2fd   : > { %v2764_v14 = vsel %vm1729_vm8, %v2471_v24, %v2686_v38  ;;  %v5567_v24 = vld [vmem:[#allocation46_spill] sm:$0xff] }
 0x2fe   : > { %3032 = vst.msk [vmem:[%s5024_s23 + $0x34] sm:$0xf] %vm3018_vm12, %v2999_v39  ;;  %v2796_v33 = vadd.f32 %v2764_v14, %v2339_v3  ;;  %v2342_v28 = vadd.f32 %v2292_v5, %v5567_v24  ;;  %v2940_v3 = vadd.f32 %v5005_v44, %v2939_v27  ;;  %v5568_v14 = vld [vmem:[#allocation80_spill] sm:$0xff] }
 0x2ff   : > { %v2579_v47 = vpop.f32.mrf.mxu0 }
 0x300   : > { %v2616_v22 = vadd.f32 %v2579_v47, %v2202_v61  ;;  %v2832_v45 = vadd.f32 %v5000_v9, %v2796_v33  ;;  %v2472_v61 = vadd.f32 %v5194_v29, %v5568_v14  ;;  %v2340_v33 = vadd.f32 %v5199_v18, %v5569_v49  ;;  %v5571_v29 = vld [vmem:[#allocation44_spill] sm:$0xff]  ;;  %v5577_v14 = vld [vmem:[#allocation50_spill] sm:$0xff] }
 0x302   : > { %v2971_v32 = vadd.f32 %v5236_v56, %v2832_v45  ;;  %2709 = vrot.lane.b32.xlu2 %v2616_v22, %s3618_s15  ;;  %v2297_v58 = vpop.f32.mrf.mxu2 }
 0x304   : > { %v3003_v55 = vpack.c.bf16 %v2971_v32, %v2971_v32  ;;  %v2682_v53 = vpop.permute.xlu0 %2681  ;;  %v2431_v5 = vpop.f32.mrf.mxu3 }
 0x305   : > { %v2762_v51 = vsel %vm1729_vm8, %v2469_v23, %v2682_v53  ;;  %v2341_v53 = vadd.f32 %v5218_v16, %v5571_v29 }
 0x306   : > { %3036 = vst.msk [vmem:[%s5024_s23 + $0x44] sm:$0xf] %vm3018_vm12, %v3003_v55  ;;  %v2794_v15 = vadd.f32 %v2762_v51, %v2337_v4  ;;  %v5570_v4 = vld [vmem:[#allocation82_spill] sm:$0xff] }
 0x307   : > { %v2582_v26 = vpop.f32.mrf.mxu0  ;;  %v2473_v55 = vadd.f32 %v5216_v37, %v5570_v4  ;;  %v2941_v37 = vpop.f32.mrf.mxu1 }
 0x308   : > { %v2830_v25 = vadd.f32 %v5000_v9, %v2794_v15  ;;  %v2617_v36 = vadd.f32 %v2582_v26, %v2205_v57 }
 0x30a   : > { %v2969_v42 = vadd.f32 %v2932_v12, %v2830_v25  ;;  %2711 = vrot.lane.b32.xlu0 %v2617_v36, %s3618_s15  ;;  %v2299_v45 = vpop.f32.mrf.mxu2 }
 0x30c   : > { %v3001_v50 = vpack.c.bf16 %v2969_v42, %v2969_v42  ;;  %v2684_v43 = vpop.permute.xlu1 %2683  ;;  %v2434_v15 = vpop.f32.mrf.mxu3 }
 0x30d   : > { %v2763_v31 = vsel %vm1729_vm8, %v2470_v48, %v2684_v43  ;;  %v2477_v48 = vadd.f32 %v2431_v5, %v5572_v11 }
 0x30e   : > { %3034 = vst.msk [vmem:[%s5024_s23 + $0x3c] sm:$0xf] %vm3018_vm12, %v3001_v50  ;;  %v2795_v8 = vadd.f32 %v2763_v31, %v2338_v52  ;;  %v2345_v52 = vadd.f32 %v2299_v45, %v5573_v21  ;;  %v5579_v45 = vld [vmem:[#allocation60_spill] sm:$0xff] }
 0x30f   : > { %v2584_v12 = vpop.f32.mrf.mxu0 }
 0x310   : > { %v2831_v0 = vadd.f32 %v5000_v9, %v2795_v8  ;;  %v2618_v17 = vadd.f32 %v2584_v12, %v2207_v30  ;;  %v2942_v30 = vadd.f32 %v5005_v44, %v2941_v37 }
 0x312   : > { %v2970_v35 = vadd.f32 %v2935_v63, %v2831_v0  ;;  %2713 = vrot.lane.b32.xlu1 %v2618_v17, %s3618_s15  ;;  %v2302_v25 = vpop.f32.mrf.mxu2  ;;  %v5574_v0 = vld [vmem:[#allocation86_spill] sm:$0xff] }
 0x313   : > { %v2475_v17 = vadd.f32 %v5250_v41, %v5574_v0  ;;  %v2344_v41 = vadd.f32 %v2297_v58, %v5577_v14 }
 0x314   : > { %v3002_v62 = vpack.c.bf16 %v2970_v35, %v2970_v35  ;;  %v2692_v10 = vpop.permute.xlu2 %2691  ;;  %v5575_v35 = vld [vmem:[#allocation48_spill] sm:$0xff] }
 0x315   : > { %v2767_v19 = vsel %vm1729_vm8, %v2474_v60, %v2692_v10  ;;  %v2343_v20 = vadd.f32 %v5253_v54, %v5575_v35 }
 0x316   : > { %3035 = vst.msk [vmem:[%s5024_s23 + $0x40] sm:$0xf] %vm3018_vm12, %v3002_v62  ;;  %v2799_v40 = vadd.f32 %v2767_v19, %v2342_v28 }
 0x318   : > { %v2835_v39 = vadd.f32 %v5000_v9, %v2799_v40  ;;  %v5576_v40 = vld [vmem:[#allocation88_spill] sm:$0xff] }
 0x31a   : > { %v2974_v38 = vadd.f32 %v2940_v3, %v2835_v39  ;;  %v2304_v12 = vpop.f32.mrf.mxu2  ;;  %v2476_v39 = vadd.f32 %v2429_v13, %v5576_v40 }
 0x31c   : > { %v3006_v47 = vpack.c.bf16 %v2974_v38, %v2974_v38  ;;  %v2688_v22 = vpop.permute.xlu0 %2687 }
 0x31d   : > { %v2765_v32 = vsel %vm1729_vm8, %v2472_v61, %v2688_v22  ;;  %v5578_v22 = vld [vmem:[#allocation19_spill] sm:$0xff] }
 0x31e   : > { %3039 = vst.msk [vmem:[%s5024_s23 + $0x50] sm:$0xf] %vm3018_vm12, %v3006_v47  ;;  %v2797_v59 = vadd.f32 %v2765_v32, %v2340_v33  ;;  %v1680_v32 = vadd.f32 %v5579_v45, %v5578_v22 }
 0x320   : > { %v2833_v23 = vadd.f32 %v5000_v9, %v2797_v59 }
 0x322   : > { %v2972_v6 = vadd.f32 %v2935_v63, %v2833_v23  ;;  %v2436_v63 = vpop.f32.mrf.mxu3  ;;  %v2307_v38 = vpop.f32.mrf.mxu2 }
 0x323   : > { %v2944_v33 = vpop.f32.mrf.mxu1  ;;  %v2348_v23 = vadd.f32 %v2307_v38, %v1680_v32 }
 0x324   : > { %v3004_v18 = vpack.c.bf16 %v2972_v6, %v2972_v6  ;;  %v2690_v51 = vpop.permute.xlu1 %2689 }
 0x325   : > { %v2766_v57 = vsel %vm1729_vm8, %v2473_v55, %v2690_v51 }
 0x326   : > { %3037 = vst.msk [vmem:[%s5024_s23 + $0x48] sm:$0xf] %vm3018_vm12, %v3004_v18  ;;  %v2798_v26 = vadd.f32 %v2766_v57, %v2341_v53  ;;  %v2945_v18 = vadd.f32 %v5005_v44, %v2944_v33  ;;  %v5587_v33 = vld [vmem:[#allocation64_spill] sm:$0xff] }
 0x328   : > { %v2834_v36 = vadd.f32 %v5000_v9, %v2798_v26  ;;  %v5580_v26 = vld [vmem:[#allocation12_spill] sm:$0xff] }
 0x32a   : > { %v2973_v42 = vadd.f32 %v5236_v56, %v2834_v36  ;;  %v2439_v10 = vpop.f32.mrf.mxu3  ;;  %v2309_v55 = vpop.f32.mrf.mxu2 }
 0x32b   : > { %v2480_v13 = vadd.f32 %v2439_v10, %v4762_v1  ;;  %v2946_v51 = vpop.f32.mrf.mxu1 }
 0x32c   : > { %v3005_v16 = vpack.c.bf16 %v2973_v42, %v2973_v42  ;;  %v2698_v50 = vpop.permute.xlu2 %2697  ;;  %v2478_v42 = vadd.f32 %v2434_v15, %v4731_v46 }
 0x32d   : > { %v2770_v43 = vsel %vm1729_vm8, %v2477_v48, %v2698_v50 }
 0x32e   : > { %3038 = vst.msk [vmem:[%s5024_s23 + $0x4c] sm:$0xf] %vm3018_vm12, %v3005_v16  ;;  %v2802_v31 = vadd.f32 %v2770_v43, %v2345_v52 }
 0x330   : > { %v2838_v8 = vadd.f32 %v5000_v9, %v2802_v31 }
 0x332   : > { %v2977_v56 = vadd.f32 %v2942_v30, %v2838_v8  ;;  %v2441_v6 = vpop.f32.mrf.mxu3  ;;  %v2312_v50 = vpop.f32.mrf.mxu2  ;;  %v5583_v8 = vld [vmem:[#allocation57_spill] sm:$0xff] }
 0x333   : > { %v2949_v31 = vpop.f32.mrf.mxu1 }
 0x334   : > { %v3009_v60 = vpack.c.bf16 %v2977_v56, %v2977_v56  ;;  %v2694_v27 = vpop.permute.xlu0 %2693 }
 0x335   : > { %v2768_v24 = vsel %vm1729_vm8, %v2475_v17, %v2694_v27  ;;  %v5584_v17 = vld [vmem:[#allocation92_spill] sm:$0xff] }
 0x336   : > { %3042 = vst.msk [vmem:[%s5024_s23 + $0x5c] sm:$0xf] %vm3018_vm12, %v3009_v60  ;;  %v2800_v28 = vadd.f32 %v2768_v24, %v2343_v20  ;;  %v2479_v46 = vadd.f32 %v2436_v63, %v5584_v17  ;;  %v2947_v60 = vadd.f32 %v5005_v44, %v2946_v51  ;;  %v5585_v63 = vld [vmem:[#allocation31_spill] sm:$0xff] }
 0x338   : > { %v2836_v62 = vadd.f32 %v5000_v9, %v2800_v28 }
 0x33a   : > { %v2975_v19 = vadd.f32 %v2942_v30, %v2836_v62  ;;  %v2444_v52 = vpop.f32.mrf.mxu3  ;;  %v5582_v30 = vld [vmem:[#allocation16_spill] sm:$0xff]  ;;  %v2314_v62 = vpop.f32.mrf.mxu2 }
 0x33b   : > { %v1677_v56 = vadd.f32 %v5583_v8, %v5582_v30  ;;  %v2951_v40 = vpop.f32.mrf.mxu1  ;;  %v5591_v30 = vld [vmem:[#allocation94_spill] sm:$0xff] }
 0x33c   : > { %v3007_v61 = vpack.c.bf16 %v2975_v19, %v2975_v19  ;;  %v2696_v54 = vpop.permute.xlu1 %2695 }
 0x33d   : > { %v2769_v49 = vsel %vm1729_vm8, %v2476_v39, %v2696_v54  ;;  %v2347_v15 = vadd.f32 %v2304_v12, %v1677_v56  ;;  %v2351_v12 = vadd.f32 %v2314_v62, %v5585_v63  ;;  %v5592_v56 = vld [vmem:[#allocation35_spill] sm:$0xff] }
 0x33e   : > { %3040 = vst.msk [vmem:[%s5024_s23 + $0x54] sm:$0xf] %vm3018_vm12, %v3007_v61  ;;  %v2801_v5 = vadd.f32 %v2769_v49, %v2344_v41  ;;  %v2952_v61 = vadd.f32 %v5005_v44, %v2951_v40  ;;  %v5586_v49 = vld [vmem:[#allocation22_spill] sm:$0xff] }
 0x340   : > { %v2837_v47 = vadd.f32 %v5000_v9, %v2801_v5  ;;  %v1682_v5 = vadd.f32 %v5587_v33, %v5586_v49 }
 0x342   : > { %v2976_v59 = vadd.f32 %v2940_v3, %v2837_v47  ;;  %v5581_v3 = vld [vmem:[#allocation54_spill] sm:$0xff]  ;;  %v2446_v24 = vpop.f32.mrf.mxu3  ;;  %v2349_v45 = vadd.f32 %v2309_v55, %v1682_v5  ;;  %v2950_v55 = vadd.f32 %v5005_v44, %v2949_v31 }
 0x343   : > { %v1675_v36 = vadd.f32 %v5581_v3, %v5580_v26  ;;  %v2483_v19 = vadd.f32 %v2446_v24, %v4801_v2  ;;  %v5588_v2 = vld [vmem:[#allocation93_spill] sm:$0xff] }
 0x344   : > { %v3008_v58 = vpack.c.bf16 %v2976_v59, %v2976_v59  ;;  %v2704_v4 = vpop.permute.xlu2 %2703  ;;  %v2481_v22 = vadd.f32 %v2441_v6, %v5588_v2 }
 0x345   : > { %v2773_v29 = vsel %vm1729_vm8, %v2480_v13, %v2704_v4  ;;  %v2346_v11 = vadd.f32 %v2302_v25, %v1675_v36 }
 0x346   : > { %3041 = vst.msk [vmem:[%s5024_s23 + $0x58] sm:$0xf] %vm3018_vm12, %v3008_v58  ;;  %v2805_v53 = vadd.f32 %v2773_v29, %v2348_v23  ;;  %v2482_v29 = vadd.f32 %v2444_v52, %v4789_v34  ;;  %v2317_v34 = vpop.f32.mrf.mxu2 }
 0x348   : > { %v2841_v57 = vadd.f32 %v5000_v9, %v2805_v53  ;;  %v5589_v53 = vld [vmem:[#allocation28_spill] sm:$0xff] }
 0x34a   : > { %v2980_v1 = vadd.f32 %v2945_v18, %v2841_v57 }
 0x34c   : > { %v3012_v48 = vpack.c.bf16 %v2980_v1, %v2980_v1  ;;  %v2700_v37 = vpop.permute.xlu0 %2699 }
 0x34d   : > { %v2771_v21 = vsel %vm1729_vm8, %v2478_v42, %v2700_v37  ;;  %v2449_v42 = vpop.f32.mrf.mxu3 }
 0x34e   : > { %3045 = vst.msk [vmem:[%s5024_s23 + $0x68] sm:$0xf] %vm3018_vm12, %v3012_v48  ;;  %v2803_v16 = vadd.f32 %v2771_v21, %v2346_v11  ;;  %v2484_v11 = vadd.f32 %v2449_v42, %v4812_v7  ;;  %v5590_v48 = vld [vmem:[#allocation33_spill] sm:$0xff] }
 0x34f   : > { %v2352_v37 = vadd.f32 %v2317_v34, %v5590_v48 }
 0x350   : > { %v2839_v43 = vadd.f32 %v5000_v9, %v2803_v16 }
 0x352   : > { %v2978_v0 = vadd.f32 %v2945_v18, %v2839_v43  ;;  %v2350_v18 = vadd.f32 %v2312_v50, %v5589_v53  ;;  %v2319_v43 = vpop.f32.mrf.mxu2 }
 0x354   : > { %v3010_v25 = vpack.c.bf16 %v2978_v0, %v2978_v0  ;;  %v2702_v35 = vpop.permute.xlu1 %2701  ;;  %v2353_v0 = vadd.f32 %v2319_v43, %v5592_v56 }
 0x355   : > { %v2772_v20 = vsel %vm1729_vm8, %v2479_v46, %v2702_v35  ;;  %v2451_v16 = vpop.f32.mrf.mxu3 }
 0x356   : > { %3043 = vst.msk [vmem:[%s5024_s23 + $0x60] sm:$0xf] %vm3018_vm12, %v3010_v25  ;;  %v2804_v27 = vadd.f32 %v2772_v20, %v2347_v15  ;;  %v2485_v8 = vadd.f32 %v2451_v16, %v5591_v30 }
 0x358   : > { %v2840_v28 = vadd.f32 %v5000_v9, %v2804_v27 }
 0x35a   : > { %v2979_v10 = vadd.f32 %v2947_v60, %v2840_v28 }
 0x35c   : > { %v3011_v39 = vpack.c.bf16 %v2979_v10, %v2979_v10  ;;  %v2710_v38 = vpop.permute.xlu2 %2709 }
 0x35d   : > { %v2776_v14 = vsel %vm1729_vm8, %v2483_v19, %v2710_v38 }
 0x35e   : > { %3044 = vst.msk [vmem:[%s5024_s23 + $0x64] sm:$0xf] %vm3018_vm12, %v3011_v39  ;;  %v2808_v41 = vadd.f32 %v2776_v14, %v2351_v12 }
 0x360   : > { %v2844_v54 = vadd.f32 %v5000_v9, %v2808_v41 }
 0x362   : > { %v2983_v47 = vadd.f32 %v2952_v61, %v2844_v54 }
 0x364   : > { %v3015_v32 = vpack.c.bf16 %v2983_v47, %v2983_v47  ;;  %v2706_v59 = vpop.permute.xlu0 %2705 }
 0x365   : > { %v2774_v13 = vsel %vm1729_vm8, %v2481_v22, %v2706_v59 }
 0x366   : > { %3048 = vst.msk [vmem:[%s5024_s23 + $0x74] sm:$0xf] %vm3018_vm12, %v3015_v32  ;;  %v2806_v23 = vadd.f32 %v2774_v13, %v2349_v45 }
 0x368   : > { %v2842_v58 = vadd.f32 %v5000_v9, %v2806_v23 }
 0x36a   : > { %v2981_v4 = vadd.f32 %v2947_v60, %v2842_v58 }
 0x36c   : > { %v3013_v51 = vpack.c.bf16 %v2981_v4, %v2981_v4  ;;  %v2708_v57 = vpop.permute.xlu1 %2707 }
 0x36d   : > { %v2775_v6 = vsel %vm1729_vm8, %v2482_v29, %v2708_v57 }
 0x36e   : > { %3046 = vst.msk [vmem:[%s5024_s23 + $0x6c] sm:$0xf] %vm3018_vm12, %v3013_v51  ;;  %v2807_v26 = vadd.f32 %v2775_v6, %v2350_v18 }
 0x370   : > { %v2843_v3 = vadd.f32 %v5000_v9, %v2807_v26 }
 0x372   : > { %v2982_v36 = vadd.f32 %v2950_v55, %v2843_v3 }
 0x374   : > { %v3014_v1 = vpack.c.bf16 %v2982_v36, %v2982_v36 }
 0x376   : > { %3047 = vst.msk [vmem:[%s5024_s23 + $0x70] sm:$0xf] %vm3018_vm12, %v3014_v1 }
 0x37c   : > { %v2712_v21 = vpop.permute.xlu0 %2711 }
 0x37d   : > { %v2777_v52 = vsel %vm1729_vm8, %v2484_v11, %v2712_v21 }
 0x37e   : > { %v2809_v44 = vadd.f32 %v2777_v52, %v2352_v37 }
 0x380   : > { %v2845_v50 = vadd.f32 %v5000_v9, %v2809_v44 }
 0x382   : > { %v2984_v31 = vadd.f32 %v2950_v55, %v2845_v50 }
 0x384   : > { %v3016_v17 = vpack.c.bf16 %v2984_v31, %v2984_v31  ;;  %v2714_v46 = vpop.permute.xlu1 %2713 }
 0x385   : > { %v2778_v7 = vsel %vm1729_vm8, %v2485_v8, %v2714_v46 }
 0x386   : > { %3049 = vst.msk [vmem:[%s5024_s23 + $0x78] sm:$0xf] %vm3018_vm12, %v3016_v17  ;;  %v2810_v15 = vadd.f32 %v2778_v7, %v2353_v0 }
 0x388   : > { %v2846_v25 = vadd.f32 %v5000_v9, %v2810_v15 }
 0x38a   : > { %v2985_v35 = vadd.f32 %v2952_v61, %v2846_v25 }
 0x38c   : > { %v3017_v20 = vpack.c.bf16 %v2985_v35, %v2985_v35 }
 0x38e   : > { %3050 = vst.msk [vmem:[%s5024_s23 + $0x7c] sm:$0xf] %vm3018_vm12, %v3017_v20 }
 0x38f PF: > { %s21_s21 = sadd.s32 1, %s3615_s21   ;;  %s5593_s18 = sld [smem:[#allocation2_spill]] }
 0x390   : > { %p18_p13 = scmp.ge.s32.totalorder %s21_s21, 6   ;;  %s5594_s24 = sld [smem:[#allocation3_spill]] }
 0x391   : > { %s5595_s20 = sld [smem:[#allocation4_spill]]  ;;  %s5596_s17 = smov %s3607_s19 }
 0x392   :  { %20 = sbr.rel (!%p18_p13) target bundleno = 3 (0x3), region = 110 }
 0x396   : > { %s5597_s19 = smov %s5594_s24 }

</bundles_post_ra>
